<compile_context>
chip_gen: v7x
topology: tpu7x:2x2x1
jax: 0.10.0
libtpu: 0.0.40
codegen_flags: <defaults>
</compile_context>

<pallas_src>
import functools

import jax
import jax.numpy as jnp
from jax.experimental import pallas as pl
from jax.experimental.pallas import tpu as pltpu

BN_EPS = 1e-5
TM_E = 1024            # row tile for the two-pass (large-M) BN fallback


def _round_up(x, m):
    return (x + m - 1) // m * m


def _tpu_generation():
    try:
        kind = jax.devices()[0].device_kind.lower()
    except Exception:
        return 0
    for gen in (7, 6, 5, 4, 3, 2):
        if f"v{gen}" in kind:
            return gen
    return 0


_GEN = _tpu_generation()

if _GEN >= 7:
    # v7x: 256-wide MXU but only 64 MiB VMEM and 2 TensorCores -> smaller
    # single-block BN cap so large slabs take the parallel two-pass path.
    TN, MAX_TM, FULL_N_MAX = 256, 512, 512
    MATMUL_VMEM_BUDGET = 24 << 20
    FUSED_BN_MAX_ELEMS = 1 << 20
    VMEM_CAP = 56 << 20
elif _GEN == 6:
    # v6e: 256-wide MXU, 128 MiB VMEM (32 MiB scoped default).
    TN, MAX_TM, FULL_N_MAX = 256, 512, 1024
    MATMUL_VMEM_BUDGET = 48 << 20
    FUSED_BN_MAX_ELEMS = 4 << 20
    VMEM_CAP = 112 << 20
elif _GEN == 5:
    # v5e/v5p: 128-wide MXU tiles, scoped-VMEM default is only 16 MiB.
    TN, MAX_TM, FULL_N_MAX = 128, 512, 1024
    MATMUL_VMEM_BUDGET = 28 << 20
    FUSED_BN_MAX_ELEMS = 2 << 20
    VMEM_CAP = 100 << 20
else:
    # Unknown / older chip: conservative, never override the vmem limit.
    TN, MAX_TM, FULL_N_MAX = 128, 256, 512
    MATMUL_VMEM_BUDGET = 8 << 20
    FUSED_BN_MAX_ELEMS = 256 << 10
    VMEM_CAP = 0


def _vmem_limit(est_bytes):
    """Explicit vmem_limit_bytes only when the working set may exceed the
    scoped default; otherwise leave the compiler default."""
    if VMEM_CAP and est_bytes > (12 << 20):
        return int(min(max(2 * est_bytes, 32 << 20), VMEM_CAP))
    return None


# --------------------------------------------------------------------------
# Pallas kernels
# --------------------------------------------------------------------------
def matmul_kernel(a_ref, b_ref, o_ref):
    # bf16 x bf16 -> f32 on the MXU; full K in one block => no accumulator.
    o_ref[...] = jnp.dot(a_ref[...], b_ref[...],
                         preferred_element_type=jnp.float32).astype(o_ref.dtype)


def matmul_tanh_kernel(a_ref, b_ref, o_ref):
    # Last layer: Tanh fused into the matmul epilogue (EUP slot; no extra pass).
    o_ref[...] = jnp.tanh(
        jnp.dot(a_ref[...], b_ref[...],
                preferred_element_type=jnp.float32)).astype(o_ref.dtype)


def bn_relu_fused_kernel(x_ref, gamma_ref, beta_ref, o_ref, *, m_valid, m_pad, eps):
    # Whole (Mp, Cp) slab VMEM-resident: batch stats + normalize + ReLU in one
    # HBM read/write.  Padded rows are exactly zero, so their contribution to
    # sum((x-mean)^2) is exactly m_pad*mean^2 and is subtracted analytically
    # (no iota/compare/select masking pass over the slab).
    x = x_ref[...].astype(jnp.float32)
    inv_m = 1.0 / m_valid
    mean = jnp.sum(x, axis=0, keepdims=True) * inv_m
    d = x - mean
    var = (jnp.sum(d * d, axis=0, keepdims=True) - m_pad * mean * mean) * inv_m
    var = jnp.maximum(var, 0.0)
    scale = gamma_ref[...] * jax.lax.rsqrt(var + eps)
    # (x - mean) * scale + beta  ==  x * scale + shift ; reuses `d`.
    o_ref[...] = jnp.maximum(d * scale + beta_ref[...], 0.0).astype(o_ref.dtype)


def stats_kernel(x_ref, s_ref, ss_ref):
    # Fallback path (large M): per-channel sum / sum-of-squares over big M tiles.
    @pl.when(pl.program_id(0) == 0)
    def _():
        s_ref[...] = jnp.zeros_like(s_ref)
        ss_ref[...] = jnp.zeros_like(ss_ref)

    x = x_ref[...].astype(jnp.float32)
    s_ref[...] += jnp.sum(x, axis=0, keepdims=True)
    ss_ref[...] += jnp.sum(x * x, axis=0, keepdims=True)


def bn_relu_kernel(x_ref, scale_ref, shift_ref, o_ref):
    o_ref[...] = jnp.maximum(
        x_ref[...].astype(jnp.float32) * scale_ref[...] + shift_ref[...],
        0.0).astype(o_ref.dtype)


# --------------------------------------------------------------------------
# Pallas wrappers
# --------------------------------------------------------------------------
def pallas_matmul(a, b, fuse_tanh=False, out_dtype=jnp.float32):
    """(M, K) @ (K, N) with bf16 inputs / f32 accumulation -> padded (Mp, Np).

    K always fits one block after the sub-pixel lowering, so there is no K
    grid axis.  When padded N fits the per-chip budget, the N axis is also
    collapsed: weights become VMEM-resident (single DMA) and the output store
    is much wider than 128 lanes."""
    M, K = a.shape
    K2, N = b.shape
    Kp = _round_up(max(K, K2), 128)
    tm = min(MAX_TM, _round_up(M, 8))
    Mp = _round_up(M, tm)
    out_bytes = jnp.dtype(out_dtype).itemsize

    def vmem_est(n_tile):
        return (2 * tm * Kp * 2        # a, double-buffered bf16
                + 2 * Kp * n_tile * 2  # b
                + 2 * tm * n_tile * out_bytes)

    Np = _round_up(N, 128)
    full_n = Np <= FULL_N_MAX and vmem_est(Np) <= MATMUL_VMEM_BUDGET
    if not full_n:
        Np = _round_up(N, TN)

    a = jnp.pad(a.astype(jnp.bfloat16), ((0, Mp - M), (0, Kp - K)))
    b = jnp.pad(b.astype(jnp.bfloat16), ((0, Kp - K2), (0, Np - N)))
    kernel = matmul_tanh_kernel if fuse_tanh else matmul_kernel

    cost = pl.CostEstimate(
        flops=2 * Mp * Kp * Np,
        transcendentals=Mp * Np if fuse_tanh else 0,
        bytes_accessed=Mp * Kp * 2 + Kp * Np * 2 + Mp * Np * out_bytes)

    if full_n:
        grid = (Mp // tm,)
        in_specs = [pl.BlockSpec((tm, Kp), lambda i: (i, 0)),
                    pl.BlockSpec((Kp, Np), lambda i: (0, 0))]   # VMEM-resident weights
        out_specs = pl.BlockSpec((tm, Np), lambda i: (i, 0))
        sem = ("parallel",)
        est = vmem_est(Np)
    else:
        grid = (Mp // tm, Np // TN)
        in_specs = [pl.BlockSpec((tm, Kp), lambda i, j: (i, 0)),
                    pl.BlockSpec((Kp, TN), lambda i, j: (0, j))]
        out_specs = pl.BlockSpec((tm, TN), lambda i, j: (i, j))
        sem = ("parallel", "parallel")
        est = vmem_est(TN)

    return pl.pallas_call(
        kernel,
        out_shape=jax.ShapeDtypeStruct((Mp, Np), out_dtype),
        grid_spec=pltpu.PrefetchScalarGridSpec(
            num_scalar_prefetch=0, grid=grid,
            in_specs=in_specs, out_specs=out_specs),
        compiler_params=pltpu.CompilerParams(
            dimension_semantics=sem, vmem_limit_bytes=_vmem_limit(est)),
        cost_estimate=cost,
    )(a, b)


def pallas_bn_relu(y_flat, gamma, beta, eps=BN_EPS):
    """BatchNorm2d (training-mode batch statistics) + ReLU over a (M, C) slab.
    Emits bfloat16 (the consuming matmul casts to bf16 anyway)."""
    M, C = y_flat.shape
    Cp = _round_up(C, 128)
    in_bytes = jnp.dtype(y_flat.dtype).itemsize
    # gamma/beta are zero-padded so padded channel columns come out exactly 0.
    gamma_p = jnp.pad(gamma, (0, Cp - C)).reshape(1, Cp)
    beta_p = jnp.pad(beta, (0, Cp - C)).reshape(1, Cp)

    Mp8 = _round_up(M, 8)
    if Mp8 * Cp <= FUSED_BN_MAX_ELEMS:
        Mp = Mp8
        x_p = jnp.pad(y_flat, ((0, Mp - M), (0, Cp - C)))
        est = Mp * Cp * (2 * in_bytes + 2 * 2 + 12)   # buffers + f32 temporaries
        out = pl.pallas_call(
            functools.partial(bn_relu_fused_kernel,
                              m_valid=float(M), m_pad=float(Mp - M), eps=eps),
            out_shape=jax.ShapeDtypeStruct((Mp, Cp), jnp.bfloat16),
            grid_spec=pltpu.PrefetchScalarGridSpec(
                num_scalar_prefetch=0, grid=(1,),
                in_specs=[pl.BlockSpec((Mp, Cp), lambda i: (0, 0)),
                          pl.BlockSpec((1, Cp), lambda i: (0, 0)),
                          pl.BlockSpec((1, Cp), lambda i: (0, 0))],
                out_specs=pl.BlockSpec((Mp, Cp), lambda i: (0, 0))),
            compiler_params=pltpu.CompilerParams(
                dimension_semantics=("arbitrary",),
                vmem_limit_bytes=_vmem_limit(est)),
            cost_estimate=pl.CostEstimate(
                flops=10 * Mp * Cp, transcendentals=Cp,
                bytes_accessed=Mp * Cp * (in_bytes + 2) + 2 * Cp * 4),
        )(x_p, gamma_p, beta_p)
        return out[:M, :C]

    # Large-M fallback: two passes with big HBM-roofline-friendly tiles.
    # TODO(synk): the one-shot E[x^2]-E[x]^2 variance here is more cancellation
    # prone than the fused path's centered sum; acceptable at BN scales.
    Mp = _round_up(M, TM_E)
    x_p = jnp.pad(y_flat, ((0, Mp - M), (0, Cp - C)))
    s, ss = pl.pallas_call(
        stats_kernel,
        out_shape=(jax.ShapeDtypeStruct((1, Cp), jnp.float32),
                   jax.ShapeDtypeStruct((1, Cp), jnp.float32)),
        grid_spec=pltpu.PrefetchScalarGridSpec(
            num_scalar_prefetch=0, grid=(Mp // TM_E,),
            in_specs=[pl.BlockSpec((TM_E, Cp), lambda i: (i, 0))],
            out_specs=(pl.BlockSpec((1, Cp), lambda i: (0, 0)),
                       pl.BlockSpec((1, Cp), lambda i: (0, 0)))),
        compiler_params=pltpu.CompilerParams(dimension_semantics=("arbitrary",)),
        cost_estimate=pl.CostEstimate(
            flops=3 * Mp * Cp, transcendentals=0,
            bytes_accessed=Mp * Cp * in_bytes + 2 * Cp * 4),
    )(x_p)
    mean = s / M
    var = jnp.maximum(ss / M - mean * mean, 0.0)
    scale = gamma_p * jax.lax.rsqrt(var + eps)
    shift = beta_p - mean * scale
    out = pl.pallas_call(
        bn_relu_kernel,
        out_shape=jax.ShapeDtypeStruct((Mp, Cp), jnp.bfloat16),
        grid_spec=pltpu.PrefetchScalarGridSpec(
            num_scalar_prefetch=0, grid=(Mp // TM_E,),
            in_specs=[pl.BlockSpec((TM_E, Cp), lambda i: (i, 0)),
                      pl.BlockSpec((1, Cp), lambda i: (0, 0)),
                      pl.BlockSpec((1, Cp), lambda i: (0, 0))],
            out_specs=pl.BlockSpec((TM_E, Cp), lambda i: (i, 0))),
        compiler_params=pltpu.CompilerParams(dimension_semantics=("parallel",)),
        cost_estimate=pl.CostEstimate(
            flops=3 * Mp * Cp, transcendentals=0,
            bytes_accessed=Mp * Cp * (in_bytes + 2) + 2 * Cp * 4),
    )(x_p, scale, shift)
    return out[:M, :C]


# --------------------------------------------------------------------------
# ConvTranspose2d lowerings (glue in XLA; hot path is the Pallas matmul)
# --------------------------------------------------------------------------
def convt_k4s1p0_from_1x1(x_nhwc, w, out_dtype=jnp.bfloat16):
    """ConvTranspose2d(Cin, Cout, K, stride=1, pad=0) on a 1x1 latent:
       out[n, kh, kw, co] = sum_ci x[n, ci] * w[ci, co, kh, kw]."""
    N, H, W, Cin = x_nhwc.shape
    assert H == 1 and W == 1, "first DCGAN layer expects a 1x1 latent"
    # TODO(synk): general stride-1 spatial inputs (H, W > 1) would need an im2col path.
    _, Cout, KH, KW = w.shape
    wm = jnp.transpose(w, (0, 2, 3, 1)).reshape(Cin, KH * KW * Cout)
    out_p = pallas_matmul(x_nhwc.reshape(N, Cin), wm, out_dtype=out_dtype)
    return out_p[:N, :KH * KW * Cout].reshape(N, KH, KW, Cout)


def convt_k4s2p1(x_nhwc, w, fuse_tanh=False, out_dtype=jnp.bfloat16):
    """ConvTranspose2d(Cin, Cout, 4, stride=2, pad=1) via sub-pixel (phase)
    decomposition: one stride-1 2x2 conv with 4 phase-stacked output channel
    groups followed by a pixel shuffle.  All XLA glue stays in bfloat16."""
    # TODO(synk): the 2x2-tap im2col (4x duplicated K) and the pixel shuffle are
    # still XLA-side copies; a fully fused variant would gather taps with
    # shifted in-kernel slices and scatter phases via a 6-D out BlockSpec.
    N, H, W, Cin = x_nhwc.shape
    _, Cout, K, _ = w.shape
    assert K == 4

    xp = jnp.pad(x_nhwc.astype(jnp.bfloat16), ((0, 0), (1, 1), (1, 1), (0, 0)))
    # 2x2-tap patches over the (H+1) x (W+1) window grid, K_red = 4*Cin.
    cols = [xp[:, ty:ty + H + 1, tx:tx + W + 1, :]
            for ty in range(2) for tx in range(2)]
    patches = jnp.concatenate(cols, axis=-1).reshape(N * (H + 1) * (W + 1), 4 * Cin)

    # Phase (ry, rx) uses kernel taps w[..., 3 - ry - 2*ty, 3 - rx - 2*tx];
    # phases are stacked along output channels (column block 2*ry + rx).
    blocks = []
    for ry in range(2):
        for rx in range(2):
            taps = [w[:, :, 3 - ry - 2 * ty, 3 - rx - 2 * tx]
                    for ty in range(2) for tx in range(2)]
            blocks.append(jnp.concatenate(taps, axis=0))          # (4*Cin, Cout)
    wm = jnp.concatenate(blocks, axis=1)                          # (4*Cin, 4*Cout)

    out_p = pallas_matmul(patches, wm, fuse_tanh=fuse_tanh, out_dtype=out_dtype)
    mm = out_p[:N * (H + 1) * (W + 1), :4 * Cout]
    mm = mm.reshape(N, H + 1, W + 1, 4, Cout)

    # Pixel shuffle: out[n, 2y+ry, 2x+rx, c] = mm[n, y+ry, x+rx, 2*ry+rx, c]
    p00 = mm[:, 0:H, 0:W, 0, :]
    p01 = mm[:, 0:H, 1:W + 1, 1, :]
    p10 = mm[:, 1:H + 1, 0:W, 2, :]
    p11 = mm[:, 1:H + 1, 1:W + 1, 3, :]
    row0 = jnp.stack([p00, p01], axis=3)          # (N, H, W, 2, C)
    row1 = jnp.stack([p10, p11], axis=3)
    y = jnp.stack([row0, row1], axis=2)           # (N, H, 2, W, 2, C)
    return y.reshape(N, 2 * H, 2 * W, Cout)


# --------------------------------------------------------------------------
# Generator (DCGAN) forward
# --------------------------------------------------------------------------
def layer_specs(nz, ngf, nc):
    # (cin, cout, k, stride, pad) for the DCGAN generator
    return ((nz, ngf * 8, 4, 1, 0),
            (ngf * 8, ngf * 4, 4, 2, 1),
            (ngf * 4, ngf * 2, 4, 2, 1),
            (ngf * 2, ngf, 4, 2, 1),
            (ngf, nc, 4, 2, 1))


def init_params(key, specs):
    layers = []
    for i, (cin, cout, k, s, p) in enumerate(specs):
        key, wk = jax.random.split(key)
        layer = {"w": jax.random.normal(wk, (cin, cout, k, k), jnp.float32) * 0.02}
        if i < len(specs) - 1:       # BatchNorm2d affine params (default init)
            layer["gamma"] = jnp.ones((cout,), jnp.float32)
            layer["beta"] = jnp.zeros((cout,), jnp.float32)
        layers.append(layer)
    return layers


@functools.partial(jax.jit, static_argnums=(2,))
def generator_forward(x_nchw, layers, specs):
    # TODO(synk): nn.parallel.data_parallel (multi-GPU dispatch branch) has no
    # Pallas equivalent; the single-device path is implemented.
    x = jnp.transpose(x_nchw, (0, 2, 3, 1)).astype(jnp.bfloat16)  # NCHW -> NHWC
    n_layers = len(specs)
    for li, (layer, spec) in enumerate(zip(layers, specs)):
        _, _, k, stride, pad = spec
        last = li == n_layers - 1
        out_dtype = jnp.float32 if last else jnp.bfloat16
        if stride == 1:
            y = convt_k4s1p0_from_1x1(x, layer["w"], out_dtype=out_dtype)
        else:
            y = convt_k4s2p1(x, layer["w"], fuse_tanh=last, out_dtype=out_dtype)
        if not last:
            N, OH, OW, C = y.shape
            y = pallas_bn_relu(y.reshape(N * OH * OW, C),
                               layer["gamma"], layer["beta"]).reshape(N, OH, OW, C)
        x = y
    return jnp.transpose(x, (0, 3, 1, 2)).astype(jnp.float32)     # NHWC -> NCHW


# --------------------------------------------------------------------------
# Pure-JAX reference (for correctness check only)
# --------------------------------------------------------------------------
def _convt_ref(x, w, stride, pad):
    cin, cout, k, _ = w.shape
    wr = jnp.flip(jnp.transpose(w, (1, 0, 2, 3)), axis=(2, 3))    # (Cout, Cin, K, K)
    p = k - 1 - pad
    return jax.lax.conv_general_dilated(
        x, wr, window_strides=(1, 1), padding=[(p, p), (p, p)],
        lhs_dilation=(stride, stride),
        dimension_numbers=("NCHW", "OIHW", "NCHW"),
        precision=jax.lax.Precision.HIGHEST)


def generator_ref(x, layers, specs, eps=BN_EPS):
    for li, (layer, spec) in enumerate(zip(layers, specs)):
        _, _, k, stride, pad = spec
        x = _convt_ref(x, layer["w"], stride, pad)
        if li < len(specs) - 1:
            mean = jnp.mean(x, axis=(0, 2, 3), keepdims=True)
            var = jnp.mean(jnp.square(x - mean), axis=(0, 2, 3), keepdims=True)
            g = layer["gamma"].reshape(1, -1, 1, 1)
            b = layer["beta"].reshape(1, -1, 1, 1)
            x = jnp.maximum((x - mean) * jax.lax.rsqrt(var + eps) * g + b, 0.0)
        else:
            x = jnp.tanh(x)
    return x


if __name__ == "__main__":
    config = {"ngpu": 1, "nz": 16, "ngf": 8, "nc": 3}
    specs = layer_specs(config["nz"], config["ngf"], config["nc"])
    key = jax.random.PRNGKey(0)
    kp, kx = jax.random.split(key)
    layers = init_params(kp, specs)
    x = jax.random.normal(kx, (2, config["nz"], 1, 1), jnp.float32)

    out = generator_forward(x, layers, specs)
    out = jax.block_until_ready(out)
    assert out.shape == (2, config["nc"], 64, 64), out.shape
    assert bool(jnp.all(jnp.isfinite(out)))

    # Tolerance-check against a pure-JAX f32 reference (kernel runs bf16
    # matmuls and keeps bf16 inter-layer slabs).
    ref = generator_ref(x, layers, specs)
    err = float(jnp.max(jnp.abs(out - ref)))
    assert err < 0.2, f"max abs error vs reference: {err}"

    print("KERNEL_OK")
</pallas_src>

<mosaic_0001>
module attributes {stable_mosaic.version = 11 : i64} {
  func.func @matmul_kernel(%arg0: i32, %arg1: i32, %arg2: memref<8x128xbf16, #tpu.memory_space<vmem>>, %arg3: memref<128x128xbf16, #tpu.memory_space<vmem>>, %arg4: memref<8x128xbf16, #tpu.memory_space<vmem>>) attributes {dimension_semantics = [#tpu.dimension_semantics<parallel>, #tpu.dimension_semantics<parallel>], iteration_bounds = array<i64: 1, 8>, scalar_prefetch = 0 : i64, scratch_operands = 0 : i64, tpu.core_type = #tpu.core_type<tc>, window_params = [{transform_indices = @transform_0, window_bounds = array<i64: 8, 128>}, {transform_indices = @transform_1, window_bounds = array<i64: 128, 128>}, {transform_indices = @transform_2, window_bounds = array<i64: 8, 128>}]} {
    %c0 = arith.constant 0 : index
    %c0_0 = arith.constant 0 : index
    %0 = vector.load %arg2[%c0, %c0_0] : memref<8x128xbf16, #tpu.memory_space<vmem>>, vector<8x128xbf16>
    %c0_1 = arith.constant 0 : index
    %c0_2 = arith.constant 0 : index
    %1 = vector.load %arg3[%c0_1, %c0_2] : memref<128x128xbf16, #tpu.memory_space<vmem>>, vector<128x128xbf16>
    %cst = arith.constant dense<0.000000e+00> : vector<8x128xf32>
    %2 = tpu.matmul %0, %1, %cst {dimension_numbers = #tpu.dot_dimension_numbers<[1], [0], [0], [1], [0, 0, 1, 1], [], []>} : vector<8x128xbf16>, vector<128x128xbf16>, vector<8x128xf32> -> vector<8x128xf32>
    %3 = arith.truncf %2 : vector<8x128xf32> to vector<8x128xbf16>
    %c0_3 = arith.constant 0 : index
    %c0_4 = arith.constant 0 : index
    %4 = vector.load %arg4[%c0_3, %c0_4] : memref<8x128xbf16, #tpu.memory_space<vmem>>, vector<8x128xbf16>
    tpu.vector_store %arg4[%c0_3, %c0_4], %3 {strides = array<i32>} : memref<8x128xbf16, #tpu.memory_space<vmem>>, vector<8x128xbf16>,
    return
  }
  func.func @transform_0(%arg0: i32, %arg1: i32) -> (i32, i32) {
    %c0_i32 = arith.constant 0 : i32
    %c0_i32_0 = arith.constant 0 : i32
    return %arg0, %c0_i32 : i32, i32
  }
  func.func @transform_1(%arg0: i32, %arg1: i32) -> (i32, i32) {
    %c0_i32 = arith.constant 0 : i32
    %c0_i32_0 = arith.constant 0 : i32
    return %c0_i32, %arg1 : i32, i32
  }
  func.func @transform_2(%arg0: i32, %arg1: i32) -> (i32, i32) {
    %c0_i32 = arith.constant 0 : i32
    return %arg0, %arg1 : i32, i32
  }
}

module attributes {stable_mosaic.version = 11 : i64} {
  func.func @bn_relu_fused_kernel(%arg0: i32, %arg1: memref<32x128xbf16, #tpu.memory_space<vmem>>, %arg2: memref<1x128xf32, #tpu.memory_space<vmem>>, %arg3: memref<1x128xf32, #tpu.memory_space<vmem>>, %arg4: memref<32x128xbf16, #tpu.memory_space<vmem>>) attributes {dimension_semantics = [#tpu.dimension_semantics<arbitrary>], iteration_bounds = array<i64: 1>, scalar_prefetch = 0 : i64, scratch_operands = 0 : i64, tpu.core_type = #tpu.core_type<tc>, window_params = [{pipeline_mode = #tpu.pipeline_mode<synchronous>, transform_indices = @transform_0, window_bounds = array<i64: 32, 128>}, {pipeline_mode = #tpu.pipeline_mode<synchronous>, transform_indices = @transform_1, window_bounds = array<i64: 1, 128>}, {pipeline_mode = #tpu.pipeline_mode<synchronous>, transform_indices = @transform_2, window_bounds = array<i64: 1, 128>}, {pipeline_mode = #tpu.pipeline_mode<synchronous>, transform_indices = @transform_3, window_bounds = array<i64: 32, 128>}]} {
    %c0 = arith.constant 0 : index
    %c0_0 = arith.constant 0 : index
    %0 = vector.load %arg1[%c0, %c0_0] : memref<32x128xbf16, #tpu.memory_space<vmem>>, vector<32x128xbf16>
    %1 = arith.extf %0 : vector<32x128xbf16> to vector<32x128xf32>
    %cst = arith.constant dense<0.000000e+00> : vector<128xf32>
    %2 = vector.multi_reduction <add>, %1, %cst [0] : vector<32x128xf32> to vector<128xf32>
    %3 = vector.shape_cast %2 : vector<128xf32> to vector<1x128xf32>
    %cst_1 = arith.constant 3.125000e-02 : f32
    %4 = vector.broadcast %cst_1 : f32 to vector<1x128xf32>
    %5 = arith.mulf %3, %4 : vector<1x128xf32>
    %6 = vector.broadcast %5 : vector<1x128xf32> to vector<32x128xf32>
    %7 = arith.subf %1, %6 : vector<32x128xf32>
    %8 = arith.mulf %7, %7 : vector<32x128xf32>
    %cst_2 = arith.constant dense<0.000000e+00> : vector<128xf32>
    %9 = vector.multi_reduction <add>, %8, %cst_2 [0] : vector<32x128xf32> to vector<128xf32>
    %10 = vector.shape_cast %9 : vector<128xf32> to vector<1x128xf32>
    %cst_3 = arith.constant 0.000000e+00 : f32
    %11 = vector.broadcast %cst_3 : f32 to vector<1x128xf32>
    %12 = arith.mulf %11, %5 : vector<1x128xf32>
    %13 = arith.mulf %12, %5 : vector<1x128xf32>
    %14 = arith.subf %10, %13 : vector<1x128xf32>
    %cst_4 = arith.constant 3.125000e-02 : f32
    %15 = vector.broadcast %cst_4 : f32 to vector<1x128xf32>
    %16 = arith.mulf %14, %15 : vector<1x128xf32>
    %cst_5 = arith.constant 0.000000e+00 : f32
    %17 = vector.broadcast %cst_5 : f32 to vector<1x128xf32>
    %18 = arith.maximumf %16, %17 : vector<1x128xf32>
    %c0_6 = arith.constant 0 : index
    %c0_7 = arith.constant 0 : index
    %19 = vector.load %arg2[%c0_6, %c0_7] : memref<1x128xf32, #tpu.memory_space<vmem>>, vector<1x128xf32>
    %cst_8 = arith.constant 9.99999974E-6 : f32
    %20 = vector.broadcast %cst_8 : f32 to vector<1x128xf32>
    %21 = arith.addf %18, %20 : vector<1x128xf32>
    %22 = math.rsqrt %21 : vector<1x128xf32>
    %23 = arith.mulf %19, %22 : vector<1x128xf32>
    %24 = vector.broadcast %23 : vector<1x128xf32> to vector<32x128xf32>
    %25 = arith.mulf %7, %24 : vector<32x128xf32>
    %c0_9 = arith.constant 0 : index
    %c0_10 = arith.constant 0 : index
    %26 = vector.load %arg3[%c0_9, %c0_10] : memref<1x128xf32, #tpu.memory_space<vmem>>, vector<1x128xf32>
    %27 = vector.broadcast %26 : vector<1x128xf32> to vector<32x128xf32>
    %28 = arith.addf %25, %27 : vector<32x128xf32>
    %cst_11 = arith.constant 0.000000e+00 : f32
    %29 = vector.broadcast %cst_11 : f32 to vector<32x128xf32>
    %30 = arith.maximumf %28, %29 : vector<32x128xf32>
    %31 = arith.truncf %30 : vector<32x128xf32> to vector<32x128xbf16>
    %c0_12 = arith.constant 0 : index
    %c0_13 = arith.constant 0 : index
    %32 = vector.load %arg4[%c0_12, %c0_13] : memref<32x128xbf16, #tpu.memory_space<vmem>>, vector<32x128xbf16>
    tpu.vector_store %arg4[%c0_12, %c0_13], %31 {strides = array<i32>} : memref<32x128xbf16, #tpu.memory_space<vmem>>, vector<32x128xbf16>,
    return
  }
  func.func @transform_0(%arg0: i32) -> (i32, i32) {
    %c0_i32 = arith.constant 0 : i32
    %c0_i32_0 = arith.constant 0 : i32
    %c0_i32_1 = arith.constant 0 : i32
    return %c0_i32, %c0_i32_0 : i32, i32
  }
  func.func @transform_1(%arg0: i32) -> (i32, i32) {
    %c0_i32 = arith.constant 0 : i32
    %c0_i32_0 = arith.constant 0 : i32
    %c0_i32_1 = arith.constant 0 : i32
    return %c0_i32, %c0_i32_0 : i32, i32
  }
  func.func @transform_2(%arg0: i32) -> (i32, i32) {
    %c0_i32 = arith.constant 0 : i32
    %c0_i32_0 = arith.constant 0 : i32
    %c0_i32_1 = arith.constant 0 : i32
    return %c0_i32, %c0_i32_0 : i32, i32
  }
  func.func @transform_3(%arg0: i32) -> (i32, i32) {
    %c0_i32 = arith.constant 0 : i32
    %c0_i32_0 = arith.constant 0 : i32
    %c0_i32_1 = arith.constant 0 : i32
    return %c0_i32, %c0_i32_0 : i32, i32
  }
}

module attributes {stable_mosaic.version = 11 : i64} {
  func.func @matmul_kernel(%arg0: i32, %arg1: memref<56x256xbf16, #tpu.memory_space<vmem>>, %arg2: memref<256x128xbf16, #tpu.memory_space<vmem>>, %arg3: memref<56x128xbf16, #tpu.memory_space<vmem>>) attributes {dimension_semantics = [#tpu.dimension_semantics<parallel>], iteration_bounds = array<i64: 1>, scalar_prefetch = 0 : i64, scratch_operands = 0 : i64, tpu.core_type = #tpu.core_type<tc>, window_params = [{transform_indices = @transform_0, window_bounds = array<i64: 56, 256>}, {pipeline_mode = #tpu.pipeline_mode<synchronous>, transform_indices = @transform_1, window_bounds = array<i64: 256, 128>}, {transform_indices = @transform_2, window_bounds = array<i64: 56, 128>}]} {
    %c0 = arith.constant 0 : index
    %c0_0 = arith.constant 0 : index
    %0 = vector.load %arg1[%c0, %c0_0] : memref<56x256xbf16, #tpu.memory_space<vmem>>, vector<56x256xbf16>
    %c0_1 = arith.constant 0 : index
    %c0_2 = arith.constant 0 : index
    %1 = vector.load %arg2[%c0_1, %c0_2] : memref<256x128xbf16, #tpu.memory_space<vmem>>, vector<256x128xbf16>
    %cst = arith.constant dense<0.000000e+00> : vector<56x128xf32>
    %2 = tpu.matmul %0, %1, %cst {dimension_numbers = #tpu.dot_dimension_numbers<[1], [0], [0], [1], [0, 0, 1, 1], [], []>} : vector<56x256xbf16>, vector<256x128xbf16>, vector<56x128xf32> -> vector<56x128xf32>
    %3 = arith.truncf %2 : vector<56x128xf32> to vector<56x128xbf16>
    %c0_3 = arith.constant 0 : index
    %c0_4 = arith.constant 0 : index
    %4 = vector.load %arg3[%c0_3, %c0_4] : memref<56x128xbf16, #tpu.memory_space<vmem>>, vector<56x128xbf16>
    tpu.vector_store %arg3[%c0_3, %c0_4], %3 {strides = array<i32>} : memref<56x128xbf16, #tpu.memory_space<vmem>>, vector<56x128xbf16>,
    return
  }
  func.func @transform_0(%arg0: i32) -> (i32, i32) {
    %c0_i32 = arith.constant 0 : i32
    %c0_i32_0 = arith.constant 0 : i32
    return %arg0, %c0_i32 : i32, i32
  }
  func.func @transform_1(%arg0: i32) -> (i32, i32) {
    %c0_i32 = arith.constant 0 : i32
    %c0_i32_0 = arith.constant 0 : i32
    %c0_i32_1 = arith.constant 0 : i32
    return %c0_i32, %c0_i32_0 : i32, i32
  }
  func.func @transform_2(%arg0: i32) -> (i32, i32) {
    %c0_i32 = arith.constant 0 : i32
    %c0_i32_0 = arith.constant 0 : i32
    return %arg0, %c0_i32 : i32, i32
  }
}

module attributes {stable_mosaic.version = 11 : i64} {
  func.func @bn_relu_fused_kernel(%arg0: i32, %arg1: memref<128x128xbf16, #tpu.memory_space<vmem>>, %arg2: memref<1x128xf32, #tpu.memory_space<vmem>>, %arg3: memref<1x128xf32, #tpu.memory_space<vmem>>, %arg4: memref<128x128xbf16, #tpu.memory_space<vmem>>) attributes {dimension_semantics = [#tpu.dimension_semantics<arbitrary>], iteration_bounds = array<i64: 1>, scalar_prefetch = 0 : i64, scratch_operands = 0 : i64, tpu.core_type = #tpu.core_type<tc>, window_params = [{pipeline_mode = #tpu.pipeline_mode<synchronous>, transform_indices = @transform_0, window_bounds = array<i64: 128, 128>}, {pipeline_mode = #tpu.pipeline_mode<synchronous>, transform_indices = @transform_1, window_bounds = array<i64: 1, 128>}, {pipeline_mode = #tpu.pipeline_mode<synchronous>, transform_indices = @transform_2, window_bounds = array<i64: 1, 128>}, {pipeline_mode = #tpu.pipeline_mode<synchronous>, transform_indices = @transform_3, window_bounds = array<i64: 128, 128>}]} {
    %c0 = arith.constant 0 : index
    %c0_0 = arith.constant 0 : index
    %0 = vector.load %arg1[%c0, %c0_0] : memref<128x128xbf16, #tpu.memory_space<vmem>>, vector<128x128xbf16>
    %1 = arith.extf %0 : vector<128x128xbf16> to vector<128x128xf32>
    %cst = arith.constant dense<0.000000e+00> : vector<128xf32>
    %2 = vector.multi_reduction <add>, %1, %cst [0] : vector<128x128xf32> to vector<128xf32>
    %3 = vector.shape_cast %2 : vector<128xf32> to vector<1x128xf32>
    %cst_1 = arith.constant 7.812500e-03 : f32
    %4 = vector.broadcast %cst_1 : f32 to vector<1x128xf32>
    %5 = arith.mulf %3, %4 : vector<1x128xf32>
    %6 = vector.broadcast %5 : vector<1x128xf32> to vector<128x128xf32>
    %7 = arith.subf %1, %6 : vector<128x128xf32>
    %8 = arith.mulf %7, %7 : vector<128x128xf32>
    %cst_2 = arith.constant dense<0.000000e+00> : vector<128xf32>
    %9 = vector.multi_reduction <add>, %8, %cst_2 [0] : vector<128x128xf32> to vector<128xf32>
    %10 = vector.shape_cast %9 : vector<128xf32> to vector<1x128xf32>
    %cst_3 = arith.constant 0.000000e+00 : f32
    %11 = vector.broadcast %cst_3 : f32 to vector<1x128xf32>
    %12 = arith.mulf %11, %5 : vector<1x128xf32>
    %13 = arith.mulf %12, %5 : vector<1x128xf32>
    %14 = arith.subf %10, %13 : vector<1x128xf32>
    %cst_4 = arith.constant 7.812500e-03 : f32
    %15 = vector.broadcast %cst_4 : f32 to vector<1x128xf32>
    %16 = arith.mulf %14, %15 : vector<1x128xf32>
    %cst_5 = arith.constant 0.000000e+00 : f32
    %17 = vector.broadcast %cst_5 : f32 to vector<1x128xf32>
    %18 = arith.maximumf %16, %17 : vector<1x128xf32>
    %c0_6 = arith.constant 0 : index
    %c0_7 = arith.constant 0 : index
    %19 = vector.load %arg2[%c0_6, %c0_7] : memref<1x128xf32, #tpu.memory_space<vmem>>, vector<1x128xf32>
    %cst_8 = arith.constant 9.99999974E-6 : f32
    %20 = vector.broadcast %cst_8 : f32 to vector<1x128xf32>
    %21 = arith.addf %18, %20 : vector<1x128xf32>
    %22 = math.rsqrt %21 : vector<1x128xf32>
    %23 = arith.mulf %19, %22 : vector<1x128xf32>
    %24 = vector.broadcast %23 : vector<1x128xf32> to vector<128x128xf32>
    %25 = arith.mulf %7, %24 : vector<128x128xf32>
    %c0_9 = arith.constant 0 : index
    %c0_10 = arith.constant 0 : index
    %26 = vector.load %arg3[%c0_9, %c0_10] : memref<1x128xf32, #tpu.memory_space<vmem>>, vector<1x128xf32>
    %27 = vector.broadcast %26 : vector<1x128xf32> to vector<128x128xf32>
    %28 = arith.addf %25, %27 : vector<128x128xf32>
    %cst_11 = arith.constant 0.000000e+00 : f32
    %29 = vector.broadcast %cst_11 : f32 to vector<128x128xf32>
    %30 = arith.maximumf %28, %29 : vector<128x128xf32>
    %31 = arith.truncf %30 : vector<128x128xf32> to vector<128x128xbf16>
    %c0_12 = arith.constant 0 : index
    %c0_13 = arith.constant 0 : index
    %32 = vector.load %arg4[%c0_12, %c0_13] : memref<128x128xbf16, #tpu.memory_space<vmem>>, vector<128x128xbf16>
    tpu.vector_store %arg4[%c0_12, %c0_13], %31 {strides = array<i32>} : memref<128x128xbf16, #tpu.memory_space<vmem>>, vector<128x128xbf16>,
    return
  }
  func.func @transform_0(%arg0: i32) -> (i32, i32) {
    %c0_i32 = arith.constant 0 : i32
    %c0_i32_0 = arith.constant 0 : i32
    %c0_i32_1 = arith.constant 0 : i32
    return %c0_i32, %c0_i32_0 : i32, i32
  }
  func.func @transform_1(%arg0: i32) -> (i32, i32) {
    %c0_i32 = arith.constant 0 : i32
    %c0_i32_0 = arith.constant 0 : i32
    %c0_i32_1 = arith.constant 0 : i32
    return %c0_i32, %c0_i32_0 : i32, i32
  }
  func.func @transform_2(%arg0: i32) -> (i32, i32) {
    %c0_i32 = arith.constant 0 : i32
    %c0_i32_0 = arith.constant 0 : i32
    %c0_i32_1 = arith.constant 0 : i32
    return %c0_i32, %c0_i32_0 : i32, i32
  }
  func.func @transform_3(%arg0: i32) -> (i32, i32) {
    %c0_i32 = arith.constant 0 : i32
    %c0_i32_0 = arith.constant 0 : i32
    %c0_i32_1 = arith.constant 0 : i32
    return %c0_i32, %c0_i32_0 : i32, i32
  }
}

module attributes {stable_mosaic.version = 11 : i64} {
  func.func @matmul_kernel(%arg0: i32, %arg1: memref<168x128xbf16, #tpu.memory_space<vmem>>, %arg2: memref<128x128xbf16, #tpu.memory_space<vmem>>, %arg3: memref<168x128xbf16, #tpu.memory_space<vmem>>) attributes {dimension_semantics = [#tpu.dimension_semantics<parallel>], iteration_bounds = array<i64: 1>, scalar_prefetch = 0 : i64, scratch_operands = 0 : i64, tpu.core_type = #tpu.core_type<tc>, window_params = [{transform_indices = @transform_0, window_bounds = array<i64: 168, 128>}, {pipeline_mode = #tpu.pipeline_mode<synchronous>, transform_indices = @transform_1, window_bounds = array<i64: 128, 128>}, {transform_indices = @transform_2, window_bounds = array<i64: 168, 128>}]} {
    %c0 = arith.constant 0 : index
    %c0_0 = arith.constant 0 : index
    %0 = vector.load %arg1[%c0, %c0_0] : memref<168x128xbf16, #tpu.memory_space<vmem>>, vector<168x128xbf16>
    %c0_1 = arith.constant 0 : index
    %c0_2 = arith.constant 0 : index
    %1 = vector.load %arg2[%c0_1, %c0_2] : memref<128x128xbf16, #tpu.memory_space<vmem>>, vector<128x128xbf16>
    %cst = arith.constant dense<0.000000e+00> : vector<168x128xf32>
    %2 = tpu.matmul %0, %1, %cst {dimension_numbers = #tpu.dot_dimension_numbers<[1], [0], [0], [1], [0, 0, 1, 1], [], []>} : vector<168x128xbf16>, vector<128x128xbf16>, vector<168x128xf32> -> vector<168x128xf32>
    %3 = arith.truncf %2 : vector<168x128xf32> to vector<168x128xbf16>
    %c0_3 = arith.constant 0 : index
    %c0_4 = arith.constant 0 : index
    %4 = vector.load %arg3[%c0_3, %c0_4] : memref<168x128xbf16, #tpu.memory_space<vmem>>, vector<168x128xbf16>
    tpu.vector_store %arg3[%c0_3, %c0_4], %3 {strides = array<i32>} : memref<168x128xbf16, #tpu.memory_space<vmem>>, vector<168x128xbf16>,
    return
  }
  func.func @transform_0(%arg0: i32) -> (i32, i32) {
    %c0_i32 = arith.constant 0 : i32
    %c0_i32_0 = arith.constant 0 : i32
    return %arg0, %c0_i32 : i32, i32
  }
  func.func @transform_1(%arg0: i32) -> (i32, i32) {
    %c0_i32 = arith.constant 0 : i32
    %c0_i32_0 = arith.constant 0 : i32
    %c0_i32_1 = arith.constant 0 : i32
    return %c0_i32, %c0_i32_0 : i32, i32
  }
  func.func @transform_2(%arg0: i32) -> (i32, i32) {
    %c0_i32 = arith.constant 0 : i32
    %c0_i32_0 = arith.constant 0 : i32
    return %arg0, %c0_i32 : i32, i32
  }
}

module attributes {stable_mosaic.version = 11 : i64} {
  func.func @bn_relu_fused_kernel(%arg0: i32, %arg1: memref<512x128xbf16, #tpu.memory_space<vmem>>, %arg2: memref<1x128xf32, #tpu.memory_space<vmem>>, %arg3: memref<1x128xf32, #tpu.memory_space<vmem>>, %arg4: memref<512x128xbf16, #tpu.memory_space<vmem>>) attributes {dimension_semantics = [#tpu.dimension_semantics<arbitrary>], iteration_bounds = array<i64: 1>, scalar_prefetch = 0 : i64, scratch_operands = 0 : i64, tpu.core_type = #tpu.core_type<tc>, window_params = [{pipeline_mode = #tpu.pipeline_mode<synchronous>, transform_indices = @transform_0, window_bounds = array<i64: 512, 128>}, {pipeline_mode = #tpu.pipeline_mode<synchronous>, transform_indices = @transform_1, window_bounds = array<i64: 1, 128>}, {pipeline_mode = #tpu.pipeline_mode<synchronous>, transform_indices = @transform_2, window_bounds = array<i64: 1, 128>}, {pipeline_mode = #tpu.pipeline_mode<synchronous>, transform_indices = @transform_3, window_bounds = array<i64: 512, 128>}]} {
    %c0 = arith.constant 0 : index
    %c0_0 = arith.constant 0 : index
    %0 = vector.load %arg1[%c0, %c0_0] : memref<512x128xbf16, #tpu.memory_space<vmem>>, vector<512x128xbf16>
    %1 = arith.extf %0 : vector<512x128xbf16> to vector<512x128xf32>
    %cst = arith.constant dense<0.000000e+00> : vector<128xf32>
    %2 = vector.multi_reduction <add>, %1, %cst [0] : vector<512x128xf32> to vector<128xf32>
    %3 = vector.shape_cast %2 : vector<128xf32> to vector<1x128xf32>
    %cst_1 = arith.constant 0.001953125 : f32
    %4 = vector.broadcast %cst_1 : f32 to vector<1x128xf32>
    %5 = arith.mulf %3, %4 : vector<1x128xf32>
    %6 = vector.broadcast %5 : vector<1x128xf32> to vector<512x128xf32>
    %7 = arith.subf %1, %6 : vector<512x128xf32>
    %8 = arith.mulf %7, %7 : vector<512x128xf32>
    %cst_2 = arith.constant dense<0.000000e+00> : vector<128xf32>
    %9 = vector.multi_reduction <add>, %8, %cst_2 [0] : vector<512x128xf32> to vector<128xf32>
    %10 = vector.shape_cast %9 : vector<128xf32> to vector<1x128xf32>
    %cst_3 = arith.constant 0.000000e+00 : f32
    %11 = vector.broadcast %cst_3 : f32 to vector<1x128xf32>
    %12 = arith.mulf %11, %5 : vector<1x128xf32>
    %13 = arith.mulf %12, %5 : vector<1x128xf32>
    %14 = arith.subf %10, %13 : vector<1x128xf32>
    %cst_4 = arith.constant 0.001953125 : f32
    %15 = vector.broadcast %cst_4 : f32 to vector<1x128xf32>
    %16 = arith.mulf %14, %15 : vector<1x128xf32>
    %cst_5 = arith.constant 0.000000e+00 : f32
    %17 = vector.broadcast %cst_5 : f32 to vector<1x128xf32>
    %18 = arith.maximumf %16, %17 : vector<1x128xf32>
    %c0_6 = arith.constant 0 : index
    %c0_7 = arith.constant 0 : index
    %19 = vector.load %arg2[%c0_6, %c0_7] : memref<1x128xf32, #tpu.memory_space<vmem>>, vector<1x128xf32>
    %cst_8 = arith.constant 9.99999974E-6 : f32
    %20 = vector.broadcast %cst_8 : f32 to vector<1x128xf32>
    %21 = arith.addf %18, %20 : vector<1x128xf32>
    %22 = math.rsqrt %21 : vector<1x128xf32>
    %23 = arith.mulf %19, %22 : vector<1x128xf32>
    %24 = vector.broadcast %23 : vector<1x128xf32> to vector<512x128xf32>
    %25 = arith.mulf %7, %24 : vector<512x128xf32>
    %c0_9 = arith.constant 0 : index
    %c0_10 = arith.constant 0 : index
    %26 = vector.load %arg3[%c0_9, %c0_10] : memref<1x128xf32, #tpu.memory_space<vmem>>, vector<1x128xf32>
    %27 = vector.broadcast %26 : vector<1x128xf32> to vector<512x128xf32>
    %28 = arith.addf %25, %27 : vector<512x128xf32>
    %cst_11 = arith.constant 0.000000e+00 : f32
    %29 = vector.broadcast %cst_11 : f32 to vector<512x128xf32>
    %30 = arith.maximumf %28, %29 : vector<512x128xf32>
    %31 = arith.truncf %30 : vector<512x128xf32> to vector<512x128xbf16>
    %c0_12 = arith.constant 0 : index
    %c0_13 = arith.constant 0 : index
    %32 = vector.load %arg4[%c0_12, %c0_13] : memref<512x128xbf16, #tpu.memory_space<vmem>>, vector<512x128xbf16>
    tpu.vector_store %arg4[%c0_12, %c0_13], %31 {strides = array<i32>} : memref<512x128xbf16, #tpu.memory_space<vmem>>, vector<512x128xbf16>,
    return
  }
  func.func @transform_0(%arg0: i32) -> (i32, i32) {
    %c0_i32 = arith.constant 0 : i32
    %c0_i32_0 = arith.constant 0 : i32
    %c0_i32_1 = arith.constant 0 : i32
    return %c0_i32, %c0_i32_0 : i32, i32
  }
  func.func @transform_1(%arg0: i32) -> (i32, i32) {
    %c0_i32 = arith.constant 0 : i32
    %c0_i32_0 = arith.constant 0 : i32
    %c0_i32_1 = arith.constant 0 : i32
    return %c0_i32, %c0_i32_0 : i32, i32
  }
  func.func @transform_2(%arg0: i32) -> (i32, i32) {
    %c0_i32 = arith.constant 0 : i32
    %c0_i32_0 = arith.constant 0 : i32
    %c0_i32_1 = arith.constant 0 : i32
    return %c0_i32, %c0_i32_0 : i32, i32
  }
  func.func @transform_3(%arg0: i32) -> (i32, i32) {
    %c0_i32 = arith.constant 0 : i32
    %c0_i32_0 = arith.constant 0 : i32
    %c0_i32_1 = arith.constant 0 : i32
    return %c0_i32, %c0_i32_0 : i32, i32
  }
}

module attributes {stable_mosaic.version = 11 : i64} {
  func.func @matmul_kernel(%arg0: i32, %arg1: memref<256x128xbf16, #tpu.memory_space<vmem>>, %arg2: memref<128x128xbf16, #tpu.memory_space<vmem>>, %arg3: memref<256x128xbf16, #tpu.memory_space<vmem>>) attributes {dimension_semantics = [#tpu.dimension_semantics<parallel>], iteration_bounds = array<i64: 3>, scalar_prefetch = 0 : i64, scratch_operands = 0 : i64, tpu.core_type = #tpu.core_type<tc>, window_params = [{transform_indices = @transform_0, window_bounds = array<i64: 256, 128>}, {pipeline_mode = #tpu.pipeline_mode<synchronous>, transform_indices = @transform_1, window_bounds = array<i64: 128, 128>}, {transform_indices = @transform_2, window_bounds = array<i64: 256, 128>}]} {
    %c0 = arith.constant 0 : index
    %c0_0 = arith.constant 0 : index
    %0 = vector.load %arg1[%c0, %c0_0] : memref<256x128xbf16, #tpu.memory_space<vmem>>, vector<256x128xbf16>
    %c0_1 = arith.constant 0 : index
    %c0_2 = arith.constant 0 : index
    %1 = vector.load %arg2[%c0_1, %c0_2] : memref<128x128xbf16, #tpu.memory_space<vmem>>, vector<128x128xbf16>
    %cst = arith.constant dense<0.000000e+00> : vector<256x128xf32>
    %2 = tpu.matmul %0, %1, %cst {dimension_numbers = #tpu.dot_dimension_numbers<[1], [0], [0], [1], [0, 0, 1, 1], [], []>} : vector<256x128xbf16>, vector<128x128xbf16>, vector<256x128xf32> -> vector<256x128xf32>
    %3 = arith.truncf %2 : vector<256x128xf32> to vector<256x128xbf16>
    %c0_3 = arith.constant 0 : index
    %c0_4 = arith.constant 0 : index
    %4 = vector.load %arg3[%c0_3, %c0_4] : memref<256x128xbf16, #tpu.memory_space<vmem>>, vector<256x128xbf16>
    tpu.vector_store %arg3[%c0_3, %c0_4], %3 {strides = array<i32>} : memref<256x128xbf16, #tpu.memory_space<vmem>>, vector<256x128xbf16>,
    return
  }
  func.func @transform_0(%arg0: i32) -> (i32, i32) {
    %c0_i32 = arith.constant 0 : i32
    %c0_i32_0 = arith.constant 0 : i32
    return %arg0, %c0_i32 : i32, i32
  }
  func.func @transform_1(%arg0: i32) -> (i32, i32) {
    %c0_i32 = arith.constant 0 : i32
    %c0_i32_0 = arith.constant 0 : i32
    %c0_i32_1 = arith.constant 0 : i32
    return %c0_i32, %c0_i32_0 : i32, i32
  }
  func.func @transform_2(%arg0: i32) -> (i32, i32) {
    %c0_i32 = arith.constant 0 : i32
    %c0_i32_0 = arith.constant 0 : i32
    return %arg0, %c0_i32 : i32, i32
  }
}

module attributes {stable_mosaic.version = 11 : i64} {
  func.func @bn_relu_fused_kernel(%arg0: i32, %arg1: memref<2048x128xbf16, #tpu.memory_space<vmem>>, %arg2: memref<1x128xf32, #tpu.memory_space<vmem>>, %arg3: memref<1x128xf32, #tpu.memory_space<vmem>>, %arg4: memref<2048x128xbf16, #tpu.memory_space<vmem>>) attributes {dimension_semantics = [#tpu.dimension_semantics<arbitrary>], iteration_bounds = array<i64: 1>, scalar_prefetch = 0 : i64, scratch_operands = 0 : i64, tpu.core_type = #tpu.core_type<tc>, window_params = [{pipeline_mode = #tpu.pipeline_mode<synchronous>, transform_indices = @transform_0, window_bounds = array<i64: 2048, 128>}, {pipeline_mode = #tpu.pipeline_mode<synchronous>, transform_indices = @transform_1, window_bounds = array<i64: 1, 128>}, {pipeline_mode = #tpu.pipeline_mode<synchronous>, transform_indices = @transform_2, window_bounds = array<i64: 1, 128>}, {pipeline_mode = #tpu.pipeline_mode<synchronous>, transform_indices = @transform_3, window_bounds = array<i64: 2048, 128>}]} {
    %c0 = arith.constant 0 : index
    %c0_0 = arith.constant 0 : index
    %0 = vector.load %arg1[%c0, %c0_0] : memref<2048x128xbf16, #tpu.memory_space<vmem>>, vector<2048x128xbf16>
    %1 = arith.extf %0 : vector<2048x128xbf16> to vector<2048x128xf32>
    %cst = arith.constant dense<0.000000e+00> : vector<128xf32>
    %2 = vector.multi_reduction <add>, %1, %cst [0] : vector<2048x128xf32> to vector<128xf32>
    %3 = vector.shape_cast %2 : vector<128xf32> to vector<1x128xf32>
    %cst_1 = arith.constant 4.8828125E-4 : f32
    %4 = vector.broadcast %cst_1 : f32 to vector<1x128xf32>
    %5 = arith.mulf %3, %4 : vector<1x128xf32>
    %6 = vector.broadcast %5 : vector<1x128xf32> to vector<2048x128xf32>
    %7 = arith.subf %1, %6 : vector<2048x128xf32>
    %8 = arith.mulf %7, %7 : vector<2048x128xf32>
    %cst_2 = arith.constant dense<0.000000e+00> : vector<128xf32>
    %9 = vector.multi_reduction <add>, %8, %cst_2 [0] : vector<2048x128xf32> to vector<128xf32>
    %10 = vector.shape_cast %9 : vector<128xf32> to vector<1x128xf32>
    %cst_3 = arith.constant 0.000000e+00 : f32
    %11 = vector.broadcast %cst_3 : f32 to vector<1x128xf32>
    %12 = arith.mulf %11, %5 : vector<1x128xf32>
    %13 = arith.mulf %12, %5 : vector<1x128xf32>
    %14 = arith.subf %10, %13 : vector<1x128xf32>
    %cst_4 = arith.constant 4.8828125E-4 : f32
    %15 = vector.broadcast %cst_4 : f32 to vector<1x128xf32>
    %16 = arith.mulf %14, %15 : vector<1x128xf32>
    %cst_5 = arith.constant 0.000000e+00 : f32
    %17 = vector.broadcast %cst_5 : f32 to vector<1x128xf32>
    %18 = arith.maximumf %16, %17 : vector<1x128xf32>
    %c0_6 = arith.constant 0 : index
    %c0_7 = arith.constant 0 : index
    %19 = vector.load %arg2[%c0_6, %c0_7] : memref<1x128xf32, #tpu.memory_space<vmem>>, vector<1x128xf32>
    %cst_8 = arith.constant 9.99999974E-6 : f32
    %20 = vector.broadcast %cst_8 : f32 to vector<1x128xf32>
    %21 = arith.addf %18, %20 : vector<1x128xf32>
    %22 = math.rsqrt %21 : vector<1x128xf32>
    %23 = arith.mulf %19, %22 : vector<1x128xf32>
    %24 = vector.broadcast %23 : vector<1x128xf32> to vector<2048x128xf32>
    %25 = arith.mulf %7, %24 : vector<2048x128xf32>
    %c0_9 = arith.constant 0 : index
    %c0_10 = arith.constant 0 : index
    %26 = vector.load %arg3[%c0_9, %c0_10] : memref<1x128xf32, #tpu.memory_space<vmem>>, vector<1x128xf32>
    %27 = vector.broadcast %26 : vector<1x128xf32> to vector<2048x128xf32>
    %28 = arith.addf %25, %27 : vector<2048x128xf32>
    %cst_11 = arith.constant 0.000000e+00 : f32
    %29 = vector.broadcast %cst_11 : f32 to vector<2048x128xf32>
    %30 = arith.maximumf %28, %29 : vector<2048x128xf32>
    %31 = arith.truncf %30 : vector<2048x128xf32> to vector<2048x128xbf16>
    %c0_12 = arith.constant 0 : index
    %c0_13 = arith.constant 0 : index
    %32 = vector.load %arg4[%c0_12, %c0_13] : memref<2048x128xbf16, #tpu.memory_space<vmem>>, vector<2048x128xbf16>
    tpu.vector_store %arg4[%c0_12, %c0_13], %31 {strides = array<i32>} : memref<2048x128xbf16, #tpu.memory_space<vmem>>, vector<2048x128xbf16>,
    return
  }
  func.func @transform_0(%arg0: i32) -> (i32, i32) {
    %c0_i32 = arith.constant 0 : i32
    %c0_i32_0 = arith.constant 0 : i32
    %c0_i32_1 = arith.constant 0 : i32
    return %c0_i32, %c0_i32_0 : i32, i32
  }
  func.func @transform_1(%arg0: i32) -> (i32, i32) {
    %c0_i32 = arith.constant 0 : i32
    %c0_i32_0 = arith.constant 0 : i32
    %c0_i32_1 = arith.constant 0 : i32
    return %c0_i32, %c0_i32_0 : i32, i32
  }
  func.func @transform_2(%arg0: i32) -> (i32, i32) {
    %c0_i32 = arith.constant 0 : i32
    %c0_i32_0 = arith.constant 0 : i32
    %c0_i32_1 = arith.constant 0 : i32
    return %c0_i32, %c0_i32_0 : i32, i32
  }
  func.func @transform_3(%arg0: i32) -> (i32, i32) {
    %c0_i32 = arith.constant 0 : i32
    %c0_i32_0 = arith.constant 0 : i32
    %c0_i32_1 = arith.constant 0 : i32
    return %c0_i32, %c0_i32_0 : i32, i32
  }
}

module attributes {stable_mosaic.version = 11 : i64} {
  func.func @matmul_tanh_kernel(%arg0: i32, %arg1: memref<256x128xbf16, #tpu.memory_space<vmem>>, %arg2: memref<128x128xbf16, #tpu.memory_space<vmem>>, %arg3: memref<256x128xf32, #tpu.memory_space<vmem>>) attributes {dimension_semantics = [#tpu.dimension_semantics<parallel>], iteration_bounds = array<i64: 9>, scalar_prefetch = 0 : i64, scratch_operands = 0 : i64, tpu.core_type = #tpu.core_type<tc>, window_params = [{transform_indices = @transform_0, window_bounds = array<i64: 256, 128>}, {pipeline_mode = #tpu.pipeline_mode<synchronous>, transform_indices = @transform_1, window_bounds = array<i64: 128, 128>}, {transform_indices = @transform_2, window_bounds = array<i64: 256, 128>}]} {
    %c0 = arith.constant 0 : index
    %c0_0 = arith.constant 0 : index
    %0 = vector.load %arg1[%c0, %c0_0] : memref<256x128xbf16, #tpu.memory_space<vmem>>, vector<256x128xbf16>
    %c0_1 = arith.constant 0 : index
    %c0_2 = arith.constant 0 : index
    %1 = vector.load %arg2[%c0_1, %c0_2] : memref<128x128xbf16, #tpu.memory_space<vmem>>, vector<128x128xbf16>
    %cst = arith.constant dense<0.000000e+00> : vector<256x128xf32>
    %2 = tpu.matmul %0, %1, %cst {dimension_numbers = #tpu.dot_dimension_numbers<[1], [0], [0], [1], [0, 0, 1, 1], [], []>} : vector<256x128xbf16>, vector<128x128xbf16>, vector<256x128xf32> -> vector<256x128xf32>
    %3 = math.tanh %2 : vector<256x128xf32>
    %c0_3 = arith.constant 0 : index
    %c0_4 = arith.constant 0 : index
    %4 = vector.load %arg3[%c0_3, %c0_4] : memref<256x128xf32, #tpu.memory_space<vmem>>, vector<256x128xf32>
    tpu.vector_store %arg3[%c0_3, %c0_4], %3 {strides = array<i32>} : memref<256x128xf32, #tpu.memory_space<vmem>>, vector<256x128xf32>,
    return
  }
  func.func @transform_0(%arg0: i32) -> (i32, i32) {
    %c0_i32 = arith.constant 0 : i32
    %c0_i32_0 = arith.constant 0 : i32
    return %arg0, %c0_i32 : i32, i32
  }
  func.func @transform_1(%arg0: i32) -> (i32, i32) {
    %c0_i32 = arith.constant 0 : i32
    %c0_i32_0 = arith.constant 0 : i32
    %c0_i32_1 = arith.constant 0 : i32
    return %c0_i32, %c0_i32_0 : i32, i32
  }
  func.func @transform_2(%arg0: i32) -> (i32, i32) {
    %c0_i32 = arith.constant 0 : i32
    %c0_i32_0 = arith.constant 0 : i32
    return %arg0, %c0_i32 : i32, i32
  }
}

</mosaic_0001>

<bundles_post_ra>
// kernel: generator_forward.10
= control target key start
LH: loop header
LB: loop body
LE: loop exit
PB: predicated region body
PF: predicated region fallthrough
CT: control target
= control target key end

     0   :  { %v59_v39 = vlaneseq  ;;  %s176_s0 = inlined_call_operand.vmem [shape: bf16[32,128], index: 0, kind: input, shape index: {}]   ;;  %s177_s1 = inlined_call_operand.vmem [shape: f32[1,128], index: 1, kind: input, shape index: {}]   ;;  %s178_s2 = inlined_call_operand.vmem [shape: f32[1,128], index: 2, kind: input, shape index: {}]   ;;  %s179_s3 = inlined_call_operand.vmem [shape: bf16[32,128], index: 3, kind: output, shape index: {}]  }
   0x1   :  { %v117_v0 = vld [vmem:[%s176_s0] sm:$0xff]   ;;  %v134_v1 = vld [vmem:[%s176_s0 + $0x8] sm:$0xff]  }
   0x2   :  { %v118_v2 = vunpack.c.l.bf16 %v117_v0  ;;  %v119_v3 = vunpack.c.h.bf16 %v117_v0  ;;  %v122_v4 = vunpack.c.l.bf16 %v134_v1  ;;  %v123_v5 = vunpack.c.h.bf16 %v134_v1  ;;  %v54_v41 = vld [vmem:[%s177_s1] sm:$0x1] }
   0x3   :  { %v60_v40 = vshrl.u32 %v59_v39, 7  ;;  %v107_v46 = vld [vmem:[%s178_s2] ss:$0 sm:$0xff] }
   0x4   :  { %v22_v6 = vadd.f32 %v119_v3, %v118_v2 }
   0x5   :  { %v61_v42 = vsub.s32 0, %v60_v40 }
   0x6   :  { %v23_v7 = vadd.f32 %v122_v4, %v22_v6 }
   0x8   :  { %v24_v8 = vadd.f32 %v123_v5, %v23_v7 }
   0xa   :  { %v25_v9 = vrot.slane %v24_v8, 4 }
   0xc   :  { %v26_v10 = vadd.f32 %v25_v9, %v24_v8 }
   0xe   :  { %v27_v11 = vrot.slane %v26_v10, 2 }
  0x10   :  { %v28_v12 = vadd.f32 %v27_v11, %v26_v10 }
  0x12   :  { %v29_v13 = vrot.slane %v28_v12, 1 }
  0x14   :  { %v30_v14 = vadd.f32 %v29_v13, %v28_v12 }
  0x16   :  { %v31_v15 = vmul.f32 0.03125, %v30_v14 }
  0x18   :  { %v32_v16 = vsub.f32 %v118_v2, %v31_v15  ;;  %v33_v17 = vsub.f32 %v119_v3, %v31_v15  ;;  %v34_v18 = vsub.f32 %v122_v4, %v31_v15  ;;  %v35_v19 = vsub.f32 %v123_v5, %v31_v15 }
  0x19   :  { %v49_v30 = vmul.f32 0.0, %v31_v15 }
  0x1a   :  { %v36_v20 = vmul.f32 %v32_v16, %v32_v16  ;;  %v37_v21 = vmul.f32 %v33_v17, %v33_v17  ;;  %v38_v22 = vmul.f32 %v34_v18, %v34_v18  ;;  %v39_v23 = vmul.f32 %v35_v19, %v35_v19 }
  0x1b   :  { %v50_v33 = vmul.f32 %v49_v30, %v31_v15 }
  0x1c   :  { %v40_v24 = vadd.f32 %v37_v21, %v36_v20 }
  0x1e   :  { %v41_v25 = vadd.f32 %v40_v24, %v38_v22 }
  0x20   :  { %v42_v26 = vadd.f32 %v41_v25, %v39_v23 }
  0x22   :  { %v43_v27 = vrot.slane %v42_v26, 4 }
  0x24   :  { %v44_v28 = vadd.f32 %v43_v27, %v42_v26 }
  0x26   :  { %v45_v29 = vrot.slane %v44_v28, 2 }
  0x28   :  { %v46_v31 = vadd.f32 %v45_v29, %v44_v28 }
  0x2a   :  { %v47_v32 = vrot.slane %v46_v31, 1 }
  0x2c   :  { %v48_v34 = vadd.f32 %v47_v32, %v46_v31 }
  0x2e   :  { %v51_v35 = vsub.f32 %v48_v34, %v50_v33 }
  0x30   :  { %v52_v36 = vmul.f32 0.03125, %v51_v35 }
  0x32   :  { %v53_v37 = vmax.f32 %v52_v36, 0.0 }
  0x34   :  { %v55_v38 = vadd.f32 1e-05, %v53_v37 }
  0x36   :  { %136 = vrsqrt.f32 %v55_v38 }
  0x40   :  { %v137_v43 = vpop.eup %136 }
  0x41   :  { %v57_v44 = vmul.f32 %v137_v43, %v54_v41 }
  0x43   :  { %v62_v45 = vrot.slane %v57_v44, %v61_v42 }
  0x45   :  { %v64_v47 = vmul.f32 %v62_v45, %v32_v16  ;;  %v65_v48 = vmul.f32 %v62_v45, %v33_v17  ;;  %v66_v49 = vmul.f32 %v62_v45, %v34_v18  ;;  %v67_v50 = vmul.f32 %v62_v45, %v35_v19 }
  0x47   :  { %v75_v51 = vadd.f32 %v107_v46, %v64_v47  ;;  %v76_v52 = vadd.f32 %v107_v46, %v65_v48  ;;  %v77_v53 = vadd.f32 %v107_v46, %v66_v49  ;;  %v78_v54 = vadd.f32 %v107_v46, %v67_v50 }
  0x49   :  { %v79_v55 = vmax.f32 %v75_v51, 0.0  ;;  %v80_v56 = vmax.f32 %v76_v52, 0.0  ;;  %v81_v57 = vmax.f32 %v77_v53, 0.0  ;;  %v82_v58 = vmax.f32 %v78_v54, 0.0 }
  0x4b   :  { %v127_v59 = vpack.c.bf16 %v80_v56, %v79_v55  ;;  %v132_v60 = vpack.c.bf16 %v82_v58, %v81_v57 }
  0x4d   :  { %128 = vst [vmem:[%s179_s3] sm:$0xff] %v127_v59   ;;  %135 = vst [vmem:[%s179_s3 + $0x8] sm:$0xff] %v132_v60  }

// kernel: generator_forward.9
= control target key start
LH: loop header
LB: loop body
LE: loop exit
PB: predicated region body
PF: predicated region fallthrough
CT: control target
= control target key end

     0   :  { %s645_s9 = smov 0   ;;  %s647_s10 = smov 0   ;;  %s732_s0 = inlined_call_operand.vmem [shape: bf16[8,128], index: 0, kind: input, shape index: {}]   ;;  %s733_s1 = inlined_call_operand.vmem [shape: bf16[128,1024], index: 1, kind: input, shape index: {}]   ;;  %s734_s2 = inlined_call_operand.vmem [shape: bf16[8,1024], index: 2, kind: output, shape index: {}]  }
   0x1   :  { %s649_s11 = smov 0   ;;  %s651_s12 = smov 0  }
   0x2   :  { %s653_s13 = smov 0  }
   0x3 LB: > { %s21_s14 = sadd.s32 1, %s622_s12  ;;  %p64_p1 = scmp.ne.s32.totalorder %s614_s10, %s610_s9  ;;  %s626_s13 = sphi %s653_s13, %s12_s13   ;;  %s622_s12 = sphi %s651_s12, %s738_s12   ;;  %s618_s11 = sphi %s649_s11, %s737_s11   ;;  %s614_s10 = sphi %s647_s10, %s736_s10   ;;  %s610_s9 = sphi %s645_s9, %s735_s9  }
   0x4   : > { %p22_p0 = scmp.ge.s32.totalorder %s21_s14, 8  ;;  %p65_p2 = scmp.eq.s32.totalorder %s626_s13, 0 }
   0x5   : > { %s57_s16 = sadd.s32 1, %s614_s10  ;;  %p493_p5 = scmp.ge.s32.totalorder %s626_s13, 8 }
   0x6   : > { %s740_s14 = smov (%p22_p0, %s21_s14), 0  ;;  %p66_p3 = por %p65_p2, %p64_p1 }
   0x7   : > { %s54_s15 = ssub.s32 %s622_s12, %s740_s14  ;;  %125 = sbr.rel (%p493_p5) target bundleno = 34 (0x22), region = 20 }
   0x8   : > { %p55_p4 = scmp.eq.s32.totalorder %s54_s15, 0 }
   0xa   : > { %s680_s17 = scalar_select %p55_p4, %s614_s10, %s57_s16  }
   0xe   : > { %128 = sbr.rel (!%p66_p3) target bundleno = 34 (0x22), region = 24  ;;  %s130_s18 = sand.u32 (%p66_p3), 1, %s614_s10  }
   0xf   : > { %s495_s19 = sshll.u32 (%p66_p3), %s622_s12, 2  ;;  %s494_s20 = sshll.u32 (%p66_p3), %s130_s18, 6 }
  0x10   : > { %s688_s23 = scalar_lea.vmem (%p66_p3), %s733_s1, %s495_s19  ;;  %s132_s24 = scalar_lea.vmem (%p66_p3), [#allocation2], %s494_s20 }
  0x11   : > { %v150_v0 = vld [vmem:[%s688_s23] sm:$0xf] (%p66_p3) }
  0x12   : > { %v152_v1 = vld [vmem:[%s688_s23 + $0x20] sm:$0xf] (%p66_p3)  ;;  %151 = vst [vmem:[%s132_s24] sm:$0xf] (%p66_p3), %v150_v0 }
  0x13   : > { %153 = vst [vmem:[%s132_s24 + $0x4] sm:$0xf] (%p66_p3), %v152_v1  ;;  %v154_v2 = vld [vmem:[%s688_s23 + $0x40] sm:$0xf] (%p66_p3) }
  0x14   : > { %v156_v3 = vld [vmem:[%s688_s23 + $0x60] sm:$0xf] (%p66_p3)  ;;  %155 = vst [vmem:[%s132_s24 + $0x8] sm:$0xf] (%p66_p3), %v154_v2 }
  0x15   : > { %v158_v4 = vld [vmem:[%s688_s23 + $0x80] sm:$0xf]  ;;  %157 = vst [vmem:[%s132_s24 + $0xc] sm:$0xf] %v156_v3 }
  0x16   : > { %159 = vst [vmem:[%s132_s24 + $0x10] sm:$0xf] %v158_v4  ;;  %v160_v5 = vld [vmem:[%s688_s23 + $0xa0] sm:$0xf] }
  0x17   : > { %v162_v6 = vld [vmem:[%s688_s23 + $0xc0] sm:$0xf]  ;;  %161 = vst [vmem:[%s132_s24 + $0x14] sm:$0xf] %v160_v5 }
  0x18   : > { %v164_v7 = vld [vmem:[%s688_s23 + $0xe0] sm:$0xf]  ;;  %163 = vst [vmem:[%s132_s24 + $0x18] sm:$0xf] %v162_v6 }
  0x19   : > { %165 = vst [vmem:[%s132_s24 + $0x1c] sm:$0xf] %v164_v7  ;;  %v166_v8 = vld [vmem:[%s688_s23 + $0x100] sm:$0xf] }
  0x1a   : > { %v168_v9 = vld [vmem:[%s688_s23 + $0x120] sm:$0xf]  ;;  %167 = vst [vmem:[%s132_s24 + $0x20] sm:$0xf] %v166_v8 }
  0x1b   : > { %v170_v10 = vld [vmem:[%s688_s23 + $0x140] sm:$0xf]  ;;  %169 = vst [vmem:[%s132_s24 + $0x24] sm:$0xf] %v168_v9 }
  0x1c   : > { %171 = vst [vmem:[%s132_s24 + $0x28] sm:$0xf] %v170_v10  ;;  %v172_v11 = vld [vmem:[%s688_s23 + $0x160] sm:$0xf] }
  0x1d   : > { %v174_v12 = vld [vmem:[%s688_s23 + $0x180] sm:$0xf]  ;;  %173 = vst [vmem:[%s132_s24 + $0x2c] sm:$0xf] %v172_v11 }
  0x1e   : > { %v176_v13 = vld [vmem:[%s688_s23 + $0x1a0] sm:$0xf]  ;;  %175 = vst [vmem:[%s132_s24 + $0x30] sm:$0xf] %v174_v12 }
  0x1f   : > { %177 = vst [vmem:[%s132_s24 + $0x34] sm:$0xf] %v176_v13  ;;  %v178_v14 = vld [vmem:[%s688_s23 + $0x1c0] sm:$0xf] }
  0x20   : > { %v180_v15 = vld [vmem:[%s688_s23 + $0x1e0] sm:$0xf]  ;;  %179 = vst [vmem:[%s132_s24 + $0x38] sm:$0xf] %v178_v14 }
  0x21   : > { %181 = vst [vmem:[%s132_s24 + $0x3c] sm:$0xf] %v180_v15 }
  0x22 PF: > { %p496_p6 = scmp.ge.s32.totalorder %s626_s13, 1  ;;  %p235_p7 = scmp.lt.s32.totalorder %s626_s13, 9 }
  0x24   : > { %p236_p8 = pnand %p496_p6, %p235_p7 }
  0x25   : > { %s242_s25 = sand.u32 (!%p236_p8), 1, %s610_s9   ;;  %v628_v16 = vmov (!%p236_p8), 0.0   ;;  %vm629_vm0 = vmmov (!%p236_p8), 0   ;;  %v283_v25 = vld [vmem:[%s732_s0] sm:$0xf] (!%p236_p8)  ;;  %p276_p9 = scmp.lt.s32.totalorder (!%p236_p8), %s618_s11, 7 }
  0x26   : > { %239 = sbr.rel (%p236_p8) target bundleno = 287 (0x11f), region = 65  ;;  %518 = vmatprep.subr.bf16.mxu0 (!%p236_p8), %v628_v16  ;;  %s497_s26 = sshll.u32 (!%p236_p8), %s242_s25, 6  ;;  %534 = vmatprep.mubr.msk.bf16.mxu0 (!%p236_p8), %vm629_vm0, %v628_v16 }
  0x27   : > { %s244_s27 = scalar_lea.vmem (!%p236_p8), [#allocation2], %s497_s26 }
  0x28   : > { %v580_v17 = vld [vmem:[%s244_s27] sm:$0xff] (!%p236_p8)   ;;  %v581_v18 = vld [vmem:[%s244_s27 + $0x8] sm:$0xff] (!%p236_p8)   ;;  %v582_v19 = vld [vmem:[%s244_s27 + $0x10] sm:$0xff] (!%p236_p8)  }
  0x29   : > { %519 = vmatpush3.bf16.msra.mxu0 (!%p236_p8), %v580_v17  ;;  %v583_v20 = vld [vmem:[%s244_s27 + $0x18] sm:$0xff] (!%p236_p8)   ;;  %v584_v21 = vld [vmem:[%s244_s27 + $0x20] sm:$0xff] (!%p236_p8)   ;;  %v585_v22 = vld [vmem:[%s244_s27 + $0x28] sm:$0xff] (!%p236_p8)  }
  0x2a   : > { %520 = vmatprep.subr.bf16.mxu0 (!%p236_p8), %v628_v16  ;;  %v586_v23 = vld [vmem:[%s244_s27 + $0x30] sm:$0xff] (!%p236_p8)   ;;  %v587_v24 = vld [vmem:[%s244_s27 + $0x38] sm:$0xff] (!%p236_p8)  }
  0x2d   : > { %521 = vmatpush3.bf16.msra.mxu0 %v581_v18  ;;  %s742_s11 = smov (!%p276_p9, %s618_s11), 7 }
  0x2e   : > { %522 = vmatprep.subr.bf16.mxu0 %v628_v16  ;;  %s498_s30 = sshll.u32 %s742_s11, 2 }
  0x2f   : > { %s281_s5 = scalar_lea.vmem %s734_s2, %s498_s30 }
  0x31   : > { %523 = vmatpush3.bf16.msra.mxu0 %v582_v19 }
  0x32   : > { %524 = vmatprep.subr.bf16.mxu0 %v628_v16 }
  0x35   : > { %525 = vmatpush3.bf16.msra.mxu0 %v583_v20 }
  0x36   : > { %526 = vmatprep.subr.bf16.mxu0 %v628_v16 }
  0x39   : > { %527 = vmatpush3.bf16.msra.mxu0 %v584_v21 }
  0x3a   : > { %528 = vmatprep.subr.bf16.mxu0 %v628_v16 }
  0x3d   : > { %529 = vmatpush3.bf16.msra.mxu0 %v585_v22 }
  0x3e   : > { %530 = vmatprep.subr.bf16.mxu0 %v628_v16 }
  0x41   : > { %531 = vmatpush3.bf16.msra.mxu0 %v586_v23 }
  0x42   : > { %532 = vmatprep.subr.bf16.mxu0 %v628_v16 }
  0x45   : > { %533 = vmatpush3.bf16.msra.mxu0 %v587_v24 }
  0x48   : > { %535 = vmatmul.mubr.bf16.vlgmr.msra.gmra.mrb[0].mxu0 %v283_v25 }
 0x11b   : > { %v382_v26 = vpop.f32.mrb[0].mxu0 }
 0x11c   : > { %v388_v27 = vpack.c.bf16 %v382_v26, %v382_v26  ;;  %v536_v28 = vpop.f32.mrb[1].mxu0 }
 0x11d   : > { %v385_v29 = vpop.f32.mrb[2].mxu0 }
 0x11e   : > { %389 = vst [vmem:[%s281_s5] sm:$0xf] %v388_v27  ;;  %v537_v30 = vpop.f32.mrb[3].mxu0 }
 0x11f PF: > { %s12_s13 = sadd.s32 1, %s626_s13   ;;  %s735_s9 = smov %s614_s10 }
 0x120   : > { %p9_p10 = scmp.ge.s32.totalorder %s12_s13, 10   ;;  %s736_s10 = smov %s680_s17 }
 0x121   : > { %s737_s11 = smov %s622_s12  ;;  %s738_s12 = smov %s740_s14 }
 0x122   :  { %11 = sbr.rel (!%p9_p10) target bundleno = 3 (0x3), region = 107 }

// kernel: generator_forward.11
= control target key start
LH: loop header
LB: loop body
LE: loop exit
PB: predicated region body
PF: predicated region fallthrough
CT: control target
= control target key end

     0   :  { %s522_s1 = inlined_call_operand.vmem [shape: bf16[256,128], index: 1, kind: input, shape index: {}]   ;;  %s523_s0 = inlined_call_operand.vmem [shape: bf16[56,256], index: 0, kind: input, shape index: {}]   ;;  %s524_s2 = inlined_call_operand.vmem [shape: bf16[56,128], index: 2, kind: output, shape index: {}]  }
   0x1   :  { %v399_v0 = vld [vmem:[%s522_s1 + $0x40] sm:$0xff]   ;;  %v401_v2 = vld [vmem:[%s522_s1 + $0x48] sm:$0xff]   ;;  %v403_v4 = vld [vmem:[%s522_s1 + $0x50] sm:$0xff]  }
   0x2   :  { %v400_v1 = vld [vmem:[%s522_s1] sm:$0xff]   ;;  %343 = vmatprep.subr.bf16.mxu0 %v399_v0  ;;  %383 = vmatprep.subr.bf16.mxu1 %v399_v0  ;;  %v402_v3 = vld [vmem:[%s522_s1 + $0x8] sm:$0xff]   ;;  %v404_v5 = vld [vmem:[%s522_s1 + $0x10] sm:$0xff]  }
   0x3   :  { %344 = vmatpush3.bf16.msra.mxu0 %v400_v1  ;;  %391 = vmatpush3.bf16.msra.mxu1 %v400_v1  ;;  %v405_v6 = vld [vmem:[%s522_s1 + $0x58] sm:$0xff]   ;;  %v407_v8 = vld [vmem:[%s522_s1 + $0x60] sm:$0xff]   ;;  %v409_v10 = vld [vmem:[%s522_s1 + $0x68] sm:$0xff]  }
   0x4   :  { %345 = vmatprep.subr.bf16.mxu0 %v401_v2  ;;  %384 = vmatprep.subr.bf16.mxu1 %v401_v2  ;;  %v406_v7 = vld [vmem:[%s522_s1 + $0x18] sm:$0xff]   ;;  %v408_v9 = vld [vmem:[%s522_s1 + $0x20] sm:$0xff]   ;;  %v410_v13 = vld [vmem:[%s522_s1 + $0x28] sm:$0xff]  }
   0x5   :  { %v417_v11 = vld [vmem:[%s523_s0 + $0x4] ss:$8 sps:$4 sm:$0xff]   ;;  %v411_v14 = vld [vmem:[%s522_s1 + $0x70] sm:$0xff]   ;;  %v413_v16 = vld [vmem:[%s522_s1 + $0x78] sm:$0xff]  }
   0x6   :  { %v420_v12 = vld [vmem:[%s523_s0 + $0x24] ss:$8 sps:$4 sm:$0xff]   ;;  %216 = vmatprep.mubr.bf16.mxu0 %v417_v11  ;;  %v412_v15 = vld [vmem:[%s522_s1 + $0x30] sm:$0xff]   ;;  %v414_v17 = vld [vmem:[%s522_s1 + $0x38] sm:$0xff]  }
   0x7   :  { %346 = vmatpush3.bf16.msra.mxu0 %v402_v3  ;;  %392 = vmatpush3.bf16.msra.mxu1 %v402_v3  ;;  %v18_v18 = vld [vmem:[%s523_s0 + $0x30] sm:$0xff]  ;;  %v415_v19 = vld [vmem:[%s523_s0] ss:$8 sps:$4 sm:$0xff]  }
   0x8   :  { %347 = vmatprep.subr.bf16.mxu0 %v403_v4  ;;  %385 = vmatprep.subr.bf16.mxu1 %v403_v4  ;;  %v418_v20 = vld [vmem:[%s523_s0 + $0x20] ss:$8 sps:$4 sm:$0xff]   ;;  %v421_v21 = vld [vmem:[%s523_s0 + $0x14] ss:$8 sps:$4 sm:$0xff]   ;;  %v295_v22 = vcombine.high %v18_v18, %v18_v18  ;;  %v424_v23 = vld [vmem:[%s523_s0 + $0x10] ss:$8 sps:$4 sm:$0xff]   ;;  %v294_v24 = vcombine.low %v18_v18, %v18_v18 }
   0x9   :  { %232 = vmatprep.mubr.bf16.mxu1 %v420_v12 }
   0xb   :  { %348 = vmatpush3.bf16.msra.mxu0 %v404_v5  ;;  %393 = vmatpush3.bf16.msra.mxu1 %v404_v5 }
   0xc   :  { %349 = vmatprep.subr.bf16.mxu0 %v405_v6  ;;  %386 = vmatprep.subr.bf16.mxu1 %v405_v6 }
   0xf   :  { %350 = vmatpush3.bf16.msra.mxu0 %v406_v7  ;;  %394 = vmatpush3.bf16.msra.mxu1 %v406_v7 }
  0x10   :  { %351 = vmatprep.subr.bf16.mxu0 %v407_v8  ;;  %387 = vmatprep.subr.bf16.mxu1 %v407_v8 }
  0x13   :  { %352 = vmatpush3.bf16.msra.mxu0 %v408_v9  ;;  %395 = vmatpush3.bf16.msra.mxu1 %v408_v9 }
  0x14   :  { %353 = vmatprep.subr.bf16.mxu0 %v409_v10  ;;  %388 = vmatprep.subr.bf16.mxu1 %v409_v10 }
  0x17   :  { %354 = vmatpush3.bf16.msra.mxu0 %v410_v13  ;;  %396 = vmatpush3.bf16.msra.mxu1 %v410_v13 }
  0x18   :  { %355 = vmatprep.subr.bf16.mxu0 %v411_v14  ;;  %389 = vmatprep.subr.bf16.mxu1 %v411_v14 }
  0x1b   :  { %356 = vmatpush3.bf16.msra.mxu0 %v412_v15  ;;  %397 = vmatpush3.bf16.msra.mxu1 %v412_v15 }
  0x1c   :  { %357 = vmatprep.subr.bf16.mxu0 %v413_v16  ;;  %390 = vmatprep.subr.bf16.mxu1 %v413_v16 }
  0x1f   :  { %358 = vmatpush3.bf16.msra.mxu0 %v414_v17  ;;  %398 = vmatpush3.bf16.msra.mxu1 %v414_v17 }
  0x22   :  { %217 = vmatmul.mubr.bf16.vlgmr.msra.gmra.mrb[0].mxu0 %v415_v19  ;;  %233 = vmatmul.mubr.bf16.vlgmr.msra.gmra.mrb[0].mxu1 %v418_v20 }
  0x23   :  { %224 = vmatprep.mubr.bf16.mxu0 %v421_v21  ;;  %240 = vmatprep.mubr.bf16.mxu1 %v295_v22 }
  0x2a   :  { %225 = vmatmul.mubr.bf16.gmra.mrb[4].mxu0 %v424_v23  ;;  %241 = vmatmul.mubr.bf16.gmra.mrb[4].mxu1 %v294_v24 }
  0xf5   :  { %v359_v25 = vpop.f32.mrb[0].mxu0  ;;  %v371_v26 = vpop.f32.mrb[0].mxu1 }
  0xf6   :  { %v360_v27 = vpop.f32.mrb[1].mxu0  ;;  %v372_v28 = vpop.f32.mrb[1].mxu1 }
  0xf7   :  { %v361_v29 = vadd.f32 %v360_v27, %v359_v25  ;;  %v373_v30 = vadd.f32 %v372_v28, %v371_v26  ;;  %v362_v31 = vpop.f32.mrb[2].mxu0  ;;  %v374_v32 = vpop.f32.mrb[2].mxu1 }
  0xf8   :  { %v363_v33 = vpop.f32.mrb[3].mxu0  ;;  %v375_v34 = vpop.f32.mrb[3].mxu1 }
  0xf9   :  { %v364_v35 = vadd.f32 %v363_v33, %v362_v31  ;;  %v376_v36 = vadd.f32 %v375_v34, %v374_v32 }
  0xfb   :  { %v329_v37 = vpack.c.bf16 %v364_v35, %v361_v29  ;;  %v339_v38 = vpack.c.bf16 %v376_v36, %v373_v30 }
  0xfd   :  { %330 = vst [vmem:[%s524_s2] sm:$0xff] %v329_v37   ;;  %342 = vst [vmem:[%s524_s2 + $0x10] sm:$0xff] %v339_v38   ;;  %v365_v39 = vpop.f32.mrb[4].mxu0  ;;  %v377_v40 = vpop.f32.mrb[4].mxu1 }
  0xfe   :  { %v366_v41 = vpop.f32.mrb[5].mxu0  ;;  %v378_v42 = vpop.f32.mrb[5].mxu1 }
  0xff   :  { %v367_v43 = vadd.f32 %v366_v41, %v365_v39  ;;  %v379_v44 = vadd.f32 %v378_v42, %v377_v40  ;;  %v368_v45 = vpop.f32.mrb[6].mxu0  ;;  %v380_v46 = vpop.f32.mrb[6].mxu1 }
 0x100   :  { %v369_v47 = vpop.f32.mrb[7].mxu0  ;;  %v381_v48 = vpop.f32.mrb[7].mxu1 }
 0x101   :  { %v325_v49 = vpack.c.bf16 %v379_v44, %v379_v44  ;;  %v370_v50 = vadd.f32 %v369_v47, %v368_v45 }
 0x103   :  { %283 = vst [vmem:[%s524_s2 + $0x18] sm:$0xf] %v325_v49  ;;  %v334_v51 = vpack.c.bf16 %v370_v50, %v367_v43 }
 0x105   :  { %341 = vst [vmem:[%s524_s2 + $0x8] sm:$0xff] %v334_v51  }

// kernel: generator_forward.12
= control target key start
LH: loop header
LB: loop body
LE: loop exit
PB: predicated region body
PF: predicated region fallthrough
CT: control target
= control target key end

     0   :  { %s550_s0 = inlined_call_operand.vmem [shape: bf16[128,128], index: 0, kind: input, shape index: {}]   ;;  %s551_s1 = inlined_call_operand.vmem [shape: f32[1,128], index: 1, kind: input, shape index: {}]   ;;  %s552_s2 = inlined_call_operand.vmem [shape: f32[1,128], index: 2, kind: input, shape index: {}]   ;;  %s553_s3 = inlined_call_operand.vmem [shape: bf16[128,128], index: 3, kind: output, shape index: {}]  }
   0x1   :  { %v309_v0 = vld [vmem:[%s550_s0] sm:$0xff]   ;;  %v380_v1 = vld [vmem:[%s550_s0 + $0x8] sm:$0xff]   ;;  %v381_v5 = vld [vmem:[%s550_s0 + $0x10] sm:$0xff]  }
   0x2   :  { %v310_v2 = vunpack.c.l.bf16 %v309_v0  ;;  %v311_v3 = vunpack.c.h.bf16 %v309_v0  ;;  %v314_v4 = vunpack.c.l.bf16 %v380_v1  ;;  %v315_v6 = vunpack.c.h.bf16 %v380_v1  ;;  %v382_v10 = vld [vmem:[%s550_s0 + $0x18] sm:$0xff]   ;;  %v383_v15 = vld [vmem:[%s550_s0 + $0x20] sm:$0xff]   ;;  %v384_v20 = vld [vmem:[%s550_s0 + $0x28] sm:$0xff]  }
   0x3   :  { %v318_v8 = vunpack.c.l.bf16 %v381_v5  ;;  %v319_v11 = vunpack.c.h.bf16 %v381_v5  ;;  %v322_v13 = vunpack.c.l.bf16 %v382_v10  ;;  %v323_v16 = vunpack.c.h.bf16 %v382_v10  ;;  %v385_v25 = vld [vmem:[%s550_s0 + $0x30] sm:$0xff]   ;;  %v386_v30 = vld [vmem:[%s550_s0 + $0x38] sm:$0xff]  }
   0x4   :  { %v46_v7 = vadd.f32 %v311_v3, %v310_v2  ;;  %v326_v18 = vunpack.c.l.bf16 %v383_v15  ;;  %v327_v21 = vunpack.c.h.bf16 %v383_v15  ;;  %v330_v23 = vunpack.c.l.bf16 %v384_v20 }
   0x5   :  { %v331_v26 = vunpack.c.h.bf16 %v384_v20  ;;  %v334_v28 = vunpack.c.l.bf16 %v385_v25  ;;  %v335_v31 = vunpack.c.h.bf16 %v385_v25  ;;  %v338_v33 = vunpack.c.l.bf16 %v386_v30 }
   0x6   :  { %v47_v9 = vadd.f32 %v314_v4, %v46_v7  ;;  %v339_v35 = vunpack.c.h.bf16 %v386_v30 }
   0x8   :  { %v48_v12 = vadd.f32 %v315_v6, %v47_v9 }
   0xa   :  { %v49_v14 = vadd.f32 %v318_v8, %v48_v12 }
   0xc   :  { %v50_v17 = vadd.f32 %v319_v11, %v49_v14 }
   0xe   :  { %v51_v19 = vadd.f32 %v322_v13, %v50_v17 }
  0x10   :  { %v52_v22 = vadd.f32 %v323_v16, %v51_v19 }
  0x12   :  { %v53_v24 = vadd.f32 %v326_v18, %v52_v22 }
  0x14   :  { %v54_v27 = vadd.f32 %v327_v21, %v53_v24 }
  0x16   :  { %v55_v29 = vadd.f32 %v330_v23, %v54_v27 }
  0x18   :  { %v56_v32 = vadd.f32 %v331_v26, %v55_v29 }
  0x1a   :  { %v57_v34 = vadd.f32 %v334_v28, %v56_v32 }
  0x1c   :  { %v58_v36 = vadd.f32 %v335_v31, %v57_v34 }
  0x1e   :  { %v59_v37 = vadd.f32 %v338_v33, %v58_v36 }
  0x20   :  { %v60_v38 = vadd.f32 %v339_v35, %v59_v37 }
  0x22   :  { %v61_v39 = vrot.slane %v60_v38, 4 }
  0x24   :  { %v62_v40 = vadd.f32 %v61_v39, %v60_v38 }
  0x26   :  { %v63_v41 = vrot.slane %v62_v40, 2 }
  0x28   :  { %v64_v42 = vadd.f32 %v63_v41, %v62_v40  ;;  %v131_v41 = vlaneseq }
  0x2a   :  { %v65_v43 = vrot.slane %v64_v42, 1 }
  0x2c   :  { %v66_v44 = vadd.f32 %v65_v43, %v64_v42  ;;  %v132_v42 = vshrl.u32 %v131_v41, 7  ;;  %v126_v43 = vld [vmem:[%s551_s1] sm:$0x1] }
  0x2e   :  { %v67_v45 = vmul.f32 0.0078125, %v66_v44  ;;  %v133_v44 = vsub.s32 0, %v132_v42 }
  0x30   :  { %v440_v46 = vsub.f32 %v310_v2, %v67_v45  ;;  %v442_v47 = vsub.f32 %v311_v3, %v67_v45  ;;  %v444_v48 = vsub.f32 %v314_v4, %v67_v45  ;;  %v446_v49 = vsub.f32 %v315_v6, %v67_v45 }
  0x31   :  { %v452_v52 = vsub.f32 %v318_v8, %v67_v45  ;;  %v456_v54 = vsub.f32 %v319_v11, %v67_v45  ;;  %v460_v57 = vsub.f32 %v322_v13, %v67_v45  ;;  %v464_v60 = vsub.f32 %v323_v16, %v67_v45 }
  0x32   :  { %v84_v50 = vmul.f32 %v440_v46, %v440_v46  ;;  %v85_v51 = vmul.f32 %v442_v47, %v442_v47  ;;  %v86_v53 = vmul.f32 %v444_v48, %v444_v48  ;;  %v87_v55 = vmul.f32 %v446_v49, %v446_v49 }
  0x33   :  { %v88_v58 = vmul.f32 %v452_v52, %v452_v52  ;;  %v89_v61 = vmul.f32 %v456_v54, %v456_v54  ;;  %v468_v63 = vsub.f32 %v326_v18, %v67_v45  ;;  %v90_v0 = vmul.f32 %v460_v57, %v460_v57 }
  0x34   :  { %v100_v56 = vadd.f32 %v85_v51, %v84_v50  ;;  %v472_v2 = vsub.f32 %v327_v21, %v67_v45  ;;  %v91_v3 = vmul.f32 %v464_v60, %v464_v60  ;;  %v476_v5 = vsub.f32 %v330_v23, %v67_v45 }
  0x35   :  { %v92_v6 = vmul.f32 %v468_v63, %v468_v63  ;;  %v480_v8 = vsub.f32 %v331_v26, %v67_v45  ;;  %v484_v11 = vsub.f32 %v334_v28, %v67_v45  ;;  %v488_v14 = vsub.f32 %v335_v31, %v67_v45 }
  0x36   :  { %v101_v59 = vadd.f32 %v100_v56, %v86_v53  ;;  %v93_v9 = vmul.f32 %v472_v2, %v472_v2  ;;  %v94_v12 = vmul.f32 %v476_v5, %v476_v5  ;;  %v492_v17 = vsub.f32 %v338_v33, %v67_v45 }
  0x37   :  { %v95_v15 = vmul.f32 %v480_v8, %v480_v8  ;;  %v96_v18 = vmul.f32 %v484_v11, %v484_v11  ;;  %v496_v20 = vsub.f32 %v339_v35, %v67_v45  ;;  %v97_v21 = vmul.f32 %v488_v14, %v488_v14 }
  0x38   :  { %v102_v62 = vadd.f32 %v101_v59, %v87_v55  ;;  %v98_v23 = vmul.f32 %v492_v17, %v492_v17  ;;  %v121_v32 = vmul.f32 0.0, %v67_v45 }
  0x39   :  { %v99_v25 = vmul.f32 %v496_v20, %v496_v20 }
  0x3a   :  { %v103_v1 = vadd.f32 %v102_v62, %v88_v58  ;;  %v122_v35 = vmul.f32 %v121_v32, %v67_v45  ;;  %v275_v45 = vld [vmem:[%s552_s2] ss:$0 sm:$0xff] }
  0x3c   :  { %v104_v4 = vadd.f32 %v103_v1, %v89_v61 }
  0x3e   :  { %v105_v7 = vadd.f32 %v104_v4, %v90_v0 }
  0x40   :  { %v106_v10 = vadd.f32 %v105_v7, %v91_v3 }
  0x42   :  { %v107_v13 = vadd.f32 %v106_v10, %v92_v6 }
  0x44   :  { %v108_v16 = vadd.f32 %v107_v13, %v93_v9 }
  0x46   :  { %v109_v19 = vadd.f32 %v108_v16, %v94_v12 }
  0x48   :  { %v110_v22 = vadd.f32 %v109_v19, %v95_v15 }
  0x4a   :  { %v111_v24 = vadd.f32 %v110_v22, %v96_v18 }
  0x4c   :  { %v112_v26 = vadd.f32 %v111_v24, %v97_v21 }
  0x4e   :  { %v113_v27 = vadd.f32 %v112_v26, %v98_v23 }
  0x50   :  { %v114_v28 = vadd.f32 %v113_v27, %v99_v25 }
  0x52   :  { %v115_v29 = vrot.slane %v114_v28, 4 }
  0x54   :  { %v116_v30 = vadd.f32 %v115_v29, %v114_v28 }
  0x56   :  { %v117_v31 = vrot.slane %v116_v30, 2 }
  0x58   :  { %v118_v33 = vadd.f32 %v117_v31, %v116_v30 }
  0x5a   :  { %v119_v34 = vrot.slane %v118_v33, 1 }
  0x5c   :  { %v120_v36 = vadd.f32 %v119_v34, %v118_v33 }
  0x5e   :  { %v123_v37 = vsub.f32 %v120_v36, %v122_v35 }
  0x60   :  { %v124_v38 = vmul.f32 0.0078125, %v123_v37 }
  0x62   :  { %v125_v39 = vmax.f32 %v124_v38, 0.0 }
  0x64   :  { %v127_v40 = vadd.f32 1e-05, %v125_v39 }
  0x66   :  { %394 = vrsqrt.f32 %v127_v40 }
  0x70   :  { %v395_v50 = vpop.eup %394 }
  0x71   :  { %v129_v51 = vmul.f32 %v395_v50, %v126_v43 }
  0x73   :  { %v134_v53 = vrot.slane %v129_v51, %v133_v44 }
  0x75   :  { %v136_v55 = vmul.f32 %v134_v53, %v440_v46  ;;  %v137_v56 = vmul.f32 %v134_v53, %v442_v47  ;;  %v138_v58 = vmul.f32 %v134_v53, %v444_v48  ;;  %v139_v59 = vmul.f32 %v134_v53, %v446_v49 }
  0x76   :  { %v140_v61 = vmul.f32 %v134_v53, %v452_v52  ;;  %v141_v62 = vmul.f32 %v134_v53, %v456_v54  ;;  %v142_v0 = vmul.f32 %v134_v53, %v460_v57  ;;  %v143_v1 = vmul.f32 %v134_v53, %v464_v60 }
  0x77   :  { %v159_v3 = vadd.f32 %v275_v45, %v136_v55  ;;  %v160_v4 = vadd.f32 %v275_v45, %v137_v56  ;;  %v161_v6 = vadd.f32 %v275_v45, %v138_v58  ;;  %v162_v7 = vadd.f32 %v275_v45, %v139_v59 }
  0x78   :  { %v163_v9 = vadd.f32 %v275_v45, %v140_v61  ;;  %v164_v46 = vadd.f32 %v275_v45, %v141_v62  ;;  %v165_v10 = vadd.f32 %v275_v45, %v142_v0  ;;  %v166_v47 = vadd.f32 %v275_v45, %v143_v1 }
  0x79   :  { %v175_v12 = vmax.f32 %v159_v3, 0.0  ;;  %v176_v48 = vmax.f32 %v160_v4, 0.0  ;;  %v177_v13 = vmax.f32 %v161_v6, 0.0  ;;  %v178_v49 = vmax.f32 %v162_v7, 0.0 }
  0x7a   :  { %v179_v15 = vmax.f32 %v163_v9, 0.0  ;;  %v180_v52 = vmax.f32 %v164_v46, 0.0  ;;  %v181_v16 = vmax.f32 %v165_v10, 0.0  ;;  %v182_v54 = vmax.f32 %v166_v47, 0.0 }
  0x7b   :  { %v343_v18 = vpack.c.bf16 %v176_v48, %v175_v12  ;;  %v348_v57 = vpack.c.bf16 %v178_v49, %v177_v13  ;;  %v144_v60 = vmul.f32 %v134_v53, %v468_v63  ;;  %v145_v19 = vmul.f32 %v134_v53, %v472_v2 }
  0x7c   :  { %v353_v21 = vpack.c.bf16 %v180_v52, %v179_v15  ;;  %v358_v22 = vpack.c.bf16 %v182_v54, %v181_v16  ;;  %v146_v23 = vmul.f32 %v134_v53, %v476_v5  ;;  %v147_v24 = vmul.f32 %v134_v53, %v480_v8 }
  0x7d   :  { %344 = vst [vmem:[%s553_s3] sm:$0xff] %v343_v18   ;;  %387 = vst [vmem:[%s553_s3 + $0x8] sm:$0xff] %v348_v57   ;;  %v167_v25 = vadd.f32 %v275_v45, %v144_v60  ;;  %v168_v26 = vadd.f32 %v275_v45, %v145_v19  ;;  %v148_v63 = vmul.f32 %v134_v53, %v484_v11 }
  0x7e   :  { %v149_v2 = vmul.f32 %v134_v53, %v488_v14  ;;  %388 = vst [vmem:[%s553_s3 + $0x10] sm:$0xff] %v353_v21   ;;  %389 = vst [vmem:[%s553_s3 + $0x18] sm:$0xff] %v358_v22   ;;  %v169_v5 = vadd.f32 %v275_v45, %v146_v23  ;;  %v170_v8 = vadd.f32 %v275_v45, %v147_v24 }
  0x7f   :  { %v150_v27 = vmul.f32 %v134_v53, %v492_v17  ;;  %v151_v28 = vmul.f32 %v134_v53, %v496_v20  ;;  %v183_v29 = vmax.f32 %v167_v25, 0.0  ;;  %v184_v30 = vmax.f32 %v168_v26, 0.0 }
  0x80   :  { %v171_v31 = vadd.f32 %v275_v45, %v148_v63  ;;  %v172_v11 = vadd.f32 %v275_v45, %v149_v2  ;;  %v185_v32 = vmax.f32 %v169_v5, 0.0  ;;  %v186_v14 = vmax.f32 %v170_v8, 0.0 }
  0x81   :  { %v173_v33 = vadd.f32 %v275_v45, %v150_v27  ;;  %v174_v34 = vadd.f32 %v275_v45, %v151_v28  ;;  %v363_v35 = vpack.c.bf16 %v184_v30, %v183_v29 }
  0x82   :  { %v187_v36 = vmax.f32 %v171_v31, 0.0  ;;  %v188_v37 = vmax.f32 %v172_v11, 0.0  ;;  %v368_v38 = vpack.c.bf16 %v186_v14, %v185_v32 }
  0x83   :  { %v189_v39 = vmax.f32 %v173_v33, 0.0  ;;  %v190_v40 = vmax.f32 %v174_v34, 0.0  ;;  %390 = vst [vmem:[%s553_s3 + $0x20] sm:$0xff] %v363_v35  }
  0x84   :  { %v373_v17 = vpack.c.bf16 %v188_v37, %v187_v36  ;;  %391 = vst [vmem:[%s553_s3 + $0x28] sm:$0xff] %v368_v38  }
  0x85   :  { %v378_v20 = vpack.c.bf16 %v190_v40, %v189_v39 }
  0x86   :  { %392 = vst [vmem:[%s553_s3 + $0x30] sm:$0xff] %v373_v17  }
  0x87   :  { %393 = vst [vmem:[%s553_s3 + $0x38] sm:$0xff] %v378_v20  }

// kernel: generator_forward.13
= control target key start
LH: loop header
LB: loop body
LE: loop exit
PB: predicated region body
PF: predicated region fallthrough
CT: control target
= control target key end

     0   :  { %v627_v0 = vmov 0.0   ;;  %vm628_vm0 = vmmov 0   ;;  %s772_s1 = inlined_call_operand.vmem [shape: bf16[128,128], index: 1, kind: input, shape index: {}]   ;;  %s773_s0 = inlined_call_operand.vmem [shape: bf16[168,128], index: 0, kind: input, shape index: {}]   ;;  %s774_s2 = inlined_call_operand.vmem [shape: bf16[168,128], index: 2, kind: output, shape index: {}]  }
   0x1   :  { %530 = vmatprep.subr.bf16.mxu0 %v627_v0  ;;  %v608_v1 = vld [vmem:[%s772_s1] sm:$0xff]   ;;  %590 = vmatprep.subr.bf16.mxu1 %v627_v0  ;;  %v609_v2 = vld [vmem:[%s772_s1 + $0x8] sm:$0xff]   ;;  %v610_v3 = vld [vmem:[%s772_s1 + $0x10] sm:$0xff]  }
   0x2   :  { %546 = vmatprep.mubr.msk.bf16.mxu0 %vm628_vm0, %v627_v0  ;;  %570 = vmatprep.mubr.msk.bf16.mxu1 %vm628_vm0, %v627_v0  ;;  %v611_v4 = vld [vmem:[%s772_s1 + $0x18] sm:$0xff]   ;;  %v612_v5 = vld [vmem:[%s772_s1 + $0x20] sm:$0xff]   ;;  %v613_v6 = vld [vmem:[%s772_s1 + $0x28] sm:$0xff]  }
   0x3   :  { %531 = vmatpush3.bf16.msra.mxu0 %v608_v1  ;;  %598 = vmatpush3.bf16.msra.mxu1 %v608_v1  ;;  %v614_v7 = vld [vmem:[%s772_s1 + $0x30] sm:$0xff]   ;;  %v615_v8 = vld [vmem:[%s772_s1 + $0x38] sm:$0xff]   ;;  %v616_v9 = vld [vmem:[%s773_s0] sm:$0xff]  }
   0x4   :  { %532 = vmatprep.subr.bf16.mxu0 %v627_v0  ;;  %591 = vmatprep.subr.bf16.mxu1 %v627_v0  ;;  %v617_v10 = vld [vmem:[%s773_s0 + $0x30] sm:$0xff]   ;;  %v618_v11 = vld [vmem:[%s773_s0 + $0x8] sm:$0xff]   ;;  %v619_v12 = vld [vmem:[%s773_s0 + $0x38] sm:$0xff]  }
   0x5   :  { %v620_v13 = vld [vmem:[%s773_s0 + $0x10] sm:$0xff]   ;;  %v621_v14 = vld [vmem:[%s773_s0 + $0x40] sm:$0xff]   ;;  %v622_v15 = vld [vmem:[%s773_s0 + $0x18] sm:$0xff]  }
   0x6   :  { %v623_v16 = vld [vmem:[%s773_s0 + $0x48] sm:$0xff]   ;;  %v624_v17 = vld [vmem:[%s773_s0 + $0x20] sm:$0xff]   ;;  %v625_v18 = vld [vmem:[%s773_s0 + $0x50] ss:$0 sps:$4 sm:$0xff]  }
   0x7   :  { %533 = vmatpush3.bf16.msra.mxu0 %v609_v2  ;;  %599 = vmatpush3.bf16.msra.mxu1 %v609_v2  ;;  %v626_v19 = vld [vmem:[%s773_s0 + $0x28] sm:$0xff]  }
   0x8   :  { %534 = vmatprep.subr.bf16.mxu0 %v627_v0  ;;  %592 = vmatprep.subr.bf16.mxu1 %v627_v0 }
   0xb   :  { %535 = vmatpush3.bf16.msra.mxu0 %v610_v3  ;;  %600 = vmatpush3.bf16.msra.mxu1 %v610_v3 }
   0xc   :  { %536 = vmatprep.subr.bf16.mxu0 %v627_v0  ;;  %593 = vmatprep.subr.bf16.mxu1 %v627_v0 }
   0xf   :  { %537 = vmatpush3.bf16.msra.mxu0 %v611_v4  ;;  %601 = vmatpush3.bf16.msra.mxu1 %v611_v4 }
  0x10   :  { %538 = vmatprep.subr.bf16.mxu0 %v627_v0  ;;  %594 = vmatprep.subr.bf16.mxu1 %v627_v0 }
  0x13   :  { %539 = vmatpush3.bf16.msra.mxu0 %v612_v5  ;;  %602 = vmatpush3.bf16.msra.mxu1 %v612_v5 }
  0x14   :  { %540 = vmatprep.subr.bf16.mxu0 %v627_v0  ;;  %595 = vmatprep.subr.bf16.mxu1 %v627_v0 }
  0x17   :  { %541 = vmatpush3.bf16.msra.mxu0 %v613_v6  ;;  %603 = vmatpush3.bf16.msra.mxu1 %v613_v6 }
  0x18   :  { %542 = vmatprep.subr.bf16.mxu0 %v627_v0  ;;  %596 = vmatprep.subr.bf16.mxu1 %v627_v0 }
  0x1b   :  { %543 = vmatpush3.bf16.msra.mxu0 %v614_v7  ;;  %604 = vmatpush3.bf16.msra.mxu1 %v614_v7 }
  0x1c   :  { %544 = vmatprep.subr.bf16.mxu0 %v627_v0  ;;  %597 = vmatprep.subr.bf16.mxu1 %v627_v0 }
  0x1f   :  { %545 = vmatpush3.bf16.msra.mxu0 %v615_v8  ;;  %605 = vmatpush3.bf16.msra.mxu1 %v615_v8 }
  0x22   :  { %547 = vmatmul.mubr.bf16.vlgmr.msra.gmra.mrb[0].mxu0 %v616_v9  ;;  %571 = vmatmul.mubr.bf16.vlgmr.msra.gmra.mrb[0].mxu1 %v617_v10 }
  0x23   :  { %550 = vmatprep.mubr.msk.bf16.mxu0 %vm628_vm0, %v627_v0  ;;  %574 = vmatprep.mubr.msk.bf16.mxu1 %vm628_vm0, %v627_v0 }
  0x2a   :  { %551 = vmatmul.mubr.bf16.gmra.mrb[4].mxu0 %v618_v11  ;;  %575 = vmatmul.mubr.bf16.gmra.mrb[4].mxu1 %v619_v12 }
  0x2b   :  { %554 = vmatprep.mubr.msk.bf16.mxu0 %vm628_vm0, %v627_v0  ;;  %578 = vmatprep.mubr.msk.bf16.mxu1 %vm628_vm0, %v627_v0 }
  0x32   :  { %555 = vmatmul.mubr.bf16.gmra.mrb[8].mxu0 %v620_v13  ;;  %579 = vmatmul.mubr.bf16.gmra.mrb[8].mxu1 %v621_v14 }
  0x33   :  { %558 = vmatprep.mubr.msk.bf16.mxu0 %vm628_vm0, %v627_v0  ;;  %582 = vmatprep.mubr.msk.bf16.mxu1 %vm628_vm0, %v627_v0 }
  0x3a   :  { %559 = vmatmul.mubr.bf16.gmra.mrb[12].mxu0 %v622_v15  ;;  %583 = vmatmul.mubr.bf16.gmra.mrb[12].mxu1 %v623_v16 }
  0x3b   :  { %562 = vmatprep.mubr.msk.bf16.mxu0 %vm628_vm0, %v627_v0  ;;  %586 = vmatprep.mubr.msk.bf16.mxu1 %vm628_vm0, %v627_v0 }
  0x42   :  { %563 = vmatmul.mubr.bf16.gmra.mrb[16].mxu0 %v624_v17  ;;  %587 = vmatmul.mubr.bf16.gmra.mrb[16].mxu1 %v625_v18 }
  0x43   :  { %566 = vmatprep.mubr.msk.bf16.mxu0 %vm628_vm0, %v627_v0 }
  0x4a   :  { %567 = vmatmul.mubr.bf16.gmra.mrb[20].mxu0 %v626_v19 }
  0xf5   :  { %v195_v20 = vpop.f32.mrb[0].mxu0  ;;  %v243_v21 = vpop.f32.mrb[0].mxu1 }
  0xf6   :  { %v548_v22 = vpop.f32.mrb[1].mxu0  ;;  %v572_v23 = vpop.f32.mrb[1].mxu1 }
  0xf7   :  { %v198_v24 = vpop.f32.mrb[2].mxu0  ;;  %v246_v25 = vpop.f32.mrb[2].mxu1 }
  0xf8   :  { %v455_v26 = vpack.c.bf16 %v198_v24, %v195_v20  ;;  %v549_v27 = vpop.f32.mrb[3].mxu0  ;;  %v485_v28 = vpack.c.bf16 %v246_v25, %v243_v21  ;;  %v573_v29 = vpop.f32.mrb[3].mxu1 }
  0xfa   :  { %456 = vst [vmem:[%s774_s2] sm:$0xff] %v455_v26   ;;  %507 = vst [vmem:[%s774_s2 + $0x30] sm:$0xff] %v485_v28  }
  0xfd   :  { %v203_v30 = vpop.f32.mrb[4].mxu0  ;;  %v251_v31 = vpop.f32.mrb[4].mxu1 }
  0xfe   :  { %v552_v32 = vpop.f32.mrb[5].mxu0  ;;  %v576_v33 = vpop.f32.mrb[5].mxu1 }
  0xff   :  { %v206_v34 = vpop.f32.mrb[6].mxu0  ;;  %v254_v35 = vpop.f32.mrb[6].mxu1 }
 0x100   :  { %v460_v36 = vpack.c.bf16 %v206_v34, %v203_v30  ;;  %v553_v37 = vpop.f32.mrb[7].mxu0  ;;  %v490_v38 = vpack.c.bf16 %v254_v35, %v251_v31  ;;  %v577_v39 = vpop.f32.mrb[7].mxu1 }
 0x102   :  { %502 = vst [vmem:[%s774_s2 + $0x8] sm:$0xff] %v460_v36   ;;  %508 = vst [vmem:[%s774_s2 + $0x38] sm:$0xff] %v490_v38  }
 0x105   :  { %v211_v40 = vpop.f32.mrb[8].mxu0  ;;  %v259_v41 = vpop.f32.mrb[8].mxu1 }
 0x106   :  { %v556_v42 = vpop.f32.mrb[9].mxu0  ;;  %v580_v43 = vpop.f32.mrb[9].mxu1 }
 0x107   :  { %v214_v44 = vpop.f32.mrb[10].mxu0  ;;  %v262_v45 = vpop.f32.mrb[10].mxu1 }
 0x108   :  { %v465_v46 = vpack.c.bf16 %v214_v44, %v211_v40  ;;  %v557_v47 = vpop.f32.mrb[11].mxu0  ;;  %v495_v48 = vpack.c.bf16 %v262_v45, %v259_v41  ;;  %v581_v49 = vpop.f32.mrb[11].mxu1 }
 0x10a   :  { %503 = vst [vmem:[%s774_s2 + $0x10] sm:$0xff] %v465_v46   ;;  %509 = vst [vmem:[%s774_s2 + $0x40] sm:$0xff] %v495_v48  }
 0x10d   :  { %v219_v50 = vpop.f32.mrb[12].mxu0  ;;  %v267_v51 = vpop.f32.mrb[12].mxu1 }
 0x10e   :  { %v560_v52 = vpop.f32.mrb[13].mxu0  ;;  %v584_v53 = vpop.f32.mrb[13].mxu1 }
 0x10f   :  { %v222_v54 = vpop.f32.mrb[14].mxu0  ;;  %v270_v55 = vpop.f32.mrb[14].mxu1 }
 0x110   :  { %v470_v56 = vpack.c.bf16 %v222_v54, %v219_v50  ;;  %v561_v57 = vpop.f32.mrb[15].mxu0  ;;  %v500_v58 = vpack.c.bf16 %v270_v55, %v267_v51  ;;  %v585_v59 = vpop.f32.mrb[15].mxu1 }
 0x112   :  { %504 = vst [vmem:[%s774_s2 + $0x18] sm:$0xff] %v470_v56   ;;  %510 = vst [vmem:[%s774_s2 + $0x48] sm:$0xff] %v500_v58  }
 0x115   :  { %v227_v60 = vpop.f32.mrb[16].mxu0  ;;  %v275_v61 = vpop.f32.mrb[16].mxu1 }
 0x116   :  { %v564_v62 = vpop.f32.mrb[17].mxu0  ;;  %v451_v63 = vpack.c.bf16 %v275_v61, %v275_v61  ;;  %v588_v0 = vpop.f32.mrb[17].mxu1 }
 0x117   :  { %v230_v1 = vpop.f32.mrb[18].mxu0  ;;  %v278_v2 = vpop.f32.mrb[18].mxu1 }
 0x118   :  { %v475_v3 = vpack.c.bf16 %v230_v1, %v227_v60  ;;  %v565_v4 = vpop.f32.mrb[19].mxu0  ;;  %386 = vst [vmem:[%s774_s2 + $0x50] sm:$0xf] %v451_v63  ;;  %v589_v5 = vpop.f32.mrb[19].mxu1 }
 0x11a   :  { %505 = vst [vmem:[%s774_s2 + $0x20] sm:$0xff] %v475_v3  }
 0x11d   :  { %v235_v6 = vpop.f32.mrb[20].mxu0 }
 0x11e   :  { %v568_v7 = vpop.f32.mrb[21].mxu0 }
 0x11f   :  { %v238_v8 = vpop.f32.mrb[22].mxu0 }
 0x120   :  { %v480_v9 = vpack.c.bf16 %v238_v8, %v235_v6  ;;  %v569_v10 = vpop.f32.mrb[23].mxu0 }
 0x122   :  { %506 = vst [vmem:[%s774_s2 + $0x28] sm:$0xff] %v480_v9  }

// kernel: generator_forward.14
= control target key start
LH: loop header
LB: loop body
LE: loop exit
PB: predicated region body
PF: predicated region fallthrough
CT: control target
= control target key end

     0   :  { %s2438_s0 = inlined_call_operand.vmem [shape: bf16[512,128], index: 0, kind: input, shape index: {}]   ;;  %s2439_s1 = inlined_call_operand.vmem [shape: f32[1,128], index: 1, kind: input, shape index: {}]   ;;  %s2440_s2 = inlined_call_operand.vmem [shape: f32[1,128], index: 2, kind: input, shape index: {}]   ;;  %s2441_s3 = inlined_call_operand.vmem [shape: bf16[512,128], index: 3, kind: output, shape index: {}]  }
   0x1   :  { %v1451_v0 = vld [vmem:[%s2438_s0] sm:$0xff]   ;;  %v1456_v1 = vld [vmem:[%s2438_s0 + $0x8] sm:$0xff]   ;;  %v1464_v5 = vld [vmem:[%s2438_s0 + $0x10] sm:$0xff]  }
   0x2   :  { %v1078_v2 = vunpack.c.l.bf16 %v1451_v0  ;;  %v1079_v3 = vunpack.c.h.bf16 %v1451_v0  ;;  %v1082_v4 = vunpack.c.l.bf16 %v1456_v1  ;;  %v1083_v6 = vunpack.c.h.bf16 %v1456_v1  ;;  %v1477_v10 = vld [vmem:[%s2438_s0 + $0x18] sm:$0xff]   ;;  %v1488_v15 = vld [vmem:[%s2438_s0 + $0x20] sm:$0xff]   ;;  %v1499_v20 = vld [vmem:[%s2438_s0 + $0x28] sm:$0xff]  }
   0x3   :  { %v1086_v8 = vunpack.c.l.bf16 %v1464_v5  ;;  %v1087_v11 = vunpack.c.h.bf16 %v1464_v5  ;;  %v2480_v13 = vunpack.c.l.bf16 %v1477_v10  ;;  %v2479_v16 = vunpack.c.h.bf16 %v1477_v10  ;;  %v1510_v25 = vld [vmem:[%s2438_s0 + $0x30] sm:$0xff]   ;;  %v1521_v30 = vld [vmem:[%s2438_s0 + $0x38] sm:$0xff]   ;;  %v1532_v35 = vld [vmem:[%s2438_s0 + $0x40] sm:$0xff]  }
   0x4   :  { %v142_v7 = vadd.f32 %v1079_v3, %v1078_v2  ;;  %v2478_v18 = vunpack.c.l.bf16 %v1488_v15  ;;  %v2477_v21 = vunpack.c.h.bf16 %v1488_v15  ;;  %v2476_v23 = vunpack.c.l.bf16 %v1499_v20  ;;  %v1543_v40 = vld [vmem:[%s2438_s0 + $0x48] sm:$0xff]   ;;  %v1554_v45 = vld [vmem:[%s2438_s0 + $0x50] sm:$0xff]   ;;  %v1565_v50 = vld [vmem:[%s2438_s0 + $0x58] sm:$0xff]  }
   0x5   :  { %v2475_v26 = vunpack.c.h.bf16 %v1499_v20  ;;  %v2474_v28 = vunpack.c.l.bf16 %v1510_v25  ;;  %v2473_v31 = vunpack.c.h.bf16 %v1510_v25  ;;  %v2472_v33 = vunpack.c.l.bf16 %v1521_v30  ;;  %v1576_v55 = vld [vmem:[%s2438_s0 + $0x60] sm:$0xff]   ;;  %v1587_v60 = vld [vmem:[%s2438_s0 + $0x68] sm:$0xff]  }
   0x6   :  { %v143_v9 = vadd.f32 %v1082_v4, %v142_v7  ;;  %v2471_v36 = vunpack.c.h.bf16 %v1521_v30  ;;  %v2470_v38 = vunpack.c.l.bf16 %v1532_v35  ;;  %v2469_v41 = vunpack.c.h.bf16 %v1532_v35 }
   0x7   :  { %v2468_v43 = vunpack.c.l.bf16 %v1543_v40  ;;  %v2467_v46 = vunpack.c.h.bf16 %v1543_v40  ;;  %v2466_v48 = vunpack.c.l.bf16 %v1554_v45  ;;  %v2465_v51 = vunpack.c.h.bf16 %v1554_v45 }
   0x8   :  { %v144_v12 = vadd.f32 %v1083_v6, %v143_v9  ;;  %v2464_v53 = vunpack.c.l.bf16 %v1565_v50  ;;  %v2463_v56 = vunpack.c.h.bf16 %v1565_v50  ;;  %v2460_v58 = vunpack.c.l.bf16 %v1576_v55  ;;  %v1598_v9 = vld [vmem:[%s2438_s0 + $0x70] sm:$0xff]  }
   0x9   :  { %v2459_v61 = vunpack.c.h.bf16 %v1576_v55  ;;  %v2458_v63 = vunpack.c.l.bf16 %v1587_v60 }
   0xa   :  { %v145_v14 = vadd.f32 %v1086_v8, %v144_v12  ;;  %v2457_v12 = vunpack.c.h.bf16 %v1587_v60 }
   0xc   :  { %v146_v17 = vadd.f32 %v1087_v11, %v145_v14 }
   0xe   :  { %v147_v19 = vadd.f32 %v2480_v13, %v146_v17  ;;  %v2455_v17 = vunpack.c.l.bf16 %v1598_v9 }
  0x10   :  { %v148_v22 = vadd.f32 %v2479_v16, %v147_v19 }
  0x12   :  { %v149_v24 = vadd.f32 %v2478_v18, %v148_v22  ;;  %v1609_v22 = vld [vmem:[%s2438_s0 + $0x78] sm:$0xff]  }
  0x14   :  { %v150_v27 = vadd.f32 %v2477_v21, %v149_v24  ;;  %v2453_v24 = vunpack.c.h.bf16 %v1598_v9 }
  0x16   :  { %v151_v29 = vadd.f32 %v2476_v23, %v150_v27 }
  0x18   :  { %v152_v32 = vadd.f32 %v2475_v26, %v151_v29  ;;  %v2452_v29 = vunpack.c.l.bf16 %v1609_v22 }
  0x1a   :  { %v153_v34 = vadd.f32 %v2474_v28, %v152_v32 }
  0x1c   :  { %v154_v37 = vadd.f32 %v2473_v31, %v153_v34  ;;  %v1620_v34 = vld [vmem:[%s2438_s0 + $0x80] sm:$0xff]  }
  0x1e   :  { %v155_v39 = vadd.f32 %v2472_v33, %v154_v37  ;;  %v2449_v37 = vunpack.c.h.bf16 %v1609_v22 }
  0x20   :  { %v156_v42 = vadd.f32 %v2471_v36, %v155_v39 }
  0x22   :  { %v157_v44 = vadd.f32 %v2470_v38, %v156_v42  ;;  %v2446_v42 = vunpack.c.l.bf16 %v1620_v34 }
  0x24   :  { %v158_v47 = vadd.f32 %v2469_v41, %v157_v44 }
  0x26   :  { %v159_v49 = vadd.f32 %v2468_v43, %v158_v47  ;;  %v1631_v47 = vld [vmem:[%s2438_s0 + $0x88] sm:$0xff]  }
  0x28   :  { %v160_v52 = vadd.f32 %v2467_v46, %v159_v49  ;;  %v2443_v49 = vunpack.c.h.bf16 %v1620_v34 }
  0x2a   :  { %v161_v54 = vadd.f32 %v2466_v48, %v160_v52 }
  0x2c   :  { %v162_v57 = vadd.f32 %v2465_v51, %v161_v54  ;;  %v2442_v54 = vunpack.c.l.bf16 %v1631_v47 }
  0x2e   :  { %v163_v59 = vadd.f32 %v2464_v53, %v162_v57 }
  0x30   :  { %v164_v62 = vadd.f32 %v2463_v56, %v163_v59  ;;  %v1642_v59 = vld [vmem:[%s2438_s0 + $0x90] sm:$0xff]  }
  0x32   :  { %v165_v7 = vadd.f32 %v2460_v58, %v164_v62  ;;  %v2444_v62 = vunpack.c.h.bf16 %v1631_v47 }
  0x34   :  { %v166_v14 = vadd.f32 %v2459_v61, %v165_v7 }
  0x36   :  { %v167_v19 = vadd.f32 %v2458_v63, %v166_v14  ;;  %v2445_v14 = vunpack.c.l.bf16 %v1642_v59 }
  0x38   :  { %v168_v27 = vadd.f32 %v2457_v12, %v167_v19  ;;  %v1388_v12 = vld [vmem:[%s2438_s0 + $0xc8] sm:$0xff]  }
  0x39   :  { %v1178_v58 = vunpack.c.l.bf16 %v1388_v12 }
  0x3a   :  { %v169_v32 = vadd.f32 %v2455_v17, %v168_v27  ;;  %v1653_v27 = vld [vmem:[%s2438_s0 + $0x98] sm:$0xff]  }
  0x3c   :  { %v170_v39 = vadd.f32 %v2453_v24, %v169_v32  ;;  %v2447_v32 = vunpack.c.h.bf16 %v1642_v59 }
  0x3e   :  { %v171_v44 = vadd.f32 %v2452_v29, %v170_v39 }
  0x40   :  { %v172_v52 = vadd.f32 %v2449_v37, %v171_v44  ;;  %v2448_v44 = vunpack.c.l.bf16 %v1653_v27 }
  0x42   :  { %v173_v57 = vadd.f32 %v2446_v42, %v172_v52 }
  0x44   :  { %v174_v7 = vadd.f32 %v2443_v49, %v173_v57  ;;  %v1664_v57 = vld [vmem:[%s2438_s0 + $0xa0] sm:$0xff]  }
  0x45   :  { %v2451_v49 = vunpack.c.l.bf16 %v1664_v57 }
  0x46   :  { %v175_v19 = vadd.f32 %v2442_v54, %v174_v7  ;;  %v2450_v7 = vunpack.c.h.bf16 %v1653_v27 }
  0x48   :  { %v176_v39 = vadd.f32 %v2444_v62, %v175_v19  ;;  %v1675_v62 = vld [vmem:[%s2438_s0 + $0xa8] sm:$0xff]  }
  0x49   :  { %v2456_v42 = vunpack.c.l.bf16 %v1675_v62 }
  0x4a   :  { %v177_v52 = vadd.f32 %v2445_v14, %v176_v39  ;;  %v2454_v39 = vunpack.c.h.bf16 %v1664_v57 }
  0x4c   :  { %v178_v54 = vadd.f32 %v2447_v32, %v177_v52  ;;  %v1686_v32 = vld [vmem:[%s2438_s0 + $0xb0] sm:$0xff]  }
  0x4d   :  { %v2461_v37 = vunpack.c.l.bf16 %v1686_v32 }
  0x4e   :  { %v179_v19 = vadd.f32 %v2448_v44, %v178_v54  ;;  %v2462_v54 = vunpack.c.h.bf16 %v1675_v62 }
  0x50   :  { %v180_v14 = vadd.f32 %v2450_v7, %v179_v19  ;;  %v1386_v7 = vld [vmem:[%s2438_s0 + $0xb8] sm:$0xff]  }
  0x51   :  { %v1170_v29 = vunpack.c.l.bf16 %v1386_v7 }
  0x52   :  { %v181_v52 = vadd.f32 %v2451_v49, %v180_v14  ;;  %v1167_v14 = vunpack.c.h.bf16 %v1686_v32 }
  0x54   :  { %v182_v44 = vadd.f32 %v2454_v39, %v181_v52  ;;  %v1387_v52 = vld [vmem:[%s2438_s0 + $0xc0] sm:$0xff]   ;;  %v1171_v39 = vunpack.c.h.bf16 %v1386_v7 }
  0x55   :  { %v1175_v63 = vunpack.c.h.bf16 %v1387_v52 }
  0x56   :  { %v183_v19 = vadd.f32 %v2456_v42, %v182_v44  ;;  %v1174_v44 = vunpack.c.l.bf16 %v1387_v52 }
  0x58   :  { %v184_v49 = vadd.f32 %v2462_v54, %v183_v19 }
  0x5a   :  { %v185_v24 = vadd.f32 %v2461_v37, %v184_v49  ;;  %v1389_v49 = vld [vmem:[%s2438_s0 + $0xd0] sm:$0xff]   ;;  %v1179_v37 = vunpack.c.h.bf16 %v1388_v12  ;;  %v1392_v12 = vld [vmem:[%s2438_s0 + $0xe8] sm:$0xff]  }
  0x5b   :  { %v1182_v56 = vunpack.c.l.bf16 %v1389_v49  ;;  %v1194_v41 = vunpack.c.l.bf16 %v1392_v12 }
  0x5c   :  { %v186_v17 = vadd.f32 %v1167_v14, %v185_v24  ;;  %v1183_v24 = vunpack.c.h.bf16 %v1389_v49  ;;  %v1195_v49 = vunpack.c.h.bf16 %v1392_v12 }
  0x5e   :  { %v187_v42 = vadd.f32 %v1170_v29, %v186_v17  ;;  %v1390_v17 = vld [vmem:[%s2438_s0 + $0xd8] sm:$0xff]  }
  0x5f   :  { %v1186_v51 = vunpack.c.l.bf16 %v1390_v17 }
  0x60   :  { %v188_v61 = vadd.f32 %v1171_v39, %v187_v42  ;;  %v1187_v42 = vunpack.c.h.bf16 %v1390_v17 }
  0x62   :  { %v189_v19 = vadd.f32 %v1174_v44, %v188_v61  ;;  %v1391_v61 = vld [vmem:[%s2438_s0 + $0xe0] sm:$0xff]  }
  0x63   :  { %v1190_v46 = vunpack.c.l.bf16 %v1391_v61 }
  0x64   :  { %v190_v54 = vadd.f32 %v1175_v63, %v189_v19 }
  0x66   :  { %v191_v53 = vadd.f32 %v1178_v58, %v190_v54  ;;  %v1191_v54 = vunpack.c.h.bf16 %v1391_v61 }
  0x68   :  { %v192_v7 = vadd.f32 %v1179_v37, %v191_v53  ;;  %v1393_v53 = vld [vmem:[%s2438_s0 + $0xf0] sm:$0xff]  }
  0x69   :  { %v1198_v36 = vunpack.c.l.bf16 %v1393_v53  ;;  %v1199_v17 = vunpack.c.h.bf16 %v1393_v53 }
  0x6a   :  { %v193_v48 = vadd.f32 %v1182_v56, %v192_v7 }
  0x6c   :  { %v194_v52 = vadd.f32 %v1183_v24, %v193_v48  ;;  %v1394_v48 = vld [vmem:[%s2438_s0 + $0xf8] sm:$0xff]  }
  0x6d   :  { %v1202_v31 = vunpack.c.l.bf16 %v1394_v48  ;;  %v1203_v61 = vunpack.c.h.bf16 %v1394_v48 }
  0x6e   :  { %v195_v43 = vadd.f32 %v1186_v51, %v194_v52 }
  0x70   :  { %v196_v19 = vadd.f32 %v1187_v42, %v195_v43 }
  0x72   :  { %v197_v38 = vadd.f32 %v1190_v46, %v196_v19 }
  0x74   :  { %v198_v7 = vadd.f32 %v1191_v54, %v197_v38 }
  0x76   :  { %v199_v33 = vadd.f32 %v1194_v41, %v198_v7 }
  0x78   :  { %v200_v52 = vadd.f32 %v1195_v49, %v199_v33 }
  0x7a   :  { %v201_v28 = vadd.f32 %v1198_v36, %v200_v52 }
  0x7c   :  { %v202_v43 = vadd.f32 %v1199_v17, %v201_v28 }
  0x7e   :  { %v203_v26 = vadd.f32 %v1202_v31, %v202_v43 }
  0x80   :  { %v204_v19 = vadd.f32 %v1203_v61, %v203_v26 }
  0x82   :  { %v205_v23 = vrot.slane %v204_v19, 4 }
  0x84   :  { %v206_v21 = vadd.f32 %v205_v23, %v204_v19 }
  0x86   :  { %v207_v18 = vrot.slane %v206_v21, 2 }
  0x88   :  { %v208_v16 = vadd.f32 %v207_v18, %v206_v21 }
  0x8a   :  { %v209_v12 = vrot.slane %v208_v16, 1 }
  0x8c   :  { %v210_v38 = vadd.f32 %v209_v12, %v208_v16 }
  0x8e   :  { %v1726_v13 = vmul.f32 0.001953125, %v210_v38  ;;  %v2513_v38 = vunpack.c.h.bf16 %v1488_v15 }
  0x90   :  { %v1729_v7 = vsub.f32 %v1167_v14, %v1726_v13  ;;  %v1732_v53 = vsub.f32 %v1170_v29, %v1726_v13  ;;  %v1735_v33 = vsub.f32 %v1171_v39, %v1726_v13  ;;  %v1738_v28 = vsub.f32 %v1174_v44, %v1726_v13 }
  0x91   :  { %v1741_v23 = vsub.f32 %v1175_v63, %v1726_v13  ;;  %v1744_v18 = vsub.f32 %v1178_v58, %v1726_v13  ;;  %v1747_v16 = vsub.f32 %v1179_v37, %v1726_v13  ;;  %v1750_v21 = vsub.f32 %v1182_v56, %v1726_v13 }
  0x92   :  { %v1753_v26 = vsub.f32 %v1183_v24, %v1726_v13  ;;  %v1756_v29 = vsub.f32 %v1186_v51, %v1726_v13  ;;  %v1759_v39 = vsub.f32 %v1187_v42, %v1726_v13  ;;  %v1762_v63 = vsub.f32 %v1190_v46, %v1726_v13 }
  0x93   :  { %v1765_v58 = vsub.f32 %v1191_v54, %v1726_v13  ;;  %v1768_v37 = vsub.f32 %v1194_v41, %v1726_v13  ;;  %v1771_v56 = vsub.f32 %v1195_v49, %v1726_v13  ;;  %v1774_v14 = vsub.f32 %v1198_v36, %v1726_v13 }
  0x94   :  { %v1777_v51 = vsub.f32 %v1199_v17, %v1726_v13  ;;  %v1780_v44 = vsub.f32 %v1202_v31, %v1726_v13  ;;  %v1783_v46 = vsub.f32 %v1203_v61, %v1726_v13  ;;  %v1788_v41 = vsub.f32 %v1078_v2, %v1726_v13 }
  0x95   :  { %2503 = vst [vmem:[#allocation2_spill] sm:$0xff] %v1765_v58  ;;  %2504 = vst [vmem:[#allocation3_spill] sm:$0xff] %v1768_v37  ;;  %v1793_v24 = vsub.f32 %v1079_v3, %v1726_v13  ;;  %v1798_v36 = vsub.f32 %v1082_v4, %v1726_v13  ;;  %v1803_v31 = vsub.f32 %v1083_v6, %v1726_v13  ;;  %v2510_v54 = vunpack.c.l.bf16 %v1477_v10 }
  0x96   :  { %2505 = vst [vmem:[#allocation4_spill] sm:$0xff] %v1771_v56  ;;  %2506 = vst [vmem:[#allocation5_spill] sm:$0xff] %v1774_v14  ;;  %v276_v42 = vmul.f32 %v1788_v41, %v1788_v41  ;;  %v1812_v0 = vsub.f32 %v1086_v8, %v1726_v13  ;;  %v1819_v1 = vsub.f32 %v1087_v11, %v1726_v13  ;;  %v2511_v17 = vunpack.c.h.bf16 %v1477_v10 }
  0x97   :  { %2507 = vst [vmem:[#allocation6_spill] sm:$0xff] %v1777_v51  ;;  %2508 = vst [vmem:[#allocation7_spill] sm:$0xff] %v1780_v44  ;;  %v277_v2 = vmul.f32 %v1793_v24, %v1793_v24  ;;  %v278_v3 = vmul.f32 %v1798_v36, %v1798_v36  ;;  %v279_v4 = vmul.f32 %v1803_v31, %v1803_v31  ;;  %v2512_v61 = vunpack.c.l.bf16 %v1488_v15 }
  0x98   :  { %2509 = vst [vmem:[#allocation8_spill] sm:$0xff] %v1783_v46  ;;  %v1826_v49 = vsub.f32 %v2510_v54, %v1726_v13  ;;  %v280_v8 = vmul.f32 %v1812_v0, %v1812_v0  ;;  %v1833_v52 = vsub.f32 %v2511_v17, %v1726_v13  ;;  %v281_v5 = vmul.f32 %v1819_v1, %v1819_v1 }
  0x99   :  { %v340_v6 = vadd.f32 %v277_v2, %v276_v42  ;;  %v1840_v43 = vsub.f32 %v2512_v61, %v1726_v13  ;;  %v1847_v42 = vsub.f32 %v2513_v38, %v1726_v13 }
  0x9a   :  { %v282_v19 = vmul.f32 %v1826_v49, %v1826_v49  ;;  %v283_v10 = vmul.f32 %v1833_v52, %v1833_v52 }
  0x9b   :  { %v341_v48 = vadd.f32 %v340_v6, %v278_v3  ;;  %v2514_v3 = vunpack.c.l.bf16 %v1499_v20  ;;  %v284_v6 = vmul.f32 %v1840_v43, %v1840_v43  ;;  %v285_v15 = vmul.f32 %v1847_v42, %v1847_v42 }
  0x9d   :  { %v342_v11 = vadd.f32 %v341_v48, %v279_v4  ;;  %v1854_v4 = vsub.f32 %v2514_v3, %v1726_v13 }
  0x9f   :  { %v343_v12 = vadd.f32 %v342_v11, %v280_v8  ;;  %v2515_v8 = vunpack.c.h.bf16 %v1499_v20  ;;  %v286_v61 = vmul.f32 %v1854_v4, %v1854_v4 }
  0xa1   :  { %v344_v2 = vadd.f32 %v343_v12, %v281_v5  ;;  %v1861_v48 = vsub.f32 %v2515_v8, %v1726_v13  ;;  %v2516_v5 = vunpack.c.l.bf16 %v1510_v25 }
  0xa3   :  { %v345_v54 = vadd.f32 %v344_v2, %v282_v19  ;;  %v1868_v11 = vsub.f32 %v2516_v5, %v1726_v13  ;;  %v2517_v19 = vunpack.c.h.bf16 %v1510_v25  ;;  %v287_v20 = vmul.f32 %v1861_v48, %v1861_v48 }
  0xa5   :  { %v346_v17 = vadd.f32 %v345_v54, %v283_v10  ;;  %v1875_v38 = vsub.f32 %v2517_v19, %v1726_v13  ;;  %v2519_v10 = vunpack.c.l.bf16 %v1521_v30  ;;  %v288_v54 = vmul.f32 %v1868_v11, %v1868_v11 }
  0xa7   :  { %v347_v12 = vadd.f32 %v346_v17, %v284_v6  ;;  %2518 = vst [vmem:[#allocation9_spill] sm:$0xff] %v1875_v38  ;;  %v1882_v3 = vsub.f32 %v2519_v10, %v1726_v13  ;;  %v2520_v6 = vunpack.c.h.bf16 %v1521_v30  ;;  %v289_v25 = vmul.f32 %v1875_v38, %v1875_v38 }
  0xa9   :  { %v348_v2 = vadd.f32 %v347_v12, %v285_v15  ;;  %v1889_v17 = vsub.f32 %v2520_v6, %v1726_v13  ;;  %v2522_v15 = vunpack.c.l.bf16 %v1532_v35  ;;  %v290_v19 = vmul.f32 %v1882_v3, %v1882_v3 }
  0xab   :  { %v349_v8 = vadd.f32 %v348_v2, %v286_v61  ;;  %2521 = vst [vmem:[#allocation10_spill] sm:$0xff] %v1889_v17  ;;  %v1896_v12 = vsub.f32 %v2522_v15, %v1726_v13  ;;  %v2523_v61 = vunpack.c.h.bf16 %v1532_v35  ;;  %v291_v30 = vmul.f32 %v1889_v17, %v1889_v17 }
  0xad   :  { %v350_v5 = vadd.f32 %v349_v8, %v287_v20  ;;  %v1903_v2 = vsub.f32 %v2523_v61, %v1726_v13  ;;  %v2525_v20 = vunpack.c.l.bf16 %v1543_v40  ;;  %v292_v15 = vmul.f32 %v1896_v12, %v1896_v12 }
  0xaf   :  { %v351_v10 = vadd.f32 %v350_v5, %v288_v54  ;;  %2524 = vst [vmem:[#allocation11_spill] sm:$0xff] %v1903_v2  ;;  %v1910_v8 = vsub.f32 %v2525_v20, %v1726_v13  ;;  %v2526_v54 = vunpack.c.h.bf16 %v1543_v40  ;;  %v293_v35 = vmul.f32 %v1903_v2, %v1903_v2 }
  0xb1   :  { %v352_v6 = vadd.f32 %v351_v10, %v289_v25  ;;  %v1917_v5 = vsub.f32 %v2526_v54, %v1726_v13  ;;  %v2528_v25 = vunpack.c.l.bf16 %v1554_v45  ;;  %v294_v20 = vmul.f32 %v1910_v8, %v1910_v8 }
  0xb3   :  { %v353_v38 = vadd.f32 %v352_v6, %v290_v19  ;;  %2527 = vst [vmem:[#allocation12_spill] sm:$0xff] %v1917_v5  ;;  %v1924_v10 = vsub.f32 %v2528_v25, %v1726_v13  ;;  %v2529_v19 = vunpack.c.h.bf16 %v1554_v45  ;;  %v295_v40 = vmul.f32 %v1917_v5, %v1917_v5 }
  0xb5   :  { %v354_v61 = vadd.f32 %v353_v38, %v291_v30  ;;  %v1931_v6 = vsub.f32 %v2529_v19, %v1726_v13  ;;  %v2531_v38 = vunpack.c.l.bf16 %v1565_v50  ;;  %v296_v25 = vmul.f32 %v1924_v10, %v1924_v10 }
  0xb7   :  { %v355_v17 = vadd.f32 %v354_v61, %v292_v15  ;;  %2530 = vst [vmem:[#allocation13_spill] sm:$0xff] %v1931_v6  ;;  %v1938_v30 = vsub.f32 %v2531_v38, %v1726_v13  ;;  %v2532_v15 = vunpack.c.h.bf16 %v1565_v50  ;;  %v297_v45 = vmul.f32 %v1931_v6, %v1931_v6 }
  0xb9   :  { %v356_v54 = vadd.f32 %v355_v17, %v293_v35  ;;  %v1945_v61 = vsub.f32 %v2532_v15, %v1726_v13  ;;  %v2534_v17 = vunpack.c.l.bf16 %v1576_v55  ;;  %v298_v38 = vmul.f32 %v1938_v30, %v1938_v30 }
  0xbb   :  { %v357_v2 = vadd.f32 %v356_v54, %v294_v20  ;;  %2533 = vst [vmem:[#allocation14_spill] sm:$0xff] %v1945_v61  ;;  %v1952_v35 = vsub.f32 %v2534_v17, %v1726_v13  ;;  %v2535_v20 = vunpack.c.h.bf16 %v1576_v55  ;;  %v299_v50 = vmul.f32 %v1945_v61, %v1945_v61 }
  0xbd   :  { %v358_v19 = vadd.f32 %v357_v2, %v295_v40  ;;  %v1959_v54 = vsub.f32 %v2535_v20, %v1726_v13  ;;  %v2537_v2 = vunpack.c.l.bf16 %v1587_v60  ;;  %v300_v17 = vmul.f32 %v1952_v35, %v1952_v35 }
  0xbf   :  { %v359_v5 = vadd.f32 %v358_v19, %v296_v25  ;;  %2536 = vst [vmem:[#allocation15_spill] sm:$0xff] %v1959_v54  ;;  %v1966_v40 = vsub.f32 %v2537_v2, %v1726_v13  ;;  %v2538_v25 = vunpack.c.h.bf16 %v1587_v60  ;;  %v301_v55 = vmul.f32 %v1959_v54, %v1959_v54 }
  0xc1   :  { %v360_v15 = vadd.f32 %v359_v5, %v297_v45  ;;  %v1973_v19 = vsub.f32 %v2538_v25, %v1726_v13  ;;  %v2540_v5 = vunpack.c.l.bf16 %v1598_v9  ;;  %v302_v2 = vmul.f32 %v1966_v40, %v1966_v40 }
  0xc3   :  { %v361_v6 = vadd.f32 %v360_v15, %v298_v38  ;;  %2539 = vst [vmem:[#allocation16_spill] sm:$0xff] %v1973_v19  ;;  %v1980_v45 = vsub.f32 %v2540_v5, %v1726_v13  ;;  %v2541_v38 = vunpack.c.h.bf16 %v1598_v9  ;;  %v303_v60 = vmul.f32 %v1973_v19, %v1973_v19 }
  0xc5   :  { %v362_v20 = vadd.f32 %v361_v6, %v299_v50  ;;  %v1987_v15 = vsub.f32 %v2541_v38, %v1726_v13  ;;  %v2543_v6 = vunpack.c.l.bf16 %v1609_v22  ;;  %v304_v5 = vmul.f32 %v1980_v45, %v1980_v45 }
  0xc7   :  { %v363_v61 = vadd.f32 %v362_v20, %v300_v17  ;;  %2542 = vst [vmem:[#allocation17_spill] sm:$0xff] %v1987_v15  ;;  %v1994_v50 = vsub.f32 %v2543_v6, %v1726_v13  ;;  %v2544_v17 = vunpack.c.h.bf16 %v1609_v22  ;;  %v305_v9 = vmul.f32 %v1987_v15, %v1987_v15 }
  0xc9   :  { %v364_v25 = vadd.f32 %v363_v61, %v301_v55  ;;  %v2001_v20 = vsub.f32 %v2544_v17, %v1726_v13  ;;  %v2546_v61 = vunpack.c.l.bf16 %v1620_v34  ;;  %v306_v6 = vmul.f32 %v1994_v50, %v1994_v50 }
  0xcb   :  { %v365_v54 = vadd.f32 %v364_v25, %v302_v2  ;;  %2545 = vst [vmem:[#allocation18_spill] sm:$0xff] %v2001_v20  ;;  %v2008_v55 = vsub.f32 %v2546_v61, %v1726_v13  ;;  %v2547_v2 = vunpack.c.h.bf16 %v1620_v34  ;;  %v307_v22 = vmul.f32 %v2001_v20, %v2001_v20 }
  0xcd   :  { %v366_v38 = vadd.f32 %v365_v54, %v303_v60  ;;  %v2015_v25 = vsub.f32 %v2547_v2, %v1726_v13  ;;  %v2549_v54 = vunpack.c.l.bf16 %v1631_v47  ;;  %v308_v61 = vmul.f32 %v2008_v55, %v2008_v55 }
  0xcf   :  { %v367_v19 = vadd.f32 %v366_v38, %v304_v5  ;;  %2548 = vst [vmem:[#allocation19_spill] sm:$0xff] %v2015_v25  ;;  %v2022_v60 = vsub.f32 %v2549_v54, %v1726_v13  ;;  %v2550_v5 = vunpack.c.h.bf16 %v1631_v47  ;;  %v309_v34 = vmul.f32 %v2015_v25, %v2015_v25 }
  0xd1   :  { %v368_v17 = vadd.f32 %v367_v19, %v305_v9  ;;  %v2029_v38 = vsub.f32 %v2550_v5, %v1726_v13  ;;  %v2552_v19 = vunpack.c.l.bf16 %v1642_v59  ;;  %v310_v54 = vmul.f32 %v2022_v60, %v2022_v60 }
  0xd3   :  { %v369_v15 = vadd.f32 %v368_v17, %v306_v6  ;;  %2551 = vst [vmem:[#allocation20_spill] sm:$0xff] %v2029_v38  ;;  %v2036_v9 = vsub.f32 %v2552_v19, %v1726_v13  ;;  %v2553_v6 = vunpack.c.h.bf16 %v1642_v59  ;;  %v311_v47 = vmul.f32 %v2029_v38, %v2029_v38 }
  0xd5   :  { %v370_v2 = vadd.f32 %v369_v15, %v307_v22  ;;  %v2043_v17 = vsub.f32 %v2553_v6, %v1726_v13  ;;  %v2555_v15 = vunpack.c.l.bf16 %v1653_v27  ;;  %v312_v19 = vmul.f32 %v2036_v9, %v2036_v9 }
  0xd7   :  { %v371_v20 = vadd.f32 %v370_v2, %v308_v61  ;;  %2554 = vst [vmem:[#allocation21_spill] sm:$0xff] %v2043_v17  ;;  %v2050_v22 = vsub.f32 %v2555_v15, %v1726_v13  ;;  %v2556_v61 = vunpack.c.h.bf16 %v1653_v27  ;;  %v313_v59 = vmul.f32 %v2043_v17, %v2043_v17 }
  0xd9   :  { %v372_v5 = vadd.f32 %v371_v20, %v309_v34  ;;  %v2057_v2 = vsub.f32 %v2556_v61, %v1726_v13  ;;  %v2558_v20 = vunpack.c.l.bf16 %v1664_v57  ;;  %v314_v15 = vmul.f32 %v2050_v22, %v2050_v22 }
  0xdb   :  { %v373_v25 = vadd.f32 %v372_v5, %v310_v54  ;;  %2557 = vst [vmem:[#allocation22_spill] sm:$0xff] %v2057_v2  ;;  %v2064_v34 = vsub.f32 %v2558_v20, %v1726_v13  ;;  %v2559_v54 = vunpack.c.h.bf16 %v1664_v57  ;;  %v315_v27 = vmul.f32 %v2057_v2, %v2057_v2 }
  0xdd   :  { %v374_v6 = vadd.f32 %v373_v25, %v311_v47  ;;  %v2071_v5 = vsub.f32 %v2559_v54, %v1726_v13  ;;  %v2560_v25 = vunpack.c.l.bf16 %v1675_v62  ;;  %v316_v20 = vmul.f32 %v2064_v34, %v2064_v34 }
  0xdf   :  { %v375_v38 = vadd.f32 %v374_v6, %v312_v19  ;;  %v2078_v47 = vsub.f32 %v2560_v25, %v1726_v13  ;;  %v2562_v19 = vunpack.c.h.bf16 %v1675_v62  ;;  %v317_v57 = vmul.f32 %v2071_v5, %v2071_v5 }
  0xe1   :  { %v376_v61 = vadd.f32 %v375_v38, %v313_v59  ;;  %2561 = vst [vmem:[#allocation23_spill] sm:$0xff] %v2078_v47  ;;  %v2085_v6 = vsub.f32 %v2562_v19, %v1726_v13  ;;  %v2563_v38 = vunpack.c.l.bf16 %v1686_v32  ;;  %v318_v25 = vmul.f32 %v2078_v47, %v2078_v47 }
  0xe2   :  { %v322_v32 = vmul.f32 %v1732_v53, %v1732_v53  ;;  %v323_v47 = vmul.f32 %v1735_v33, %v1735_v33 }
  0xe3   :  { %v377_v17 = vadd.f32 %v376_v61, %v314_v15  ;;  %v2092_v59 = vsub.f32 %v2563_v38, %v1726_v13  ;;  %v319_v15 = vmul.f32 %v2085_v6, %v2085_v6 }
  0xe5   :  { %v378_v54 = vadd.f32 %v377_v17, %v315_v27  ;;  %v320_v62 = vmul.f32 %v2092_v59, %v2092_v59  ;;  %v321_v17 = vmul.f32 %v1729_v7, %v1729_v7 }
  0xe7   :  { %v379_v2 = vadd.f32 %v378_v54, %v316_v20  ;;  %v324_v54 = vmul.f32 %v1738_v28, %v1738_v28 }
  0xe9   :  { %v380_v61 = vadd.f32 %v379_v2, %v317_v57  ;;  %v325_v57 = vmul.f32 %v1741_v23, %v1741_v23 }
  0xeb   :  { %v381_v19 = vadd.f32 %v380_v61, %v318_v25  ;;  %v326_v61 = vmul.f32 %v1744_v18, %v1744_v18 }
  0xed   :  { %v382_v27 = vadd.f32 %v381_v19, %v319_v15  ;;  %v327_v19 = vmul.f32 %v1747_v16, %v1747_v16 }
  0xef   :  { %v383_v38 = vadd.f32 %v382_v27, %v320_v62  ;;  %v328_v27 = vmul.f32 %v1750_v21, %v1750_v21 }
  0xf1   :  { %v384_v20 = vadd.f32 %v383_v38, %v321_v17  ;;  %v329_v38 = vmul.f32 %v1753_v26, %v1753_v26 }
  0xf3   :  { %v385_v2 = vadd.f32 %v384_v20, %v322_v32  ;;  %v330_v20 = vmul.f32 %v1756_v29, %v1756_v29 }
  0xf5   :  { %v386_v25 = vadd.f32 %v385_v2, %v323_v47  ;;  %v331_v2 = vmul.f32 %v1759_v39, %v1759_v39 }
  0xf7   :  { %v387_v15 = vadd.f32 %v386_v25, %v324_v54  ;;  %v332_v25 = vmul.f32 %v1762_v63, %v1762_v63 }
  0xf9   :  { %v388_v62 = vadd.f32 %v387_v15, %v325_v57  ;;  %v333_v15 = vmul.f32 %v1765_v58, %v1765_v58 }
  0xfb   :  { %v389_v17 = vadd.f32 %v388_v62, %v326_v61  ;;  %v334_v62 = vmul.f32 %v1768_v37, %v1768_v37 }
  0xfd   :  { %v390_v32 = vadd.f32 %v389_v17, %v327_v19  ;;  %v335_v17 = vmul.f32 %v1771_v56, %v1771_v56 }
  0xff   :  { %v391_v47 = vadd.f32 %v390_v32, %v328_v27  ;;  %v336_v32 = vmul.f32 %v1774_v14, %v1774_v14  ;;  %v409_v14 = vmul.f32 0.0, %v1726_v13 }
 0x101   :  { %v392_v54 = vadd.f32 %v391_v47, %v329_v38  ;;  %v337_v47 = vmul.f32 %v1777_v51, %v1777_v51  ;;  %v410_v51 = vmul.f32 %v409_v14, %v1726_v13  ;;  %v2148_v13 = vld [vmem:[%s2440_s2] ss:$0 sm:$0xff] }
 0x103   :  { %v393_v57 = vadd.f32 %v392_v54, %v330_v20  ;;  %v338_v54 = vmul.f32 %v1780_v44, %v1780_v44 }
 0x105   :  { %v394_v61 = vadd.f32 %v393_v57, %v331_v2  ;;  %v339_v57 = vmul.f32 %v1783_v46, %v1783_v46 }
 0x107   :  { %v395_v19 = vadd.f32 %v394_v61, %v332_v25 }
 0x109   :  { %v396_v27 = vadd.f32 %v395_v19, %v333_v15 }
 0x10b   :  { %v397_v38 = vadd.f32 %v396_v27, %v334_v62 }
 0x10d   :  { %v398_v20 = vadd.f32 %v397_v38, %v335_v17 }
 0x10f   :  { %v399_v2 = vadd.f32 %v398_v20, %v336_v32  ;;  %v419_v20 = vlaneseq }
 0x111   :  { %v400_v25 = vadd.f32 %v399_v2, %v337_v47  ;;  %v420_v46 = vshrl.u32 %v419_v20, 7  ;;  %v414_v47 = vld [vmem:[%s2439_s1] sm:$0x1] }
 0x113   :  { %v401_v61 = vadd.f32 %v400_v25, %v338_v54 }
 0x115   :  { %v402_v37 = vadd.f32 %v401_v61, %v339_v57 }
 0x117   :  { %v403_v56 = vrot.slane %v402_v37, 4 }
 0x119   :  { %v404_v15 = vadd.f32 %v403_v56, %v402_v37  ;;  %v421_v37 = vsub.s32 0, %v420_v46 }
 0x11b   :  { %v405_v19 = vrot.slane %v404_v15, 2 }
 0x11d   :  { %v406_v62 = vadd.f32 %v405_v19, %v404_v15 }
 0x11f   :  { %v407_v27 = vrot.slane %v406_v62, 1 }
 0x121   :  { %v408_v17 = vadd.f32 %v407_v27, %v406_v62 }
 0x123   :  { %v411_v38 = vsub.f32 %v408_v17, %v410_v51 }
 0x125   :  { %v412_v58 = vmul.f32 0.001953125, %v411_v38 }
 0x127   :  { %v413_v44 = vmax.f32 %v412_v58, 0.0 }
 0x129   :  { %v415_v32 = vadd.f32 1e-05, %v413_v44 }
 0x12b   :  { %1426 = vrsqrt.f32 %v415_v32 }
 0x135   :  { %v1427_v56 = vpop.eup %1426 }
 0x136   :  { %v417_v54 = vmul.f32 %v1427_v56, %v414_v47 }
 0x138   :  { %v2143_v2 = vrot.slane %v417_v54, %v421_v37 }
 0x13a   :  { %v424_v58 = vmul.f32 %v2143_v2, %v1788_v41  ;;  %v425_v14 = vmul.f32 %v2143_v2, %v1793_v24  ;;  %v426_v51 = vmul.f32 %v2143_v2, %v1798_v36  ;;  %v427_v44 = vmul.f32 %v2143_v2, %v1803_v31 }
 0x13b   :  { %v428_v46 = vmul.f32 %v2143_v2, %v1812_v0  ;;  %v429_v57 = vmul.f32 %v2143_v2, %v1819_v1  ;;  %v430_v25 = vmul.f32 %v2143_v2, %v1826_v49  ;;  %v431_v41 = vmul.f32 %v2143_v2, %v1833_v52 }
 0x13c   :  { %v495_v24 = vadd.f32 %v2148_v13, %v424_v58  ;;  %v496_v61 = vadd.f32 %v2148_v13, %v425_v14  ;;  %v497_v36 = vadd.f32 %v2148_v13, %v426_v51  ;;  %v498_v31 = vadd.f32 %v2148_v13, %v427_v44 }
 0x13d   :  { %v499_v15 = vadd.f32 %v2148_v13, %v428_v46  ;;  %v500_v0 = vadd.f32 %v2148_v13, %v429_v57  ;;  %v501_v1 = vadd.f32 %v2148_v13, %v430_v25  ;;  %v502_v19 = vadd.f32 %v2148_v13, %v431_v41  ;;  %v2564_v57 = vld [vmem:[#allocation9_spill] sm:$0xff] }
 0x13e   :  { %v559_v49 = vmax.f32 %v495_v24, 0.0  ;;  %v560_v62 = vmax.f32 %v496_v61, 0.0  ;;  %v561_v27 = vmax.f32 %v497_v36, 0.0  ;;  %v562_v52 = vmax.f32 %v498_v31, 0.0  ;;  %v2565_v24 = vld [vmem:[#allocation10_spill] sm:$0xff] }
 0x13f   :  { %v563_v17 = vmax.f32 %v499_v15, 0.0  ;;  %v564_v38 = vmax.f32 %v500_v0, 0.0  ;;  %v565_v32 = vmax.f32 %v501_v1, 0.0  ;;  %v566_v20 = vmax.f32 %v502_v19, 0.0 }
 0x140   :  { %v1207_v47 = vpack.c.bf16 %v560_v62, %v559_v49  ;;  %v1212_v37 = vpack.c.bf16 %v562_v52, %v561_v27  ;;  %v432_v56 = vmul.f32 %v2143_v2, %v1840_v43  ;;  %v433_v54 = vmul.f32 %v2143_v2, %v1847_v42 }
 0x141   :  { %v1217_v58 = vpack.c.bf16 %v564_v38, %v563_v17  ;;  %v1222_v14 = vpack.c.bf16 %v566_v20, %v565_v32  ;;  %v434_v51 = vmul.f32 %v2143_v2, %v1854_v4  ;;  %v435_v44 = vmul.f32 %v2143_v2, %v1861_v48  ;;  %v2566_v20 = vld [vmem:[#allocation11_spill] sm:$0xff] }
 0x142   :  { %1208 = vst [vmem:[%s2441_s3] sm:$0xff] %v1207_v47   ;;  %1395 = vst [vmem:[%s2441_s3 + $0x8] sm:$0xff] %v1212_v37   ;;  %v503_v43 = vadd.f32 %v2148_v13, %v432_v56  ;;  %v504_v42 = vadd.f32 %v2148_v13, %v433_v54  ;;  %v436_v46 = vmul.f32 %v2143_v2, %v1868_v11 }
 0x143   :  { %v437_v4 = vmul.f32 %v2143_v2, %v2564_v57  ;;  %1396 = vst [vmem:[%s2441_s3 + $0x10] sm:$0xff] %v1217_v58   ;;  %1397 = vst [vmem:[%s2441_s3 + $0x18] sm:$0xff] %v1222_v14   ;;  %v505_v48 = vadd.f32 %v2148_v13, %v434_v51  ;;  %v506_v25 = vadd.f32 %v2148_v13, %v435_v44  ;;  %v2567_v58 = vld [vmem:[#allocation12_spill] sm:$0xff] }
 0x144   :  { %v438_v41 = vmul.f32 %v2143_v2, %v1882_v3  ;;  %v439_v11 = vmul.f32 %v2143_v2, %v2565_v24  ;;  %v567_v61 = vmax.f32 %v503_v43, 0.0  ;;  %v568_v36 = vmax.f32 %v504_v42, 0.0  ;;  %v2568_v43 = vld [vmem:[#allocation13_spill] sm:$0xff] }
 0x145   :  { %v507_v31 = vadd.f32 %v2148_v13, %v436_v46  ;;  %v508_v15 = vadd.f32 %v2148_v13, %v437_v4  ;;  %v569_v0 = vmax.f32 %v505_v48, 0.0  ;;  %v570_v1 = vmax.f32 %v506_v25, 0.0 }
 0x146   :  { %v509_v19 = vadd.f32 %v2148_v13, %v438_v41  ;;  %v510_v49 = vadd.f32 %v2148_v13, %v439_v11  ;;  %v1227_v62 = vpack.c.bf16 %v568_v36, %v567_v61  ;;  %v440_v3 = vmul.f32 %v2143_v2, %v1896_v12  ;;  %v2569_v41 = vld [vmem:[#allocation14_spill] sm:$0xff] }
 0x147   :  { %v571_v27 = vmax.f32 %v507_v31, 0.0  ;;  %v572_v52 = vmax.f32 %v508_v15, 0.0  ;;  %v1232_v17 = vpack.c.bf16 %v570_v1, %v569_v0  ;;  %v441_v47 = vmul.f32 %v2143_v2, %v2566_v20 }
 0x148   :  { %v573_v38 = vmax.f32 %v509_v19, 0.0  ;;  %v574_v32 = vmax.f32 %v510_v49, 0.0  ;;  %1398 = vst [vmem:[%s2441_s3 + $0x20] sm:$0xff] %v1227_v62   ;;  %v511_v56 = vadd.f32 %v2148_v13, %v440_v3  ;;  %v442_v54 = vmul.f32 %v2143_v2, %v1910_v8  ;;  %v2570_v62 = vld [vmem:[#allocation15_spill] sm:$0xff] }
 0x149   :  { %v1237_v37 = vpack.c.bf16 %v572_v52, %v571_v27  ;;  %v443_v14 = vmul.f32 %v2143_v2, %v2567_v58  ;;  %1399 = vst [vmem:[%s2441_s3 + $0x28] sm:$0xff] %v1232_v17   ;;  %v512_v51 = vadd.f32 %v2148_v13, %v441_v47  ;;  %v444_v44 = vmul.f32 %v2143_v2, %v1924_v10 }
 0x14a   :  { %v1242_v12 = vpack.c.bf16 %v574_v32, %v573_v38  ;;  %v445_v42 = vmul.f32 %v2143_v2, %v2568_v43  ;;  %v575_v8 = vmax.f32 %v511_v56, 0.0  ;;  %v513_v46 = vadd.f32 %v2148_v13, %v442_v54  ;;  %v2571_v38 = vld [vmem:[#allocation16_spill] sm:$0xff]  ;;  %v2572_v56 = vld [vmem:[#allocation17_spill] sm:$0xff]  ;;  %v2573_v43 = vld [vmem:[#allocation18_spill] sm:$0xff] }
 0x14b   :  { %1400 = vst [vmem:[%s2441_s3 + $0x30] sm:$0xff] %v1237_v37   ;;  %v514_v57 = vadd.f32 %v2148_v13, %v443_v14  ;;  %v446_v4 = vmul.f32 %v2143_v2, %v1938_v30  ;;  %v576_v10 = vmax.f32 %v512_v51, 0.0  ;;  %v515_v48 = vadd.f32 %v2148_v13, %v444_v44 }
 0x14c   :  { %1401 = vst [vmem:[%s2441_s3 + $0x38] sm:$0xff] %v1242_v12   ;;  %v516_v25 = vadd.f32 %v2148_v13, %v445_v42  ;;  %v447_v24 = vmul.f32 %v2143_v2, %v2569_v41  ;;  %v577_v11 = vmax.f32 %v513_v46, 0.0  ;;  %v448_v31 = vmul.f32 %v2143_v2, %v1952_v35 }
 0x14d   :  { %v578_v61 = vmax.f32 %v514_v57, 0.0  ;;  %v517_v36 = vadd.f32 %v2148_v13, %v446_v4  ;;  %v1247_v30 = vpack.c.bf16 %v576_v10, %v575_v8  ;;  %v579_v15 = vmax.f32 %v515_v48, 0.0 }
 0x14e   :  { %v580_v0 = vmax.f32 %v516_v25, 0.0  ;;  %v518_v1 = vadd.f32 %v2148_v13, %v447_v24  ;;  %v449_v27 = vmul.f32 %v2143_v2, %v2570_v62  ;;  %v519_v52 = vadd.f32 %v2148_v13, %v448_v31  ;;  %v2576_v62 = vld [vmem:[#allocation21_spill] sm:$0xff] }
 0x14f   :  { %v1252_v19 = vpack.c.bf16 %v578_v61, %v577_v11  ;;  %v581_v49 = vmax.f32 %v517_v36, 0.0  ;;  %1402 = vst [vmem:[%s2441_s3 + $0x40] sm:$0xff] %v1247_v30   ;;  %v450_v35 = vmul.f32 %v2143_v2, %v1966_v40  ;;  %v451_v32 = vmul.f32 %v2143_v2, %v2571_v38  ;;  %v2574_v11 = vld [vmem:[#allocation19_spill] sm:$0xff] }
 0x150   :  { %v1257_v3 = vpack.c.bf16 %v580_v0, %v579_v15  ;;  %v582_v17 = vmax.f32 %v518_v1, 0.0  ;;  %v520_v20 = vadd.f32 %v2148_v13, %v449_v27  ;;  %v583_v47 = vmax.f32 %v519_v52, 0.0  ;;  %v2575_v15 = vld [vmem:[#allocation20_spill] sm:$0xff] }
 0x151   :  { %1403 = vst [vmem:[%s2441_s3 + $0x48] sm:$0xff] %v1252_v19   ;;  %v452_v37 = vmul.f32 %v2143_v2, %v1980_v45  ;;  %v453_v54 = vmul.f32 %v2143_v2, %v2572_v56  ;;  %v521_v58 = vadd.f32 %v2148_v13, %v450_v35  ;;  %v522_v14 = vadd.f32 %v2148_v13, %v451_v32  ;;  %v2577_v32 = vld [vmem:[#allocation22_spill] sm:$0xff] }
 0x152   :  { %1404 = vst [vmem:[%s2441_s3 + $0x50] sm:$0xff] %v1257_v3   ;;  %v1262_v40 = vpack.c.bf16 %v582_v17, %v581_v49  ;;  %v454_v12 = vmul.f32 %v2143_v2, %v1994_v50  ;;  %v584_v51 = vmax.f32 %v520_v20, 0.0  ;;  %v455_v42 = vmul.f32 %v2143_v2, %v2573_v43 }
 0x153   :  { %v523_v44 = vadd.f32 %v2148_v13, %v452_v37  ;;  %v524_v45 = vadd.f32 %v2148_v13, %v453_v54  ;;  %v585_v8 = vmax.f32 %v521_v58, 0.0  ;;  %v586_v46 = vmax.f32 %v522_v14, 0.0 }
 0x154   :  { %1405 = vst [vmem:[%s2441_s3 + $0x58] sm:$0xff] %v1262_v40   ;;  %v525_v57 = vadd.f32 %v2148_v13, %v454_v12  ;;  %v456_v4 = vmul.f32 %v2143_v2, %v2008_v55  ;;  %v1267_v50 = vpack.c.bf16 %v584_v51, %v583_v47  ;;  %v526_v25 = vadd.f32 %v2148_v13, %v455_v42 }
 0x155   :  { %v587_v10 = vmax.f32 %v523_v44, 0.0  ;;  %v588_v48 = vmax.f32 %v524_v45, 0.0  ;;  %v1272_v41 = vpack.c.bf16 %v586_v46, %v585_v8  ;;  %v457_v61 = vmul.f32 %v2143_v2, %v2574_v11  ;;  %v2578_v8 = vld [vmem:[#allocation23_spill] sm:$0xff] }
 0x156   :  { %v589_v24 = vmax.f32 %v525_v57, 0.0  ;;  %v527_v36 = vadd.f32 %v2148_v13, %v456_v4  ;;  %1406 = vst [vmem:[%s2441_s3 + $0x60] sm:$0xff] %v1267_v50   ;;  %v590_v30 = vmax.f32 %v526_v25, 0.0  ;;  %v458_v55 = vmul.f32 %v2143_v2, %v2022_v60 }
 0x157   :  { %v1277_v31 = vpack.c.bf16 %v588_v48, %v587_v10  ;;  %v459_v0 = vmul.f32 %v2143_v2, %v2575_v15  ;;  %1407 = vst [vmem:[%s2441_s3 + $0x68] sm:$0xff] %v1272_v41   ;;  %v528_v1 = vadd.f32 %v2148_v13, %v457_v61  ;;  %v460_v49 = vmul.f32 %v2143_v2, %v2036_v9 }
 0x158   :  { %v591_v19 = vmax.f32 %v527_v36, 0.0  ;;  %v461_v27 = vmul.f32 %v2143_v2, %v2576_v62  ;;  %v1282_v60 = vpack.c.bf16 %v590_v30, %v589_v24  ;;  %v529_v52 = vadd.f32 %v2148_v13, %v458_v55 }
 0x159   :  { %1408 = vst [vmem:[%s2441_s3 + $0x70] sm:$0xff] %v1277_v31   ;;  %v530_v3 = vadd.f32 %v2148_v13, %v459_v0  ;;  %v462_v17 = vmul.f32 %v2143_v2, %v2050_v22  ;;  %v592_v35 = vmax.f32 %v528_v1, 0.0  ;;  %v531_v38 = vadd.f32 %v2148_v13, %v460_v49 }
 0x15a   :  { %v532_v9 = vadd.f32 %v2148_v13, %v461_v27  ;;  %v463_v20 = vmul.f32 %v2143_v2, %v2577_v32  ;;  %1409 = vst [vmem:[%s2441_s3 + $0x78] sm:$0xff] %v1282_v60   ;;  %v593_v47 = vmax.f32 %v529_v52, 0.0  ;;  %v464_v54 = vmul.f32 %v2143_v2, %v2064_v34 }
 0x15b   :  { %v594_v37 = vmax.f32 %v530_v3, 0.0  ;;  %v533_v56 = vadd.f32 %v2148_v13, %v462_v17  ;;  %v1287_v22 = vpack.c.bf16 %v592_v35, %v591_v19  ;;  %v595_v40 = vmax.f32 %v531_v38, 0.0 }
 0x15c   :  { %v596_v58 = vmax.f32 %v532_v9, 0.0  ;;  %v534_v14 = vadd.f32 %v2148_v13, %v463_v20  ;;  %v465_v44 = vmul.f32 %v2143_v2, %v2071_v5  ;;  %v535_v45 = vadd.f32 %v2148_v13, %v464_v54 }
 0x15d   :  { %v1292_v12 = vpack.c.bf16 %v594_v37, %v593_v47  ;;  %v597_v51 = vmax.f32 %v533_v56, 0.0  ;;  %1410 = vst [vmem:[%s2441_s3 + $0x80] sm:$0xff] %v1287_v22   ;;  %v466_v34 = vmul.f32 %v2143_v2, %v2578_v8  ;;  %v467_v46 = vmul.f32 %v2143_v2, %v2085_v6 }
 0x15e   :  { %v1297_v43 = vpack.c.bf16 %v596_v58, %v595_v40  ;;  %v598_v42 = vmax.f32 %v534_v14, 0.0  ;;  %v536_v5 = vadd.f32 %v2148_v13, %v465_v44  ;;  %v599_v57 = vmax.f32 %v535_v45, 0.0  ;;  %v2579_v14 = vld [vmem:[#allocation2_spill] sm:$0xff]  ;;  %v2580_v45 = vld [vmem:[#allocation3_spill] sm:$0xff] }
 0x15f   :  { %1411 = vst [vmem:[%s2441_s3 + $0x88] sm:$0xff] %v1292_v12   ;;  %v468_v4 = vmul.f32 %v2143_v2, %v2092_v59  ;;  %v469_v50 = vmul.f32 %v2143_v2, %v1729_v7  ;;  %v537_v6 = vadd.f32 %v2148_v13, %v466_v34  ;;  %v538_v48 = vadd.f32 %v2148_v13, %v467_v46  ;;  %v2582_v46 = vld [vmem:[#allocation5_spill] sm:$0xff] }
 0x160   :  { %1412 = vst [vmem:[%s2441_s3 + $0x90] sm:$0xff] %v1297_v43   ;;  %v1302_v10 = vpack.c.bf16 %v598_v42, %v597_v51  ;;  %v470_v25 = vmul.f32 %v2143_v2, %v1732_v53  ;;  %v600_v41 = vmax.f32 %v536_v5, 0.0  ;;  %v471_v7 = vmul.f32 %v2143_v2, %v1735_v33  ;;  %v2581_v43 = vld [vmem:[#allocation4_spill] sm:$0xff] }
 0x161   :  { %v539_v24 = vadd.f32 %v2148_v13, %v468_v4  ;;  %v540_v59 = vadd.f32 %v2148_v13, %v469_v50  ;;  %v601_v11 = vmax.f32 %v537_v6, 0.0  ;;  %v602_v61 = vmax.f32 %v538_v48, 0.0  ;;  %v2584_v48 = vld [vmem:[#allocation7_spill] sm:$0xff] }
 0x162   :  { %1413 = vst [vmem:[%s2441_s3 + $0x98] sm:$0xff] %v1302_v10   ;;  %v541_v36 = vadd.f32 %v2148_v13, %v470_v25  ;;  %v472_v31 = vmul.f32 %v2143_v2, %v1738_v28  ;;  %v1307_v53 = vpack.c.bf16 %v600_v41, %v599_v57  ;;  %v542_v15 = vadd.f32 %v2148_v13, %v471_v7  ;;  %v2583_v57 = vld [vmem:[#allocation6_spill] sm:$0xff]  ;;  %v2585_v7 = vld [vmem:[#allocation8_spill] sm:$0xff] }
 0x163   :  { %v603_v30 = vmax.f32 %v539_v24, 0.0  ;;  %v604_v55 = vmax.f32 %v540_v59, 0.0  ;;  %v1312_v0 = vpack.c.bf16 %v602_v61, %v601_v11  ;;  %v473_v33 = vmul.f32 %v2143_v2, %v1741_v23 }
 0x164   :  { %v605_v1 = vmax.f32 %v541_v36, 0.0  ;;  %v543_v19 = vadd.f32 %v2148_v13, %v472_v31  ;;  %1414 = vst [vmem:[%s2441_s3 + $0xa0] sm:$0xff] %v1307_v53   ;;  %v606_v62 = vmax.f32 %v542_v15, 0.0  ;;  %v474_v28 = vmul.f32 %v2143_v2, %v1744_v18 }
 0x165   :  { %v1317_v49 = vpack.c.bf16 %v604_v55, %v603_v30  ;;  %v475_v27 = vmul.f32 %v2143_v2, %v1747_v16  ;;  %1415 = vst [vmem:[%s2441_s3 + $0xa8] sm:$0xff] %v1312_v0   ;;  %v544_v23 = vadd.f32 %v2148_v13, %v473_v33  ;;  %v476_v52 = vmul.f32 %v2143_v2, %v1750_v21 }
 0x166   :  { %v607_v60 = vmax.f32 %v543_v19, 0.0  ;;  %v477_v3 = vmul.f32 %v2143_v2, %v1753_v26  ;;  %v1322_v18 = vpack.c.bf16 %v606_v62, %v605_v1  ;;  %v545_v16 = vadd.f32 %v2148_v13, %v474_v28 }
 0x167   :  { %1416 = vst [vmem:[%s2441_s3 + $0xb0] sm:$0xff] %v1317_v49   ;;  %v546_v17 = vadd.f32 %v2148_v13, %v475_v27  ;;  %v478_v35 = vmul.f32 %v2143_v2, %v1756_v29  ;;  %v608_v38 = vmax.f32 %v544_v23, 0.0  ;;  %v547_v9 = vadd.f32 %v2148_v13, %v476_v52 }
 0x168   :  { %v548_v21 = vadd.f32 %v2148_v13, %v477_v3  ;;  %v479_v26 = vmul.f32 %v2143_v2, %v1759_v39  ;;  %1417 = vst [vmem:[%s2441_s3 + $0xb8] sm:$0xff] %v1322_v18   ;;  %v609_v32 = vmax.f32 %v545_v16, 0.0  ;;  %v480_v37 = vmul.f32 %v2143_v2, %v1762_v63 }
 0x169   :  { %v610_v20 = vmax.f32 %v546_v17, 0.0  ;;  %v549_v47 = vadd.f32 %v2148_v13, %v478_v35  ;;  %v1327_v29 = vpack.c.bf16 %v608_v38, %v607_v60  ;;  %v611_v56 = vmax.f32 %v547_v9, 0.0 }
 0x16a   :  { %v612_v54 = vmax.f32 %v548_v21, 0.0  ;;  %v550_v22 = vadd.f32 %v2148_v13, %v479_v26  ;;  %v481_v39 = vmul.f32 %v2143_v2, %v2579_v14  ;;  %v551_v12 = vadd.f32 %v2148_v13, %v480_v37 }
 0x16b   :  { %v1332_v40 = vpack.c.bf16 %v610_v20, %v609_v32  ;;  %v613_v58 = vmax.f32 %v549_v47, 0.0  ;;  %1418 = vst [vmem:[%s2441_s3 + $0xc0] sm:$0xff] %v1327_v29   ;;  %v482_v63 = vmul.f32 %v2143_v2, %v2580_v45  ;;  %v483_v42 = vmul.f32 %v2143_v2, %v2581_v43 }
 0x16c   :  { %v1337_v51 = vpack.c.bf16 %v612_v54, %v611_v56  ;;  %v614_v44 = vmax.f32 %v550_v22, 0.0  ;;  %v552_v8 = vadd.f32 %v2148_v13, %v481_v39  ;;  %v615_v34 = vmax.f32 %v551_v12, 0.0 }
 0x16d   :  { %1419 = vst [vmem:[%s2441_s3 + $0xc8] sm:$0xff] %v1332_v40   ;;  %v484_v5 = vmul.f32 %v2143_v2, %v2582_v46  ;;  %v485_v4 = vmul.f32 %v2143_v2, %v2583_v57  ;;  %v553_v10 = vadd.f32 %v2148_v13, %v482_v63  ;;  %v554_v6 = vadd.f32 %v2148_v13, %v483_v42 }
 0x16e   :  { %1420 = vst [vmem:[%s2441_s3 + $0xd0] sm:$0xff] %v1337_v51   ;;  %v1342_v50 = vpack.c.bf16 %v614_v44, %v613_v58  ;;  %v486_v25 = vmul.f32 %v2143_v2, %v2584_v48  ;;  %v616_v41 = vmax.f32 %v552_v8, 0.0  ;;  %v487_v11 = vmul.f32 %v2143_v2, %v2585_v7 }
 0x16f   :  { %v555_v24 = vadd.f32 %v2148_v13, %v484_v5  ;;  %v556_v59 = vadd.f32 %v2148_v13, %v485_v4  ;;  %v617_v61 = vmax.f32 %v553_v10, 0.0  ;;  %v618_v36 = vmax.f32 %v554_v6, 0.0 }
 0x170   :  { %1421 = vst [vmem:[%s2441_s3 + $0xd8] sm:$0xff] %v1342_v50   ;;  %v557_v31 = vadd.f32 %v2148_v13, %v486_v25  ;;  %v1347_v53 = vpack.c.bf16 %v616_v41, %v615_v34  ;;  %v558_v15 = vadd.f32 %v2148_v13, %v487_v11 }
 0x171   :  { %v619_v30 = vmax.f32 %v555_v24, 0.0  ;;  %v620_v55 = vmax.f32 %v556_v59, 0.0  ;;  %v1352_v0 = vpack.c.bf16 %v618_v36, %v617_v61 }
 0x172   :  { %v621_v1 = vmax.f32 %v557_v31, 0.0  ;;  %1422 = vst [vmem:[%s2441_s3 + $0xe0] sm:$0xff] %v1347_v53   ;;  %v622_v33 = vmax.f32 %v558_v15, 0.0 }
 0x173   :  { %v1357_v2 = vpack.c.bf16 %v620_v55, %v619_v30  ;;  %1423 = vst [vmem:[%s2441_s3 + $0xe8] sm:$0xff] %v1352_v0  }
 0x174   :  { %v1362_v19 = vpack.c.bf16 %v622_v33, %v621_v1 }
 0x175   :  { %1424 = vst [vmem:[%s2441_s3 + $0xf0] sm:$0xff] %v1357_v2  }
 0x176   :  { %1425 = vst [vmem:[%s2441_s3 + $0xf8] sm:$0xff] %v1362_v19  }

// kernel: generator_forward.15
= control target key start
LH: loop header
LB: loop body
LE: loop exit
PB: predicated region body
PF: predicated region fallthrough
CT: control target
= control target key end

     0   :  { %s1054_s9 = smov 0   ;;  %s1138_s0 = inlined_call_operand.vmem [shape: bf16[768,128], index: 0, kind: input, shape index: {}]   ;;  %s1139_s1 = inlined_call_operand.vmem [shape: bf16[128,128], index: 1, kind: input, shape index: {}]   ;;  %s1140_s2 = inlined_call_operand.vmem [shape: bf16[768,128], index: 2, kind: output, shape index: {}]  }
   0x1 LB: > { %s717_s10 = sadd.s32 4294967295, %s1037_s9   ;;  %p721_p0 = scmp.ge.s32.totalorder %s1037_s9, 1  ;;  %s1037_s9 = sphi %s1054_s9, %s12_s9  }
   0x2   : > { %p113_p1 = scmp.lt.s32.totalorder %s1037_s9, 4 }
   0x4   : > { %p114_p2 = pnand %p721_p0, %p113_p1 }
   0x5   : > { %v1007_v0 = vld [vmem:[%s1139_s1] sm:$0xff] (!%p114_p2)   ;;  %s722_s13 = sshll.u32 (!%p114_p2), %s717_s10, 5  ;;  %v1008_v1 = vld [vmem:[%s1139_s1 + $0x8] sm:$0xff] (!%p114_p2)   ;;  %v1009_v2 = vld [vmem:[%s1139_s1 + $0x10] sm:$0xff] (!%p114_p2)  }
   0x6   : > { %117 = sbr.rel (%p114_p2) target bundleno = 280 (0x118), region = 28  ;;  %p136_p3 = scmp.lt.s32.totalorder (!%p114_p2), %s722_s13, 95  ;;  %935 = vmatprep.subr.bf16.mxu0 (!%p114_p2), %v1007_v0  ;;  %983 = vmatprep.subr.bf16.mxu1 (!%p114_p2), %v1007_v0  ;;  %v1010_v3 = vld [vmem:[%s1139_s1 + $0x18] sm:$0xff] (!%p114_p2)   ;;  %v1011_v6 = vld [vmem:[%s1139_s1 + $0x20] sm:$0xff] (!%p114_p2)   ;;  %v1012_v7 = vld [vmem:[%s1139_s1 + $0x28] sm:$0xff] (!%p114_p2)  }
   0x7   : > { %936 = vmatpush3.bf16.msra.mxu0 (!%p114_p2), %v1007_v0  ;;  %991 = vmatpush3.bf16.msra.mxu1 (!%p114_p2), %v1007_v0  ;;  %v1013_v8 = vld [vmem:[%s1139_s1 + $0x30] sm:$0xff] (!%p114_p2)   ;;  %v1014_v9 = vld [vmem:[%s1139_s1 + $0x38] sm:$0xff] (!%p114_p2)  }
   0x8   : > { %937 = vmatprep.subr.bf16.mxu0 (!%p114_p2), %v1008_v1  ;;  %984 = vmatprep.subr.bf16.mxu1 (!%p114_p2), %v1008_v1 }
   0xb   : > { %938 = vmatpush3.bf16.msra.mxu0 (!%p114_p2), %v1008_v1  ;;  %992 = vmatpush3.bf16.msra.mxu1 (!%p114_p2), %v1008_v1 }
   0xc   : > { %939 = vmatprep.subr.bf16.mxu0 (!%p114_p2), %v1009_v2  ;;  %985 = vmatprep.subr.bf16.mxu1 (!%p114_p2), %v1009_v2 }
   0xd   : > { %s1142_s13 = smov (!%p136_p3, %s722_s13), 95 }
   0xe   : > { %s723_s18 = sshll.u32 %s1142_s13, 2 }
   0xf   : > { %s1079_s21 = scalar_lea.vmem %s1138_s0, %s723_s18  ;;  %940 = vmatpush3.bf16.msra.mxu0 %v1009_v2  ;;  %993 = vmatpush3.bf16.msra.mxu1 %v1009_v2  ;;  %s1117_s6 = scalar_lea.vmem %s1140_s2, %s723_s18 }
  0x10   : > { %v1015_v4 = vld [vmem:[%s1079_s21] sm:$0xff]   ;;  %941 = vmatprep.subr.bf16.mxu0 %v1010_v3  ;;  %986 = vmatprep.subr.bf16.mxu1 %v1010_v3  ;;  %v1017_v10 = vld [vmem:[%s1079_s21 + $0x8] sm:$0xff]   ;;  %v1019_v12 = vld [vmem:[%s1079_s21 + $0x10] sm:$0xff]  }
  0x11   : > { %v1016_v5 = vld [vmem:[%s1079_s21 + $0x40] sm:$0xff]   ;;  %951 = vmatprep.mubr.bf16.mxu0 %v1015_v4  ;;  %v1018_v11 = vld [vmem:[%s1079_s21 + $0x48] sm:$0xff]   ;;  %v1020_v13 = vld [vmem:[%s1079_s21 + $0x50] sm:$0xff]  }
  0x12   : > { %967 = vmatprep.mubr.bf16.mxu1 %v1016_v5  ;;  %v1021_v14 = vld [vmem:[%s1079_s21 + $0x18] sm:$0xff]   ;;  %v1023_v16 = vld [vmem:[%s1079_s21 + $0x20] sm:$0xff]   ;;  %v1025_v18 = vld [vmem:[%s1079_s21 + $0x28] sm:$0xff]  }
  0x13   : > { %942 = vmatpush3.bf16.msra.mxu0 %v1010_v3  ;;  %994 = vmatpush3.bf16.msra.mxu1 %v1010_v3  ;;  %v1022_v15 = vld [vmem:[%s1079_s21 + $0x58] sm:$0xff]   ;;  %v1024_v17 = vld [vmem:[%s1079_s21 + $0x60] sm:$0xff]   ;;  %v1026_v19 = vld [vmem:[%s1079_s21 + $0x68] sm:$0xff]  }
  0x14   : > { %943 = vmatprep.subr.bf16.mxu0 %v1011_v6  ;;  %987 = vmatprep.subr.bf16.mxu1 %v1011_v6  ;;  %v1027_v20 = vld [vmem:[%s1079_s21 + $0x30] sm:$0xff]   ;;  %v1029_v22 = vld [vmem:[%s1079_s21 + $0x38] sm:$0xff]  }
  0x15   : > { %v1028_v21 = vld [vmem:[%s1079_s21 + $0x70] sm:$0xff]   ;;  %v1030_v23 = vld [vmem:[%s1079_s21 + $0x78] sm:$0xff]  }
  0x17   : > { %944 = vmatpush3.bf16.msra.mxu0 %v1011_v6  ;;  %995 = vmatpush3.bf16.msra.mxu1 %v1011_v6 }
  0x18   : > { %945 = vmatprep.subr.bf16.mxu0 %v1012_v7  ;;  %988 = vmatprep.subr.bf16.mxu1 %v1012_v7 }
  0x1b   : > { %946 = vmatpush3.bf16.msra.mxu0 %v1012_v7  ;;  %996 = vmatpush3.bf16.msra.mxu1 %v1012_v7 }
  0x1c   : > { %947 = vmatprep.subr.bf16.mxu0 %v1013_v8  ;;  %989 = vmatprep.subr.bf16.mxu1 %v1013_v8 }
  0x1f   : > { %948 = vmatpush3.bf16.msra.mxu0 %v1013_v8  ;;  %997 = vmatpush3.bf16.msra.mxu1 %v1013_v8 }
  0x20   : > { %949 = vmatprep.subr.bf16.mxu0 %v1014_v9  ;;  %990 = vmatprep.subr.bf16.mxu1 %v1014_v9 }
  0x23   : > { %950 = vmatpush3.bf16.msra.mxu0 %v1014_v9  ;;  %998 = vmatpush3.bf16.msra.mxu1 %v1014_v9 }
  0x26   : > { %952 = vmatmul.mubr.bf16.vlgmr.msra.gmra.mrb[0].mxu0 %v1017_v10  ;;  %968 = vmatmul.mubr.bf16.vlgmr.msra.gmra.mrb[0].mxu1 %v1018_v11 }
  0x27   : > { %955 = vmatprep.mubr.bf16.mxu0 %v1019_v12  ;;  %971 = vmatprep.mubr.bf16.mxu1 %v1020_v13 }
  0x2e   : > { %956 = vmatmul.mubr.bf16.gmra.mrb[4].mxu0 %v1021_v14  ;;  %972 = vmatmul.mubr.bf16.gmra.mrb[4].mxu1 %v1022_v15 }
  0x2f   : > { %959 = vmatprep.mubr.bf16.mxu0 %v1023_v16  ;;  %975 = vmatprep.mubr.bf16.mxu1 %v1024_v17 }
  0x36   : > { %960 = vmatmul.mubr.bf16.gmra.mrb[8].mxu0 %v1025_v18  ;;  %976 = vmatmul.mubr.bf16.gmra.mrb[8].mxu1 %v1026_v19 }
  0x37   : > { %963 = vmatprep.mubr.bf16.mxu0 %v1027_v20  ;;  %979 = vmatprep.mubr.bf16.mxu1 %v1028_v21 }
  0x3e   : > { %964 = vmatmul.mubr.bf16.gmra.mrb[12].mxu0 %v1029_v22  ;;  %980 = vmatmul.mubr.bf16.gmra.mrb[12].mxu1 %v1030_v23 }
  0xf9   : > { %v953_v24 = vpop.f32.mrb[0].mxu0  ;;  %v969_v25 = vpop.f32.mrb[0].mxu1 }
  0xfa   : > { %v374_v26 = vpop.f32.mrb[1].mxu0  ;;  %v438_v27 = vpop.f32.mrb[1].mxu1 }
  0xfb   : > { %v954_v28 = vpop.f32.mrb[2].mxu0  ;;  %v970_v29 = vpop.f32.mrb[2].mxu1 }
  0xfc   : > { %v824_v30 = vpack.c.bf16 %v954_v28, %v953_v24  ;;  %v864_v31 = vpack.c.bf16 %v970_v29, %v969_v25  ;;  %v377_v32 = vpop.f32.mrb[3].mxu0  ;;  %v441_v33 = vpop.f32.mrb[3].mxu1 }
  0xfd   : > { %v819_v34 = vpack.c.bf16 %v377_v32, %v374_v26  ;;  %v859_v35 = vpack.c.bf16 %v441_v33, %v438_v27 }
  0xfe   : > { %896 = vst [vmem:[%s1117_s6 + $0x8] sm:$0xff] %v824_v30   ;;  %904 = vst [vmem:[%s1117_s6 + $0x48] sm:$0xff] %v864_v31  }
  0xff   : > { %820 = vst [vmem:[%s1117_s6] sm:$0xff] %v819_v34   ;;  %903 = vst [vmem:[%s1117_s6 + $0x40] sm:$0xff] %v859_v35  }
 0x101   : > { %v957_v36 = vpop.f32.mrb[4].mxu0  ;;  %v973_v37 = vpop.f32.mrb[4].mxu1 }
 0x102   : > { %v390_v38 = vpop.f32.mrb[5].mxu0  ;;  %v454_v39 = vpop.f32.mrb[5].mxu1 }
 0x103   : > { %v958_v40 = vpop.f32.mrb[6].mxu0  ;;  %v974_v41 = vpop.f32.mrb[6].mxu1 }
 0x104   : > { %v834_v42 = vpack.c.bf16 %v958_v40, %v957_v36  ;;  %v874_v43 = vpack.c.bf16 %v974_v41, %v973_v37  ;;  %v393_v44 = vpop.f32.mrb[7].mxu0  ;;  %v457_v45 = vpop.f32.mrb[7].mxu1 }
 0x105   : > { %v829_v46 = vpack.c.bf16 %v393_v44, %v390_v38  ;;  %v869_v47 = vpack.c.bf16 %v457_v45, %v454_v39 }
 0x106   : > { %898 = vst [vmem:[%s1117_s6 + $0x18] sm:$0xff] %v834_v42   ;;  %906 = vst [vmem:[%s1117_s6 + $0x58] sm:$0xff] %v874_v43  }
 0x107   : > { %897 = vst [vmem:[%s1117_s6 + $0x10] sm:$0xff] %v829_v46   ;;  %905 = vst [vmem:[%s1117_s6 + $0x50] sm:$0xff] %v869_v47  }
 0x109   : > { %v961_v48 = vpop.f32.mrb[8].mxu0  ;;  %v977_v49 = vpop.f32.mrb[8].mxu1 }
 0x10a   : > { %v406_v50 = vpop.f32.mrb[9].mxu0  ;;  %v470_v51 = vpop.f32.mrb[9].mxu1 }
 0x10b   : > { %v962_v52 = vpop.f32.mrb[10].mxu0  ;;  %v978_v53 = vpop.f32.mrb[10].mxu1 }
 0x10c   : > { %v844_v54 = vpack.c.bf16 %v962_v52, %v961_v48  ;;  %v884_v55 = vpack.c.bf16 %v978_v53, %v977_v49  ;;  %v409_v56 = vpop.f32.mrb[11].mxu0  ;;  %v473_v57 = vpop.f32.mrb[11].mxu1 }
 0x10d   : > { %v839_v58 = vpack.c.bf16 %v409_v56, %v406_v50  ;;  %v879_v59 = vpack.c.bf16 %v473_v57, %v470_v51 }
 0x10e   : > { %900 = vst [vmem:[%s1117_s6 + $0x28] sm:$0xff] %v844_v54   ;;  %908 = vst [vmem:[%s1117_s6 + $0x68] sm:$0xff] %v884_v55  }
 0x10f   : > { %899 = vst [vmem:[%s1117_s6 + $0x20] sm:$0xff] %v839_v58   ;;  %907 = vst [vmem:[%s1117_s6 + $0x60] sm:$0xff] %v879_v59  }
 0x111   : > { %v965_v60 = vpop.f32.mrb[12].mxu0  ;;  %v981_v61 = vpop.f32.mrb[12].mxu1 }
 0x112   : > { %v422_v62 = vpop.f32.mrb[13].mxu0  ;;  %v486_v63 = vpop.f32.mrb[13].mxu1 }
 0x113   : > { %v966_v0 = vpop.f32.mrb[14].mxu0  ;;  %v982_v1 = vpop.f32.mrb[14].mxu1 }
 0x114   : > { %v854_v2 = vpack.c.bf16 %v966_v0, %v965_v60  ;;  %v894_v3 = vpack.c.bf16 %v982_v1, %v981_v61  ;;  %v425_v4 = vpop.f32.mrb[15].mxu0  ;;  %v489_v5 = vpop.f32.mrb[15].mxu1 }
 0x115   : > { %v849_v6 = vpack.c.bf16 %v425_v4, %v422_v62  ;;  %v889_v7 = vpack.c.bf16 %v489_v5, %v486_v63 }
 0x116   : > { %902 = vst [vmem:[%s1117_s6 + $0x38] sm:$0xff] %v854_v2   ;;  %910 = vst [vmem:[%s1117_s6 + $0x78] sm:$0xff] %v894_v3  }
 0x117   : > { %901 = vst [vmem:[%s1117_s6 + $0x30] sm:$0xff] %v849_v6   ;;  %909 = vst [vmem:[%s1117_s6 + $0x70] sm:$0xff] %v889_v7  }
 0x118 PF: > { %s12_s9 = sadd.s32 1, %s1037_s9  }
 0x119   : > { %p9_p4 = scmp.ge.s32.totalorder %s12_s9, 5  }
 0x11b   :  { %11 = sbr.rel (!%p9_p4) target bundleno = 1 (0x1), region = 58 }

// kernel: generator_forward.16
= control target key start
LH: loop header
LB: loop body
LE: loop exit
PB: predicated region body
PF: predicated region fallthrough
CT: control target
= control target key end

     0   :  { %s9948_s0 = inlined_call_operand.vmem [shape: bf16[2048,128], index: 0, kind: input, shape index: {}]   ;;  %s9949_s1 = inlined_call_operand.vmem [shape: f32[1,128], index: 1, kind: input, shape index: {}]   ;;  %s9950_s2 = inlined_call_operand.vmem [shape: f32[1,128], index: 2, kind: input, shape index: {}]   ;;  %s9951_s3 = inlined_call_operand.vmem [shape: bf16[2048,128], index: 3, kind: output, shape index: {}]  }
   0x1   :  { %v5580_v0 = vld [vmem:[%s9948_s0] sm:$0xff]   ;;  %v5585_v1 = vld [vmem:[%s9948_s0 + $0x8] sm:$0xff]   ;;  %v5593_v5 = vld [vmem:[%s9948_s0 + $0x10] sm:$0xff]  }
   0x2   :  { %v10052_v2 = vunpack.c.l.bf16 %v5580_v0  ;;  %v10049_v3 = vunpack.c.h.bf16 %v5580_v0  ;;  %v10046_v4 = vunpack.c.l.bf16 %v5585_v1  ;;  %v10043_v6 = vunpack.c.h.bf16 %v5585_v1  ;;  %v5606_v10 = vld [vmem:[%s9948_s0 + $0x18] sm:$0xff]   ;;  %v5617_v15 = vld [vmem:[%s9948_s0 + $0x20] sm:$0xff]   ;;  %v5628_v20 = vld [vmem:[%s9948_s0 + $0x28] sm:$0xff]  }
   0x3   :  { %v10040_v8 = vunpack.c.l.bf16 %v5593_v5  ;;  %v10037_v11 = vunpack.c.h.bf16 %v5593_v5  ;;  %v10034_v13 = vunpack.c.l.bf16 %v5606_v10  ;;  %v10031_v16 = vunpack.c.h.bf16 %v5606_v10  ;;  %v5639_v25 = vld [vmem:[%s9948_s0 + $0x30] sm:$0xff]   ;;  %v5650_v30 = vld [vmem:[%s9948_s0 + $0x38] sm:$0xff]   ;;  %v5661_v35 = vld [vmem:[%s9948_s0 + $0x40] sm:$0xff]  }
   0x4   :  { %v526_v7 = vadd.f32 %v10049_v3, %v10052_v2  ;;  %v10028_v18 = vunpack.c.l.bf16 %v5617_v15  ;;  %v10025_v21 = vunpack.c.h.bf16 %v5617_v15  ;;  %v10022_v23 = vunpack.c.l.bf16 %v5628_v20  ;;  %v5672_v40 = vld [vmem:[%s9948_s0 + $0x48] sm:$0xff]   ;;  %v5683_v45 = vld [vmem:[%s9948_s0 + $0x50] sm:$0xff]   ;;  %v5694_v50 = vld [vmem:[%s9948_s0 + $0x58] sm:$0xff]  }
   0x5   :  { %v10019_v26 = vunpack.c.h.bf16 %v5628_v20  ;;  %v10016_v28 = vunpack.c.l.bf16 %v5639_v25  ;;  %v10013_v31 = vunpack.c.h.bf16 %v5639_v25  ;;  %v10010_v33 = vunpack.c.l.bf16 %v5650_v30  ;;  %v5705_v55 = vld [vmem:[%s9948_s0 + $0x60] sm:$0xff]   ;;  %v5716_v60 = vld [vmem:[%s9948_s0 + $0x68] sm:$0xff]  }
   0x6   :  { %v527_v9 = vadd.f32 %v10046_v4, %v526_v7  ;;  %v10007_v36 = vunpack.c.h.bf16 %v5650_v30  ;;  %v10004_v38 = vunpack.c.l.bf16 %v5661_v35  ;;  %v10001_v41 = vunpack.c.h.bf16 %v5661_v35 }
   0x7   :  { %v9998_v43 = vunpack.c.l.bf16 %v5672_v40  ;;  %v9995_v46 = vunpack.c.h.bf16 %v5672_v40  ;;  %v9992_v48 = vunpack.c.l.bf16 %v5683_v45  ;;  %v9989_v51 = vunpack.c.h.bf16 %v5683_v45 }
   0x8   :  { %v528_v12 = vadd.f32 %v10043_v6, %v527_v9  ;;  %v9986_v53 = vunpack.c.l.bf16 %v5694_v50  ;;  %v9983_v56 = vunpack.c.h.bf16 %v5694_v50  ;;  %v9980_v58 = vunpack.c.l.bf16 %v5705_v55  ;;  %v5727_v9 = vld [vmem:[%s9948_s0 + $0x70] sm:$0xff]  }
   0x9   :  { %v9977_v61 = vunpack.c.h.bf16 %v5705_v55  ;;  %v9974_v63 = vunpack.c.l.bf16 %v5716_v60 }
   0xa   :  { %v529_v14 = vadd.f32 %v10040_v8, %v528_v12  ;;  %v9971_v12 = vunpack.c.h.bf16 %v5716_v60 }
   0xc   :  { %v530_v17 = vadd.f32 %v10037_v11, %v529_v14 }
   0xe   :  { %v531_v19 = vadd.f32 %v10034_v13, %v530_v17  ;;  %v9968_v17 = vunpack.c.l.bf16 %v5727_v9 }
  0x10   :  { %v532_v22 = vadd.f32 %v10031_v16, %v531_v19 }
  0x12   :  { %v533_v24 = vadd.f32 %v10028_v18, %v532_v22  ;;  %v5738_v22 = vld [vmem:[%s9948_s0 + $0x78] sm:$0xff]  }
  0x14   :  { %v534_v27 = vadd.f32 %v10025_v21, %v533_v24  ;;  %v9965_v24 = vunpack.c.h.bf16 %v5727_v9 }
  0x16   :  { %v535_v29 = vadd.f32 %v10022_v23, %v534_v27 }
  0x18   :  { %v536_v32 = vadd.f32 %v10019_v26, %v535_v29  ;;  %v9962_v29 = vunpack.c.l.bf16 %v5738_v22 }
  0x1a   :  { %v537_v34 = vadd.f32 %v10016_v28, %v536_v32 }
  0x1c   :  { %v538_v37 = vadd.f32 %v10013_v31, %v537_v34  ;;  %v5749_v34 = vld [vmem:[%s9948_s0 + $0x80] sm:$0xff]  }
  0x1e   :  { %v539_v39 = vadd.f32 %v10010_v33, %v538_v37  ;;  %v9959_v37 = vunpack.c.h.bf16 %v5738_v22 }
  0x20   :  { %v540_v42 = vadd.f32 %v10007_v36, %v539_v39 }
  0x22   :  { %v541_v44 = vadd.f32 %v10004_v38, %v540_v42  ;;  %v9956_v42 = vunpack.c.l.bf16 %v5749_v34 }
  0x24   :  { %v542_v47 = vadd.f32 %v10001_v41, %v541_v44 }
  0x26   :  { %v543_v49 = vadd.f32 %v9998_v43, %v542_v47  ;;  %v5760_v47 = vld [vmem:[%s9948_s0 + $0x88] sm:$0xff]  }
  0x28   :  { %v544_v52 = vadd.f32 %v9995_v46, %v543_v49  ;;  %v9953_v49 = vunpack.c.h.bf16 %v5749_v34 }
  0x2a   :  { %v545_v54 = vadd.f32 %v9992_v48, %v544_v52 }
  0x2c   :  { %v546_v57 = vadd.f32 %v9989_v51, %v545_v54  ;;  %v9952_v54 = vunpack.c.l.bf16 %v5760_v47 }
  0x2e   :  { %v547_v59 = vadd.f32 %v9986_v53, %v546_v57 }
  0x30   :  { %v548_v62 = vadd.f32 %v9983_v56, %v547_v59  ;;  %v5771_v59 = vld [vmem:[%s9948_s0 + $0x90] sm:$0xff]  }
  0x32   :  { %v549_v7 = vadd.f32 %v9980_v58, %v548_v62  ;;  %v9954_v62 = vunpack.c.h.bf16 %v5760_v47 }
  0x34   :  { %v550_v14 = vadd.f32 %v9977_v61, %v549_v7 }
  0x36   :  { %v551_v19 = vadd.f32 %v9974_v63, %v550_v14  ;;  %v9955_v14 = vunpack.c.l.bf16 %v5771_v59 }
  0x38   :  { %v552_v27 = vadd.f32 %v9971_v12, %v551_v19 }
  0x3a   :  { %v553_v32 = vadd.f32 %v9968_v17, %v552_v27  ;;  %v5782_v27 = vld [vmem:[%s9948_s0 + $0x98] sm:$0xff]  }
  0x3c   :  { %v554_v39 = vadd.f32 %v9965_v24, %v553_v32  ;;  %v9957_v32 = vunpack.c.h.bf16 %v5771_v59 }
  0x3e   :  { %v555_v44 = vadd.f32 %v9962_v29, %v554_v39 }
  0x40   :  { %v556_v52 = vadd.f32 %v9959_v37, %v555_v44  ;;  %v9958_v44 = vunpack.c.l.bf16 %v5782_v27 }
  0x42   :  { %v557_v57 = vadd.f32 %v9956_v42, %v556_v52 }
  0x44   :  { %v558_v7 = vadd.f32 %v9953_v49, %v557_v57  ;;  %v5793_v57 = vld [vmem:[%s9948_s0 + $0xa0] sm:$0xff]  }
  0x45   :  { %v9961_v49 = vunpack.c.l.bf16 %v5793_v57 }
  0x46   :  { %v559_v19 = vadd.f32 %v9952_v54, %v558_v7  ;;  %v9960_v7 = vunpack.c.h.bf16 %v5782_v27 }
  0x48   :  { %v560_v39 = vadd.f32 %v9954_v62, %v559_v19  ;;  %v5804_v62 = vld [vmem:[%s9948_s0 + $0xa8] sm:$0xff]  }
  0x49   :  { %v9964_v42 = vunpack.c.l.bf16 %v5804_v62 }
  0x4a   :  { %v561_v52 = vadd.f32 %v9955_v14, %v560_v39  ;;  %v9963_v39 = vunpack.c.h.bf16 %v5793_v57 }
  0x4c   :  { %v562_v54 = vadd.f32 %v9957_v32, %v561_v52  ;;  %v5815_v32 = vld [vmem:[%s9948_s0 + $0xb0] sm:$0xff]  }
  0x4d   :  { %v9967_v37 = vunpack.c.l.bf16 %v5815_v32 }
  0x4e   :  { %v563_v19 = vadd.f32 %v9958_v44, %v562_v54  ;;  %v9966_v54 = vunpack.c.h.bf16 %v5804_v62 }
  0x50   :  { %v564_v14 = vadd.f32 %v9960_v7, %v563_v19  ;;  %v5826_v7 = vld [vmem:[%s9948_s0 + $0xb8] sm:$0xff]  }
  0x51   :  { %v9970_v29 = vunpack.c.l.bf16 %v5826_v7 }
  0x52   :  { %v565_v52 = vadd.f32 %v9961_v49, %v564_v14  ;;  %v9969_v14 = vunpack.c.h.bf16 %v5815_v32 }
  0x54   :  { %v566_v44 = vadd.f32 %v9963_v39, %v565_v52  ;;  %v5837_v39 = vld [vmem:[%s9948_s0 + $0xc0] sm:$0xff]  }
  0x55   :  { %v9973_v24 = vunpack.c.l.bf16 %v5837_v39 }
  0x56   :  { %v567_v19 = vadd.f32 %v9964_v42, %v566_v44  ;;  %v9972_v44 = vunpack.c.h.bf16 %v5826_v7 }
  0x58   :  { %v568_v49 = vadd.f32 %v9966_v54, %v567_v19  ;;  %v5848_v54 = vld [vmem:[%s9948_s0 + $0xc8] sm:$0xff]  }
  0x59   :  { %v9976_v17 = vunpack.c.l.bf16 %v5848_v54 }
  0x5a   :  { %v569_v52 = vadd.f32 %v9967_v37, %v568_v49  ;;  %v9975_v49 = vunpack.c.h.bf16 %v5837_v39 }
  0x5c   :  { %v570_v42 = vadd.f32 %v9969_v14, %v569_v52  ;;  %v5859_v14 = vld [vmem:[%s9948_s0 + $0xd0] sm:$0xff]  }
  0x5d   :  { %v9979_v12 = vunpack.c.l.bf16 %v5859_v14 }
  0x5e   :  { %v571_v19 = vadd.f32 %v9970_v29, %v570_v42  ;;  %v9978_v42 = vunpack.c.h.bf16 %v5848_v54 }
  0x60   :  { %v572_v37 = vadd.f32 %v9972_v44, %v571_v19  ;;  %v5870_v44 = vld [vmem:[%s9948_s0 + $0xd8] sm:$0xff]  }
  0x61   :  { %v9982_v63 = vunpack.c.l.bf16 %v5870_v44 }
  0x62   :  { %v573_v52 = vadd.f32 %v9973_v24, %v572_v37  ;;  %v9981_v37 = vunpack.c.h.bf16 %v5859_v14 }
  0x64   :  { %v574_v29 = vadd.f32 %v9975_v49, %v573_v52  ;;  %v5881_v49 = vld [vmem:[%s9948_s0 + $0xe0] sm:$0xff]  }
  0x65   :  { %v9985_v61 = vunpack.c.l.bf16 %v5881_v49 }
  0x66   :  { %v575_v19 = vadd.f32 %v9976_v17, %v574_v29  ;;  %v9984_v29 = vunpack.c.h.bf16 %v5870_v44 }
  0x68   :  { %v576_v24 = vadd.f32 %v9978_v42, %v575_v19  ;;  %v5892_v42 = vld [vmem:[%s9948_s0 + $0xe8] sm:$0xff]  }
  0x69   :  { %v9988_v58 = vunpack.c.l.bf16 %v5892_v42 }
  0x6a   :  { %v577_v52 = vadd.f32 %v9979_v12, %v576_v24  ;;  %v9987_v24 = vunpack.c.h.bf16 %v5881_v49 }
  0x6c   :  { %v578_v17 = vadd.f32 %v9981_v37, %v577_v52  ;;  %v5903_v37 = vld [vmem:[%s9948_s0 + $0xf0] sm:$0xff]  }
  0x6d   :  { %v9991_v56 = vunpack.c.l.bf16 %v5903_v37 }
  0x6e   :  { %v579_v19 = vadd.f32 %v9982_v63, %v578_v17  ;;  %v9990_v17 = vunpack.c.h.bf16 %v5892_v42 }
  0x70   :  { %v580_v12 = vadd.f32 %v9984_v29, %v579_v19  ;;  %v5914_v29 = vld [vmem:[%s9948_s0 + $0xf8] sm:$0xff]  }
  0x71   :  { %v9994_v53 = vunpack.c.l.bf16 %v5914_v29 }
  0x72   :  { %v581_v52 = vadd.f32 %v9985_v61, %v580_v12  ;;  %v9993_v12 = vunpack.c.h.bf16 %v5903_v37 }
  0x74   :  { %v582_v63 = vadd.f32 %v9987_v24, %v581_v52  ;;  %v5925_v24 = vld [vmem:[%s9948_s0 + $0x100] sm:$0xff]  }
  0x75   :  { %v9997_v51 = vunpack.c.l.bf16 %v5925_v24 }
  0x76   :  { %v583_v19 = vadd.f32 %v9988_v58, %v582_v63  ;;  %v9996_v63 = vunpack.c.h.bf16 %v5914_v29 }
  0x78   :  { %v584_v61 = vadd.f32 %v9990_v17, %v583_v19  ;;  %v5936_v17 = vld [vmem:[%s9948_s0 + $0x108] sm:$0xff]  }
  0x79   :  { %v10000_v48 = vunpack.c.l.bf16 %v5936_v17 }
  0x7a   :  { %v585_v52 = vadd.f32 %v9991_v56, %v584_v61  ;;  %v9999_v61 = vunpack.c.h.bf16 %v5925_v24 }
  0x7c   :  { %v586_v58 = vadd.f32 %v9993_v12, %v585_v52  ;;  %v5947_v12 = vld [vmem:[%s9948_s0 + $0x110] sm:$0xff]  }
  0x7d   :  { %v10003_v46 = vunpack.c.l.bf16 %v5947_v12 }
  0x7e   :  { %v587_v19 = vadd.f32 %v9994_v53, %v586_v58  ;;  %v10002_v58 = vunpack.c.h.bf16 %v5936_v17 }
  0x80   :  { %v588_v56 = vadd.f32 %v9996_v63, %v587_v19  ;;  %v5958_v63 = vld [vmem:[%s9948_s0 + $0x118] sm:$0xff]  }
  0x81   :  { %v10006_v43 = vunpack.c.l.bf16 %v5958_v63 }
  0x82   :  { %v589_v52 = vadd.f32 %v9997_v51, %v588_v56  ;;  %v10005_v56 = vunpack.c.h.bf16 %v5947_v12 }
  0x84   :  { %v590_v53 = vadd.f32 %v9999_v61, %v589_v52  ;;  %v5969_v61 = vld [vmem:[%s9948_s0 + $0x120] sm:$0xff]  }
  0x85   :  { %v10009_v41 = vunpack.c.l.bf16 %v5969_v61 }
  0x86   :  { %v591_v19 = vadd.f32 %v10000_v48, %v590_v53  ;;  %v10008_v53 = vunpack.c.h.bf16 %v5958_v63 }
  0x88   :  { %v592_v51 = vadd.f32 %v10002_v58, %v591_v19  ;;  %v5980_v58 = vld [vmem:[%s9948_s0 + $0x128] sm:$0xff]  }
  0x89   :  { %v10012_v38 = vunpack.c.l.bf16 %v5980_v58 }
  0x8a   :  { %v593_v52 = vadd.f32 %v10003_v46, %v592_v51  ;;  %v10011_v51 = vunpack.c.h.bf16 %v5969_v61 }
  0x8c   :  { %v594_v48 = vadd.f32 %v10005_v56, %v593_v52  ;;  %v5991_v56 = vld [vmem:[%s9948_s0 + $0x130] sm:$0xff]  }
  0x8d   :  { %v10015_v36 = vunpack.c.l.bf16 %v5991_v56 }
  0x8e   :  { %v595_v19 = vadd.f32 %v10006_v43, %v594_v48  ;;  %v10014_v48 = vunpack.c.h.bf16 %v5980_v58 }
  0x90   :  { %v596_v46 = vadd.f32 %v10008_v53, %v595_v19  ;;  %v6002_v53 = vld [vmem:[%s9948_s0 + $0x138] sm:$0xff]  }
  0x91   :  { %v10018_v33 = vunpack.c.l.bf16 %v6002_v53 }
  0x92   :  { %v597_v52 = vadd.f32 %v10009_v41, %v596_v46  ;;  %v10017_v46 = vunpack.c.h.bf16 %v5991_v56 }
  0x94   :  { %v598_v43 = vadd.f32 %v10011_v51, %v597_v52  ;;  %v6013_v51 = vld [vmem:[%s9948_s0 + $0x140] sm:$0xff]  }
  0x95   :  { %v10021_v31 = vunpack.c.l.bf16 %v6013_v51 }
  0x96   :  { %v599_v19 = vadd.f32 %v10012_v38, %v598_v43  ;;  %v10020_v43 = vunpack.c.h.bf16 %v6002_v53 }
  0x98   :  { %v600_v41 = vadd.f32 %v10014_v48, %v599_v19  ;;  %v6024_v48 = vld [vmem:[%s9948_s0 + $0x148] sm:$0xff]  }
  0x99   :  { %v10024_v28 = vunpack.c.l.bf16 %v6024_v48 }
  0x9a   :  { %v601_v52 = vadd.f32 %v10015_v36, %v600_v41  ;;  %v10023_v41 = vunpack.c.h.bf16 %v6013_v51 }
  0x9c   :  { %v602_v38 = vadd.f32 %v10017_v46, %v601_v52  ;;  %v6035_v46 = vld [vmem:[%s9948_s0 + $0x150] sm:$0xff]  }
  0x9d   :  { %v10027_v26 = vunpack.c.l.bf16 %v6035_v46 }
  0x9e   :  { %v603_v19 = vadd.f32 %v10018_v33, %v602_v38  ;;  %v10026_v38 = vunpack.c.h.bf16 %v6024_v48 }
  0xa0   :  { %v604_v36 = vadd.f32 %v10020_v43, %v603_v19  ;;  %v6046_v43 = vld [vmem:[%s9948_s0 + $0x158] sm:$0xff]  }
  0xa1   :  { %v10030_v23 = vunpack.c.l.bf16 %v6046_v43 }
  0xa2   :  { %v605_v52 = vadd.f32 %v10021_v31, %v604_v36  ;;  %v10029_v36 = vunpack.c.h.bf16 %v6035_v46 }
  0xa4   :  { %v606_v33 = vadd.f32 %v10023_v41, %v605_v52  ;;  %v6057_v41 = vld [vmem:[%s9948_s0 + $0x160] sm:$0xff]  }
  0xa5   :  { %v10033_v21 = vunpack.c.l.bf16 %v6057_v41 }
  0xa6   :  { %v607_v19 = vadd.f32 %v10024_v28, %v606_v33  ;;  %v10032_v33 = vunpack.c.h.bf16 %v6046_v43 }
  0xa8   :  { %v608_v31 = vadd.f32 %v10026_v38, %v607_v19  ;;  %v6068_v38 = vld [vmem:[%s9948_s0 + $0x168] sm:$0xff]  }
  0xa9   :  { %v10036_v18 = vunpack.c.l.bf16 %v6068_v38 }
  0xaa   :  { %v609_v52 = vadd.f32 %v10027_v26, %v608_v31  ;;  %v10035_v31 = vunpack.c.h.bf16 %v6057_v41 }
  0xac   :  { %v610_v28 = vadd.f32 %v10029_v36, %v609_v52  ;;  %v6079_v36 = vld [vmem:[%s9948_s0 + $0x170] sm:$0xff]  }
  0xad   :  { %v10039_v16 = vunpack.c.l.bf16 %v6079_v36 }
  0xae   :  { %v611_v19 = vadd.f32 %v10030_v23, %v610_v28  ;;  %v10038_v28 = vunpack.c.h.bf16 %v6068_v38 }
  0xb0   :  { %v612_v26 = vadd.f32 %v10032_v33, %v611_v19  ;;  %v6090_v33 = vld [vmem:[%s9948_s0 + $0x178] sm:$0xff]  }
  0xb1   :  { %v10042_v13 = vunpack.c.l.bf16 %v6090_v33 }
  0xb2   :  { %v613_v52 = vadd.f32 %v10033_v21, %v612_v26  ;;  %v10041_v26 = vunpack.c.h.bf16 %v6079_v36 }
  0xb4   :  { %v614_v23 = vadd.f32 %v10035_v31, %v613_v52  ;;  %v6101_v31 = vld [vmem:[%s9948_s0 + $0x180] sm:$0xff]  }
  0xb5   :  { %10581 = vst [vmem:[#allocation2_spill] sm:$0xff] %v6101_v31  ;;  %v10045_v11 = vunpack.c.l.bf16 %v6101_v31 }
  0xb6   :  { %v615_v19 = vadd.f32 %v10036_v18, %v614_v23  ;;  %v10044_v23 = vunpack.c.h.bf16 %v6090_v33 }
  0xb8   :  { %v616_v21 = vadd.f32 %v10038_v28, %v615_v19  ;;  %v6112_v28 = vld [vmem:[%s9948_s0 + $0x188] sm:$0xff]  }
  0xb9   :  { %10582 = vst [vmem:[#allocation3_spill] sm:$0xff] %v6112_v28  ;;  %v10048_v8 = vunpack.c.l.bf16 %v6112_v28 }
  0xba   :  { %v617_v52 = vadd.f32 %v10039_v16, %v616_v21  ;;  %v10047_v21 = vunpack.c.h.bf16 %v6101_v31 }
  0xbc   :  { %v618_v18 = vadd.f32 %v10041_v26, %v617_v52  ;;  %v6123_v26 = vld [vmem:[%s9948_s0 + $0x190] sm:$0xff]  }
  0xbd   :  { %10583 = vst [vmem:[#allocation4_spill] sm:$0xff] %v6123_v26  ;;  %v10051_v6 = vunpack.c.l.bf16 %v6123_v26 }
  0xbe   :  { %v619_v19 = vadd.f32 %v10042_v13, %v618_v18  ;;  %v10050_v18 = vunpack.c.h.bf16 %v6112_v28 }
  0xc0   :  { %v620_v16 = vadd.f32 %v10044_v23, %v619_v19  ;;  %v6134_v23 = vld [vmem:[%s9948_s0 + $0x198] sm:$0xff]  }
  0xc1   :  { %10584 = vst [vmem:[#allocation5_spill] sm:$0xff] %v6134_v23  ;;  %v10054_v4 = vunpack.c.l.bf16 %v6134_v23 }
  0xc2   :  { %v621_v52 = vadd.f32 %v10045_v11, %v620_v16  ;;  %v10053_v16 = vunpack.c.h.bf16 %v6123_v26 }
  0xc4   :  { %v622_v13 = vadd.f32 %v10047_v21, %v621_v52  ;;  %v6145_v21 = vld [vmem:[%s9948_s0 + $0x1a0] sm:$0xff]  }
  0xc5   :  { %10585 = vst [vmem:[#allocation6_spill] sm:$0xff] %v6145_v21  ;;  %v10058_v3 = vunpack.c.l.bf16 %v6145_v21 }
  0xc6   :  { %v623_v19 = vadd.f32 %v10048_v8, %v622_v13  ;;  %v10057_v13 = vunpack.c.h.bf16 %v6134_v23 }
  0xc8   :  { %v624_v11 = vadd.f32 %v10050_v18, %v623_v19  ;;  %v6156_v18 = vld [vmem:[%s9948_s0 + $0x1a8] sm:$0xff]  }
  0xc9   :  { %10586 = vst [vmem:[#allocation7_spill] sm:$0xff] %v6156_v18  ;;  %v10062_v2 = vunpack.c.l.bf16 %v6156_v18 }
  0xca   :  { %v625_v52 = vadd.f32 %v10051_v6, %v624_v11  ;;  %v10061_v11 = vunpack.c.h.bf16 %v6145_v21 }
  0xcc   :  { %v626_v8 = vadd.f32 %v10053_v16, %v625_v52  ;;  %v6167_v16 = vld [vmem:[%s9948_s0 + $0x1b0] sm:$0xff]  }
  0xcd   :  { %10587 = vst [vmem:[#allocation8_spill] sm:$0xff] %v6167_v16  ;;  %v10066_v26 = vunpack.c.l.bf16 %v6167_v16 }
  0xce   :  { %v627_v19 = vadd.f32 %v10054_v4, %v626_v8  ;;  %v10065_v8 = vunpack.c.h.bf16 %v6156_v18 }
  0xd0   :  { %v628_v6 = vadd.f32 %v10057_v13, %v627_v19  ;;  %v6178_v13 = vld [vmem:[%s9948_s0 + $0x1b8] sm:$0xff]  }
  0xd1   :  { %10588 = vst [vmem:[#allocation9_spill] sm:$0xff] %v6178_v13  ;;  %v10070_v23 = vunpack.c.l.bf16 %v6178_v13 }
  0xd2   :  { %v629_v52 = vadd.f32 %v10058_v3, %v628_v6  ;;  %v10069_v6 = vunpack.c.h.bf16 %v6167_v16 }
  0xd4   :  { %v630_v4 = vadd.f32 %v10061_v11, %v629_v52  ;;  %v6189_v11 = vld [vmem:[%s9948_s0 + $0x1c0] sm:$0xff]  }
  0xd5   :  { %10589 = vst [vmem:[#allocation10_spill] sm:$0xff] %v6189_v11  ;;  %v10074_v21 = vunpack.c.l.bf16 %v6189_v11 }
  0xd6   :  { %v631_v19 = vadd.f32 %v10062_v2, %v630_v4  ;;  %v10073_v4 = vunpack.c.h.bf16 %v6178_v13 }
  0xd8   :  { %v632_v3 = vadd.f32 %v10065_v8, %v631_v19  ;;  %v6200_v8 = vld [vmem:[%s9948_s0 + $0x1c8] sm:$0xff]  }
  0xd9   :  { %10590 = vst [vmem:[#allocation11_spill] sm:$0xff] %v6200_v8  ;;  %v10078_v18 = vunpack.c.l.bf16 %v6200_v8 }
  0xda   :  { %v633_v52 = vadd.f32 %v10066_v26, %v632_v3  ;;  %v10077_v3 = vunpack.c.h.bf16 %v6189_v11 }
  0xdc   :  { %v634_v2 = vadd.f32 %v10069_v6, %v633_v52  ;;  %v6211_v6 = vld [vmem:[%s9948_s0 + $0x1d0] sm:$0xff]  }
  0xdd   :  { %10591 = vst [vmem:[#allocation12_spill] sm:$0xff] %v6211_v6  ;;  %v10082_v16 = vunpack.c.l.bf16 %v6211_v6 }
  0xde   :  { %v635_v19 = vadd.f32 %v10070_v23, %v634_v2  ;;  %v10081_v2 = vunpack.c.h.bf16 %v6200_v8 }
  0xe0   :  { %v636_v26 = vadd.f32 %v10073_v4, %v635_v19  ;;  %v6222_v4 = vld [vmem:[%s9948_s0 + $0x1d8] sm:$0xff]  }
  0xe1   :  { %10592 = vst [vmem:[#allocation13_spill] sm:$0xff] %v6222_v4  ;;  %v10086_v13 = vunpack.c.l.bf16 %v6222_v4 }
  0xe2   :  { %v637_v52 = vadd.f32 %v10074_v21, %v636_v26  ;;  %v10085_v26 = vunpack.c.h.bf16 %v6211_v6 }
  0xe4   :  { %v638_v23 = vadd.f32 %v10077_v3, %v637_v52  ;;  %v6233_v3 = vld [vmem:[%s9948_s0 + $0x1e0] sm:$0xff]  }
  0xe5   :  { %10593 = vst [vmem:[#allocation14_spill] sm:$0xff] %v6233_v3  ;;  %v10090_v11 = vunpack.c.l.bf16 %v6233_v3 }
  0xe6   :  { %v639_v19 = vadd.f32 %v10078_v18, %v638_v23  ;;  %v10089_v23 = vunpack.c.h.bf16 %v6222_v4 }
  0xe8   :  { %v640_v21 = vadd.f32 %v10081_v2, %v639_v19  ;;  %v6244_v2 = vld [vmem:[%s9948_s0 + $0x1e8] sm:$0xff]  }
  0xe9   :  { %10594 = vst [vmem:[#allocation15_spill] sm:$0xff] %v6244_v2  ;;  %v10094_v8 = vunpack.c.l.bf16 %v6244_v2 }
  0xea   :  { %v641_v52 = vadd.f32 %v10082_v16, %v640_v21  ;;  %v10093_v21 = vunpack.c.h.bf16 %v6233_v3 }
  0xec   :  { %v642_v18 = vadd.f32 %v10085_v26, %v641_v52  ;;  %v6255_v26 = vld [vmem:[%s9948_s0 + $0x1f0] sm:$0xff]  }
  0xed   :  { %10595 = vst [vmem:[#allocation16_spill] sm:$0xff] %v6255_v26  ;;  %v10098_v6 = vunpack.c.l.bf16 %v6255_v26 }
  0xee   :  { %v643_v19 = vadd.f32 %v10086_v13, %v642_v18  ;;  %v10097_v18 = vunpack.c.h.bf16 %v6244_v2 }
  0xf0   :  { %v644_v16 = vadd.f32 %v10089_v23, %v643_v19  ;;  %v6266_v23 = vld [vmem:[%s9948_s0 + $0x1f8] sm:$0xff]  }
  0xf1   :  { %10596 = vst [vmem:[#allocation17_spill] sm:$0xff] %v6266_v23  ;;  %v10102_v4 = vunpack.c.l.bf16 %v6266_v23 }
  0xf2   :  { %v645_v52 = vadd.f32 %v10090_v11, %v644_v16  ;;  %v10101_v16 = vunpack.c.h.bf16 %v6255_v26 }
  0xf4   :  { %v646_v13 = vadd.f32 %v10093_v21, %v645_v52  ;;  %v6277_v21 = vld [vmem:[%s9948_s0 + $0x200] sm:$0xff]  }
  0xf5   :  { %10597 = vst [vmem:[#allocation18_spill] sm:$0xff] %v6277_v21  ;;  %v10106_v3 = vunpack.c.l.bf16 %v6277_v21 }
  0xf6   :  { %v647_v19 = vadd.f32 %v10094_v8, %v646_v13  ;;  %v10105_v13 = vunpack.c.h.bf16 %v6266_v23 }
  0xf8   :  { %v648_v11 = vadd.f32 %v10097_v18, %v647_v19  ;;  %v6288_v18 = vld [vmem:[%s9948_s0 + $0x208] sm:$0xff]  }
  0xf9   :  { %10598 = vst [vmem:[#allocation19_spill] sm:$0xff] %v6288_v18  ;;  %v10110_v2 = vunpack.c.l.bf16 %v6288_v18 }
  0xfa   :  { %v649_v52 = vadd.f32 %v10098_v6, %v648_v11  ;;  %v10109_v11 = vunpack.c.h.bf16 %v6277_v21 }
  0xfc   :  { %v650_v8 = vadd.f32 %v10101_v16, %v649_v52  ;;  %v6299_v16 = vld [vmem:[%s9948_s0 + $0x210] sm:$0xff]  }
  0xfd   :  { %10599 = vst [vmem:[#allocation20_spill] sm:$0xff] %v6299_v16  ;;  %v10114_v26 = vunpack.c.l.bf16 %v6299_v16 }
  0xfe   :  { %v651_v19 = vadd.f32 %v10102_v4, %v650_v8  ;;  %v10113_v8 = vunpack.c.h.bf16 %v6288_v18 }
 0x100   :  { %v652_v6 = vadd.f32 %v10105_v13, %v651_v19  ;;  %v6310_v13 = vld [vmem:[%s9948_s0 + $0x218] sm:$0xff]  }
 0x101   :  { %10600 = vst [vmem:[#allocation21_spill] sm:$0xff] %v6310_v13  ;;  %v10118_v23 = vunpack.c.l.bf16 %v6310_v13 }
 0x102   :  { %v653_v52 = vadd.f32 %v10106_v3, %v652_v6  ;;  %v10117_v6 = vunpack.c.h.bf16 %v6299_v16 }
 0x104   :  { %v654_v4 = vadd.f32 %v10109_v11, %v653_v52  ;;  %v6321_v11 = vld [vmem:[%s9948_s0 + $0x220] sm:$0xff]  }
 0x105   :  { %10601 = vst [vmem:[#allocation22_spill] sm:$0xff] %v6321_v11  ;;  %v10122_v21 = vunpack.c.l.bf16 %v6321_v11 }
 0x106   :  { %v655_v19 = vadd.f32 %v10110_v2, %v654_v4  ;;  %v10121_v4 = vunpack.c.h.bf16 %v6310_v13 }
 0x108   :  { %v656_v3 = vadd.f32 %v10113_v8, %v655_v19  ;;  %v6332_v8 = vld [vmem:[%s9948_s0 + $0x228] sm:$0xff]  }
 0x109   :  { %10602 = vst [vmem:[#allocation23_spill] sm:$0xff] %v6332_v8  ;;  %v10126_v18 = vunpack.c.l.bf16 %v6332_v8 }
 0x10a   :  { %v657_v52 = vadd.f32 %v10114_v26, %v656_v3  ;;  %v10125_v3 = vunpack.c.h.bf16 %v6321_v11 }
 0x10c   :  { %v658_v2 = vadd.f32 %v10117_v6, %v657_v52  ;;  %v6343_v6 = vld [vmem:[%s9948_s0 + $0x230] sm:$0xff]  }
 0x10d   :  { %10603 = vst [vmem:[#allocation24_spill] sm:$0xff] %v6343_v6  ;;  %v10130_v16 = vunpack.c.l.bf16 %v6343_v6 }
 0x10e   :  { %v659_v19 = vadd.f32 %v10118_v23, %v658_v2  ;;  %v10129_v2 = vunpack.c.h.bf16 %v6332_v8 }
 0x110   :  { %v660_v26 = vadd.f32 %v10121_v4, %v659_v19  ;;  %v6354_v4 = vld [vmem:[%s9948_s0 + $0x238] sm:$0xff]  }
 0x111   :  { %10604 = vst [vmem:[#allocation25_spill] sm:$0xff] %v6354_v4  ;;  %v10134_v13 = vunpack.c.l.bf16 %v6354_v4 }
 0x112   :  { %v661_v52 = vadd.f32 %v10122_v21, %v660_v26  ;;  %v10133_v26 = vunpack.c.h.bf16 %v6343_v6 }
 0x114   :  { %v662_v23 = vadd.f32 %v10125_v3, %v661_v52  ;;  %v6365_v3 = vld [vmem:[%s9948_s0 + $0x240] sm:$0xff]  }
 0x115   :  { %10605 = vst [vmem:[#allocation26_spill] sm:$0xff] %v6365_v3  ;;  %v10138_v11 = vunpack.c.l.bf16 %v6365_v3 }
 0x116   :  { %v663_v19 = vadd.f32 %v10126_v18, %v662_v23  ;;  %v10137_v23 = vunpack.c.h.bf16 %v6354_v4 }
 0x118   :  { %v664_v21 = vadd.f32 %v10129_v2, %v663_v19  ;;  %v6376_v2 = vld [vmem:[%s9948_s0 + $0x248] sm:$0xff]  }
 0x119   :  { %10606 = vst [vmem:[#allocation27_spill] sm:$0xff] %v6376_v2  ;;  %v10142_v8 = vunpack.c.l.bf16 %v6376_v2 }
 0x11a   :  { %v665_v52 = vadd.f32 %v10130_v16, %v664_v21  ;;  %v10141_v21 = vunpack.c.h.bf16 %v6365_v3 }
 0x11c   :  { %v666_v18 = vadd.f32 %v10133_v26, %v665_v52  ;;  %v6387_v26 = vld [vmem:[%s9948_s0 + $0x250] sm:$0xff]  }
 0x11d   :  { %10607 = vst [vmem:[#allocation28_spill] sm:$0xff] %v6387_v26  ;;  %v10146_v6 = vunpack.c.l.bf16 %v6387_v26 }
 0x11e   :  { %v667_v19 = vadd.f32 %v10134_v13, %v666_v18  ;;  %v10145_v18 = vunpack.c.h.bf16 %v6376_v2 }
 0x120   :  { %v668_v16 = vadd.f32 %v10137_v23, %v667_v19  ;;  %v6398_v23 = vld [vmem:[%s9948_s0 + $0x258] sm:$0xff]  }
 0x121   :  { %10608 = vst [vmem:[#allocation29_spill] sm:$0xff] %v6398_v23  ;;  %v10150_v4 = vunpack.c.l.bf16 %v6398_v23 }
 0x122   :  { %v669_v52 = vadd.f32 %v10138_v11, %v668_v16  ;;  %v10149_v16 = vunpack.c.h.bf16 %v6387_v26 }
 0x124   :  { %v670_v13 = vadd.f32 %v10141_v21, %v669_v52  ;;  %v6409_v21 = vld [vmem:[%s9948_s0 + $0x260] sm:$0xff]  }
 0x125   :  { %10609 = vst [vmem:[#allocation30_spill] sm:$0xff] %v6409_v21  ;;  %v10154_v3 = vunpack.c.l.bf16 %v6409_v21 }
 0x126   :  { %v671_v19 = vadd.f32 %v10142_v8, %v670_v13  ;;  %v10153_v13 = vunpack.c.h.bf16 %v6398_v23 }
 0x128   :  { %v672_v11 = vadd.f32 %v10145_v18, %v671_v19  ;;  %v6420_v18 = vld [vmem:[%s9948_s0 + $0x268] sm:$0xff]  }
 0x129   :  { %10610 = vst [vmem:[#allocation31_spill] sm:$0xff] %v6420_v18  ;;  %v10158_v2 = vunpack.c.l.bf16 %v6420_v18 }
 0x12a   :  { %v673_v52 = vadd.f32 %v10146_v6, %v672_v11  ;;  %v10157_v11 = vunpack.c.h.bf16 %v6409_v21 }
 0x12c   :  { %v674_v8 = vadd.f32 %v10149_v16, %v673_v52  ;;  %v6431_v16 = vld [vmem:[%s9948_s0 + $0x270] sm:$0xff]  }
 0x12d   :  { %10611 = vst [vmem:[#allocation32_spill] sm:$0xff] %v6431_v16  ;;  %v10162_v26 = vunpack.c.l.bf16 %v6431_v16 }
 0x12e   :  { %v675_v19 = vadd.f32 %v10150_v4, %v674_v8  ;;  %v10161_v8 = vunpack.c.h.bf16 %v6420_v18 }
 0x130   :  { %v676_v6 = vadd.f32 %v10153_v13, %v675_v19  ;;  %v6442_v13 = vld [vmem:[%s9948_s0 + $0x278] sm:$0xff]  }
 0x131   :  { %10612 = vst [vmem:[#allocation33_spill] sm:$0xff] %v6442_v13  ;;  %v10166_v23 = vunpack.c.l.bf16 %v6442_v13 }
 0x132   :  { %v677_v52 = vadd.f32 %v10154_v3, %v676_v6  ;;  %v10165_v6 = vunpack.c.h.bf16 %v6431_v16 }
 0x134   :  { %v678_v4 = vadd.f32 %v10157_v11, %v677_v52  ;;  %v6453_v11 = vld [vmem:[%s9948_s0 + $0x280] sm:$0xff]  }
 0x135   :  { %10613 = vst [vmem:[#allocation34_spill] sm:$0xff] %v6453_v11  ;;  %v10170_v21 = vunpack.c.l.bf16 %v6453_v11 }
 0x136   :  { %v679_v19 = vadd.f32 %v10158_v2, %v678_v4  ;;  %v10169_v4 = vunpack.c.h.bf16 %v6442_v13 }
 0x138   :  { %v680_v3 = vadd.f32 %v10161_v8, %v679_v19  ;;  %v6464_v8 = vld [vmem:[%s9948_s0 + $0x288] sm:$0xff]  }
 0x139   :  { %10614 = vst [vmem:[#allocation35_spill] sm:$0xff] %v6464_v8  ;;  %v10174_v18 = vunpack.c.l.bf16 %v6464_v8 }
 0x13a   :  { %v681_v52 = vadd.f32 %v10162_v26, %v680_v3  ;;  %v10173_v3 = vunpack.c.h.bf16 %v6453_v11 }
 0x13c   :  { %v682_v2 = vadd.f32 %v10165_v6, %v681_v52  ;;  %v6475_v6 = vld [vmem:[%s9948_s0 + $0x290] sm:$0xff]  }
 0x13d   :  { %10615 = vst [vmem:[#allocation36_spill] sm:$0xff] %v6475_v6  ;;  %v10178_v16 = vunpack.c.l.bf16 %v6475_v6 }
 0x13e   :  { %v683_v19 = vadd.f32 %v10166_v23, %v682_v2  ;;  %v10177_v2 = vunpack.c.h.bf16 %v6464_v8 }
 0x140   :  { %v684_v26 = vadd.f32 %v10169_v4, %v683_v19  ;;  %v6486_v4 = vld [vmem:[%s9948_s0 + $0x298] sm:$0xff]  }
 0x141   :  { %10616 = vst [vmem:[#allocation37_spill] sm:$0xff] %v6486_v4  ;;  %v10182_v13 = vunpack.c.l.bf16 %v6486_v4 }
 0x142   :  { %v685_v52 = vadd.f32 %v10170_v21, %v684_v26  ;;  %v10181_v26 = vunpack.c.h.bf16 %v6475_v6 }
 0x144   :  { %v686_v23 = vadd.f32 %v10173_v3, %v685_v52  ;;  %v6497_v3 = vld [vmem:[%s9948_s0 + $0x2a0] sm:$0xff]  }
 0x145   :  { %10617 = vst [vmem:[#allocation38_spill] sm:$0xff] %v6497_v3  ;;  %v10186_v11 = vunpack.c.l.bf16 %v6497_v3 }
 0x146   :  { %v687_v19 = vadd.f32 %v10174_v18, %v686_v23  ;;  %v10185_v23 = vunpack.c.h.bf16 %v6486_v4 }
 0x148   :  { %v688_v21 = vadd.f32 %v10177_v2, %v687_v19  ;;  %v6508_v2 = vld [vmem:[%s9948_s0 + $0x2a8] sm:$0xff]  }
 0x149   :  { %10618 = vst [vmem:[#allocation39_spill] sm:$0xff] %v6508_v2  ;;  %v10190_v8 = vunpack.c.l.bf16 %v6508_v2 }
 0x14a   :  { %v689_v52 = vadd.f32 %v10178_v16, %v688_v21  ;;  %v10189_v21 = vunpack.c.h.bf16 %v6497_v3 }
 0x14c   :  { %v690_v18 = vadd.f32 %v10181_v26, %v689_v52  ;;  %v6519_v26 = vld [vmem:[%s9948_s0 + $0x2b0] sm:$0xff]  }
 0x14d   :  { %10619 = vst [vmem:[#allocation40_spill] sm:$0xff] %v6519_v26  ;;  %v10194_v6 = vunpack.c.l.bf16 %v6519_v26 }
 0x14e   :  { %v691_v19 = vadd.f32 %v10182_v13, %v690_v18  ;;  %v10193_v18 = vunpack.c.h.bf16 %v6508_v2 }
 0x150   :  { %v692_v16 = vadd.f32 %v10185_v23, %v691_v19  ;;  %v6530_v23 = vld [vmem:[%s9948_s0 + $0x2b8] sm:$0xff]  }
 0x151   :  { %10620 = vst [vmem:[#allocation41_spill] sm:$0xff] %v6530_v23  ;;  %v10198_v4 = vunpack.c.l.bf16 %v6530_v23 }
 0x152   :  { %v693_v52 = vadd.f32 %v10186_v11, %v692_v16  ;;  %v10197_v16 = vunpack.c.h.bf16 %v6519_v26 }
 0x154   :  { %v694_v13 = vadd.f32 %v10189_v21, %v693_v52  ;;  %v6541_v21 = vld [vmem:[%s9948_s0 + $0x2c0] sm:$0xff]  }
 0x155   :  { %10621 = vst [vmem:[#allocation42_spill] sm:$0xff] %v6541_v21  ;;  %v10202_v3 = vunpack.c.l.bf16 %v6541_v21 }
 0x156   :  { %v695_v19 = vadd.f32 %v10190_v8, %v694_v13  ;;  %v10201_v13 = vunpack.c.h.bf16 %v6530_v23 }
 0x158   :  { %v696_v11 = vadd.f32 %v10193_v18, %v695_v19  ;;  %v6552_v18 = vld [vmem:[%s9948_s0 + $0x2c8] sm:$0xff]  }
 0x159   :  { %10622 = vst [vmem:[#allocation43_spill] sm:$0xff] %v6552_v18  ;;  %v10206_v2 = vunpack.c.l.bf16 %v6552_v18 }
 0x15a   :  { %v697_v52 = vadd.f32 %v10194_v6, %v696_v11  ;;  %v10205_v11 = vunpack.c.h.bf16 %v6541_v21 }
 0x15c   :  { %v698_v8 = vadd.f32 %v10197_v16, %v697_v52  ;;  %v6563_v16 = vld [vmem:[%s9948_s0 + $0x2d0] sm:$0xff]  }
 0x15d   :  { %10623 = vst [vmem:[#allocation44_spill] sm:$0xff] %v6563_v16  ;;  %v10210_v26 = vunpack.c.l.bf16 %v6563_v16 }
 0x15e   :  { %v699_v19 = vadd.f32 %v10198_v4, %v698_v8  ;;  %v10209_v8 = vunpack.c.h.bf16 %v6552_v18 }
 0x160   :  { %v700_v6 = vadd.f32 %v10201_v13, %v699_v19  ;;  %v6574_v13 = vld [vmem:[%s9948_s0 + $0x2d8] sm:$0xff]  }
 0x161   :  { %10624 = vst [vmem:[#allocation45_spill] sm:$0xff] %v6574_v13  ;;  %v10214_v23 = vunpack.c.l.bf16 %v6574_v13 }
 0x162   :  { %v701_v52 = vadd.f32 %v10202_v3, %v700_v6  ;;  %v10213_v6 = vunpack.c.h.bf16 %v6563_v16 }
 0x164   :  { %v702_v4 = vadd.f32 %v10205_v11, %v701_v52  ;;  %v6585_v11 = vld [vmem:[%s9948_s0 + $0x2e0] sm:$0xff]  }
 0x165   :  { %10625 = vst [vmem:[#allocation46_spill] sm:$0xff] %v6585_v11  ;;  %v10218_v21 = vunpack.c.l.bf16 %v6585_v11 }
 0x166   :  { %v703_v19 = vadd.f32 %v10206_v2, %v702_v4  ;;  %v10217_v4 = vunpack.c.h.bf16 %v6574_v13 }
 0x168   :  { %v704_v3 = vadd.f32 %v10209_v8, %v703_v19  ;;  %v6596_v8 = vld [vmem:[%s9948_s0 + $0x2e8] sm:$0xff]  }
 0x169   :  { %10626 = vst [vmem:[#allocation47_spill] sm:$0xff] %v6596_v8  ;;  %v10222_v18 = vunpack.c.l.bf16 %v6596_v8 }
 0x16a   :  { %v705_v52 = vadd.f32 %v10210_v26, %v704_v3  ;;  %v10221_v3 = vunpack.c.h.bf16 %v6585_v11 }
 0x16c   :  { %v706_v2 = vadd.f32 %v10213_v6, %v705_v52  ;;  %v6607_v6 = vld [vmem:[%s9948_s0 + $0x2f0] sm:$0xff]  }
 0x16d   :  { %10627 = vst [vmem:[#allocation48_spill] sm:$0xff] %v6607_v6  ;;  %v10226_v16 = vunpack.c.l.bf16 %v6607_v6 }
 0x16e   :  { %v707_v19 = vadd.f32 %v10214_v23, %v706_v2  ;;  %v10225_v2 = vunpack.c.h.bf16 %v6596_v8 }
 0x170   :  { %v708_v26 = vadd.f32 %v10217_v4, %v707_v19  ;;  %v6618_v4 = vld [vmem:[%s9948_s0 + $0x2f8] sm:$0xff]  }
 0x171   :  { %10628 = vst [vmem:[#allocation49_spill] sm:$0xff] %v6618_v4  ;;  %v10230_v13 = vunpack.c.l.bf16 %v6618_v4 }
 0x172   :  { %v709_v52 = vadd.f32 %v10218_v21, %v708_v26  ;;  %v10229_v26 = vunpack.c.h.bf16 %v6607_v6 }
 0x174   :  { %v710_v23 = vadd.f32 %v10221_v3, %v709_v52  ;;  %v6629_v3 = vld [vmem:[%s9948_s0 + $0x300] sm:$0xff]  }
 0x175   :  { %10629 = vst [vmem:[#allocation50_spill] sm:$0xff] %v6629_v3  ;;  %v10234_v11 = vunpack.c.l.bf16 %v6629_v3 }
 0x176   :  { %v711_v19 = vadd.f32 %v10222_v18, %v710_v23  ;;  %v10233_v23 = vunpack.c.h.bf16 %v6618_v4 }
 0x178   :  { %v712_v21 = vadd.f32 %v10225_v2, %v711_v19  ;;  %v6640_v2 = vld [vmem:[%s9948_s0 + $0x308] sm:$0xff]  }
 0x179   :  { %10630 = vst [vmem:[#allocation51_spill] sm:$0xff] %v6640_v2  ;;  %v10238_v8 = vunpack.c.l.bf16 %v6640_v2 }
 0x17a   :  { %v713_v52 = vadd.f32 %v10226_v16, %v712_v21  ;;  %v10237_v21 = vunpack.c.h.bf16 %v6629_v3 }
 0x17c   :  { %v714_v18 = vadd.f32 %v10229_v26, %v713_v52  ;;  %v6651_v26 = vld [vmem:[%s9948_s0 + $0x310] sm:$0xff]  }
 0x17d   :  { %10631 = vst [vmem:[#allocation52_spill] sm:$0xff] %v6651_v26  ;;  %v10242_v6 = vunpack.c.l.bf16 %v6651_v26 }
 0x17e   :  { %v715_v19 = vadd.f32 %v10230_v13, %v714_v18  ;;  %v10241_v18 = vunpack.c.h.bf16 %v6640_v2 }
 0x180   :  { %v716_v16 = vadd.f32 %v10233_v23, %v715_v19  ;;  %v6662_v23 = vld [vmem:[%s9948_s0 + $0x318] sm:$0xff]  }
 0x181   :  { %10632 = vst [vmem:[#allocation53_spill] sm:$0xff] %v6662_v23  ;;  %v10246_v4 = vunpack.c.l.bf16 %v6662_v23 }
 0x182   :  { %v717_v52 = vadd.f32 %v10234_v11, %v716_v16  ;;  %v10245_v16 = vunpack.c.h.bf16 %v6651_v26 }
 0x184   :  { %v718_v13 = vadd.f32 %v10237_v21, %v717_v52  ;;  %v6673_v21 = vld [vmem:[%s9948_s0 + $0x320] sm:$0xff]  }
 0x185   :  { %10633 = vst [vmem:[#allocation54_spill] sm:$0xff] %v6673_v21  ;;  %v10250_v3 = vunpack.c.l.bf16 %v6673_v21 }
 0x186   :  { %v719_v19 = vadd.f32 %v10238_v8, %v718_v13  ;;  %v10249_v13 = vunpack.c.h.bf16 %v6662_v23 }
 0x188   :  { %v720_v11 = vadd.f32 %v10241_v18, %v719_v19  ;;  %v6684_v18 = vld [vmem:[%s9948_s0 + $0x328] sm:$0xff]  }
 0x189   :  { %10634 = vst [vmem:[#allocation55_spill] sm:$0xff] %v6684_v18  ;;  %v10252_v2 = vunpack.c.l.bf16 %v6684_v18 }
 0x18a   :  { %v721_v52 = vadd.f32 %v10242_v6, %v720_v11  ;;  %v10251_v11 = vunpack.c.h.bf16 %v6673_v21 }
 0x18c   :  { %v722_v8 = vadd.f32 %v10245_v16, %v721_v52  ;;  %v10253_v16 = vunpack.c.h.bf16 %v6684_v18 }
 0x18e   :  { %v723_v19 = vadd.f32 %v10246_v4, %v722_v8  ;;  %v6698_v4 = vld [vmem:[%s9948_s0 + $0x330] sm:$0xff]  }
 0x18f   :  { %10635 = vst [vmem:[#allocation56_spill] sm:$0xff] %v6698_v4 }
 0x190   :  { %v724_v6 = vadd.f32 %v10249_v13, %v723_v19  ;;  %v10254_v19 = vunpack.c.l.bf16 %v6698_v4 }
 0x192   :  { %v725_v52 = vadd.f32 %v10250_v3, %v724_v6  ;;  %v10257_v6 = vunpack.c.h.bf16 %v6698_v4 }
 0x194   :  { %v726_v8 = vadd.f32 %v10251_v11, %v725_v52  ;;  %v6711_v52 = vld [vmem:[%s9948_s0 + $0x338] sm:$0xff]  }
 0x195   :  { %10636 = vst [vmem:[#allocation57_spill] sm:$0xff] %v6711_v52  ;;  %v10258_v11 = vunpack.c.l.bf16 %v6711_v52 }
 0x196   :  { %v727_v26 = vadd.f32 %v10252_v2, %v726_v8  ;;  %v10261_v2 = vunpack.c.h.bf16 %v6711_v52 }
 0x198   :  { %v728_v13 = vadd.f32 %v10253_v16, %v727_v26  ;;  %v6722_v16 = vld [vmem:[%s9948_s0 + $0x340] sm:$0xff]  }
 0x199   :  { %10637 = vst [vmem:[#allocation58_spill] sm:$0xff] %v6722_v16  ;;  %v10265_v18 = vunpack.c.h.bf16 %v6722_v16 }
 0x19a   :  { %v729_v3 = vadd.f32 %v10254_v19, %v728_v13  ;;  %v10262_v13 = vunpack.c.l.bf16 %v6722_v16 }
 0x19c   :  { %v730_v8 = vadd.f32 %v10257_v6, %v729_v3  ;;  %v6733_v6 = vld [vmem:[%s9948_s0 + $0x348] sm:$0xff]  }
 0x19d   :  { %10638 = vst [vmem:[#allocation59_spill] sm:$0xff] %v6733_v6  ;;  %v10269_v4 = vunpack.c.h.bf16 %v6733_v6 }
 0x19e   :  { %v731_v26 = vadd.f32 %v10258_v11, %v730_v8  ;;  %v10266_v8 = vunpack.c.l.bf16 %v6733_v6 }
 0x1a0   :  { %v732_v19 = vadd.f32 %v10261_v2, %v731_v26  ;;  %v6744_v2 = vld [vmem:[%s9948_s0 + $0x350] sm:$0xff]  }
 0x1a1   :  { %10639 = vst [vmem:[#allocation60_spill] sm:$0xff] %v6744_v2  ;;  %v10273_v52 = vunpack.c.h.bf16 %v6744_v2 }
 0x1a2   :  { %v733_v3 = vadd.f32 %v10262_v13, %v732_v19  ;;  %v10270_v19 = vunpack.c.l.bf16 %v6744_v2 }
 0x1a4   :  { %v734_v11 = vadd.f32 %v10265_v18, %v733_v3  ;;  %v6755_v18 = vld [vmem:[%s9948_s0 + $0x358] sm:$0xff]  }
 0x1a5   :  { %10640 = vst [vmem:[#allocation61_spill] sm:$0xff] %v6755_v18  ;;  %v10277_v16 = vunpack.c.h.bf16 %v6755_v18 }
 0x1a6   :  { %v735_v26 = vadd.f32 %v10266_v8, %v734_v11  ;;  %v10274_v11 = vunpack.c.l.bf16 %v6755_v18 }
 0x1a8   :  { %v736_v13 = vadd.f32 %v10269_v4, %v735_v26  ;;  %v6766_v4 = vld [vmem:[%s9948_s0 + $0x360] sm:$0xff]  }
 0x1a9   :  { %10641 = vst [vmem:[#allocation62_spill] sm:$0xff] %v6766_v4  ;;  %v10281_v6 = vunpack.c.h.bf16 %v6766_v4 }
 0x1aa   :  { %v737_v3 = vadd.f32 %v10270_v19, %v736_v13  ;;  %v10278_v13 = vunpack.c.l.bf16 %v6766_v4 }
 0x1ac   :  { %v738_v8 = vadd.f32 %v10273_v52, %v737_v3  ;;  %v6777_v52 = vld [vmem:[%s9948_s0 + $0x368] sm:$0xff]  }
 0x1ad   :  { %10642 = vst [vmem:[#allocation63_spill] sm:$0xff] %v6777_v52  ;;  %v10285_v2 = vunpack.c.h.bf16 %v6777_v52 }
 0x1ae   :  { %v739_v26 = vadd.f32 %v10274_v11, %v738_v8  ;;  %v10282_v8 = vunpack.c.l.bf16 %v6777_v52 }
 0x1b0   :  { %v740_v19 = vadd.f32 %v10277_v16, %v739_v26  ;;  %v6788_v16 = vld [vmem:[%s9948_s0 + $0x370] sm:$0xff]  }
 0x1b1   :  { %10643 = vst [vmem:[#allocation64_spill] sm:$0xff] %v6788_v16  ;;  %v10289_v18 = vunpack.c.h.bf16 %v6788_v16 }
 0x1b2   :  { %v741_v3 = vadd.f32 %v10278_v13, %v740_v19  ;;  %v10286_v19 = vunpack.c.l.bf16 %v6788_v16 }
 0x1b4   :  { %v742_v11 = vadd.f32 %v10281_v6, %v741_v3  ;;  %v6799_v6 = vld [vmem:[%s9948_s0 + $0x378] sm:$0xff]  }
 0x1b5   :  { %10644 = vst [vmem:[#allocation65_spill] sm:$0xff] %v6799_v6  ;;  %v10293_v4 = vunpack.c.h.bf16 %v6799_v6 }
 0x1b6   :  { %v743_v26 = vadd.f32 %v10282_v8, %v742_v11  ;;  %v10290_v11 = vunpack.c.l.bf16 %v6799_v6 }
 0x1b8   :  { %v744_v13 = vadd.f32 %v10285_v2, %v743_v26  ;;  %v6810_v2 = vld [vmem:[%s9948_s0 + $0x380] sm:$0xff]  }
 0x1b9   :  { %10645 = vst [vmem:[#allocation66_spill] sm:$0xff] %v6810_v2  ;;  %v10297_v52 = vunpack.c.h.bf16 %v6810_v2 }
 0x1ba   :  { %v745_v3 = vadd.f32 %v10286_v19, %v744_v13  ;;  %v10294_v13 = vunpack.c.l.bf16 %v6810_v2 }
 0x1bc   :  { %v746_v8 = vadd.f32 %v10289_v18, %v745_v3  ;;  %v6821_v18 = vld [vmem:[%s9948_s0 + $0x388] sm:$0xff]  }
 0x1bd   :  { %10646 = vst [vmem:[#allocation67_spill] sm:$0xff] %v6821_v18  ;;  %v10301_v16 = vunpack.c.h.bf16 %v6821_v18 }
 0x1be   :  { %v747_v26 = vadd.f32 %v10290_v11, %v746_v8  ;;  %v10298_v8 = vunpack.c.l.bf16 %v6821_v18 }
 0x1c0   :  { %v748_v19 = vadd.f32 %v10293_v4, %v747_v26  ;;  %v6832_v4 = vld [vmem:[%s9948_s0 + $0x390] sm:$0xff]  }
 0x1c1   :  { %10647 = vst [vmem:[#allocation68_spill] sm:$0xff] %v6832_v4  ;;  %v10305_v6 = vunpack.c.h.bf16 %v6832_v4 }
 0x1c2   :  { %v749_v3 = vadd.f32 %v10294_v13, %v748_v19  ;;  %v10302_v19 = vunpack.c.l.bf16 %v6832_v4 }
 0x1c4   :  { %v750_v11 = vadd.f32 %v10297_v52, %v749_v3  ;;  %v6843_v52 = vld [vmem:[%s9948_s0 + $0x398] sm:$0xff]  }
 0x1c5   :  { %10648 = vst [vmem:[#allocation69_spill] sm:$0xff] %v6843_v52  ;;  %v10309_v2 = vunpack.c.h.bf16 %v6843_v52 }
 0x1c6   :  { %v751_v26 = vadd.f32 %v10298_v8, %v750_v11  ;;  %v10306_v11 = vunpack.c.l.bf16 %v6843_v52 }
 0x1c8   :  { %v752_v13 = vadd.f32 %v10301_v16, %v751_v26  ;;  %v6854_v16 = vld [vmem:[%s9948_s0 + $0x3a0] sm:$0xff]  }
 0x1c9   :  { %10649 = vst [vmem:[#allocation70_spill] sm:$0xff] %v6854_v16  ;;  %v10313_v18 = vunpack.c.h.bf16 %v6854_v16 }
 0x1ca   :  { %v753_v3 = vadd.f32 %v10302_v19, %v752_v13  ;;  %v10310_v13 = vunpack.c.l.bf16 %v6854_v16 }
 0x1cc   :  { %v754_v8 = vadd.f32 %v10305_v6, %v753_v3  ;;  %v6865_v6 = vld [vmem:[%s9948_s0 + $0x3a8] sm:$0xff]  }
 0x1cd   :  { %10650 = vst [vmem:[#allocation71_spill] sm:$0xff] %v6865_v6  ;;  %v10317_v4 = vunpack.c.h.bf16 %v6865_v6 }
 0x1ce   :  { %v755_v26 = vadd.f32 %v10306_v11, %v754_v8  ;;  %v10314_v8 = vunpack.c.l.bf16 %v6865_v6 }
 0x1d0   :  { %v756_v19 = vadd.f32 %v10309_v2, %v755_v26  ;;  %v6876_v2 = vld [vmem:[%s9948_s0 + $0x3b0] sm:$0xff]  }
 0x1d1   :  { %10651 = vst [vmem:[#allocation72_spill] sm:$0xff] %v6876_v2  ;;  %v10321_v52 = vunpack.c.h.bf16 %v6876_v2 }
 0x1d2   :  { %v757_v3 = vadd.f32 %v10310_v13, %v756_v19  ;;  %v10318_v19 = vunpack.c.l.bf16 %v6876_v2 }
 0x1d4   :  { %v758_v11 = vadd.f32 %v10313_v18, %v757_v3  ;;  %v6887_v18 = vld [vmem:[%s9948_s0 + $0x3b8] sm:$0xff]  }
 0x1d5   :  { %10652 = vst [vmem:[#allocation73_spill] sm:$0xff] %v6887_v18  ;;  %v10325_v16 = vunpack.c.h.bf16 %v6887_v18 }
 0x1d6   :  { %v759_v26 = vadd.f32 %v10314_v8, %v758_v11  ;;  %v10322_v11 = vunpack.c.l.bf16 %v6887_v18 }
 0x1d8   :  { %v760_v13 = vadd.f32 %v10317_v4, %v759_v26  ;;  %v6898_v4 = vld [vmem:[%s9948_s0 + $0x3c0] sm:$0xff]  }
 0x1d9   :  { %10653 = vst [vmem:[#allocation74_spill] sm:$0xff] %v6898_v4  ;;  %v10329_v6 = vunpack.c.h.bf16 %v6898_v4 }
 0x1da   :  { %v761_v3 = vadd.f32 %v10318_v19, %v760_v13  ;;  %v10326_v13 = vunpack.c.l.bf16 %v6898_v4 }
 0x1dc   :  { %v762_v8 = vadd.f32 %v10321_v52, %v761_v3  ;;  %v6909_v52 = vld [vmem:[%s9948_s0 + $0x3c8] sm:$0xff]  }
 0x1dd   :  { %10654 = vst [vmem:[#allocation75_spill] sm:$0xff] %v6909_v52  ;;  %v10333_v2 = vunpack.c.h.bf16 %v6909_v52 }
 0x1de   :  { %v763_v26 = vadd.f32 %v10322_v11, %v762_v8  ;;  %v10330_v8 = vunpack.c.l.bf16 %v6909_v52 }
 0x1e0   :  { %v764_v19 = vadd.f32 %v10325_v16, %v763_v26  ;;  %v6920_v16 = vld [vmem:[%s9948_s0 + $0x3d0] sm:$0xff]  }
 0x1e1   :  { %10655 = vst [vmem:[#allocation76_spill] sm:$0xff] %v6920_v16  ;;  %v10337_v18 = vunpack.c.h.bf16 %v6920_v16 }
 0x1e2   :  { %v765_v3 = vadd.f32 %v10326_v13, %v764_v19  ;;  %v10334_v19 = vunpack.c.l.bf16 %v6920_v16 }
 0x1e4   :  { %v766_v11 = vadd.f32 %v10329_v6, %v765_v3  ;;  %v6931_v6 = vld [vmem:[%s9948_s0 + $0x3d8] sm:$0xff]  }
 0x1e5   :  { %10656 = vst [vmem:[#allocation77_spill] sm:$0xff] %v6931_v6  ;;  %v10341_v4 = vunpack.c.h.bf16 %v6931_v6 }
 0x1e6   :  { %v767_v26 = vadd.f32 %v10330_v8, %v766_v11  ;;  %v10338_v11 = vunpack.c.l.bf16 %v6931_v6 }
 0x1e8   :  { %v768_v13 = vadd.f32 %v10333_v2, %v767_v26  ;;  %v6942_v2 = vld [vmem:[%s9948_s0 + $0x3e0] sm:$0xff]  }
 0x1e9   :  { %10657 = vst [vmem:[#allocation78_spill] sm:$0xff] %v6942_v2  ;;  %v10345_v52 = vunpack.c.h.bf16 %v6942_v2 }
 0x1ea   :  { %v769_v3 = vadd.f32 %v10334_v19, %v768_v13  ;;  %v10342_v13 = vunpack.c.l.bf16 %v6942_v2 }
 0x1ec   :  { %v770_v8 = vadd.f32 %v10337_v18, %v769_v3  ;;  %v6953_v18 = vld [vmem:[%s9948_s0 + $0x3e8] sm:$0xff]  }
 0x1ed   :  { %10658 = vst [vmem:[#allocation79_spill] sm:$0xff] %v6953_v18  ;;  %v10349_v16 = vunpack.c.h.bf16 %v6953_v18 }
 0x1ee   :  { %v771_v26 = vadd.f32 %v10338_v11, %v770_v8  ;;  %v10346_v8 = vunpack.c.l.bf16 %v6953_v18 }
 0x1f0   :  { %v772_v19 = vadd.f32 %v10341_v4, %v771_v26  ;;  %v6964_v4 = vld [vmem:[%s9948_s0 + $0x3f0] sm:$0xff]  }
 0x1f1   :  { %10659 = vst [vmem:[#allocation80_spill] sm:$0xff] %v6964_v4  ;;  %v10363_v6 = vunpack.c.h.bf16 %v6964_v4 }
 0x1f2   :  { %v773_v3 = vadd.f32 %v10342_v13, %v772_v19  ;;  %v10352_v19 = vunpack.c.l.bf16 %v6964_v4  ;;  %v10660_v4 = vunpack.c.l.bf16 %v5580_v0 }
 0x1f4   :  { %v774_v11 = vadd.f32 %v10345_v52, %v773_v3  ;;  %v6975_v52 = vld [vmem:[%s9948_s0 + $0x3f8] sm:$0xff]  }
 0x1f5   :  { %v10364_v2 = vunpack.c.h.bf16 %v6975_v52 }
 0x1f6   :  { %v775_v26 = vadd.f32 %v10346_v8, %v774_v11  ;;  %v10365_v11 = vunpack.c.l.bf16 %v6975_v52 }
 0x1f8   :  { %v776_v13 = vadd.f32 %v10349_v16, %v775_v26 }
 0x1fa   :  { %v777_v3 = vadd.f32 %v10352_v19, %v776_v13 }
 0x1fc   :  { %v778_v8 = vadd.f32 %v10363_v6, %v777_v3  ;;  %v10661_v6 = vunpack.c.h.bf16 %v5580_v0  ;;  %v10667_v0 = vunpack.c.l.bf16 %v5593_v5 }
 0x1fe   :  { %v779_v26 = vadd.f32 %v10365_v11, %v778_v8 }
 0x200   :  { %v780_v16 = vadd.f32 %v10364_v2, %v779_v26  ;;  %v10663_v26 = vunpack.c.l.bf16 %v5585_v1 }
 0x202   :  { %v781_v18 = vrot.slane %v780_v16, 4 }
 0x204   :  { %v782_v13 = vadd.f32 %v781_v18, %v780_v16 }
 0x206   :  { %v783_v19 = vrot.slane %v782_v13, 2 }
 0x208   :  { %v784_v21 = vadd.f32 %v783_v19, %v782_v13  ;;  %v10668_v19 = vunpack.c.h.bf16 %v5593_v5 }
 0x20a   :  { %v785_v23 = vrot.slane %v784_v21, 1 }
 0x20c   :  { %v786_v28 = vadd.f32 %v785_v23, %v784_v21  ;;  %v10665_v23 = vunpack.c.h.bf16 %v5585_v1 }
 0x20e   :  { %v6985_v31 = vmul.f32 0.00048828125, %v786_v28 }
 0x210   :  { %v6990_v3 = vsub.f32 %v10660_v4, %v6985_v31  ;;  %v6995_v8 = vsub.f32 %v10661_v6, %v6985_v31  ;;  %v7000_v18 = vsub.f32 %v10663_v26, %v6985_v31  ;;  %v7005_v28 = vsub.f32 %v10665_v23, %v6985_v31 }
 0x211   :  { %v7014_v16 = vsub.f32 %v10667_v0, %v6985_v31  ;;  %v7021_v1 = vsub.f32 %v10668_v19, %v6985_v31  ;;  %v10670_v23 = vunpack.c.l.bf16 %v5606_v10 }
 0x212   :  { %10662 = vst [vmem:[#allocation81_spill] sm:$0xff] %v6995_v8  ;;  %10664 = vst [vmem:[#allocation82_spill] sm:$0xff] %v7000_v18  ;;  %v1044_v21 = vmul.f32 %v6990_v3, %v6990_v3  ;;  %v1045_v4 = vmul.f32 %v6995_v8, %v6995_v8  ;;  %v1046_v6 = vmul.f32 %v7000_v18, %v7000_v18  ;;  %v10671_v18 = vunpack.c.h.bf16 %v5606_v10 }
 0x213   :  { %10666 = vst [vmem:[#allocation83_spill] sm:$0xff] %v7005_v28  ;;  %10669 = vst [vmem:[#allocation84_spill] sm:$0xff] %v7021_v1  ;;  %v1047_v13 = vmul.f32 %v7005_v28, %v7005_v28  ;;  %v7028_v2 = vsub.f32 %v10670_v23, %v6985_v31  ;;  %v1048_v0 = vmul.f32 %v7014_v16, %v7014_v16 }
 0x214   :  { %v1300_v26 = vadd.f32 %v1045_v4, %v1044_v21  ;;  %v7035_v8 = vsub.f32 %v10671_v18, %v6985_v31  ;;  %v1049_v5 = vmul.f32 %v7021_v1, %v7021_v1  ;;  %v10673_v21 = vunpack.c.l.bf16 %v5617_v15 }
 0x215   :  { %v1050_v23 = vmul.f32 %v7028_v2, %v7028_v2 }
 0x216   :  { %v1301_v11 = vadd.f32 %v1300_v26, %v1046_v6  ;;  %10672 = vst [vmem:[#allocation85_spill] sm:$0xff] %v7035_v8  ;;  %v7042_v4 = vsub.f32 %v10673_v21, %v6985_v31  ;;  %v10674_v6 = vunpack.c.h.bf16 %v5617_v15  ;;  %v1051_v10 = vmul.f32 %v7035_v8, %v7035_v8 }
 0x218   :  { %v1302_v19 = vadd.f32 %v1301_v11, %v1047_v13  ;;  %v7049_v26 = vsub.f32 %v10674_v6, %v6985_v31  ;;  %v10676_v11 = vunpack.c.l.bf16 %v5628_v20  ;;  %v1052_v21 = vmul.f32 %v7042_v4, %v7042_v4 }
 0x21a   :  { %v1303_v28 = vadd.f32 %v1302_v19, %v1048_v0  ;;  %10675 = vst [vmem:[#allocation86_spill] sm:$0xff] %v7049_v26  ;;  %v7056_v13 = vsub.f32 %v10676_v11, %v6985_v31  ;;  %v10677_v0 = vunpack.c.h.bf16 %v5628_v20  ;;  %v1053_v15 = vmul.f32 %v7049_v26, %v7049_v26 }
 0x21c   :  { %v1304_v18 = vadd.f32 %v1303_v28, %v1049_v5  ;;  %v7063_v19 = vsub.f32 %v10677_v0, %v6985_v31  ;;  %v10679_v28 = vunpack.c.l.bf16 %v5639_v25  ;;  %v1054_v11 = vmul.f32 %v7056_v13, %v7056_v13 }
 0x21e   :  { %v1305_v1 = vadd.f32 %v1304_v18, %v1050_v23  ;;  %10678 = vst [vmem:[#allocation87_spill] sm:$0xff] %v7063_v19  ;;  %v7070_v5 = vsub.f32 %v10679_v28, %v6985_v31  ;;  %v10680_v23 = vunpack.c.h.bf16 %v5639_v25  ;;  %v1055_v20 = vmul.f32 %v7063_v19, %v7063_v19 }
 0x220   :  { %v1306_v6 = vadd.f32 %v1305_v1, %v1051_v10  ;;  %v7077_v18 = vsub.f32 %v10680_v23, %v6985_v31  ;;  %v10682_v1 = vunpack.c.l.bf16 %v5650_v30  ;;  %v1056_v28 = vmul.f32 %v7070_v5, %v7070_v5 }
 0x222   :  { %v1307_v8 = vadd.f32 %v1306_v6, %v1052_v21  ;;  %10681 = vst [vmem:[#allocation88_spill] sm:$0xff] %v7077_v18  ;;  %v7084_v10 = vsub.f32 %v10682_v1, %v6985_v31  ;;  %v10683_v21 = vunpack.c.h.bf16 %v5650_v30  ;;  %v1057_v25 = vmul.f32 %v7077_v18, %v7077_v18 }
 0x224   :  { %v1308_v0 = vadd.f32 %v1307_v8, %v1053_v15  ;;  %v7091_v6 = vsub.f32 %v10683_v21, %v6985_v31  ;;  %v10685_v8 = vunpack.c.l.bf16 %v5661_v35  ;;  %v1058_v1 = vmul.f32 %v7084_v10, %v7084_v10 }
 0x226   :  { %v1309_v26 = vadd.f32 %v1308_v0, %v1054_v11  ;;  %10684 = vst [vmem:[#allocation89_spill] sm:$0xff] %v7091_v6  ;;  %v7098_v15 = vsub.f32 %v10685_v8, %v6985_v31  ;;  %v10686_v11 = vunpack.c.h.bf16 %v5661_v35  ;;  %v1059_v30 = vmul.f32 %v7091_v6, %v7091_v6 }
 0x228   :  { %v1310_v23 = vadd.f32 %v1309_v26, %v1055_v20  ;;  %v7105_v0 = vsub.f32 %v10686_v11, %v6985_v31  ;;  %v10688_v26 = vunpack.c.l.bf16 %v5672_v40  ;;  %v1060_v8 = vmul.f32 %v7098_v15, %v7098_v15 }
 0x22a   :  { %v1311_v19 = vadd.f32 %v1310_v23, %v1056_v28  ;;  %10687 = vst [vmem:[#allocation90_spill] sm:$0xff] %v7105_v0  ;;  %v7112_v20 = vsub.f32 %v10688_v26, %v6985_v31  ;;  %v10689_v28 = vunpack.c.h.bf16 %v5672_v40  ;;  %v1061_v35 = vmul.f32 %v7105_v0, %v7105_v0 }
 0x22c   :  { %v1312_v21 = vadd.f32 %v1311_v19, %v1057_v25  ;;  %v7119_v23 = vsub.f32 %v10689_v28, %v6985_v31  ;;  %v10691_v19 = vunpack.c.l.bf16 %v5683_v45  ;;  %v1062_v26 = vmul.f32 %v7112_v20, %v7112_v20 }
 0x22e   :  { %v1313_v18 = vadd.f32 %v1312_v21, %v1058_v1  ;;  %10690 = vst [vmem:[#allocation91_spill] sm:$0xff] %v7119_v23  ;;  %v7126_v25 = vsub.f32 %v10691_v19, %v6985_v31  ;;  %v10692_v1 = vunpack.c.h.bf16 %v5683_v45  ;;  %v1063_v40 = vmul.f32 %v7119_v23, %v7119_v23 }
 0x230   :  { %v1314_v11 = vadd.f32 %v1313_v18, %v1059_v30  ;;  %v7133_v21 = vsub.f32 %v10692_v1, %v6985_v31  ;;  %v10694_v18 = vunpack.c.l.bf16 %v5694_v50  ;;  %v1064_v19 = vmul.f32 %v7126_v25, %v7126_v25 }
 0x232   :  { %v1315_v6 = vadd.f32 %v1314_v11, %v1060_v8  ;;  %10693 = vst [vmem:[#allocation92_spill] sm:$0xff] %v7133_v21  ;;  %v7140_v30 = vsub.f32 %v10694_v18, %v6985_v31  ;;  %v10695_v8 = vunpack.c.h.bf16 %v5694_v50  ;;  %v1065_v45 = vmul.f32 %v7133_v21, %v7133_v21 }
 0x234   :  { %v1316_v28 = vadd.f32 %v1315_v6, %v1061_v35  ;;  %v7147_v11 = vsub.f32 %v10695_v8, %v6985_v31  ;;  %v10697_v6 = vunpack.c.l.bf16 %v5705_v55  ;;  %v1066_v18 = vmul.f32 %v7140_v30, %v7140_v30 }
 0x236   :  { %v1317_v0 = vadd.f32 %v1316_v28, %v1062_v26  ;;  %10696 = vst [vmem:[#allocation93_spill] sm:$0xff] %v7147_v11  ;;  %v7154_v35 = vsub.f32 %v10697_v6, %v6985_v31  ;;  %v10698_v26 = vunpack.c.h.bf16 %v5705_v55  ;;  %v1067_v50 = vmul.f32 %v7147_v11, %v7147_v11 }
 0x238   :  { %v1318_v1 = vadd.f32 %v1317_v0, %v1063_v40  ;;  %v7161_v28 = vsub.f32 %v10698_v26, %v6985_v31  ;;  %v10700_v0 = vunpack.c.l.bf16 %v5716_v60  ;;  %v1068_v6 = vmul.f32 %v7154_v35, %v7154_v35 }
 0x23a   :  { %v1319_v23 = vadd.f32 %v1318_v1, %v1064_v19  ;;  %10699 = vst [vmem:[#allocation94_spill] sm:$0xff] %v7161_v28  ;;  %v7168_v40 = vsub.f32 %v10700_v0, %v6985_v31  ;;  %v10701_v19 = vunpack.c.h.bf16 %v5716_v60  ;;  %v1069_v55 = vmul.f32 %v7161_v28, %v7161_v28 }
 0x23c   :  { %v1320_v8 = vadd.f32 %v1319_v23, %v1065_v45  ;;  %v7175_v1 = vsub.f32 %v10701_v19, %v6985_v31  ;;  %v10703_v23 = vunpack.c.l.bf16 %v5727_v9  ;;  %v1070_v0 = vmul.f32 %v7168_v40, %v7168_v40 }
 0x23e   :  { %v1321_v21 = vadd.f32 %v1320_v8, %v1066_v18  ;;  %10702 = vst [vmem:[#allocation95_spill] sm:$0xff] %v7175_v1  ;;  %v7182_v45 = vsub.f32 %v10703_v23, %v6985_v31  ;;  %v10704_v18 = vunpack.c.h.bf16 %v5727_v9  ;;  %v1071_v60 = vmul.f32 %v7175_v1, %v7175_v1 }
 0x240   :  { %v1322_v26 = vadd.f32 %v1321_v21, %v1067_v50  ;;  %v7189_v8 = vsub.f32 %v10704_v18, %v6985_v31  ;;  %v10706_v21 = vunpack.c.l.bf16 %v5738_v22  ;;  %v1072_v23 = vmul.f32 %v7182_v45, %v7182_v45 }
 0x242   :  { %v1323_v11 = vadd.f32 %v1322_v26, %v1068_v6  ;;  %10705 = vst [vmem:[#allocation96_spill] sm:$0xff] %v7189_v8  ;;  %v7196_v50 = vsub.f32 %v10706_v21, %v6985_v31  ;;  %v10707_v6 = vunpack.c.h.bf16 %v5738_v22  ;;  %v1073_v9 = vmul.f32 %v7189_v8, %v7189_v8 }
 0x244   :  { %v1324_v19 = vadd.f32 %v1323_v11, %v1069_v55  ;;  %v7203_v26 = vsub.f32 %v10707_v6, %v6985_v31  ;;  %v10709_v11 = vunpack.c.l.bf16 %v5749_v34  ;;  %v1074_v21 = vmul.f32 %v7196_v50, %v7196_v50 }
 0x246   :  { %v1325_v28 = vadd.f32 %v1324_v19, %v1070_v0  ;;  %10708 = vst [vmem:[#allocation97_spill] sm:$0xff] %v7203_v26  ;;  %v7210_v55 = vsub.f32 %v10709_v11, %v6985_v31  ;;  %v10710_v0 = vunpack.c.h.bf16 %v5749_v34  ;;  %v1075_v22 = vmul.f32 %v7203_v26, %v7203_v26 }
 0x248   :  { %v1326_v18 = vadd.f32 %v1325_v28, %v1071_v60  ;;  %v7217_v19 = vsub.f32 %v10710_v0, %v6985_v31  ;;  %v10712_v28 = vunpack.c.l.bf16 %v5760_v47  ;;  %v1076_v11 = vmul.f32 %v7210_v55, %v7210_v55 }
 0x24a   :  { %v1327_v1 = vadd.f32 %v1326_v18, %v1072_v23  ;;  %10711 = vst [vmem:[#allocation98_spill] sm:$0xff] %v7217_v19  ;;  %v7224_v60 = vsub.f32 %v10712_v28, %v6985_v31  ;;  %v10713_v23 = vunpack.c.h.bf16 %v5760_v47  ;;  %v1077_v34 = vmul.f32 %v7217_v19, %v7217_v19 }
 0x24c   :  { %v1328_v6 = vadd.f32 %v1327_v1, %v1073_v9  ;;  %v7231_v18 = vsub.f32 %v10713_v23, %v6985_v31  ;;  %v10715_v1 = vunpack.c.l.bf16 %v5771_v59  ;;  %v1078_v28 = vmul.f32 %v7224_v60, %v7224_v60 }
 0x24e   :  { %v1329_v8 = vadd.f32 %v1328_v6, %v1074_v21  ;;  %10714 = vst [vmem:[#allocation99_spill] sm:$0xff] %v7231_v18  ;;  %v7238_v9 = vsub.f32 %v10715_v1, %v6985_v31  ;;  %v10716_v21 = vunpack.c.h.bf16 %v5771_v59  ;;  %v1079_v47 = vmul.f32 %v7231_v18, %v7231_v18 }
 0x250   :  { %v1330_v0 = vadd.f32 %v1329_v8, %v1075_v22  ;;  %v7245_v6 = vsub.f32 %v10716_v21, %v6985_v31  ;;  %v10718_v8 = vunpack.c.l.bf16 %v5782_v27  ;;  %v1080_v1 = vmul.f32 %v7238_v9, %v7238_v9 }
 0x252   :  { %v1331_v26 = vadd.f32 %v1330_v0, %v1076_v11  ;;  %10717 = vst [vmem:[#allocation100_spill] sm:$0xff] %v7245_v6  ;;  %v7252_v22 = vsub.f32 %v10718_v8, %v6985_v31  ;;  %v10719_v11 = vunpack.c.h.bf16 %v5782_v27  ;;  %v1081_v59 = vmul.f32 %v7245_v6, %v7245_v6 }
 0x254   :  { %v1332_v23 = vadd.f32 %v1331_v26, %v1077_v34  ;;  %v7259_v0 = vsub.f32 %v10719_v11, %v6985_v31  ;;  %v10721_v26 = vunpack.c.l.bf16 %v5793_v57  ;;  %v1082_v8 = vmul.f32 %v7252_v22, %v7252_v22 }
 0x256   :  { %v1333_v19 = vadd.f32 %v1332_v23, %v1078_v28  ;;  %10720 = vst [vmem:[#allocation101_spill] sm:$0xff] %v7259_v0  ;;  %v7266_v34 = vsub.f32 %v10721_v26, %v6985_v31  ;;  %v10722_v28 = vunpack.c.h.bf16 %v5793_v57  ;;  %v1083_v27 = vmul.f32 %v7259_v0, %v7259_v0 }
 0x258   :  { %v1334_v21 = vadd.f32 %v1333_v19, %v1079_v47  ;;  %v7273_v23 = vsub.f32 %v10722_v28, %v6985_v31  ;;  %v10724_v19 = vunpack.c.l.bf16 %v5804_v62  ;;  %v1084_v26 = vmul.f32 %v7266_v34, %v7266_v34 }
 0x25a   :  { %v1335_v18 = vadd.f32 %v1334_v21, %v1080_v1  ;;  %10723 = vst [vmem:[#allocation102_spill] sm:$0xff] %v7273_v23  ;;  %v7280_v47 = vsub.f32 %v10724_v19, %v6985_v31  ;;  %v10725_v1 = vunpack.c.h.bf16 %v5804_v62  ;;  %v1085_v57 = vmul.f32 %v7273_v23, %v7273_v23 }
 0x25c   :  { %v1336_v11 = vadd.f32 %v1335_v18, %v1081_v59  ;;  %v7287_v21 = vsub.f32 %v10725_v1, %v6985_v31  ;;  %v10727_v18 = vunpack.c.l.bf16 %v5815_v32  ;;  %v1086_v19 = vmul.f32 %v7280_v47, %v7280_v47 }
 0x25e   :  { %v1337_v6 = vadd.f32 %v1336_v11, %v1082_v8  ;;  %10726 = vst [vmem:[#allocation103_spill] sm:$0xff] %v7287_v21  ;;  %v7294_v59 = vsub.f32 %v10727_v18, %v6985_v31  ;;  %v10728_v8 = vunpack.c.h.bf16 %v5815_v32  ;;  %v1087_v62 = vmul.f32 %v7287_v21, %v7287_v21 }
 0x260   :  { %v1338_v28 = vadd.f32 %v1337_v6, %v1083_v27  ;;  %v7301_v11 = vsub.f32 %v10728_v8, %v6985_v31  ;;  %v10730_v6 = vunpack.c.l.bf16 %v5826_v7  ;;  %v1088_v18 = vmul.f32 %v7294_v59, %v7294_v59 }
 0x262   :  { %v1339_v0 = vadd.f32 %v1338_v28, %v1084_v26  ;;  %10729 = vst [vmem:[#allocation104_spill] sm:$0xff] %v7301_v11  ;;  %v7308_v27 = vsub.f32 %v10730_v6, %v6985_v31  ;;  %v10731_v26 = vunpack.c.h.bf16 %v5826_v7  ;;  %v1089_v32 = vmul.f32 %v7301_v11, %v7301_v11 }
 0x264   :  { %v1340_v1 = vadd.f32 %v1339_v0, %v1085_v57  ;;  %v7315_v28 = vsub.f32 %v10731_v26, %v6985_v31  ;;  %v10733_v0 = vunpack.c.l.bf16 %v5837_v39  ;;  %v1090_v6 = vmul.f32 %v7308_v27, %v7308_v27 }
 0x266   :  { %v1341_v23 = vadd.f32 %v1340_v1, %v1086_v19  ;;  %10732 = vst [vmem:[#allocation105_spill] sm:$0xff] %v7315_v28  ;;  %v7322_v57 = vsub.f32 %v10733_v0, %v6985_v31  ;;  %v10734_v19 = vunpack.c.h.bf16 %v5837_v39  ;;  %v1091_v7 = vmul.f32 %v7315_v28, %v7315_v28 }
 0x268   :  { %v1342_v8 = vadd.f32 %v1341_v23, %v1087_v62  ;;  %v7329_v1 = vsub.f32 %v10734_v19, %v6985_v31  ;;  %v10736_v23 = vunpack.c.l.bf16 %v5848_v54  ;;  %v1092_v0 = vmul.f32 %v7322_v57, %v7322_v57 }
 0x26a   :  { %v1343_v21 = vadd.f32 %v1342_v8, %v1088_v18  ;;  %10735 = vst [vmem:[#allocation106_spill] sm:$0xff] %v7329_v1  ;;  %v7336_v62 = vsub.f32 %v10736_v23, %v6985_v31  ;;  %v10737_v18 = vunpack.c.h.bf16 %v5848_v54  ;;  %v1093_v39 = vmul.f32 %v7329_v1, %v7329_v1 }
 0x26c   :  { %v1344_v26 = vadd.f32 %v1343_v21, %v1089_v32  ;;  %v7343_v8 = vsub.f32 %v10737_v18, %v6985_v31  ;;  %v10739_v21 = vunpack.c.l.bf16 %v5859_v14  ;;  %v1094_v23 = vmul.f32 %v7336_v62, %v7336_v62 }
 0x26e   :  { %v1345_v11 = vadd.f32 %v1344_v26, %v1090_v6  ;;  %10738 = vst [vmem:[#allocation107_spill] sm:$0xff] %v7343_v8  ;;  %v7350_v32 = vsub.f32 %v10739_v21, %v6985_v31  ;;  %v10740_v6 = vunpack.c.h.bf16 %v5859_v14  ;;  %v1095_v54 = vmul.f32 %v7343_v8, %v7343_v8 }
 0x270   :  { %v1346_v19 = vadd.f32 %v1345_v11, %v1091_v7  ;;  %v7357_v26 = vsub.f32 %v10740_v6, %v6985_v31  ;;  %v10742_v11 = vunpack.c.l.bf16 %v5870_v44  ;;  %v1096_v21 = vmul.f32 %v7350_v32, %v7350_v32 }
 0x272   :  { %v1347_v28 = vadd.f32 %v1346_v19, %v1092_v0  ;;  %10741 = vst [vmem:[#allocation108_spill] sm:$0xff] %v7357_v26  ;;  %v7364_v7 = vsub.f32 %v10742_v11, %v6985_v31  ;;  %v10743_v0 = vunpack.c.h.bf16 %v5870_v44  ;;  %v1097_v14 = vmul.f32 %v7357_v26, %v7357_v26 }
 0x274   :  { %v1348_v18 = vadd.f32 %v1347_v28, %v1093_v39  ;;  %v7371_v19 = vsub.f32 %v10743_v0, %v6985_v31  ;;  %v10745_v28 = vunpack.c.l.bf16 %v5881_v49  ;;  %v1098_v11 = vmul.f32 %v7364_v7, %v7364_v7 }
 0x276   :  { %v1349_v1 = vadd.f32 %v1348_v18, %v1094_v23  ;;  %10744 = vst [vmem:[#allocation109_spill] sm:$0xff] %v7371_v19  ;;  %v7378_v39 = vsub.f32 %v10745_v28, %v6985_v31  ;;  %v10746_v23 = vunpack.c.h.bf16 %v5881_v49  ;;  %v1099_v44 = vmul.f32 %v7371_v19, %v7371_v19 }
 0x278   :  { %v1350_v6 = vadd.f32 %v1349_v1, %v1095_v54  ;;  %v7385_v18 = vsub.f32 %v10746_v23, %v6985_v31  ;;  %v10748_v1 = vunpack.c.l.bf16 %v5892_v42  ;;  %v1100_v28 = vmul.f32 %v7378_v39, %v7378_v39 }
 0x27a   :  { %v1351_v8 = vadd.f32 %v1350_v6, %v1096_v21  ;;  %10747 = vst [vmem:[#allocation110_spill] sm:$0xff] %v7385_v18  ;;  %v7392_v54 = vsub.f32 %v10748_v1, %v6985_v31  ;;  %v10749_v21 = vunpack.c.h.bf16 %v5892_v42  ;;  %v1101_v49 = vmul.f32 %v7385_v18, %v7385_v18 }
 0x27c   :  { %v1352_v0 = vadd.f32 %v1351_v8, %v1097_v14  ;;  %v7399_v6 = vsub.f32 %v10749_v21, %v6985_v31  ;;  %v10751_v8 = vunpack.c.l.bf16 %v5903_v37  ;;  %v1102_v1 = vmul.f32 %v7392_v54, %v7392_v54 }
 0x27e   :  { %v1353_v26 = vadd.f32 %v1352_v0, %v1098_v11  ;;  %10750 = vst [vmem:[#allocation111_spill] sm:$0xff] %v7399_v6  ;;  %v7406_v14 = vsub.f32 %v10751_v8, %v6985_v31  ;;  %v10752_v11 = vunpack.c.h.bf16 %v5903_v37  ;;  %v1103_v42 = vmul.f32 %v7399_v6, %v7399_v6 }
 0x280   :  { %v1354_v23 = vadd.f32 %v1353_v26, %v1099_v44  ;;  %v7413_v0 = vsub.f32 %v10752_v11, %v6985_v31  ;;  %v10754_v26 = vunpack.c.l.bf16 %v5914_v29  ;;  %v1104_v8 = vmul.f32 %v7406_v14, %v7406_v14 }
 0x282   :  { %v1355_v19 = vadd.f32 %v1354_v23, %v1100_v28  ;;  %10753 = vst [vmem:[#allocation112_spill] sm:$0xff] %v7413_v0  ;;  %v7420_v44 = vsub.f32 %v10754_v26, %v6985_v31  ;;  %v10755_v28 = vunpack.c.h.bf16 %v5914_v29  ;;  %v1105_v37 = vmul.f32 %v7413_v0, %v7413_v0 }
 0x284   :  { %v1356_v21 = vadd.f32 %v1355_v19, %v1101_v49  ;;  %v7427_v23 = vsub.f32 %v10755_v28, %v6985_v31  ;;  %v10757_v19 = vunpack.c.l.bf16 %v5925_v24  ;;  %v1106_v26 = vmul.f32 %v7420_v44, %v7420_v44 }
 0x286   :  { %v1357_v18 = vadd.f32 %v1356_v21, %v1102_v1  ;;  %10756 = vst [vmem:[#allocation113_spill] sm:$0xff] %v7427_v23  ;;  %v7434_v49 = vsub.f32 %v10757_v19, %v6985_v31  ;;  %v10758_v1 = vunpack.c.h.bf16 %v5925_v24  ;;  %v1107_v29 = vmul.f32 %v7427_v23, %v7427_v23 }
 0x288   :  { %v1358_v11 = vadd.f32 %v1357_v18, %v1103_v42  ;;  %v7441_v21 = vsub.f32 %v10758_v1, %v6985_v31  ;;  %v10760_v18 = vunpack.c.l.bf16 %v5936_v17  ;;  %v1108_v19 = vmul.f32 %v7434_v49, %v7434_v49 }
 0x28a   :  { %v1359_v6 = vadd.f32 %v1358_v11, %v1104_v8  ;;  %10759 = vst [vmem:[#allocation114_spill] sm:$0xff] %v7441_v21  ;;  %v7448_v42 = vsub.f32 %v10760_v18, %v6985_v31  ;;  %v10761_v8 = vunpack.c.h.bf16 %v5936_v17  ;;  %v1109_v24 = vmul.f32 %v7441_v21, %v7441_v21 }
 0x28c   :  { %v1360_v28 = vadd.f32 %v1359_v6, %v1105_v37  ;;  %v7455_v11 = vsub.f32 %v10761_v8, %v6985_v31  ;;  %v10763_v6 = vunpack.c.l.bf16 %v5947_v12  ;;  %v1110_v18 = vmul.f32 %v7448_v42, %v7448_v42 }
 0x28e   :  { %v1361_v0 = vadd.f32 %v1360_v28, %v1106_v26  ;;  %10762 = vst [vmem:[#allocation115_spill] sm:$0xff] %v7455_v11  ;;  %v7462_v37 = vsub.f32 %v10763_v6, %v6985_v31  ;;  %v10764_v26 = vunpack.c.h.bf16 %v5947_v12  ;;  %v1111_v17 = vmul.f32 %v7455_v11, %v7455_v11 }
 0x290   :  { %v1362_v1 = vadd.f32 %v1361_v0, %v1107_v29  ;;  %v7469_v28 = vsub.f32 %v10764_v26, %v6985_v31  ;;  %v10766_v0 = vunpack.c.l.bf16 %v5958_v63  ;;  %v1112_v6 = vmul.f32 %v7462_v37, %v7462_v37 }
 0x292   :  { %v1363_v23 = vadd.f32 %v1362_v1, %v1108_v19  ;;  %10765 = vst [vmem:[#allocation116_spill] sm:$0xff] %v7469_v28  ;;  %v7476_v29 = vsub.f32 %v10766_v0, %v6985_v31  ;;  %v10767_v19 = vunpack.c.h.bf16 %v5958_v63  ;;  %v1113_v12 = vmul.f32 %v7469_v28, %v7469_v28 }
 0x294   :  { %v1364_v8 = vadd.f32 %v1363_v23, %v1109_v24  ;;  %v7483_v1 = vsub.f32 %v10767_v19, %v6985_v31  ;;  %v10769_v23 = vunpack.c.l.bf16 %v5969_v61  ;;  %v1114_v0 = vmul.f32 %v7476_v29, %v7476_v29 }
 0x296   :  { %v1365_v21 = vadd.f32 %v1364_v8, %v1110_v18  ;;  %10768 = vst [vmem:[#allocation117_spill] sm:$0xff] %v7483_v1  ;;  %v7490_v24 = vsub.f32 %v10769_v23, %v6985_v31  ;;  %v10770_v18 = vunpack.c.h.bf16 %v5969_v61  ;;  %v1115_v63 = vmul.f32 %v7483_v1, %v7483_v1 }
 0x298   :  { %v1366_v26 = vadd.f32 %v1365_v21, %v1111_v17  ;;  %v7497_v8 = vsub.f32 %v10770_v18, %v6985_v31  ;;  %v10772_v21 = vunpack.c.l.bf16 %v5980_v58  ;;  %v1116_v23 = vmul.f32 %v7490_v24, %v7490_v24 }
 0x29a   :  { %v1367_v11 = vadd.f32 %v1366_v26, %v1112_v6  ;;  %10771 = vst [vmem:[#allocation118_spill] sm:$0xff] %v7497_v8  ;;  %v7504_v17 = vsub.f32 %v10772_v21, %v6985_v31  ;;  %v10773_v6 = vunpack.c.h.bf16 %v5980_v58  ;;  %v1117_v61 = vmul.f32 %v7497_v8, %v7497_v8 }
 0x29c   :  { %v1368_v19 = vadd.f32 %v1367_v11, %v1113_v12  ;;  %v7511_v26 = vsub.f32 %v10773_v6, %v6985_v31  ;;  %v10775_v11 = vunpack.c.l.bf16 %v5991_v56  ;;  %v1118_v21 = vmul.f32 %v7504_v17, %v7504_v17 }
 0x29e   :  { %v1369_v28 = vadd.f32 %v1368_v19, %v1114_v0  ;;  %10774 = vst [vmem:[#allocation119_spill] sm:$0xff] %v7511_v26  ;;  %v7518_v12 = vsub.f32 %v10775_v11, %v6985_v31  ;;  %v10776_v0 = vunpack.c.h.bf16 %v5991_v56  ;;  %v1119_v58 = vmul.f32 %v7511_v26, %v7511_v26 }
 0x2a0   :  { %v1370_v18 = vadd.f32 %v1369_v28, %v1115_v63  ;;  %v7525_v19 = vsub.f32 %v10776_v0, %v6985_v31  ;;  %v10778_v28 = vunpack.c.l.bf16 %v6002_v53  ;;  %v1120_v11 = vmul.f32 %v7518_v12, %v7518_v12 }
 0x2a2   :  { %v1371_v1 = vadd.f32 %v1370_v18, %v1116_v23  ;;  %10777 = vst [vmem:[#allocation120_spill] sm:$0xff] %v7525_v19  ;;  %v7532_v63 = vsub.f32 %v10778_v28, %v6985_v31  ;;  %v10779_v23 = vunpack.c.h.bf16 %v6002_v53  ;;  %v1121_v56 = vmul.f32 %v7525_v19, %v7525_v19 }
 0x2a4   :  { %v1372_v6 = vadd.f32 %v1371_v1, %v1117_v61  ;;  %v7539_v18 = vsub.f32 %v10779_v23, %v6985_v31  ;;  %v10781_v1 = vunpack.c.l.bf16 %v6013_v51  ;;  %v1122_v28 = vmul.f32 %v7532_v63, %v7532_v63 }
 0x2a6   :  { %v1373_v8 = vadd.f32 %v1372_v6, %v1118_v21  ;;  %10780 = vst [vmem:[#allocation121_spill] sm:$0xff] %v7539_v18  ;;  %v7546_v61 = vsub.f32 %v10781_v1, %v6985_v31  ;;  %v10782_v21 = vunpack.c.h.bf16 %v6013_v51  ;;  %v1123_v53 = vmul.f32 %v7539_v18, %v7539_v18 }
 0x2a8   :  { %v1374_v0 = vadd.f32 %v1373_v8, %v1119_v58  ;;  %v7553_v6 = vsub.f32 %v10782_v21, %v6985_v31  ;;  %v10784_v8 = vunpack.c.l.bf16 %v6024_v48  ;;  %v1124_v1 = vmul.f32 %v7546_v61, %v7546_v61 }
 0x2aa   :  { %v1375_v26 = vadd.f32 %v1374_v0, %v1120_v11  ;;  %10783 = vst [vmem:[#allocation122_spill] sm:$0xff] %v7553_v6  ;;  %v7560_v58 = vsub.f32 %v10784_v8, %v6985_v31  ;;  %v10785_v11 = vunpack.c.h.bf16 %v6024_v48  ;;  %v1125_v51 = vmul.f32 %v7553_v6, %v7553_v6 }
 0x2ac   :  { %v1376_v23 = vadd.f32 %v1375_v26, %v1121_v56  ;;  %v7567_v0 = vsub.f32 %v10785_v11, %v6985_v31  ;;  %v10787_v26 = vunpack.c.l.bf16 %v6035_v46  ;;  %v1126_v8 = vmul.f32 %v7560_v58, %v7560_v58 }
 0x2ae   :  { %v1377_v19 = vadd.f32 %v1376_v23, %v1122_v28  ;;  %10786 = vst [vmem:[#allocation123_spill] sm:$0xff] %v7567_v0  ;;  %v7574_v56 = vsub.f32 %v10787_v26, %v6985_v31  ;;  %v10789_v28 = vunpack.c.h.bf16 %v6035_v46  ;;  %v1127_v48 = vmul.f32 %v7567_v0, %v7567_v0 }
 0x2b0   :  { %v1378_v21 = vadd.f32 %v1377_v19, %v1123_v53  ;;  %10788 = vst [vmem:[#allocation124_spill] sm:$0xff] %v7574_v56  ;;  %v7581_v23 = vsub.f32 %v10789_v28, %v6985_v31  ;;  %v10791_v19 = vunpack.c.l.bf16 %v6046_v43  ;;  %v1128_v26 = vmul.f32 %v7574_v56, %v7574_v56 }
 0x2b2   :  { %v1379_v18 = vadd.f32 %v1378_v21, %v1124_v1  ;;  %10790 = vst [vmem:[#allocation125_spill] sm:$0xff] %v7581_v23  ;;  %v7588_v53 = vsub.f32 %v10791_v19, %v6985_v31  ;;  %v10793_v1 = vunpack.c.h.bf16 %v6046_v43  ;;  %v1129_v46 = vmul.f32 %v7581_v23, %v7581_v23 }
 0x2b4   :  { %v1380_v11 = vadd.f32 %v1379_v18, %v1125_v51  ;;  %10792 = vst [vmem:[#allocation126_spill] sm:$0xff] %v7588_v53  ;;  %v7595_v21 = vsub.f32 %v10793_v1, %v6985_v31  ;;  %v10795_v18 = vunpack.c.l.bf16 %v6057_v41  ;;  %v1130_v19 = vmul.f32 %v7588_v53, %v7588_v53 }
 0x2b6   :  { %v1381_v6 = vadd.f32 %v1380_v11, %v1126_v8  ;;  %10794 = vst [vmem:[#allocation127_spill] sm:$0xff] %v7595_v21  ;;  %v7602_v51 = vsub.f32 %v10795_v18, %v6985_v31  ;;  %v10797_v8 = vunpack.c.h.bf16 %v6057_v41  ;;  %v1131_v43 = vmul.f32 %v7595_v21, %v7595_v21 }
 0x2b8   :  { %v1382_v28 = vadd.f32 %v1381_v6, %v1127_v48  ;;  %10796 = vst [vmem:[#allocation128_spill] sm:$0xff] %v7602_v51  ;;  %v7609_v11 = vsub.f32 %v10797_v8, %v6985_v31  ;;  %v10799_v6 = vunpack.c.l.bf16 %v6068_v38  ;;  %v1132_v18 = vmul.f32 %v7602_v51, %v7602_v51 }
 0x2ba   :  { %v1383_v0 = vadd.f32 %v1382_v28, %v1128_v26  ;;  %10798 = vst [vmem:[#allocation129_spill] sm:$0xff] %v7609_v11  ;;  %v7616_v48 = vsub.f32 %v10799_v6, %v6985_v31  ;;  %v10801_v26 = vunpack.c.h.bf16 %v6068_v38  ;;  %v1133_v41 = vmul.f32 %v7609_v11, %v7609_v11 }
 0x2bc   :  { %v1384_v1 = vadd.f32 %v1383_v0, %v1129_v46  ;;  %10800 = vst [vmem:[#allocation130_spill] sm:$0xff] %v7616_v48  ;;  %v7623_v28 = vsub.f32 %v10801_v26, %v6985_v31  ;;  %v10803_v0 = vunpack.c.l.bf16 %v6079_v36  ;;  %v1134_v6 = vmul.f32 %v7616_v48, %v7616_v48 }
 0x2be   :  { %v1385_v23 = vadd.f32 %v1384_v1, %v1130_v19  ;;  %10802 = vst [vmem:[#allocation131_spill] sm:$0xff] %v7623_v28  ;;  %v7630_v46 = vsub.f32 %v10803_v0, %v6985_v31  ;;  %v10805_v19 = vunpack.c.h.bf16 %v6079_v36  ;;  %v1135_v38 = vmul.f32 %v7623_v28, %v7623_v28 }
 0x2c0   :  { %v1386_v8 = vadd.f32 %v1385_v23, %v1131_v43  ;;  %10804 = vst [vmem:[#allocation132_spill] sm:$0xff] %v7630_v46  ;;  %v7637_v1 = vsub.f32 %v10805_v19, %v6985_v31  ;;  %v10807_v23 = vunpack.c.l.bf16 %v6090_v33  ;;  %v1136_v0 = vmul.f32 %v7630_v46, %v7630_v46 }
 0x2c2   :  { %v1387_v21 = vadd.f32 %v1386_v8, %v1132_v18  ;;  %10806 = vst [vmem:[#allocation133_spill] sm:$0xff] %v7637_v1  ;;  %v7644_v43 = vsub.f32 %v10807_v23, %v6985_v31  ;;  %v10809_v18 = vunpack.c.h.bf16 %v6090_v33  ;;  %v1137_v36 = vmul.f32 %v7637_v1, %v7637_v1 }
 0x2c4   :  { %v1388_v26 = vadd.f32 %v1387_v21, %v1133_v41  ;;  %10808 = vst [vmem:[#allocation134_spill] sm:$0xff] %v7644_v43  ;;  %v7651_v8 = vsub.f32 %v10809_v18, %v6985_v31  ;;  %v10811_v21 = vld [vmem:[#allocation2_spill] sm:$0xff]  ;;  %v1138_v23 = vmul.f32 %v7644_v43, %v7644_v43 }
 0x2c5   :  { %v10812_v41 = vunpack.c.l.bf16 %v10811_v21 }
 0x2c6   :  { %v1389_v11 = vadd.f32 %v1388_v26, %v1134_v6  ;;  %10810 = vst [vmem:[#allocation135_spill] sm:$0xff] %v7651_v8  ;;  %v10814_v6 = vunpack.c.h.bf16 %v10811_v21  ;;  %v1139_v33 = vmul.f32 %v7651_v8, %v7651_v8 }
 0x2c7   :  { %v7658_v28 = vsub.f32 %v10812_v41, %v6985_v31 }
 0x2c8   :  { %v1390_v19 = vadd.f32 %v1389_v11, %v1135_v38  ;;  %v7665_v26 = vsub.f32 %v10814_v6, %v6985_v31  ;;  %v10816_v11 = vld [vmem:[#allocation3_spill] sm:$0xff] }
 0x2c9   :  { %10813 = vst [vmem:[#allocation2_spill] sm:$0xff] %v7658_v28  ;;  %v10817_v38 = vunpack.c.l.bf16 %v10816_v11  ;;  %v1140_v41 = vmul.f32 %v7658_v28, %v7658_v28 }
 0x2ca   :  { %v1391_v48 = vadd.f32 %v1390_v19, %v1136_v0  ;;  %10815 = vst [vmem:[#allocation136_spill] sm:$0xff] %v7665_v26  ;;  %v10819_v0 = vunpack.c.h.bf16 %v10816_v11  ;;  %v1141_v21 = vmul.f32 %v7665_v26, %v7665_v26 }
 0x2cb   :  { %v7672_v1 = vsub.f32 %v10817_v38, %v6985_v31 }
 0x2cc   :  { %v1392_v18 = vadd.f32 %v1391_v48, %v1137_v36  ;;  %v7679_v19 = vsub.f32 %v10819_v0, %v6985_v31  ;;  %v10821_v48 = vld [vmem:[#allocation4_spill] sm:$0xff] }
 0x2cd   :  { %10818 = vst [vmem:[#allocation3_spill] sm:$0xff] %v7672_v1  ;;  %v10822_v36 = vunpack.c.l.bf16 %v10821_v48  ;;  %v1142_v38 = vmul.f32 %v7672_v1, %v7672_v1 }
 0x2ce   :  { %v1393_v46 = vadd.f32 %v1392_v18, %v1138_v23  ;;  %10820 = vst [vmem:[#allocation137_spill] sm:$0xff] %v7679_v19  ;;  %v10824_v23 = vunpack.c.h.bf16 %v10821_v48  ;;  %v1143_v11 = vmul.f32 %v7679_v19, %v7679_v19 }
 0x2cf   :  { %v7686_v8 = vsub.f32 %v10822_v36, %v6985_v31 }
 0x2d0   :  { %v1394_v6 = vadd.f32 %v1393_v46, %v1139_v33  ;;  %v7693_v18 = vsub.f32 %v10824_v23, %v6985_v31  ;;  %v10826_v46 = vld [vmem:[#allocation5_spill] sm:$0xff] }
 0x2d1   :  { %10823 = vst [vmem:[#allocation4_spill] sm:$0xff] %v7686_v8  ;;  %v10827_v33 = vunpack.c.l.bf16 %v10826_v46  ;;  %v1144_v36 = vmul.f32 %v7686_v8, %v7686_v8 }
 0x2d2   :  { %v1395_v43 = vadd.f32 %v1394_v6, %v1140_v41  ;;  %10825 = vst [vmem:[#allocation138_spill] sm:$0xff] %v7693_v18  ;;  %v10829_v41 = vunpack.c.h.bf16 %v10826_v46  ;;  %v1145_v48 = vmul.f32 %v7693_v18, %v7693_v18 }
 0x2d3   :  { %v7700_v26 = vsub.f32 %v10827_v33, %v6985_v31 }
 0x2d4   :  { %v1396_v0 = vadd.f32 %v1395_v43, %v1141_v21  ;;  %v7707_v6 = vsub.f32 %v10829_v41, %v6985_v31  ;;  %v10831_v43 = vld [vmem:[#allocation6_spill] sm:$0xff] }
 0x2d5   :  { %10828 = vst [vmem:[#allocation5_spill] sm:$0xff] %v7700_v26  ;;  %v10832_v21 = vunpack.c.l.bf16 %v10831_v43  ;;  %v1146_v33 = vmul.f32 %v7700_v26, %v7700_v26 }
 0x2d6   :  { %v1397_v28 = vadd.f32 %v1396_v0, %v1142_v38  ;;  %10830 = vst [vmem:[#allocation139_spill] sm:$0xff] %v7707_v6  ;;  %v10834_v38 = vunpack.c.h.bf16 %v10831_v43  ;;  %v1147_v46 = vmul.f32 %v7707_v6, %v7707_v6 }
 0x2d7   :  { %v7714_v19 = vsub.f32 %v10832_v21, %v6985_v31 }
 0x2d8   :  { %v1398_v23 = vadd.f32 %v1397_v28, %v1143_v11  ;;  %v7721_v0 = vsub.f32 %v10834_v38, %v6985_v31  ;;  %v10836_v28 = vld [vmem:[#allocation7_spill] sm:$0xff] }
 0x2d9   :  { %10833 = vst [vmem:[#allocation6_spill] sm:$0xff] %v7714_v19  ;;  %v10837_v11 = vunpack.c.l.bf16 %v10836_v28  ;;  %v1148_v21 = vmul.f32 %v7714_v19, %v7714_v19 }
 0x2da   :  { %v1399_v1 = vadd.f32 %v1398_v23, %v1144_v36  ;;  %10835 = vst [vmem:[#allocation140_spill] sm:$0xff] %v7721_v0  ;;  %v10839_v36 = vunpack.c.h.bf16 %v10836_v28  ;;  %v1149_v43 = vmul.f32 %v7721_v0, %v7721_v0 }
 0x2db   :  { %v7728_v18 = vsub.f32 %v10837_v11, %v6985_v31 }
 0x2dc   :  { %v1400_v41 = vadd.f32 %v1399_v1, %v1145_v48  ;;  %v7735_v23 = vsub.f32 %v10839_v36, %v6985_v31  ;;  %v10841_v1 = vld [vmem:[#allocation8_spill] sm:$0xff] }
 0x2dd   :  { %10838 = vst [vmem:[#allocation7_spill] sm:$0xff] %v7728_v18  ;;  %v10842_v48 = vunpack.c.l.bf16 %v10841_v1  ;;  %v1150_v11 = vmul.f32 %v7728_v18, %v7728_v18 }
 0x2de   :  { %v1401_v8 = vadd.f32 %v1400_v41, %v1146_v33  ;;  %10840 = vst [vmem:[#allocation141_spill] sm:$0xff] %v7735_v23  ;;  %v10844_v33 = vunpack.c.h.bf16 %v10841_v1  ;;  %v1151_v28 = vmul.f32 %v7735_v23, %v7735_v23 }
 0x2df   :  { %v7742_v6 = vsub.f32 %v10842_v48, %v6985_v31 }
 0x2e0   :  { %v1402_v38 = vadd.f32 %v1401_v8, %v1147_v46  ;;  %v7749_v41 = vsub.f32 %v10844_v33, %v6985_v31  ;;  %v10846_v8 = vld [vmem:[#allocation9_spill] sm:$0xff] }
 0x2e1   :  { %10843 = vst [vmem:[#allocation8_spill] sm:$0xff] %v7742_v6  ;;  %v10847_v46 = vunpack.c.l.bf16 %v10846_v8  ;;  %v1152_v48 = vmul.f32 %v7742_v6, %v7742_v6 }
 0x2e2   :  { %v1403_v26 = vadd.f32 %v1402_v38, %v1148_v21  ;;  %10845 = vst [vmem:[#allocation142_spill] sm:$0xff] %v7749_v41  ;;  %v10849_v21 = vunpack.c.h.bf16 %v10846_v8  ;;  %v1153_v1 = vmul.f32 %v7749_v41, %v7749_v41 }
 0x2e3   :  { %v7756_v0 = vsub.f32 %v10847_v46, %v6985_v31 }
 0x2e4   :  { %v1404_v36 = vadd.f32 %v1403_v26, %v1149_v43  ;;  %v7763_v38 = vsub.f32 %v10849_v21, %v6985_v31  ;;  %v10851_v26 = vld [vmem:[#allocation10_spill] sm:$0xff] }
 0x2e5   :  { %10848 = vst [vmem:[#allocation9_spill] sm:$0xff] %v7756_v0  ;;  %v10852_v43 = vunpack.c.l.bf16 %v10851_v26  ;;  %v1154_v46 = vmul.f32 %v7756_v0, %v7756_v0 }
 0x2e6   :  { %v1405_v19 = vadd.f32 %v1404_v36, %v1150_v11  ;;  %10850 = vst [vmem:[#allocation143_spill] sm:$0xff] %v7763_v38  ;;  %v10854_v11 = vunpack.c.h.bf16 %v10851_v26  ;;  %v1155_v8 = vmul.f32 %v7763_v38, %v7763_v38 }
 0x2e7   :  { %v7770_v23 = vsub.f32 %v10852_v43, %v6985_v31 }
 0x2e8   :  { %v1406_v33 = vadd.f32 %v1405_v19, %v1151_v28  ;;  %v7777_v36 = vsub.f32 %v10854_v11, %v6985_v31  ;;  %v10856_v19 = vld [vmem:[#allocation11_spill] sm:$0xff] }
 0x2e9   :  { %10853 = vst [vmem:[#allocation10_spill] sm:$0xff] %v7770_v23  ;;  %v10857_v28 = vunpack.c.l.bf16 %v10856_v19  ;;  %v1156_v43 = vmul.f32 %v7770_v23, %v7770_v23 }
 0x2ea   :  { %v1407_v18 = vadd.f32 %v1406_v33, %v1152_v48  ;;  %10855 = vst [vmem:[#allocation144_spill] sm:$0xff] %v7777_v36  ;;  %v10859_v48 = vunpack.c.h.bf16 %v10856_v19  ;;  %v1157_v26 = vmul.f32 %v7777_v36, %v7777_v36 }
 0x2eb   :  { %v7784_v41 = vsub.f32 %v10857_v28, %v6985_v31 }
 0x2ec   :  { %v1408_v21 = vadd.f32 %v1407_v18, %v1153_v1  ;;  %v7791_v33 = vsub.f32 %v10859_v48, %v6985_v31  ;;  %v10861_v18 = vld [vmem:[#allocation12_spill] sm:$0xff] }
 0x2ed   :  { %10858 = vst [vmem:[#allocation11_spill] sm:$0xff] %v7784_v41  ;;  %v10862_v1 = vunpack.c.l.bf16 %v10861_v18  ;;  %v1158_v28 = vmul.f32 %v7784_v41, %v7784_v41 }
 0x2ee   :  { %v1409_v6 = vadd.f32 %v1408_v21, %v1154_v46  ;;  %10860 = vst [vmem:[#allocation145_spill] sm:$0xff] %v7791_v33  ;;  %v10864_v46 = vunpack.c.h.bf16 %v10861_v18  ;;  %v1159_v19 = vmul.f32 %v7791_v33, %v7791_v33 }
 0x2ef   :  { %v7798_v38 = vsub.f32 %v10862_v1, %v6985_v31 }
 0x2f0   :  { %v1410_v11 = vadd.f32 %v1409_v6, %v1155_v8  ;;  %v7805_v21 = vsub.f32 %v10864_v46, %v6985_v31  ;;  %v10866_v6 = vld [vmem:[#allocation13_spill] sm:$0xff] }
 0x2f1   :  { %10863 = vst [vmem:[#allocation12_spill] sm:$0xff] %v7798_v38  ;;  %v10867_v8 = vunpack.c.l.bf16 %v10866_v6  ;;  %v1160_v1 = vmul.f32 %v7798_v38, %v7798_v38 }
 0x2f2   :  { %v1411_v0 = vadd.f32 %v1410_v11, %v1156_v43  ;;  %10865 = vst [vmem:[#allocation146_spill] sm:$0xff] %v7805_v21  ;;  %v10869_v43 = vunpack.c.h.bf16 %v10866_v6  ;;  %v1161_v18 = vmul.f32 %v7805_v21, %v7805_v21 }
 0x2f3   :  { %v7812_v36 = vsub.f32 %v10867_v8, %v6985_v31 }
 0x2f4   :  { %v1412_v48 = vadd.f32 %v1411_v0, %v1157_v26  ;;  %v7819_v11 = vsub.f32 %v10869_v43, %v6985_v31  ;;  %v10871_v0 = vld [vmem:[#allocation14_spill] sm:$0xff] }
 0x2f5   :  { %10868 = vst [vmem:[#allocation13_spill] sm:$0xff] %v7812_v36  ;;  %v10872_v26 = vunpack.c.l.bf16 %v10871_v0  ;;  %v1162_v8 = vmul.f32 %v7812_v36, %v7812_v36 }
 0x2f6   :  { %v1413_v23 = vadd.f32 %v1412_v48, %v1158_v28  ;;  %10870 = vst [vmem:[#allocation147_spill] sm:$0xff] %v7819_v11  ;;  %v10874_v28 = vunpack.c.h.bf16 %v10871_v0  ;;  %v1163_v6 = vmul.f32 %v7819_v11, %v7819_v11 }
 0x2f7   :  { %v7826_v33 = vsub.f32 %v10872_v26, %v6985_v31 }
 0x2f8   :  { %v1414_v46 = vadd.f32 %v1413_v23, %v1159_v19  ;;  %v7833_v48 = vsub.f32 %v10874_v28, %v6985_v31  ;;  %v10876_v23 = vld [vmem:[#allocation15_spill] sm:$0xff] }
 0x2f9   :  { %10873 = vst [vmem:[#allocation14_spill] sm:$0xff] %v7826_v33  ;;  %v10877_v19 = vunpack.c.l.bf16 %v10876_v23  ;;  %v1164_v26 = vmul.f32 %v7826_v33, %v7826_v33 }
 0x2fa   :  { %v1415_v41 = vadd.f32 %v1414_v46, %v1160_v1  ;;  %10875 = vst [vmem:[#allocation148_spill] sm:$0xff] %v7833_v48  ;;  %v10879_v1 = vunpack.c.h.bf16 %v10876_v23  ;;  %v1165_v0 = vmul.f32 %v7833_v48, %v7833_v48 }
 0x2fb   :  { %v7840_v21 = vsub.f32 %v10877_v19, %v6985_v31 }
 0x2fc   :  { %v1416_v43 = vadd.f32 %v1415_v41, %v1161_v18  ;;  %v7847_v46 = vsub.f32 %v10879_v1, %v6985_v31  ;;  %v10881_v41 = vld [vmem:[#allocation16_spill] sm:$0xff] }
 0x2fd   :  { %10878 = vst [vmem:[#allocation15_spill] sm:$0xff] %v7840_v21  ;;  %v10882_v18 = vunpack.c.l.bf16 %v10881_v41  ;;  %v1166_v19 = vmul.f32 %v7840_v21, %v7840_v21 }
 0x2fe   :  { %v1417_v38 = vadd.f32 %v1416_v43, %v1162_v8  ;;  %10880 = vst [vmem:[#allocation149_spill] sm:$0xff] %v7847_v46  ;;  %v10884_v8 = vunpack.c.h.bf16 %v10881_v41  ;;  %v1167_v23 = vmul.f32 %v7847_v46, %v7847_v46 }
 0x2ff   :  { %v7854_v11 = vsub.f32 %v10882_v18, %v6985_v31 }
 0x300   :  { %v1418_v28 = vadd.f32 %v1417_v38, %v1163_v6  ;;  %v7861_v43 = vsub.f32 %v10884_v8, %v6985_v31  ;;  %v10886_v38 = vld [vmem:[#allocation17_spill] sm:$0xff] }
 0x301   :  { %10883 = vst [vmem:[#allocation16_spill] sm:$0xff] %v7854_v11  ;;  %v10887_v6 = vunpack.c.l.bf16 %v10886_v38  ;;  %v1168_v18 = vmul.f32 %v7854_v11, %v7854_v11 }
 0x302   :  { %v1419_v36 = vadd.f32 %v1418_v28, %v1164_v26  ;;  %10885 = vst [vmem:[#allocation150_spill] sm:$0xff] %v7861_v43  ;;  %v10889_v26 = vunpack.c.h.bf16 %v10886_v38  ;;  %v1169_v41 = vmul.f32 %v7861_v43, %v7861_v43 }
 0x303   :  { %v7868_v48 = vsub.f32 %v10887_v6, %v6985_v31 }
 0x304   :  { %v1420_v1 = vadd.f32 %v1419_v36, %v1165_v0  ;;  %v7875_v28 = vsub.f32 %v10889_v26, %v6985_v31  ;;  %v10891_v36 = vld [vmem:[#allocation18_spill] sm:$0xff] }
 0x305   :  { %10888 = vst [vmem:[#allocation17_spill] sm:$0xff] %v7868_v48  ;;  %v10892_v0 = vunpack.c.l.bf16 %v10891_v36  ;;  %v1170_v6 = vmul.f32 %v7868_v48, %v7868_v48 }
 0x306   :  { %v1421_v33 = vadd.f32 %v1420_v1, %v1166_v19  ;;  %10890 = vst [vmem:[#allocation151_spill] sm:$0xff] %v7875_v28  ;;  %v10894_v19 = vunpack.c.h.bf16 %v10891_v36  ;;  %v1171_v38 = vmul.f32 %v7875_v28, %v7875_v28 }
 0x307   :  { %v7882_v46 = vsub.f32 %v10892_v0, %v6985_v31 }
 0x308   :  { %v1422_v8 = vadd.f32 %v1421_v33, %v1167_v23  ;;  %v7889_v1 = vsub.f32 %v10894_v19, %v6985_v31  ;;  %v10896_v33 = vld [vmem:[#allocation19_spill] sm:$0xff] }
 0x309   :  { %10893 = vst [vmem:[#allocation18_spill] sm:$0xff] %v7882_v46  ;;  %v10897_v23 = vunpack.c.l.bf16 %v10896_v33  ;;  %v1172_v0 = vmul.f32 %v7882_v46, %v7882_v46 }
 0x30a   :  { %v1423_v21 = vadd.f32 %v1422_v8, %v1168_v18  ;;  %10895 = vst [vmem:[#allocation152_spill] sm:$0xff] %v7889_v1  ;;  %v10899_v18 = vunpack.c.h.bf16 %v10896_v33  ;;  %v1173_v36 = vmul.f32 %v7889_v1, %v7889_v1 }
 0x30b   :  { %v7896_v43 = vsub.f32 %v10897_v23, %v6985_v31 }
 0x30c   :  { %v1424_v26 = vadd.f32 %v1423_v21, %v1169_v41  ;;  %v7903_v8 = vsub.f32 %v10899_v18, %v6985_v31  ;;  %v10901_v21 = vld [vmem:[#allocation20_spill] sm:$0xff] }
 0x30d   :  { %10898 = vst [vmem:[#allocation19_spill] sm:$0xff] %v7896_v43  ;;  %v10902_v41 = vunpack.c.l.bf16 %v10901_v21  ;;  %v1174_v23 = vmul.f32 %v7896_v43, %v7896_v43 }
 0x30e   :  { %v1425_v11 = vadd.f32 %v1424_v26, %v1170_v6  ;;  %10900 = vst [vmem:[#allocation153_spill] sm:$0xff] %v7903_v8  ;;  %v10904_v6 = vunpack.c.h.bf16 %v10901_v21  ;;  %v1175_v33 = vmul.f32 %v7903_v8, %v7903_v8 }
 0x30f   :  { %v7910_v28 = vsub.f32 %v10902_v41, %v6985_v31 }
 0x310   :  { %v1426_v19 = vadd.f32 %v1425_v11, %v1171_v38  ;;  %v7917_v26 = vsub.f32 %v10904_v6, %v6985_v31  ;;  %v10906_v11 = vld [vmem:[#allocation21_spill] sm:$0xff] }
 0x311   :  { %10903 = vst [vmem:[#allocation20_spill] sm:$0xff] %v7910_v28  ;;  %v10907_v38 = vunpack.c.l.bf16 %v10906_v11  ;;  %v1176_v41 = vmul.f32 %v7910_v28, %v7910_v28 }
 0x312   :  { %v1427_v48 = vadd.f32 %v1426_v19, %v1172_v0  ;;  %10905 = vst [vmem:[#allocation154_spill] sm:$0xff] %v7917_v26  ;;  %v10909_v0 = vunpack.c.h.bf16 %v10906_v11  ;;  %v1177_v21 = vmul.f32 %v7917_v26, %v7917_v26 }
 0x313   :  { %v7924_v1 = vsub.f32 %v10907_v38, %v6985_v31 }
 0x314   :  { %v1428_v18 = vadd.f32 %v1427_v48, %v1173_v36  ;;  %v7931_v19 = vsub.f32 %v10909_v0, %v6985_v31  ;;  %v10911_v48 = vld [vmem:[#allocation22_spill] sm:$0xff] }
 0x315   :  { %10908 = vst [vmem:[#allocation21_spill] sm:$0xff] %v7924_v1  ;;  %v10912_v36 = vunpack.c.l.bf16 %v10911_v48  ;;  %v1178_v38 = vmul.f32 %v7924_v1, %v7924_v1 }
 0x316   :  { %v1429_v46 = vadd.f32 %v1428_v18, %v1174_v23  ;;  %10910 = vst [vmem:[#allocation155_spill] sm:$0xff] %v7931_v19  ;;  %v10914_v23 = vunpack.c.h.bf16 %v10911_v48  ;;  %v1179_v11 = vmul.f32 %v7931_v19, %v7931_v19 }
 0x317   :  { %v7938_v8 = vsub.f32 %v10912_v36, %v6985_v31 }
 0x318   :  { %v1430_v6 = vadd.f32 %v1429_v46, %v1175_v33  ;;  %v7945_v18 = vsub.f32 %v10914_v23, %v6985_v31  ;;  %v10916_v46 = vld [vmem:[#allocation23_spill] sm:$0xff] }
 0x319   :  { %10913 = vst [vmem:[#allocation22_spill] sm:$0xff] %v7938_v8  ;;  %v10917_v33 = vunpack.c.l.bf16 %v10916_v46  ;;  %v1180_v36 = vmul.f32 %v7938_v8, %v7938_v8 }
 0x31a   :  { %v1431_v43 = vadd.f32 %v1430_v6, %v1176_v41  ;;  %10915 = vst [vmem:[#allocation156_spill] sm:$0xff] %v7945_v18  ;;  %v10919_v41 = vunpack.c.h.bf16 %v10916_v46  ;;  %v1181_v48 = vmul.f32 %v7945_v18, %v7945_v18 }
 0x31b   :  { %v7952_v26 = vsub.f32 %v10917_v33, %v6985_v31 }
 0x31c   :  { %v1432_v0 = vadd.f32 %v1431_v43, %v1177_v21  ;;  %v7959_v6 = vsub.f32 %v10919_v41, %v6985_v31  ;;  %v10921_v43 = vld [vmem:[#allocation24_spill] sm:$0xff] }
 0x31d   :  { %10918 = vst [vmem:[#allocation23_spill] sm:$0xff] %v7952_v26  ;;  %v10922_v21 = vunpack.c.l.bf16 %v10921_v43  ;;  %v1182_v33 = vmul.f32 %v7952_v26, %v7952_v26 }
 0x31e   :  { %v1433_v28 = vadd.f32 %v1432_v0, %v1178_v38  ;;  %10920 = vst [vmem:[#allocation157_spill] sm:$0xff] %v7959_v6  ;;  %v10924_v38 = vunpack.c.h.bf16 %v10921_v43  ;;  %v1183_v46 = vmul.f32 %v7959_v6, %v7959_v6 }
 0x31f   :  { %v7966_v19 = vsub.f32 %v10922_v21, %v6985_v31 }
 0x320   :  { %v1434_v23 = vadd.f32 %v1433_v28, %v1179_v11  ;;  %v7973_v0 = vsub.f32 %v10924_v38, %v6985_v31  ;;  %v10926_v28 = vld [vmem:[#allocation25_spill] sm:$0xff] }
 0x321   :  { %10923 = vst [vmem:[#allocation24_spill] sm:$0xff] %v7966_v19  ;;  %v10927_v11 = vunpack.c.l.bf16 %v10926_v28  ;;  %v1184_v21 = vmul.f32 %v7966_v19, %v7966_v19 }
 0x322   :  { %v1435_v1 = vadd.f32 %v1434_v23, %v1180_v36  ;;  %10925 = vst [vmem:[#allocation158_spill] sm:$0xff] %v7973_v0  ;;  %v10929_v36 = vunpack.c.h.bf16 %v10926_v28  ;;  %v1185_v43 = vmul.f32 %v7973_v0, %v7973_v0 }
 0x323   :  { %v7980_v18 = vsub.f32 %v10927_v11, %v6985_v31 }
 0x324   :  { %v1436_v41 = vadd.f32 %v1435_v1, %v1181_v48  ;;  %v7987_v23 = vsub.f32 %v10929_v36, %v6985_v31  ;;  %v10931_v1 = vld [vmem:[#allocation26_spill] sm:$0xff] }
 0x325   :  { %10928 = vst [vmem:[#allocation25_spill] sm:$0xff] %v7980_v18  ;;  %v10932_v48 = vunpack.c.l.bf16 %v10931_v1  ;;  %v1186_v11 = vmul.f32 %v7980_v18, %v7980_v18 }
 0x326   :  { %v1437_v8 = vadd.f32 %v1436_v41, %v1182_v33  ;;  %10930 = vst [vmem:[#allocation159_spill] sm:$0xff] %v7987_v23  ;;  %v10934_v33 = vunpack.c.h.bf16 %v10931_v1  ;;  %v1187_v28 = vmul.f32 %v7987_v23, %v7987_v23 }
 0x327   :  { %v7994_v6 = vsub.f32 %v10932_v48, %v6985_v31 }
 0x328   :  { %v1438_v38 = vadd.f32 %v1437_v8, %v1183_v46  ;;  %v8001_v41 = vsub.f32 %v10934_v33, %v6985_v31  ;;  %v10936_v8 = vld [vmem:[#allocation27_spill] sm:$0xff] }
 0x329   :  { %10933 = vst [vmem:[#allocation26_spill] sm:$0xff] %v7994_v6  ;;  %v10937_v46 = vunpack.c.l.bf16 %v10936_v8  ;;  %v1188_v48 = vmul.f32 %v7994_v6, %v7994_v6 }
 0x32a   :  { %v1439_v26 = vadd.f32 %v1438_v38, %v1184_v21  ;;  %10935 = vst [vmem:[#allocation160_spill] sm:$0xff] %v8001_v41  ;;  %v10939_v21 = vunpack.c.h.bf16 %v10936_v8  ;;  %v1189_v1 = vmul.f32 %v8001_v41, %v8001_v41 }
 0x32b   :  { %v8008_v0 = vsub.f32 %v10937_v46, %v6985_v31 }
 0x32c   :  { %v1440_v36 = vadd.f32 %v1439_v26, %v1185_v43  ;;  %v8015_v38 = vsub.f32 %v10939_v21, %v6985_v31  ;;  %v10941_v26 = vld [vmem:[#allocation28_spill] sm:$0xff] }
 0x32d   :  { %10938 = vst [vmem:[#allocation27_spill] sm:$0xff] %v8008_v0  ;;  %v10942_v43 = vunpack.c.l.bf16 %v10941_v26  ;;  %v1190_v46 = vmul.f32 %v8008_v0, %v8008_v0 }
 0x32e   :  { %v1441_v19 = vadd.f32 %v1440_v36, %v1186_v11  ;;  %10940 = vst [vmem:[#allocation161_spill] sm:$0xff] %v8015_v38  ;;  %v10944_v11 = vunpack.c.h.bf16 %v10941_v26  ;;  %v1191_v8 = vmul.f32 %v8015_v38, %v8015_v38 }
 0x32f   :  { %v8022_v23 = vsub.f32 %v10942_v43, %v6985_v31 }
 0x330   :  { %v1442_v33 = vadd.f32 %v1441_v19, %v1187_v28  ;;  %v8029_v36 = vsub.f32 %v10944_v11, %v6985_v31  ;;  %v10946_v19 = vld [vmem:[#allocation29_spill] sm:$0xff] }
 0x331   :  { %10943 = vst [vmem:[#allocation28_spill] sm:$0xff] %v8022_v23  ;;  %v10947_v28 = vunpack.c.l.bf16 %v10946_v19  ;;  %v1192_v43 = vmul.f32 %v8022_v23, %v8022_v23 }
 0x332   :  { %v1443_v18 = vadd.f32 %v1442_v33, %v1188_v48  ;;  %10945 = vst [vmem:[#allocation162_spill] sm:$0xff] %v8029_v36  ;;  %v10949_v48 = vunpack.c.h.bf16 %v10946_v19  ;;  %v1193_v26 = vmul.f32 %v8029_v36, %v8029_v36 }
 0x333   :  { %v8036_v41 = vsub.f32 %v10947_v28, %v6985_v31 }
 0x334   :  { %v1444_v21 = vadd.f32 %v1443_v18, %v1189_v1  ;;  %v8043_v33 = vsub.f32 %v10949_v48, %v6985_v31  ;;  %v10951_v18 = vld [vmem:[#allocation30_spill] sm:$0xff] }
 0x335   :  { %10948 = vst [vmem:[#allocation29_spill] sm:$0xff] %v8036_v41  ;;  %v10952_v1 = vunpack.c.l.bf16 %v10951_v18  ;;  %v1194_v28 = vmul.f32 %v8036_v41, %v8036_v41 }
 0x336   :  { %v1445_v6 = vadd.f32 %v1444_v21, %v1190_v46  ;;  %10950 = vst [vmem:[#allocation163_spill] sm:$0xff] %v8043_v33  ;;  %v10954_v46 = vunpack.c.h.bf16 %v10951_v18  ;;  %v1195_v19 = vmul.f32 %v8043_v33, %v8043_v33 }
 0x337   :  { %v8050_v38 = vsub.f32 %v10952_v1, %v6985_v31 }
 0x338   :  { %v1446_v11 = vadd.f32 %v1445_v6, %v1191_v8  ;;  %v8057_v21 = vsub.f32 %v10954_v46, %v6985_v31  ;;  %v10956_v6 = vld [vmem:[#allocation31_spill] sm:$0xff] }
 0x339   :  { %10953 = vst [vmem:[#allocation30_spill] sm:$0xff] %v8050_v38  ;;  %v10957_v8 = vunpack.c.l.bf16 %v10956_v6  ;;  %v1196_v1 = vmul.f32 %v8050_v38, %v8050_v38 }
 0x33a   :  { %v1447_v0 = vadd.f32 %v1446_v11, %v1192_v43  ;;  %10955 = vst [vmem:[#allocation164_spill] sm:$0xff] %v8057_v21  ;;  %v10959_v43 = vunpack.c.h.bf16 %v10956_v6  ;;  %v1197_v18 = vmul.f32 %v8057_v21, %v8057_v21 }
 0x33b   :  { %v8064_v36 = vsub.f32 %v10957_v8, %v6985_v31 }
 0x33c   :  { %v1448_v48 = vadd.f32 %v1447_v0, %v1193_v26  ;;  %v8071_v11 = vsub.f32 %v10959_v43, %v6985_v31  ;;  %v10961_v0 = vld [vmem:[#allocation32_spill] sm:$0xff] }
 0x33d   :  { %10958 = vst [vmem:[#allocation31_spill] sm:$0xff] %v8064_v36  ;;  %v10962_v26 = vunpack.c.l.bf16 %v10961_v0  ;;  %v1198_v8 = vmul.f32 %v8064_v36, %v8064_v36 }
 0x33e   :  { %v1449_v23 = vadd.f32 %v1448_v48, %v1194_v28  ;;  %10960 = vst [vmem:[#allocation165_spill] sm:$0xff] %v8071_v11  ;;  %v10964_v28 = vunpack.c.h.bf16 %v10961_v0  ;;  %v1199_v6 = vmul.f32 %v8071_v11, %v8071_v11 }
 0x33f   :  { %v8078_v33 = vsub.f32 %v10962_v26, %v6985_v31 }
 0x340   :  { %v1450_v46 = vadd.f32 %v1449_v23, %v1195_v19  ;;  %v8085_v48 = vsub.f32 %v10964_v28, %v6985_v31  ;;  %v10966_v23 = vld [vmem:[#allocation33_spill] sm:$0xff] }
 0x341   :  { %10963 = vst [vmem:[#allocation32_spill] sm:$0xff] %v8078_v33  ;;  %v10967_v19 = vunpack.c.l.bf16 %v10966_v23  ;;  %v1200_v26 = vmul.f32 %v8078_v33, %v8078_v33 }
 0x342   :  { %v1451_v41 = vadd.f32 %v1450_v46, %v1196_v1  ;;  %10965 = vst [vmem:[#allocation166_spill] sm:$0xff] %v8085_v48  ;;  %v10969_v1 = vunpack.c.h.bf16 %v10966_v23  ;;  %v1201_v0 = vmul.f32 %v8085_v48, %v8085_v48 }
 0x343   :  { %v8092_v21 = vsub.f32 %v10967_v19, %v6985_v31 }
 0x344   :  { %v1452_v43 = vadd.f32 %v1451_v41, %v1197_v18  ;;  %v8099_v46 = vsub.f32 %v10969_v1, %v6985_v31  ;;  %v10971_v41 = vld [vmem:[#allocation34_spill] sm:$0xff] }
 0x345   :  { %10968 = vst [vmem:[#allocation33_spill] sm:$0xff] %v8092_v21  ;;  %v10972_v18 = vunpack.c.l.bf16 %v10971_v41  ;;  %v1202_v19 = vmul.f32 %v8092_v21, %v8092_v21 }
 0x346   :  { %v1453_v38 = vadd.f32 %v1452_v43, %v1198_v8  ;;  %10970 = vst [vmem:[#allocation167_spill] sm:$0xff] %v8099_v46  ;;  %v10974_v8 = vunpack.c.h.bf16 %v10971_v41  ;;  %v1203_v23 = vmul.f32 %v8099_v46, %v8099_v46 }
 0x347   :  { %v8106_v11 = vsub.f32 %v10972_v18, %v6985_v31 }
 0x348   :  { %v1454_v28 = vadd.f32 %v1453_v38, %v1199_v6  ;;  %v8113_v43 = vsub.f32 %v10974_v8, %v6985_v31  ;;  %v10976_v38 = vld [vmem:[#allocation35_spill] sm:$0xff] }
 0x349   :  { %10973 = vst [vmem:[#allocation34_spill] sm:$0xff] %v8106_v11  ;;  %v10977_v6 = vunpack.c.l.bf16 %v10976_v38  ;;  %v1204_v18 = vmul.f32 %v8106_v11, %v8106_v11 }
 0x34a   :  { %v1455_v36 = vadd.f32 %v1454_v28, %v1200_v26  ;;  %10975 = vst [vmem:[#allocation168_spill] sm:$0xff] %v8113_v43  ;;  %v10979_v26 = vunpack.c.h.bf16 %v10976_v38  ;;  %v1205_v41 = vmul.f32 %v8113_v43, %v8113_v43 }
 0x34b   :  { %v8120_v48 = vsub.f32 %v10977_v6, %v6985_v31 }
 0x34c   :  { %v1456_v1 = vadd.f32 %v1455_v36, %v1201_v0  ;;  %v8127_v28 = vsub.f32 %v10979_v26, %v6985_v31  ;;  %v10981_v36 = vld [vmem:[#allocation36_spill] sm:$0xff] }
 0x34d   :  { %10978 = vst [vmem:[#allocation35_spill] sm:$0xff] %v8120_v48  ;;  %v10982_v0 = vunpack.c.l.bf16 %v10981_v36  ;;  %v1206_v6 = vmul.f32 %v8120_v48, %v8120_v48 }
 0x34e   :  { %v1457_v33 = vadd.f32 %v1456_v1, %v1202_v19  ;;  %10980 = vst [vmem:[#allocation169_spill] sm:$0xff] %v8127_v28  ;;  %v10984_v19 = vunpack.c.h.bf16 %v10981_v36  ;;  %v1207_v38 = vmul.f32 %v8127_v28, %v8127_v28 }
 0x34f   :  { %v8134_v46 = vsub.f32 %v10982_v0, %v6985_v31 }
 0x350   :  { %v1458_v8 = vadd.f32 %v1457_v33, %v1203_v23  ;;  %v8141_v1 = vsub.f32 %v10984_v19, %v6985_v31  ;;  %v10986_v33 = vld [vmem:[#allocation37_spill] sm:$0xff] }
 0x351   :  { %10983 = vst [vmem:[#allocation36_spill] sm:$0xff] %v8134_v46  ;;  %v10987_v23 = vunpack.c.l.bf16 %v10986_v33  ;;  %v1208_v0 = vmul.f32 %v8134_v46, %v8134_v46 }
 0x352   :  { %v1459_v21 = vadd.f32 %v1458_v8, %v1204_v18  ;;  %10985 = vst [vmem:[#allocation170_spill] sm:$0xff] %v8141_v1  ;;  %v10989_v18 = vunpack.c.h.bf16 %v10986_v33  ;;  %v1209_v36 = vmul.f32 %v8141_v1, %v8141_v1 }
 0x353   :  { %v8148_v43 = vsub.f32 %v10987_v23, %v6985_v31 }
 0x354   :  { %v1460_v26 = vadd.f32 %v1459_v21, %v1205_v41  ;;  %v8155_v8 = vsub.f32 %v10989_v18, %v6985_v31  ;;  %v10991_v21 = vld [vmem:[#allocation38_spill] sm:$0xff] }
 0x355   :  { %10988 = vst [vmem:[#allocation37_spill] sm:$0xff] %v8148_v43  ;;  %v10992_v41 = vunpack.c.l.bf16 %v10991_v21  ;;  %v1210_v23 = vmul.f32 %v8148_v43, %v8148_v43 }
 0x356   :  { %v1461_v11 = vadd.f32 %v1460_v26, %v1206_v6  ;;  %10990 = vst [vmem:[#allocation171_spill] sm:$0xff] %v8155_v8  ;;  %v10994_v6 = vunpack.c.h.bf16 %v10991_v21  ;;  %v1211_v33 = vmul.f32 %v8155_v8, %v8155_v8 }
 0x357   :  { %v8162_v28 = vsub.f32 %v10992_v41, %v6985_v31 }
 0x358   :  { %v1462_v19 = vadd.f32 %v1461_v11, %v1207_v38  ;;  %v8169_v26 = vsub.f32 %v10994_v6, %v6985_v31  ;;  %v10996_v11 = vld [vmem:[#allocation39_spill] sm:$0xff] }
 0x359   :  { %10993 = vst [vmem:[#allocation38_spill] sm:$0xff] %v8162_v28  ;;  %v10997_v38 = vunpack.c.l.bf16 %v10996_v11  ;;  %v1212_v41 = vmul.f32 %v8162_v28, %v8162_v28 }
 0x35a   :  { %v1463_v48 = vadd.f32 %v1462_v19, %v1208_v0  ;;  %10995 = vst [vmem:[#allocation172_spill] sm:$0xff] %v8169_v26  ;;  %v10999_v0 = vunpack.c.h.bf16 %v10996_v11  ;;  %v1213_v21 = vmul.f32 %v8169_v26, %v8169_v26 }
 0x35b   :  { %v8176_v1 = vsub.f32 %v10997_v38, %v6985_v31 }
 0x35c   :  { %v1464_v18 = vadd.f32 %v1463_v48, %v1209_v36  ;;  %v8183_v19 = vsub.f32 %v10999_v0, %v6985_v31  ;;  %v11001_v48 = vld [vmem:[#allocation40_spill] sm:$0xff] }
 0x35d   :  { %10998 = vst [vmem:[#allocation39_spill] sm:$0xff] %v8176_v1  ;;  %v11002_v36 = vunpack.c.l.bf16 %v11001_v48  ;;  %v1214_v38 = vmul.f32 %v8176_v1, %v8176_v1 }
 0x35e   :  { %v1465_v46 = vadd.f32 %v1464_v18, %v1210_v23  ;;  %11000 = vst [vmem:[#allocation173_spill] sm:$0xff] %v8183_v19  ;;  %v11004_v23 = vunpack.c.h.bf16 %v11001_v48  ;;  %v1215_v11 = vmul.f32 %v8183_v19, %v8183_v19 }
 0x35f   :  { %v8190_v8 = vsub.f32 %v11002_v36, %v6985_v31 }
 0x360   :  { %v1466_v6 = vadd.f32 %v1465_v46, %v1211_v33  ;;  %v8197_v18 = vsub.f32 %v11004_v23, %v6985_v31  ;;  %v11006_v46 = vld [vmem:[#allocation41_spill] sm:$0xff] }
 0x361   :  { %11003 = vst [vmem:[#allocation40_spill] sm:$0xff] %v8190_v8  ;;  %v11007_v33 = vunpack.c.l.bf16 %v11006_v46  ;;  %v1216_v36 = vmul.f32 %v8190_v8, %v8190_v8 }
 0x362   :  { %v1467_v43 = vadd.f32 %v1466_v6, %v1212_v41  ;;  %11005 = vst [vmem:[#allocation174_spill] sm:$0xff] %v8197_v18  ;;  %v11009_v41 = vunpack.c.h.bf16 %v11006_v46  ;;  %v1217_v48 = vmul.f32 %v8197_v18, %v8197_v18 }
 0x363   :  { %v8204_v26 = vsub.f32 %v11007_v33, %v6985_v31 }
 0x364   :  { %v1468_v0 = vadd.f32 %v1467_v43, %v1213_v21  ;;  %v8211_v6 = vsub.f32 %v11009_v41, %v6985_v31  ;;  %v11011_v43 = vld [vmem:[#allocation42_spill] sm:$0xff] }
 0x365   :  { %11008 = vst [vmem:[#allocation41_spill] sm:$0xff] %v8204_v26  ;;  %v11012_v21 = vunpack.c.l.bf16 %v11011_v43  ;;  %v1218_v33 = vmul.f32 %v8204_v26, %v8204_v26 }
 0x366   :  { %v1469_v28 = vadd.f32 %v1468_v0, %v1214_v38  ;;  %11010 = vst [vmem:[#allocation175_spill] sm:$0xff] %v8211_v6  ;;  %v11014_v38 = vunpack.c.h.bf16 %v11011_v43  ;;  %v1219_v46 = vmul.f32 %v8211_v6, %v8211_v6 }
 0x367   :  { %v8218_v19 = vsub.f32 %v11012_v21, %v6985_v31 }
 0x368   :  { %v1470_v23 = vadd.f32 %v1469_v28, %v1215_v11  ;;  %v8225_v0 = vsub.f32 %v11014_v38, %v6985_v31  ;;  %v11016_v28 = vld [vmem:[#allocation43_spill] sm:$0xff] }
 0x369   :  { %11013 = vst [vmem:[#allocation42_spill] sm:$0xff] %v8218_v19  ;;  %v11017_v11 = vunpack.c.l.bf16 %v11016_v28  ;;  %v1220_v21 = vmul.f32 %v8218_v19, %v8218_v19 }
 0x36a   :  { %v1471_v1 = vadd.f32 %v1470_v23, %v1216_v36  ;;  %11015 = vst [vmem:[#allocation176_spill] sm:$0xff] %v8225_v0  ;;  %v11019_v36 = vunpack.c.h.bf16 %v11016_v28  ;;  %v1221_v43 = vmul.f32 %v8225_v0, %v8225_v0 }
 0x36b   :  { %v8232_v18 = vsub.f32 %v11017_v11, %v6985_v31 }
 0x36c   :  { %v1472_v41 = vadd.f32 %v1471_v1, %v1217_v48  ;;  %v8239_v23 = vsub.f32 %v11019_v36, %v6985_v31  ;;  %v11021_v1 = vld [vmem:[#allocation44_spill] sm:$0xff] }
 0x36d   :  { %11018 = vst [vmem:[#allocation43_spill] sm:$0xff] %v8232_v18  ;;  %v11022_v48 = vunpack.c.l.bf16 %v11021_v1  ;;  %v1222_v11 = vmul.f32 %v8232_v18, %v8232_v18 }
 0x36e   :  { %v1473_v8 = vadd.f32 %v1472_v41, %v1218_v33  ;;  %11020 = vst [vmem:[#allocation177_spill] sm:$0xff] %v8239_v23  ;;  %v11024_v33 = vunpack.c.h.bf16 %v11021_v1  ;;  %v1223_v28 = vmul.f32 %v8239_v23, %v8239_v23 }
 0x36f   :  { %v8246_v6 = vsub.f32 %v11022_v48, %v6985_v31 }
 0x370   :  { %v1474_v38 = vadd.f32 %v1473_v8, %v1219_v46  ;;  %v8253_v41 = vsub.f32 %v11024_v33, %v6985_v31  ;;  %v11026_v8 = vld [vmem:[#allocation45_spill] sm:$0xff] }
 0x371   :  { %11023 = vst [vmem:[#allocation44_spill] sm:$0xff] %v8246_v6  ;;  %v11027_v46 = vunpack.c.l.bf16 %v11026_v8  ;;  %v1224_v48 = vmul.f32 %v8246_v6, %v8246_v6 }
 0x372   :  { %v1475_v26 = vadd.f32 %v1474_v38, %v1220_v21  ;;  %11025 = vst [vmem:[#allocation178_spill] sm:$0xff] %v8253_v41  ;;  %v11029_v21 = vunpack.c.h.bf16 %v11026_v8  ;;  %v1225_v1 = vmul.f32 %v8253_v41, %v8253_v41 }
 0x373   :  { %v8260_v0 = vsub.f32 %v11027_v46, %v6985_v31 }
 0x374   :  { %v1476_v36 = vadd.f32 %v1475_v26, %v1221_v43  ;;  %v8267_v38 = vsub.f32 %v11029_v21, %v6985_v31  ;;  %v11031_v26 = vld [vmem:[#allocation46_spill] sm:$0xff] }
 0x375   :  { %11028 = vst [vmem:[#allocation45_spill] sm:$0xff] %v8260_v0  ;;  %v11032_v43 = vunpack.c.l.bf16 %v11031_v26  ;;  %v1226_v46 = vmul.f32 %v8260_v0, %v8260_v0 }
 0x376   :  { %v1477_v19 = vadd.f32 %v1476_v36, %v1222_v11  ;;  %11030 = vst [vmem:[#allocation179_spill] sm:$0xff] %v8267_v38  ;;  %v11034_v11 = vunpack.c.h.bf16 %v11031_v26  ;;  %v1227_v8 = vmul.f32 %v8267_v38, %v8267_v38 }
 0x377   :  { %v8274_v23 = vsub.f32 %v11032_v43, %v6985_v31 }
 0x378   :  { %v1478_v33 = vadd.f32 %v1477_v19, %v1223_v28  ;;  %v8281_v36 = vsub.f32 %v11034_v11, %v6985_v31  ;;  %v11036_v19 = vld [vmem:[#allocation47_spill] sm:$0xff] }
 0x379   :  { %11033 = vst [vmem:[#allocation46_spill] sm:$0xff] %v8274_v23  ;;  %v11037_v28 = vunpack.c.l.bf16 %v11036_v19  ;;  %v1228_v43 = vmul.f32 %v8274_v23, %v8274_v23 }
 0x37a   :  { %v1479_v18 = vadd.f32 %v1478_v33, %v1224_v48  ;;  %11035 = vst [vmem:[#allocation180_spill] sm:$0xff] %v8281_v36  ;;  %v11039_v48 = vunpack.c.h.bf16 %v11036_v19  ;;  %v1229_v26 = vmul.f32 %v8281_v36, %v8281_v36 }
 0x37b   :  { %v8288_v41 = vsub.f32 %v11037_v28, %v6985_v31 }
 0x37c   :  { %v1480_v21 = vadd.f32 %v1479_v18, %v1225_v1  ;;  %v8295_v33 = vsub.f32 %v11039_v48, %v6985_v31  ;;  %v11041_v18 = vld [vmem:[#allocation48_spill] sm:$0xff] }
 0x37d   :  { %11038 = vst [vmem:[#allocation47_spill] sm:$0xff] %v8288_v41  ;;  %v11042_v1 = vunpack.c.l.bf16 %v11041_v18  ;;  %v1230_v28 = vmul.f32 %v8288_v41, %v8288_v41 }
 0x37e   :  { %v1481_v6 = vadd.f32 %v1480_v21, %v1226_v46  ;;  %11040 = vst [vmem:[#allocation181_spill] sm:$0xff] %v8295_v33  ;;  %v11044_v46 = vunpack.c.h.bf16 %v11041_v18  ;;  %v1231_v19 = vmul.f32 %v8295_v33, %v8295_v33 }
 0x37f   :  { %v8302_v38 = vsub.f32 %v11042_v1, %v6985_v31 }
 0x380   :  { %v1482_v11 = vadd.f32 %v1481_v6, %v1227_v8  ;;  %v8309_v21 = vsub.f32 %v11044_v46, %v6985_v31  ;;  %v11046_v6 = vld [vmem:[#allocation49_spill] sm:$0xff] }
 0x381   :  { %11043 = vst [vmem:[#allocation48_spill] sm:$0xff] %v8302_v38  ;;  %v11047_v8 = vunpack.c.l.bf16 %v11046_v6  ;;  %v1232_v1 = vmul.f32 %v8302_v38, %v8302_v38 }
 0x382   :  { %v1483_v0 = vadd.f32 %v1482_v11, %v1228_v43  ;;  %11045 = vst [vmem:[#allocation182_spill] sm:$0xff] %v8309_v21  ;;  %v11049_v43 = vunpack.c.h.bf16 %v11046_v6  ;;  %v1233_v18 = vmul.f32 %v8309_v21, %v8309_v21 }
 0x383   :  { %v8316_v36 = vsub.f32 %v11047_v8, %v6985_v31 }
 0x384   :  { %v1484_v48 = vadd.f32 %v1483_v0, %v1229_v26  ;;  %v8323_v11 = vsub.f32 %v11049_v43, %v6985_v31  ;;  %v11051_v0 = vld [vmem:[#allocation50_spill] sm:$0xff] }
 0x385   :  { %11048 = vst [vmem:[#allocation49_spill] sm:$0xff] %v8316_v36  ;;  %v11052_v26 = vunpack.c.l.bf16 %v11051_v0  ;;  %v1234_v8 = vmul.f32 %v8316_v36, %v8316_v36 }
 0x386   :  { %v1485_v23 = vadd.f32 %v1484_v48, %v1230_v28  ;;  %11050 = vst [vmem:[#allocation183_spill] sm:$0xff] %v8323_v11  ;;  %v11054_v28 = vunpack.c.h.bf16 %v11051_v0  ;;  %v1235_v6 = vmul.f32 %v8323_v11, %v8323_v11 }
 0x387   :  { %v8330_v33 = vsub.f32 %v11052_v26, %v6985_v31 }
 0x388   :  { %v1486_v46 = vadd.f32 %v1485_v23, %v1231_v19  ;;  %v8337_v48 = vsub.f32 %v11054_v28, %v6985_v31  ;;  %v11056_v23 = vld [vmem:[#allocation51_spill] sm:$0xff] }
 0x389   :  { %11053 = vst [vmem:[#allocation50_spill] sm:$0xff] %v8330_v33  ;;  %v11057_v19 = vunpack.c.l.bf16 %v11056_v23  ;;  %v1236_v26 = vmul.f32 %v8330_v33, %v8330_v33 }
 0x38a   :  { %v1487_v41 = vadd.f32 %v1486_v46, %v1232_v1  ;;  %11055 = vst [vmem:[#allocation184_spill] sm:$0xff] %v8337_v48  ;;  %v11059_v1 = vunpack.c.h.bf16 %v11056_v23  ;;  %v1237_v0 = vmul.f32 %v8337_v48, %v8337_v48 }
 0x38b   :  { %v8344_v21 = vsub.f32 %v11057_v19, %v6985_v31 }
 0x38c   :  { %v1488_v43 = vadd.f32 %v1487_v41, %v1233_v18  ;;  %v8351_v46 = vsub.f32 %v11059_v1, %v6985_v31  ;;  %v11061_v41 = vld [vmem:[#allocation52_spill] sm:$0xff] }
 0x38d   :  { %11058 = vst [vmem:[#allocation51_spill] sm:$0xff] %v8344_v21  ;;  %v11062_v18 = vunpack.c.l.bf16 %v11061_v41  ;;  %v1238_v19 = vmul.f32 %v8344_v21, %v8344_v21 }
 0x38e   :  { %v1489_v38 = vadd.f32 %v1488_v43, %v1234_v8  ;;  %11060 = vst [vmem:[#allocation185_spill] sm:$0xff] %v8351_v46  ;;  %v11064_v8 = vunpack.c.h.bf16 %v11061_v41  ;;  %v1239_v23 = vmul.f32 %v8351_v46, %v8351_v46 }
 0x38f   :  { %v8358_v11 = vsub.f32 %v11062_v18, %v6985_v31 }
 0x390   :  { %v1490_v28 = vadd.f32 %v1489_v38, %v1235_v6  ;;  %v8365_v43 = vsub.f32 %v11064_v8, %v6985_v31  ;;  %v11066_v38 = vld [vmem:[#allocation53_spill] sm:$0xff] }
 0x391   :  { %11063 = vst [vmem:[#allocation52_spill] sm:$0xff] %v8358_v11  ;;  %v11067_v6 = vunpack.c.l.bf16 %v11066_v38  ;;  %v1240_v18 = vmul.f32 %v8358_v11, %v8358_v11 }
 0x392   :  { %v1491_v36 = vadd.f32 %v1490_v28, %v1236_v26  ;;  %11065 = vst [vmem:[#allocation186_spill] sm:$0xff] %v8365_v43  ;;  %v11069_v26 = vunpack.c.h.bf16 %v11066_v38  ;;  %v1241_v41 = vmul.f32 %v8365_v43, %v8365_v43 }
 0x393   :  { %v8372_v48 = vsub.f32 %v11067_v6, %v6985_v31 }
 0x394   :  { %v1492_v1 = vadd.f32 %v1491_v36, %v1237_v0  ;;  %v8379_v28 = vsub.f32 %v11069_v26, %v6985_v31  ;;  %v11071_v36 = vld [vmem:[#allocation54_spill] sm:$0xff] }
 0x395   :  { %11068 = vst [vmem:[#allocation53_spill] sm:$0xff] %v8372_v48  ;;  %v11072_v0 = vunpack.c.l.bf16 %v11071_v36  ;;  %v1242_v6 = vmul.f32 %v8372_v48, %v8372_v48 }
 0x396   :  { %v1493_v33 = vadd.f32 %v1492_v1, %v1238_v19  ;;  %11070 = vst [vmem:[#allocation187_spill] sm:$0xff] %v8379_v28  ;;  %v11074_v19 = vunpack.c.h.bf16 %v11071_v36  ;;  %v1243_v38 = vmul.f32 %v8379_v28, %v8379_v28 }
 0x397   :  { %v8386_v46 = vsub.f32 %v11072_v0, %v6985_v31 }
 0x398   :  { %v1494_v8 = vadd.f32 %v1493_v33, %v1239_v23  ;;  %v8393_v1 = vsub.f32 %v11074_v19, %v6985_v31  ;;  %v11076_v33 = vld [vmem:[#allocation55_spill] sm:$0xff] }
 0x399   :  { %11073 = vst [vmem:[#allocation54_spill] sm:$0xff] %v8386_v46  ;;  %v11077_v23 = vunpack.c.l.bf16 %v11076_v33  ;;  %v1244_v0 = vmul.f32 %v8386_v46, %v8386_v46 }
 0x39a   :  { %v1495_v21 = vadd.f32 %v1494_v8, %v1240_v18  ;;  %11075 = vst [vmem:[#allocation188_spill] sm:$0xff] %v8393_v1  ;;  %v11079_v18 = vunpack.c.h.bf16 %v11076_v33  ;;  %v1245_v36 = vmul.f32 %v8393_v1, %v8393_v1 }
 0x39b   :  { %v8400_v43 = vsub.f32 %v11077_v23, %v6985_v31 }
 0x39c   :  { %v1496_v26 = vadd.f32 %v1495_v21, %v1241_v41  ;;  %v8407_v8 = vsub.f32 %v11079_v18, %v6985_v31  ;;  %v11081_v21 = vld [vmem:[#allocation56_spill] sm:$0xff] }
 0x39d   :  { %11078 = vst [vmem:[#allocation55_spill] sm:$0xff] %v8400_v43  ;;  %v11082_v41 = vunpack.c.l.bf16 %v11081_v21  ;;  %v1246_v23 = vmul.f32 %v8400_v43, %v8400_v43 }
 0x39e   :  { %v1497_v11 = vadd.f32 %v1496_v26, %v1242_v6  ;;  %11080 = vst [vmem:[#allocation189_spill] sm:$0xff] %v8407_v8  ;;  %v11084_v6 = vunpack.c.h.bf16 %v11081_v21  ;;  %v1247_v33 = vmul.f32 %v8407_v8, %v8407_v8 }
 0x39f   :  { %v8414_v28 = vsub.f32 %v11082_v41, %v6985_v31 }
 0x3a0   :  { %v1498_v19 = vadd.f32 %v1497_v11, %v1243_v38  ;;  %v8421_v26 = vsub.f32 %v11084_v6, %v6985_v31  ;;  %v11086_v11 = vld [vmem:[#allocation57_spill] sm:$0xff] }
 0x3a1   :  { %11083 = vst [vmem:[#allocation56_spill] sm:$0xff] %v8414_v28  ;;  %v11087_v38 = vunpack.c.l.bf16 %v11086_v11  ;;  %v1248_v41 = vmul.f32 %v8414_v28, %v8414_v28 }
 0x3a2   :  { %v1499_v48 = vadd.f32 %v1498_v19, %v1244_v0  ;;  %11085 = vst [vmem:[#allocation190_spill] sm:$0xff] %v8421_v26  ;;  %v11089_v0 = vunpack.c.h.bf16 %v11086_v11  ;;  %v1249_v21 = vmul.f32 %v8421_v26, %v8421_v26 }
 0x3a3   :  { %v8428_v1 = vsub.f32 %v11087_v38, %v6985_v31 }
 0x3a4   :  { %v1500_v18 = vadd.f32 %v1499_v48, %v1245_v36  ;;  %v8435_v19 = vsub.f32 %v11089_v0, %v6985_v31  ;;  %v11091_v48 = vld [vmem:[#allocation58_spill] sm:$0xff] }
 0x3a5   :  { %11088 = vst [vmem:[#allocation57_spill] sm:$0xff] %v8428_v1  ;;  %v11092_v36 = vunpack.c.l.bf16 %v11091_v48  ;;  %v1250_v38 = vmul.f32 %v8428_v1, %v8428_v1 }
 0x3a6   :  { %v1501_v46 = vadd.f32 %v1500_v18, %v1246_v23  ;;  %11090 = vst [vmem:[#allocation191_spill] sm:$0xff] %v8435_v19  ;;  %v11094_v23 = vunpack.c.h.bf16 %v11091_v48  ;;  %v1251_v11 = vmul.f32 %v8435_v19, %v8435_v19 }
 0x3a7   :  { %v8442_v8 = vsub.f32 %v11092_v36, %v6985_v31 }
 0x3a8   :  { %v1502_v6 = vadd.f32 %v1501_v46, %v1247_v33  ;;  %v8449_v18 = vsub.f32 %v11094_v23, %v6985_v31  ;;  %v11096_v46 = vld [vmem:[#allocation59_spill] sm:$0xff] }
 0x3a9   :  { %11093 = vst [vmem:[#allocation58_spill] sm:$0xff] %v8442_v8  ;;  %v11097_v33 = vunpack.c.l.bf16 %v11096_v46  ;;  %v1252_v36 = vmul.f32 %v8442_v8, %v8442_v8 }
 0x3aa   :  { %v1503_v43 = vadd.f32 %v1502_v6, %v1248_v41  ;;  %11095 = vst [vmem:[#allocation192_spill] sm:$0xff] %v8449_v18  ;;  %v11099_v41 = vunpack.c.h.bf16 %v11096_v46  ;;  %v1253_v48 = vmul.f32 %v8449_v18, %v8449_v18 }
 0x3ab   :  { %v8456_v26 = vsub.f32 %v11097_v33, %v6985_v31 }
 0x3ac   :  { %v1504_v0 = vadd.f32 %v1503_v43, %v1249_v21  ;;  %v8463_v6 = vsub.f32 %v11099_v41, %v6985_v31  ;;  %v11101_v43 = vld [vmem:[#allocation60_spill] sm:$0xff] }
 0x3ad   :  { %11098 = vst [vmem:[#allocation59_spill] sm:$0xff] %v8456_v26  ;;  %v11102_v21 = vunpack.c.l.bf16 %v11101_v43  ;;  %v1254_v33 = vmul.f32 %v8456_v26, %v8456_v26 }
 0x3ae   :  { %v1505_v28 = vadd.f32 %v1504_v0, %v1250_v38  ;;  %11100 = vst [vmem:[#allocation193_spill] sm:$0xff] %v8463_v6  ;;  %v11104_v38 = vunpack.c.h.bf16 %v11101_v43  ;;  %v1255_v46 = vmul.f32 %v8463_v6, %v8463_v6 }
 0x3af   :  { %v8470_v19 = vsub.f32 %v11102_v21, %v6985_v31 }
 0x3b0   :  { %v1506_v23 = vadd.f32 %v1505_v28, %v1251_v11  ;;  %v8477_v0 = vsub.f32 %v11104_v38, %v6985_v31  ;;  %v11106_v28 = vld [vmem:[#allocation61_spill] sm:$0xff] }
 0x3b1   :  { %11103 = vst [vmem:[#allocation60_spill] sm:$0xff] %v8470_v19  ;;  %v11107_v11 = vunpack.c.l.bf16 %v11106_v28  ;;  %v1256_v21 = vmul.f32 %v8470_v19, %v8470_v19 }
 0x3b2   :  { %v1507_v1 = vadd.f32 %v1506_v23, %v1252_v36  ;;  %11105 = vst [vmem:[#allocation194_spill] sm:$0xff] %v8477_v0  ;;  %v11109_v36 = vunpack.c.h.bf16 %v11106_v28  ;;  %v1257_v43 = vmul.f32 %v8477_v0, %v8477_v0 }
 0x3b3   :  { %v8484_v18 = vsub.f32 %v11107_v11, %v6985_v31 }
 0x3b4   :  { %v1508_v41 = vadd.f32 %v1507_v1, %v1253_v48  ;;  %v8491_v23 = vsub.f32 %v11109_v36, %v6985_v31  ;;  %v11111_v1 = vld [vmem:[#allocation62_spill] sm:$0xff] }
 0x3b5   :  { %11108 = vst [vmem:[#allocation61_spill] sm:$0xff] %v8484_v18  ;;  %v11112_v48 = vunpack.c.l.bf16 %v11111_v1  ;;  %v1258_v11 = vmul.f32 %v8484_v18, %v8484_v18 }
 0x3b6   :  { %v1509_v8 = vadd.f32 %v1508_v41, %v1254_v33  ;;  %11110 = vst [vmem:[#allocation195_spill] sm:$0xff] %v8491_v23  ;;  %v11114_v33 = vunpack.c.h.bf16 %v11111_v1  ;;  %v1259_v28 = vmul.f32 %v8491_v23, %v8491_v23 }
 0x3b7   :  { %v8498_v6 = vsub.f32 %v11112_v48, %v6985_v31 }
 0x3b8   :  { %v1510_v38 = vadd.f32 %v1509_v8, %v1255_v46  ;;  %v8505_v41 = vsub.f32 %v11114_v33, %v6985_v31  ;;  %v11116_v8 = vld [vmem:[#allocation63_spill] sm:$0xff] }
 0x3b9   :  { %11113 = vst [vmem:[#allocation62_spill] sm:$0xff] %v8498_v6  ;;  %v11117_v46 = vunpack.c.l.bf16 %v11116_v8  ;;  %v1260_v48 = vmul.f32 %v8498_v6, %v8498_v6 }
 0x3ba   :  { %v1511_v26 = vadd.f32 %v1510_v38, %v1256_v21  ;;  %11115 = vst [vmem:[#allocation196_spill] sm:$0xff] %v8505_v41  ;;  %v11119_v21 = vunpack.c.h.bf16 %v11116_v8  ;;  %v1261_v1 = vmul.f32 %v8505_v41, %v8505_v41 }
 0x3bb   :  { %v8512_v0 = vsub.f32 %v11117_v46, %v6985_v31 }
 0x3bc   :  { %v1512_v36 = vadd.f32 %v1511_v26, %v1257_v43  ;;  %v8519_v38 = vsub.f32 %v11119_v21, %v6985_v31  ;;  %v11121_v26 = vld [vmem:[#allocation64_spill] sm:$0xff] }
 0x3bd   :  { %11118 = vst [vmem:[#allocation63_spill] sm:$0xff] %v8512_v0  ;;  %v11122_v43 = vunpack.c.l.bf16 %v11121_v26  ;;  %v1262_v46 = vmul.f32 %v8512_v0, %v8512_v0 }
 0x3be   :  { %v1513_v19 = vadd.f32 %v1512_v36, %v1258_v11  ;;  %11120 = vst [vmem:[#allocation197_spill] sm:$0xff] %v8519_v38  ;;  %v11124_v11 = vunpack.c.h.bf16 %v11121_v26  ;;  %v1263_v8 = vmul.f32 %v8519_v38, %v8519_v38 }
 0x3bf   :  { %v8526_v23 = vsub.f32 %v11122_v43, %v6985_v31 }
 0x3c0   :  { %v1514_v33 = vadd.f32 %v1513_v19, %v1259_v28  ;;  %v8533_v36 = vsub.f32 %v11124_v11, %v6985_v31  ;;  %v11126_v19 = vld [vmem:[#allocation65_spill] sm:$0xff] }
 0x3c1   :  { %11123 = vst [vmem:[#allocation64_spill] sm:$0xff] %v8526_v23  ;;  %v11127_v28 = vunpack.c.l.bf16 %v11126_v19  ;;  %v1264_v43 = vmul.f32 %v8526_v23, %v8526_v23 }
 0x3c2   :  { %v1515_v18 = vadd.f32 %v1514_v33, %v1260_v48  ;;  %11125 = vst [vmem:[#allocation198_spill] sm:$0xff] %v8533_v36  ;;  %v11129_v48 = vunpack.c.h.bf16 %v11126_v19  ;;  %v1265_v26 = vmul.f32 %v8533_v36, %v8533_v36 }
 0x3c3   :  { %v8540_v41 = vsub.f32 %v11127_v28, %v6985_v31 }
 0x3c4   :  { %v1516_v21 = vadd.f32 %v1515_v18, %v1261_v1  ;;  %v8547_v33 = vsub.f32 %v11129_v48, %v6985_v31  ;;  %v11131_v18 = vld [vmem:[#allocation66_spill] sm:$0xff] }
 0x3c5   :  { %11128 = vst [vmem:[#allocation65_spill] sm:$0xff] %v8540_v41  ;;  %v11132_v1 = vunpack.c.l.bf16 %v11131_v18  ;;  %v1266_v28 = vmul.f32 %v8540_v41, %v8540_v41 }
 0x3c6   :  { %v1517_v6 = vadd.f32 %v1516_v21, %v1262_v46  ;;  %11130 = vst [vmem:[#allocation199_spill] sm:$0xff] %v8547_v33  ;;  %v11134_v46 = vunpack.c.h.bf16 %v11131_v18  ;;  %v1267_v19 = vmul.f32 %v8547_v33, %v8547_v33 }
 0x3c7   :  { %v8554_v38 = vsub.f32 %v11132_v1, %v6985_v31 }
 0x3c8   :  { %v1518_v11 = vadd.f32 %v1517_v6, %v1263_v8  ;;  %v8561_v21 = vsub.f32 %v11134_v46, %v6985_v31  ;;  %v11136_v6 = vld [vmem:[#allocation67_spill] sm:$0xff] }
 0x3c9   :  { %11133 = vst [vmem:[#allocation66_spill] sm:$0xff] %v8554_v38  ;;  %v11137_v8 = vunpack.c.l.bf16 %v11136_v6  ;;  %v1268_v1 = vmul.f32 %v8554_v38, %v8554_v38 }
 0x3ca   :  { %v1519_v0 = vadd.f32 %v1518_v11, %v1264_v43  ;;  %11135 = vst [vmem:[#allocation200_spill] sm:$0xff] %v8561_v21  ;;  %v11139_v43 = vunpack.c.h.bf16 %v11136_v6  ;;  %v1269_v18 = vmul.f32 %v8561_v21, %v8561_v21 }
 0x3cb   :  { %v8568_v36 = vsub.f32 %v11137_v8, %v6985_v31 }
 0x3cc   :  { %v1520_v48 = vadd.f32 %v1519_v0, %v1265_v26  ;;  %v8575_v11 = vsub.f32 %v11139_v43, %v6985_v31  ;;  %v11141_v0 = vld [vmem:[#allocation68_spill] sm:$0xff] }
 0x3cd   :  { %11138 = vst [vmem:[#allocation67_spill] sm:$0xff] %v8568_v36  ;;  %v11142_v26 = vunpack.c.l.bf16 %v11141_v0  ;;  %v1270_v8 = vmul.f32 %v8568_v36, %v8568_v36 }
 0x3ce   :  { %v1521_v23 = vadd.f32 %v1520_v48, %v1266_v28  ;;  %11140 = vst [vmem:[#allocation201_spill] sm:$0xff] %v8575_v11  ;;  %v11144_v28 = vunpack.c.h.bf16 %v11141_v0  ;;  %v1271_v6 = vmul.f32 %v8575_v11, %v8575_v11 }
 0x3cf   :  { %v8582_v33 = vsub.f32 %v11142_v26, %v6985_v31 }
 0x3d0   :  { %v1522_v46 = vadd.f32 %v1521_v23, %v1267_v19  ;;  %v8589_v48 = vsub.f32 %v11144_v28, %v6985_v31  ;;  %v11146_v23 = vld [vmem:[#allocation69_spill] sm:$0xff] }
 0x3d1   :  { %11143 = vst [vmem:[#allocation68_spill] sm:$0xff] %v8582_v33  ;;  %v11147_v19 = vunpack.c.l.bf16 %v11146_v23  ;;  %v1272_v26 = vmul.f32 %v8582_v33, %v8582_v33 }
 0x3d2   :  { %v1523_v41 = vadd.f32 %v1522_v46, %v1268_v1  ;;  %11145 = vst [vmem:[#allocation202_spill] sm:$0xff] %v8589_v48  ;;  %v11149_v1 = vunpack.c.h.bf16 %v11146_v23  ;;  %v1273_v0 = vmul.f32 %v8589_v48, %v8589_v48 }
 0x3d3   :  { %v8596_v21 = vsub.f32 %v11147_v19, %v6985_v31 }
 0x3d4   :  { %v1524_v43 = vadd.f32 %v1523_v41, %v1269_v18  ;;  %v8603_v46 = vsub.f32 %v11149_v1, %v6985_v31  ;;  %v11151_v41 = vld [vmem:[#allocation70_spill] sm:$0xff] }
 0x3d5   :  { %11148 = vst [vmem:[#allocation69_spill] sm:$0xff] %v8596_v21  ;;  %v11152_v18 = vunpack.c.l.bf16 %v11151_v41  ;;  %v1274_v19 = vmul.f32 %v8596_v21, %v8596_v21 }
 0x3d6   :  { %v1525_v38 = vadd.f32 %v1524_v43, %v1270_v8  ;;  %11150 = vst [vmem:[#allocation203_spill] sm:$0xff] %v8603_v46  ;;  %v11154_v8 = vunpack.c.h.bf16 %v11151_v41  ;;  %v1275_v23 = vmul.f32 %v8603_v46, %v8603_v46 }
 0x3d7   :  { %v8610_v11 = vsub.f32 %v11152_v18, %v6985_v31 }
 0x3d8   :  { %v1526_v28 = vadd.f32 %v1525_v38, %v1271_v6  ;;  %v8617_v43 = vsub.f32 %v11154_v8, %v6985_v31  ;;  %v11156_v38 = vld [vmem:[#allocation71_spill] sm:$0xff] }
 0x3d9   :  { %11153 = vst [vmem:[#allocation70_spill] sm:$0xff] %v8610_v11  ;;  %v11157_v6 = vunpack.c.l.bf16 %v11156_v38  ;;  %v1276_v18 = vmul.f32 %v8610_v11, %v8610_v11 }
 0x3da   :  { %v1527_v36 = vadd.f32 %v1526_v28, %v1272_v26  ;;  %11155 = vst [vmem:[#allocation204_spill] sm:$0xff] %v8617_v43  ;;  %v11159_v26 = vunpack.c.h.bf16 %v11156_v38  ;;  %v1277_v41 = vmul.f32 %v8617_v43, %v8617_v43 }
 0x3db   :  { %v8624_v48 = vsub.f32 %v11157_v6, %v6985_v31 }
 0x3dc   :  { %v1528_v1 = vadd.f32 %v1527_v36, %v1273_v0  ;;  %v8631_v28 = vsub.f32 %v11159_v26, %v6985_v31  ;;  %v11161_v36 = vld [vmem:[#allocation72_spill] sm:$0xff] }
 0x3dd   :  { %11158 = vst [vmem:[#allocation71_spill] sm:$0xff] %v8624_v48  ;;  %v11162_v0 = vunpack.c.l.bf16 %v11161_v36  ;;  %v1278_v6 = vmul.f32 %v8624_v48, %v8624_v48 }
 0x3de   :  { %v1529_v33 = vadd.f32 %v1528_v1, %v1274_v19  ;;  %11160 = vst [vmem:[#allocation205_spill] sm:$0xff] %v8631_v28  ;;  %v11164_v19 = vunpack.c.h.bf16 %v11161_v36  ;;  %v1279_v38 = vmul.f32 %v8631_v28, %v8631_v28 }
 0x3df   :  { %v8638_v46 = vsub.f32 %v11162_v0, %v6985_v31 }
 0x3e0   :  { %v1530_v8 = vadd.f32 %v1529_v33, %v1275_v23  ;;  %v8645_v1 = vsub.f32 %v11164_v19, %v6985_v31  ;;  %v11166_v33 = vld [vmem:[#allocation73_spill] sm:$0xff] }
 0x3e1   :  { %11163 = vst [vmem:[#allocation72_spill] sm:$0xff] %v8638_v46  ;;  %v11167_v23 = vunpack.c.l.bf16 %v11166_v33  ;;  %v1280_v0 = vmul.f32 %v8638_v46, %v8638_v46 }
 0x3e2   :  { %v1531_v21 = vadd.f32 %v1530_v8, %v1276_v18  ;;  %11165 = vst [vmem:[#allocation206_spill] sm:$0xff] %v8645_v1  ;;  %v11169_v18 = vunpack.c.h.bf16 %v11166_v33  ;;  %v1281_v36 = vmul.f32 %v8645_v1, %v8645_v1 }
 0x3e3   :  { %v8652_v43 = vsub.f32 %v11167_v23, %v6985_v31 }
 0x3e4   :  { %v1532_v26 = vadd.f32 %v1531_v21, %v1277_v41  ;;  %v8659_v8 = vsub.f32 %v11169_v18, %v6985_v31  ;;  %v11171_v21 = vld [vmem:[#allocation74_spill] sm:$0xff] }
 0x3e5   :  { %11168 = vst [vmem:[#allocation73_spill] sm:$0xff] %v8652_v43  ;;  %v11172_v41 = vunpack.c.l.bf16 %v11171_v21  ;;  %v1282_v23 = vmul.f32 %v8652_v43, %v8652_v43 }
 0x3e6   :  { %v1533_v11 = vadd.f32 %v1532_v26, %v1278_v6  ;;  %11170 = vst [vmem:[#allocation207_spill] sm:$0xff] %v8659_v8  ;;  %v11174_v6 = vunpack.c.h.bf16 %v11171_v21  ;;  %v1283_v33 = vmul.f32 %v8659_v8, %v8659_v8 }
 0x3e7   :  { %v8666_v28 = vsub.f32 %v11172_v41, %v6985_v31 }
 0x3e8   :  { %v1534_v19 = vadd.f32 %v1533_v11, %v1279_v38  ;;  %v8673_v26 = vsub.f32 %v11174_v6, %v6985_v31  ;;  %v11176_v11 = vld [vmem:[#allocation75_spill] sm:$0xff] }
 0x3e9   :  { %11173 = vst [vmem:[#allocation74_spill] sm:$0xff] %v8666_v28  ;;  %v11177_v38 = vunpack.c.l.bf16 %v11176_v11  ;;  %v1284_v41 = vmul.f32 %v8666_v28, %v8666_v28 }
 0x3ea   :  { %v1535_v48 = vadd.f32 %v1534_v19, %v1280_v0  ;;  %11175 = vst [vmem:[#allocation208_spill] sm:$0xff] %v8673_v26  ;;  %v11179_v0 = vunpack.c.h.bf16 %v11176_v11  ;;  %v1285_v21 = vmul.f32 %v8673_v26, %v8673_v26 }
 0x3eb   :  { %v8680_v1 = vsub.f32 %v11177_v38, %v6985_v31 }
 0x3ec   :  { %v1536_v18 = vadd.f32 %v1535_v48, %v1281_v36  ;;  %v8687_v19 = vsub.f32 %v11179_v0, %v6985_v31  ;;  %v11181_v48 = vld [vmem:[#allocation76_spill] sm:$0xff] }
 0x3ed   :  { %11178 = vst [vmem:[#allocation75_spill] sm:$0xff] %v8680_v1  ;;  %v11182_v36 = vunpack.c.l.bf16 %v11181_v48  ;;  %v1286_v38 = vmul.f32 %v8680_v1, %v8680_v1 }
 0x3ee   :  { %v1537_v46 = vadd.f32 %v1536_v18, %v1282_v23  ;;  %11180 = vst [vmem:[#allocation209_spill] sm:$0xff] %v8687_v19  ;;  %v11184_v23 = vunpack.c.h.bf16 %v11181_v48  ;;  %v1287_v11 = vmul.f32 %v8687_v19, %v8687_v19 }
 0x3ef   :  { %v8694_v8 = vsub.f32 %v11182_v36, %v6985_v31 }
 0x3f0   :  { %v1538_v6 = vadd.f32 %v1537_v46, %v1283_v33  ;;  %v8701_v18 = vsub.f32 %v11184_v23, %v6985_v31  ;;  %v11186_v46 = vld [vmem:[#allocation77_spill] sm:$0xff] }
 0x3f1   :  { %11183 = vst [vmem:[#allocation76_spill] sm:$0xff] %v8694_v8  ;;  %v11187_v33 = vunpack.c.l.bf16 %v11186_v46  ;;  %v1288_v36 = vmul.f32 %v8694_v8, %v8694_v8 }
 0x3f2   :  { %v1539_v43 = vadd.f32 %v1538_v6, %v1284_v41  ;;  %11185 = vst [vmem:[#allocation210_spill] sm:$0xff] %v8701_v18  ;;  %v11189_v41 = vunpack.c.h.bf16 %v11186_v46  ;;  %v1289_v48 = vmul.f32 %v8701_v18, %v8701_v18 }
 0x3f3   :  { %v8708_v26 = vsub.f32 %v11187_v33, %v6985_v31 }
 0x3f4   :  { %v1540_v0 = vadd.f32 %v1539_v43, %v1285_v21  ;;  %v8715_v6 = vsub.f32 %v11189_v41, %v6985_v31  ;;  %v11191_v43 = vld [vmem:[#allocation78_spill] sm:$0xff] }
 0x3f5   :  { %11188 = vst [vmem:[#allocation77_spill] sm:$0xff] %v8708_v26  ;;  %v11192_v21 = vunpack.c.l.bf16 %v11191_v43  ;;  %v1290_v33 = vmul.f32 %v8708_v26, %v8708_v26 }
 0x3f6   :  { %v1541_v28 = vadd.f32 %v1540_v0, %v1286_v38  ;;  %11190 = vst [vmem:[#allocation211_spill] sm:$0xff] %v8715_v6  ;;  %v11194_v38 = vunpack.c.h.bf16 %v11191_v43  ;;  %v1291_v46 = vmul.f32 %v8715_v6, %v8715_v6 }
 0x3f7   :  { %v8722_v19 = vsub.f32 %v11192_v21, %v6985_v31 }
 0x3f8   :  { %v1542_v23 = vadd.f32 %v1541_v28, %v1287_v11  ;;  %v8729_v0 = vsub.f32 %v11194_v38, %v6985_v31  ;;  %v11196_v28 = vld [vmem:[#allocation79_spill] sm:$0xff] }
 0x3f9   :  { %11193 = vst [vmem:[#allocation78_spill] sm:$0xff] %v8722_v19  ;;  %v11197_v11 = vunpack.c.l.bf16 %v11196_v28  ;;  %v1292_v21 = vmul.f32 %v8722_v19, %v8722_v19 }
 0x3fa   :  { %v1543_v1 = vadd.f32 %v1542_v23, %v1288_v36  ;;  %11195 = vst [vmem:[#allocation212_spill] sm:$0xff] %v8729_v0  ;;  %v11199_v36 = vunpack.c.h.bf16 %v11196_v28  ;;  %v1293_v43 = vmul.f32 %v8729_v0, %v8729_v0 }
 0x3fb   :  { %v8736_v18 = vsub.f32 %v11197_v11, %v6985_v31 }
 0x3fc   :  { %v1544_v41 = vadd.f32 %v1543_v1, %v1289_v48  ;;  %v8743_v23 = vsub.f32 %v11199_v36, %v6985_v31  ;;  %v11201_v1 = vld [vmem:[#allocation80_spill] sm:$0xff] }
 0x3fd   :  { %11198 = vst [vmem:[#allocation79_spill] sm:$0xff] %v8736_v18  ;;  %v11202_v48 = vunpack.c.l.bf16 %v11201_v1  ;;  %v1294_v11 = vmul.f32 %v8736_v18, %v8736_v18 }
 0x3fe   :  { %v1545_v8 = vadd.f32 %v1544_v41, %v1290_v33  ;;  %11200 = vst [vmem:[#allocation213_spill] sm:$0xff] %v8743_v23  ;;  %v11204_v33 = vunpack.c.h.bf16 %v11201_v1  ;;  %v1295_v28 = vmul.f32 %v8743_v23, %v8743_v23 }
 0x3ff   :  { %v8750_v6 = vsub.f32 %v11202_v48, %v6985_v31 }
 0x400   :  { %v1546_v38 = vadd.f32 %v1545_v8, %v1291_v46  ;;  %v8757_v41 = vsub.f32 %v11204_v33, %v6985_v31  ;;  %v11206_v8 = vunpack.c.l.bf16 %v6975_v52 }
 0x401   :  { %11203 = vst [vmem:[#allocation80_spill] sm:$0xff] %v8750_v6  ;;  %v1296_v48 = vmul.f32 %v8750_v6, %v8750_v6 }
 0x402   :  { %v1547_v26 = vadd.f32 %v1546_v38, %v1292_v21  ;;  %11205 = vst [vmem:[#allocation214_spill] sm:$0xff] %v8757_v41  ;;  %v8764_v46 = vsub.f32 %v11206_v8, %v6985_v31  ;;  %v11208_v21 = vunpack.c.h.bf16 %v6975_v52  ;;  %v1297_v1 = vmul.f32 %v8757_v41, %v8757_v41 }
 0x403   :  { %v1561_v52 = vmul.f32 0.0, %v6985_v31 }
 0x404   :  { %v1548_v36 = vadd.f32 %v1547_v26, %v1293_v43  ;;  %11207 = vst [vmem:[#allocation215_spill] sm:$0xff] %v8764_v46  ;;  %v8771_v38 = vsub.f32 %v11208_v21, %v6985_v31  ;;  %v1298_v26 = vmul.f32 %v8764_v46, %v8764_v46 }
 0x405   :  { %v1562_v41 = vmul.f32 %v1561_v52, %v6985_v31  ;;  %v8789_v31 = vld [vmem:[%s9950_s2] ss:$0 sm:$0xff] }
 0x406   :  { %v1549_v0 = vadd.f32 %v1548_v36, %v1294_v11  ;;  %11209 = vst [vmem:[#allocation216_spill] sm:$0xff] %v8771_v38  ;;  %v1299_v8 = vmul.f32 %v8771_v38, %v8771_v38 }
 0x408   :  { %v1550_v33 = vadd.f32 %v1549_v0, %v1295_v28 }
 0x40a   :  { %v1551_v43 = vadd.f32 %v1550_v33, %v1296_v48  ;;  %v1571_v33 = vlaneseq }
 0x40c   :  { %v1552_v23 = vadd.f32 %v1551_v43, %v1297_v1  ;;  %v1572_v38 = vshrl.u32 %v1571_v33, 7  ;;  %v11212_v43 = vld [vmem:[#allocation83_spill] sm:$0xff] }
 0x40e   :  { %v1553_v18 = vadd.f32 %v1552_v23, %v1298_v26 }
 0x410   :  { %v1554_v6 = vadd.f32 %v1553_v18, %v1299_v8  ;;  %v1566_v18 = vld [vmem:[%s9949_s1] sm:$0x1] }
 0x412   :  { %v1555_v11 = vrot.slane %v1554_v6, 4 }
 0x414   :  { %v1556_v36 = vadd.f32 %v1555_v11, %v1554_v6  ;;  %v1573_v6 = vsub.s32 0, %v1572_v38  ;;  %v11213_v11 = vld [vmem:[#allocation84_spill] sm:$0xff] }
 0x416   :  { %v1557_v19 = vrot.slane %v1556_v36, 2 }
 0x418   :  { %v1558_v21 = vadd.f32 %v1557_v19, %v1556_v36 }
 0x41a   :  { %v1559_v51 = vrot.slane %v1558_v21, 1 }
 0x41c   :  { %v1560_v0 = vadd.f32 %v1559_v51, %v1558_v21  ;;  %v11210_v51 = vld [vmem:[#allocation81_spill] sm:$0xff] }
 0x41d   :  { %v11214_v21 = vld [vmem:[#allocation85_spill] sm:$0xff] }
 0x41e   :  { %v1563_v28 = vsub.f32 %v1560_v0, %v1562_v41  ;;  %v11211_v41 = vld [vmem:[#allocation82_spill] sm:$0xff] }
 0x420   :  { %v1564_v53 = vmul.f32 0.00048828125, %v1563_v28 }
 0x422   :  { %v1565_v46 = vmax.f32 %v1564_v53, 0.0 }
 0x424   :  { %v1567_v48 = vadd.f32 1e-05, %v1565_v46 }
 0x426   :  { %5554 = vrsqrt.f32 %v1567_v48 }
 0x430   :  { %v5555_v23 = vpop.eup %5554 }
 0x431   :  { %v1569_v1 = vmul.f32 %v5555_v23, %v1566_v18 }
 0x433   :  { %v8784_v26 = vrot.slane %v1569_v1, %v1573_v6 }
 0x435   :  { %v1576_v53 = vmul.f32 %v8784_v26, %v6990_v3  ;;  %v1577_v19 = vmul.f32 %v8784_v26, %v11210_v51  ;;  %v1578_v46 = vmul.f32 %v8784_v26, %v11211_v41  ;;  %v1579_v38 = vmul.f32 %v8784_v26, %v11212_v43 }
 0x436   :  { %v1580_v8 = vmul.f32 %v8784_v26, %v7014_v16  ;;  %v1581_v36 = vmul.f32 %v8784_v26, %v11213_v11  ;;  %v1582_v52 = vmul.f32 %v8784_v26, %v7028_v2  ;;  %v1583_v3 = vmul.f32 %v8784_v26, %v11214_v21 }
 0x437   :  { %v1839_v0 = vadd.f32 %v8789_v31, %v1576_v53  ;;  %v1840_v28 = vadd.f32 %v8789_v31, %v1577_v19  ;;  %v1841_v48 = vadd.f32 %v8789_v31, %v1578_v46  ;;  %v1842_v33 = vadd.f32 %v8789_v31, %v1579_v38 }
 0x438   :  { %v1843_v18 = vadd.f32 %v8789_v31, %v1580_v8  ;;  %v1844_v16 = vadd.f32 %v8789_v31, %v1581_v36  ;;  %v1845_v6 = vadd.f32 %v8789_v31, %v1582_v52  ;;  %v1846_v23 = vadd.f32 %v8789_v31, %v1583_v3  ;;  %v11215_v8 = vld [vmem:[#allocation86_spill] sm:$0xff] }
 0x439   :  { %v2095_v2 = vmax.f32 %v1839_v0, 0.0  ;;  %v2096_v1 = vmax.f32 %v1840_v28, 0.0  ;;  %v2097_v51 = vmax.f32 %v1841_v48, 0.0  ;;  %v2098_v41 = vmax.f32 %v1842_v33, 0.0  ;;  %v11216_v0 = vld [vmem:[#allocation87_spill] sm:$0xff] }
 0x43a   :  { %v2099_v43 = vmax.f32 %v1843_v18, 0.0  ;;  %v2100_v53 = vmax.f32 %v1844_v16, 0.0  ;;  %v2101_v11 = vmax.f32 %v1845_v6, 0.0  ;;  %v2102_v19 = vmax.f32 %v1846_v23, 0.0  ;;  %v11217_v18 = vld [vmem:[#allocation88_spill] sm:$0xff] }
 0x43b   :  { %v4663_v21 = vpack.c.bf16 %v2096_v1, %v2095_v2  ;;  %v4668_v46 = vpack.c.bf16 %v2098_v41, %v2097_v51  ;;  %v1584_v38 = vmul.f32 %v8784_v26, %v7042_v4  ;;  %v1585_v36 = vmul.f32 %v8784_v26, %v11215_v8  ;;  %v11218_v2 = vld [vmem:[#allocation89_spill] sm:$0xff] }
 0x43c   :  { %v4673_v56 = vpack.c.bf16 %v2100_v53, %v2099_v43  ;;  %v4678_v52 = vpack.c.bf16 %v2102_v19, %v2101_v11  ;;  %v1586_v3 = vmul.f32 %v8784_v26, %v7056_v13  ;;  %v1587_v28 = vmul.f32 %v8784_v26, %v11216_v0 }
 0x43d   :  { %4664 = vst [vmem:[%s9951_s3] sm:$0xff] %v4663_v21   ;;  %5427 = vst [vmem:[%s9951_s3 + $0x8] sm:$0xff] %v4668_v46   ;;  %v1847_v4 = vadd.f32 %v8789_v31, %v1584_v38  ;;  %v1848_v48 = vadd.f32 %v8789_v31, %v1585_v36  ;;  %v1588_v33 = vmul.f32 %v8784_v26, %v7070_v5 }
 0x43e   :  { %v1589_v13 = vmul.f32 %v8784_v26, %v11217_v18  ;;  %5428 = vst [vmem:[%s9951_s3 + $0x10] sm:$0xff] %v4673_v56   ;;  %5429 = vst [vmem:[%s9951_s3 + $0x18] sm:$0xff] %v4678_v52   ;;  %v1849_v16 = vadd.f32 %v8789_v31, %v1586_v3  ;;  %v1850_v6 = vadd.f32 %v8789_v31, %v1587_v28  ;;  %v11219_v3 = vld [vmem:[#allocation90_spill] sm:$0xff] }
 0x43f   :  { %v1590_v23 = vmul.f32 %v8784_v26, %v7084_v10  ;;  %v1591_v5 = vmul.f32 %v8784_v26, %v11218_v2  ;;  %v2103_v1 = vmax.f32 %v1847_v4, 0.0  ;;  %v2104_v51 = vmax.f32 %v1848_v48, 0.0 }
 0x440   :  { %v1851_v41 = vadd.f32 %v8789_v31, %v1588_v33  ;;  %v1852_v56 = vadd.f32 %v8789_v31, %v1589_v13  ;;  %v2105_v43 = vmax.f32 %v1849_v16, 0.0  ;;  %v2106_v53 = vmax.f32 %v1850_v6, 0.0  ;;  %v11220_v33 = vld [vmem:[#allocation91_spill] sm:$0xff]  ;;  %v11221_v6 = vld [vmem:[#allocation92_spill] sm:$0xff] }
 0x441   :  { %v1853_v11 = vadd.f32 %v8789_v31, %v1590_v23  ;;  %v1854_v19 = vadd.f32 %v8789_v31, %v1591_v5  ;;  %v4683_v21 = vpack.c.bf16 %v2104_v51, %v2103_v1  ;;  %v1592_v10 = vmul.f32 %v8784_v26, %v7098_v15 }
 0x442   :  { %v2107_v46 = vmax.f32 %v1851_v41, 0.0  ;;  %v2108_v38 = vmax.f32 %v1852_v56, 0.0  ;;  %v4688_v8 = vpack.c.bf16 %v2106_v53, %v2105_v43  ;;  %v1593_v0 = vmul.f32 %v8784_v26, %v11219_v3  ;;  %v11222_v56 = vld [vmem:[#allocation93_spill] sm:$0xff] }
 0x443   :  { %v2109_v36 = vmax.f32 %v1853_v11, 0.0  ;;  %v2110_v52 = vmax.f32 %v1854_v19, 0.0  ;;  %5430 = vst [vmem:[%s9951_s3 + $0x20] sm:$0xff] %v4683_v21   ;;  %v1855_v4 = vadd.f32 %v8789_v31, %v1592_v10  ;;  %v1594_v48 = vmul.f32 %v8784_v26, %v7112_v20 }
 0x444   :  { %v4693_v28 = vpack.c.bf16 %v2108_v38, %v2107_v46  ;;  %v1595_v18 = vmul.f32 %v8784_v26, %v11220_v33  ;;  %5431 = vst [vmem:[%s9951_s3 + $0x28] sm:$0xff] %v4688_v8   ;;  %v1856_v13 = vadd.f32 %v8789_v31, %v1593_v0  ;;  %v1596_v16 = vmul.f32 %v8784_v26, %v7126_v25 }
 0x445   :  { %v4698_v15 = vpack.c.bf16 %v2110_v52, %v2109_v36  ;;  %v1597_v23 = vmul.f32 %v8784_v26, %v11221_v6  ;;  %v2111_v20 = vmax.f32 %v1855_v4, 0.0  ;;  %v1857_v2 = vadd.f32 %v8789_v31, %v1594_v48  ;;  %v11223_v52 = vld [vmem:[#allocation94_spill] sm:$0xff]  ;;  %v11224_v48 = vld [vmem:[#allocation95_spill] sm:$0xff] }
 0x446   :  { %5432 = vst [vmem:[%s9951_s3 + $0x30] sm:$0xff] %v4693_v28   ;;  %v1858_v5 = vadd.f32 %v8789_v31, %v1595_v18  ;;  %v1598_v1 = vmul.f32 %v8784_v26, %v7140_v30  ;;  %v2112_v25 = vmax.f32 %v1856_v13, 0.0  ;;  %v1859_v51 = vadd.f32 %v8789_v31, %v1596_v16  ;;  %v11225_v16 = vld [vmem:[#allocation96_spill] sm:$0xff] }
 0x447   :  { %5433 = vst [vmem:[%s9951_s3 + $0x38] sm:$0xff] %v4698_v15   ;;  %v1860_v41 = vadd.f32 %v8789_v31, %v1597_v23  ;;  %v1599_v43 = vmul.f32 %v8784_v26, %v11222_v56  ;;  %v2113_v53 = vmax.f32 %v1857_v2, 0.0  ;;  %v1600_v21 = vmul.f32 %v8784_v26, %v7154_v35 }
 0x448   :  { %v2114_v11 = vmax.f32 %v1858_v5, 0.0  ;;  %v1861_v19 = vadd.f32 %v8789_v31, %v1598_v1  ;;  %v4703_v30 = vpack.c.bf16 %v2112_v25, %v2111_v20  ;;  %v2115_v46 = vmax.f32 %v1859_v51, 0.0  ;;  %v11226_v25 = vld [vmem:[#allocation97_spill] sm:$0xff] }
 0x449   :  { %v2116_v38 = vmax.f32 %v1860_v41, 0.0  ;;  %v1862_v10 = vadd.f32 %v8789_v31, %v1599_v43  ;;  %v1601_v3 = vmul.f32 %v8784_v26, %v11223_v52  ;;  %v1863_v0 = vadd.f32 %v8789_v31, %v1600_v21 }
 0x44a   :  { %v4708_v8 = vpack.c.bf16 %v2114_v11, %v2113_v53  ;;  %v2117_v36 = vmax.f32 %v1861_v19, 0.0  ;;  %5434 = vst [vmem:[%s9951_s3 + $0x40] sm:$0xff] %v4703_v30   ;;  %v1602_v35 = vmul.f32 %v8784_v26, %v7168_v40  ;;  %v1603_v33 = vmul.f32 %v8784_v26, %v11224_v48  ;;  %v11229_v48 = vld [vmem:[#allocation100_spill] sm:$0xff] }
 0x44b   :  { %v4713_v28 = vpack.c.bf16 %v2116_v38, %v2115_v46  ;;  %v2118_v4 = vmax.f32 %v1862_v10, 0.0  ;;  %v1864_v18 = vadd.f32 %v8789_v31, %v1601_v3  ;;  %v2119_v15 = vmax.f32 %v1863_v0, 0.0  ;;  %v11227_v38 = vld [vmem:[#allocation98_spill] sm:$0xff]  ;;  %v11228_v3 = vld [vmem:[#allocation99_spill] sm:$0xff] }
 0x44c   :  { %5435 = vst [vmem:[%s9951_s3 + $0x48] sm:$0xff] %v4708_v8   ;;  %v1604_v13 = vmul.f32 %v8784_v26, %v7182_v45  ;;  %v1605_v6 = vmul.f32 %v8784_v26, %v11225_v16  ;;  %v1865_v23 = vadd.f32 %v8789_v31, %v1602_v35  ;;  %v1866_v20 = vadd.f32 %v8789_v31, %v1603_v33 }
 0x44d   :  { %5436 = vst [vmem:[%s9951_s3 + $0x50] sm:$0xff] %v4713_v28   ;;  %v4718_v40 = vpack.c.bf16 %v2118_v4, %v2117_v36  ;;  %v1606_v2 = vmul.f32 %v8784_v26, %v7196_v50  ;;  %v2120_v5 = vmax.f32 %v1864_v18, 0.0  ;;  %v1607_v51 = vmul.f32 %v8784_v26, %v11226_v25 }
 0x44e   :  { %v1867_v1 = vadd.f32 %v8789_v31, %v1604_v13  ;;  %v1868_v45 = vadd.f32 %v8789_v31, %v1605_v6  ;;  %v2121_v41 = vmax.f32 %v1865_v23, 0.0  ;;  %v2122_v56 = vmax.f32 %v1866_v20, 0.0 }
 0x44f   :  { %5437 = vst [vmem:[%s9951_s3 + $0x58] sm:$0xff] %v4718_v40   ;;  %v1869_v43 = vadd.f32 %v8789_v31, %v1606_v2  ;;  %v1608_v53 = vmul.f32 %v8784_v26, %v7210_v55  ;;  %v4723_v50 = vpack.c.bf16 %v2120_v5, %v2119_v15  ;;  %v1870_v21 = vadd.f32 %v8789_v31, %v1607_v51  ;;  %v11230_v40 = vld [vmem:[#allocation101_spill] sm:$0xff] }
 0x450   :  { %v2123_v11 = vmax.f32 %v1867_v1, 0.0  ;;  %v2124_v19 = vmax.f32 %v1868_v45, 0.0  ;;  %v4728_v30 = vpack.c.bf16 %v2122_v56, %v2121_v41  ;;  %v1609_v10 = vmul.f32 %v8784_v26, %v11227_v38 }
 0x451   :  { %v2125_v46 = vmax.f32 %v1869_v43, 0.0  ;;  %v1871_v8 = vadd.f32 %v8789_v31, %v1608_v53  ;;  %5438 = vst [vmem:[%s9951_s3 + $0x60] sm:$0xff] %v4723_v50   ;;  %v2126_v52 = vmax.f32 %v1870_v21, 0.0  ;;  %v1610_v55 = vmul.f32 %v8784_v26, %v7224_v60  ;;  %v11231_v43 = vld [vmem:[#allocation102_spill] sm:$0xff]  ;;  %v11232_v21 = vld [vmem:[#allocation103_spill] sm:$0xff] }
 0x452   :  { %v4733_v36 = vpack.c.bf16 %v2124_v19, %v2123_v11  ;;  %v1611_v0 = vmul.f32 %v8784_v26, %v11228_v3  ;;  %5439 = vst [vmem:[%s9951_s3 + $0x68] sm:$0xff] %v4728_v30   ;;  %v1872_v28 = vadd.f32 %v8789_v31, %v1609_v10  ;;  %v1612_v35 = vmul.f32 %v8784_v26, %v7238_v9 }
 0x453   :  { %v2127_v4 = vmax.f32 %v1871_v8, 0.0  ;;  %v1613_v33 = vmul.f32 %v8784_v26, %v11229_v48  ;;  %v4738_v60 = vpack.c.bf16 %v2126_v52, %v2125_v46  ;;  %v1873_v18 = vadd.f32 %v8789_v31, %v1610_v55  ;;  %v11233_v8 = vld [vmem:[#allocation104_spill] sm:$0xff] }
 0x454   :  { %5440 = vst [vmem:[%s9951_s3 + $0x70] sm:$0xff] %v4733_v36   ;;  %v1874_v15 = vadd.f32 %v8789_v31, %v1611_v0  ;;  %v1614_v13 = vmul.f32 %v8784_v26, %v7252_v22  ;;  %v2128_v16 = vmax.f32 %v1872_v28, 0.0  ;;  %v1875_v6 = vadd.f32 %v8789_v31, %v1612_v35 }
 0x455   :  { %v1876_v9 = vadd.f32 %v8789_v31, %v1613_v33  ;;  %v1615_v23 = vmul.f32 %v8784_v26, %v11230_v40  ;;  %5441 = vst [vmem:[%s9951_s3 + $0x78] sm:$0xff] %v4738_v60   ;;  %v2129_v20 = vmax.f32 %v1873_v18, 0.0  ;;  %v1616_v1 = vmul.f32 %v8784_v26, %v7266_v34  ;;  %v11235_v40 = vld [vmem:[#allocation106_spill] sm:$0xff] }
 0x456   :  { %v2130_v2 = vmax.f32 %v1874_v15, 0.0  ;;  %v1877_v5 = vadd.f32 %v8789_v31, %v1614_v13  ;;  %v4743_v22 = vpack.c.bf16 %v2128_v16, %v2127_v4  ;;  %v2131_v45 = vmax.f32 %v1875_v6, 0.0  ;;  %v11234_v4 = vld [vmem:[#allocation105_spill] sm:$0xff] }
 0x457   :  { %v2132_v25 = vmax.f32 %v1876_v9, 0.0  ;;  %v1878_v51 = vadd.f32 %v8789_v31, %v1615_v23  ;;  %v1617_v53 = vmul.f32 %v8784_v26, %v11231_v43  ;;  %v1879_v50 = vadd.f32 %v8789_v31, %v1616_v1  ;;  %v11236_v1 = vld [vmem:[#allocation107_spill] sm:$0xff] }
 0x458   :  { %v4748_v41 = vpack.c.bf16 %v2130_v2, %v2129_v20  ;;  %v2133_v56 = vmax.f32 %v1877_v5, 0.0  ;;  %5442 = vst [vmem:[%s9951_s3 + $0x80] sm:$0xff] %v4743_v22   ;;  %v1618_v34 = vmul.f32 %v8784_v26, %v7280_v47  ;;  %v1619_v30 = vmul.f32 %v8784_v26, %v11232_v21 }
 0x459   :  { %v4753_v11 = vpack.c.bf16 %v2132_v25, %v2131_v45  ;;  %v2134_v19 = vmax.f32 %v1878_v51, 0.0  ;;  %v1880_v46 = vadd.f32 %v8789_v31, %v1617_v53  ;;  %v2135_v38 = vmax.f32 %v1879_v50, 0.0 }
 0x45a   :  { %5443 = vst [vmem:[%s9951_s3 + $0x88] sm:$0xff] %v4748_v41   ;;  %v1620_v10 = vmul.f32 %v8784_v26, %v7294_v59  ;;  %v1621_v36 = vmul.f32 %v8784_v26, %v11233_v8  ;;  %v1881_v52 = vadd.f32 %v8789_v31, %v1618_v34  ;;  %v1882_v55 = vadd.f32 %v8789_v31, %v1619_v30  ;;  %v11237_v41 = vld [vmem:[#allocation108_spill] sm:$0xff]  ;;  %v11238_v34 = vld [vmem:[#allocation109_spill] sm:$0xff] }
 0x45b   :  { %5444 = vst [vmem:[%s9951_s3 + $0x90] sm:$0xff] %v4753_v11   ;;  %v4758_v47 = vpack.c.bf16 %v2134_v19, %v2133_v56  ;;  %v1622_v3 = vmul.f32 %v8784_v26, %v7308_v27  ;;  %v2136_v0 = vmax.f32 %v1880_v46, 0.0  ;;  %v1623_v35 = vmul.f32 %v8784_v26, %v11234_v4 }
 0x45c   :  { %v1883_v28 = vadd.f32 %v8789_v31, %v1620_v10  ;;  %v1884_v59 = vadd.f32 %v8789_v31, %v1621_v36  ;;  %v2137_v48 = vmax.f32 %v1881_v52, 0.0  ;;  %v2138_v33 = vmax.f32 %v1882_v55, 0.0 }
 0x45d   :  { %5445 = vst [vmem:[%s9951_s3 + $0x98] sm:$0xff] %v4758_v47   ;;  %v1885_v60 = vadd.f32 %v8789_v31, %v1622_v3  ;;  %v1624_v18 = vmul.f32 %v8784_v26, %v7322_v57  ;;  %v4763_v27 = vpack.c.bf16 %v2136_v0, %v2135_v38  ;;  %v1886_v16 = vadd.f32 %v8789_v31, %v1623_v35  ;;  %v11239_v3 = vld [vmem:[#allocation110_spill] sm:$0xff]  ;;  %v11240_v35 = vld [vmem:[#allocation111_spill] sm:$0xff] }
 0x45e   :  { %v2139_v15 = vmax.f32 %v1883_v28, 0.0  ;;  %v2140_v13 = vmax.f32 %v1884_v59, 0.0  ;;  %v4768_v6 = vpack.c.bf16 %v2138_v33, %v2137_v48  ;;  %v1625_v23 = vmul.f32 %v8784_v26, %v11235_v40 }
 0x45f   :  { %v2141_v9 = vmax.f32 %v1885_v60, 0.0  ;;  %v1887_v20 = vadd.f32 %v8789_v31, %v1624_v18  ;;  %5446 = vst [vmem:[%s9951_s3 + $0xa0] sm:$0xff] %v4763_v27   ;;  %v2142_v5 = vmax.f32 %v1886_v16, 0.0  ;;  %v1626_v57 = vmul.f32 %v8784_v26, %v7336_v62  ;;  %v11241_v27 = vld [vmem:[#allocation112_spill] sm:$0xff] }
 0x460   :  { %v4773_v2 = vpack.c.bf16 %v2140_v13, %v2139_v15  ;;  %v1627_v22 = vmul.f32 %v8784_v26, %v11236_v1  ;;  %5447 = vst [vmem:[%s9951_s3 + $0xa8] sm:$0xff] %v4768_v6   ;;  %v1888_v45 = vadd.f32 %v8789_v31, %v1625_v23  ;;  %v1628_v51 = vmul.f32 %v8784_v26, %v7350_v32  ;;  %v11242_v23 = vld [vmem:[#allocation113_spill] sm:$0xff] }
 0x461   :  { %v2143_v25 = vmax.f32 %v1887_v20, 0.0  ;;  %v1629_v56 = vmul.f32 %v8784_v26, %v11237_v41  ;;  %v4778_v62 = vpack.c.bf16 %v2142_v5, %v2141_v9  ;;  %v1889_v43 = vadd.f32 %v8789_v31, %v1626_v57 }
 0x462   :  { %5448 = vst [vmem:[%s9951_s3 + $0xb0] sm:$0xff] %v4773_v2   ;;  %v1890_v53 = vadd.f32 %v8789_v31, %v1627_v22  ;;  %v1630_v50 = vmul.f32 %v8784_v26, %v7364_v7  ;;  %v2144_v11 = vmax.f32 %v1888_v45, 0.0  ;;  %v1891_v19 = vadd.f32 %v8789_v31, %v1628_v51 }
 0x463   :  { %v1892_v32 = vadd.f32 %v8789_v31, %v1629_v56  ;;  %v1631_v21 = vmul.f32 %v8784_v26, %v11238_v34  ;;  %5449 = vst [vmem:[%s9951_s3 + $0xb8] sm:$0xff] %v4778_v62   ;;  %v2145_v30 = vmax.f32 %v1889_v43, 0.0  ;;  %v1632_v10 = vmul.f32 %v8784_v26, %v7378_v39  ;;  %v11243_v56 = vld [vmem:[#allocation114_spill] sm:$0xff] }
 0x464   :  { %v2146_v46 = vmax.f32 %v1890_v53, 0.0  ;;  %v1893_v38 = vadd.f32 %v8789_v31, %v1630_v50  ;;  %v4783_v7 = vpack.c.bf16 %v2144_v11, %v2143_v25  ;;  %v2147_v8 = vmax.f32 %v1891_v19, 0.0  ;;  %v11244_v11 = vld [vmem:[#allocation115_spill] sm:$0xff] }
 0x465   :  { %v2148_v36 = vmax.f32 %v1892_v32, 0.0  ;;  %v1894_v47 = vadd.f32 %v8789_v31, %v1631_v21  ;;  %v1633_v0 = vmul.f32 %v8784_v26, %v11239_v3  ;;  %v1895_v28 = vadd.f32 %v8789_v31, %v1632_v10 }
 0x466   :  { %v4788_v52 = vpack.c.bf16 %v2146_v46, %v2145_v30  ;;  %v2149_v55 = vmax.f32 %v1893_v38, 0.0  ;;  %5450 = vst [vmem:[%s9951_s3 + $0xc0] sm:$0xff] %v4783_v7   ;;  %v1634_v39 = vmul.f32 %v8784_v26, %v7392_v54  ;;  %v1635_v48 = vmul.f32 %v8784_v26, %v11240_v35  ;;  %v11245_v30 = vld [vmem:[#allocation116_spill] sm:$0xff] }
 0x467   :  { %v4793_v59 = vpack.c.bf16 %v2148_v36, %v2147_v8  ;;  %v2150_v4 = vmax.f32 %v1894_v47, 0.0  ;;  %v1896_v33 = vadd.f32 %v8789_v31, %v1633_v0  ;;  %v2151_v60 = vmax.f32 %v1895_v28, 0.0  ;;  %v11246_v47 = vld [vmem:[#allocation117_spill] sm:$0xff] }
 0x468   :  { %5451 = vst [vmem:[%s9951_s3 + $0xc8] sm:$0xff] %v4788_v52   ;;  %v1636_v18 = vmul.f32 %v8784_v26, %v7406_v14  ;;  %v1637_v15 = vmul.f32 %v8784_v26, %v11241_v27  ;;  %v1897_v13 = vadd.f32 %v8789_v31, %v1634_v39  ;;  %v1898_v16 = vadd.f32 %v8789_v31, %v1635_v48 }
 0x469   :  { %5452 = vst [vmem:[%s9951_s3 + $0xd0] sm:$0xff] %v4793_v59   ;;  %v4798_v54 = vpack.c.bf16 %v2150_v4, %v2149_v55  ;;  %v1638_v6 = vmul.f32 %v8784_v26, %v7420_v44  ;;  %v2152_v9 = vmax.f32 %v1896_v33, 0.0  ;;  %v1639_v20 = vmul.f32 %v8784_v26, %v11242_v23  ;;  %v11247_v33 = vld [vmem:[#allocation118_spill] sm:$0xff] }
 0x46a   :  { %v1899_v40 = vadd.f32 %v8789_v31, %v1636_v18  ;;  %v1900_v14 = vadd.f32 %v8789_v31, %v1637_v15  ;;  %v2153_v2 = vmax.f32 %v1897_v13, 0.0  ;;  %v2154_v5 = vmax.f32 %v1898_v16, 0.0 }
 0x46b   :  { %5453 = vst [vmem:[%s9951_s3 + $0xd8] sm:$0xff] %v4798_v54   ;;  %v1901_v57 = vadd.f32 %v8789_v31, %v1638_v6  ;;  %v1640_v1 = vmul.f32 %v8784_v26, %v7434_v49  ;;  %v4803_v44 = vpack.c.bf16 %v2152_v9, %v2151_v60  ;;  %v1902_v25 = vadd.f32 %v8789_v31, %v1639_v20  ;;  %v11248_v54 = vld [vmem:[#allocation119_spill] sm:$0xff] }
 0x46c   :  { %v2155_v22 = vmax.f32 %v1899_v40, 0.0  ;;  %v2156_v45 = vmax.f32 %v1900_v14, 0.0  ;;  %v4808_v51 = vpack.c.bf16 %v2154_v5, %v2153_v2  ;;  %v1641_v62 = vmul.f32 %v8784_v26, %v11243_v56  ;;  %v11249_v40 = vld [vmem:[#allocation120_spill] sm:$0xff] }
 0x46d   :  { %v2157_v41 = vmax.f32 %v1901_v57, 0.0  ;;  %v1903_v43 = vadd.f32 %v8789_v31, %v1640_v1  ;;  %5454 = vst [vmem:[%s9951_s3 + $0xe0] sm:$0xff] %v4803_v44   ;;  %v2158_v50 = vmax.f32 %v1902_v25, 0.0  ;;  %v1642_v49 = vmul.f32 %v8784_v26, %v7448_v42  ;;  %v11250_v1 = vld [vmem:[#allocation121_spill] sm:$0xff] }
 0x46e   :  { %v4813_v53 = vpack.c.bf16 %v2156_v45, %v2155_v22  ;;  %v1643_v19 = vmul.f32 %v8784_v26, %v11244_v11  ;;  %5455 = vst [vmem:[%s9951_s3 + $0xe8] sm:$0xff] %v4808_v51   ;;  %v1904_v32 = vadd.f32 %v8789_v31, %v1641_v62  ;;  %v1644_v21 = vmul.f32 %v8784_v26, %v7462_v37 }
 0x46f   :  { %v2159_v34 = vmax.f32 %v1903_v43, 0.0  ;;  %v1645_v46 = vmul.f32 %v8784_v26, %v11245_v30  ;;  %v4818_v42 = vpack.c.bf16 %v2158_v50, %v2157_v41  ;;  %v1905_v38 = vadd.f32 %v8789_v31, %v1642_v49  ;;  %v11251_v50 = vld [vmem:[#allocation122_spill] sm:$0xff] }
 0x470   :  { %5456 = vst [vmem:[%s9951_s3 + $0xf0] sm:$0xff] %v4813_v53   ;;  %v1906_v10 = vadd.f32 %v8789_v31, %v1643_v19  ;;  %v1646_v7 = vmul.f32 %v8784_v26, %v7476_v29  ;;  %v2160_v8 = vmax.f32 %v1904_v32, 0.0  ;;  %v1907_v36 = vadd.f32 %v8789_v31, %v1644_v21 }
 0x471   :  { %v1908_v37 = vadd.f32 %v8789_v31, %v1645_v46  ;;  %v1647_v52 = vmul.f32 %v8784_v26, %v11246_v47  ;;  %5457 = vst [vmem:[%s9951_s3 + $0xf8] sm:$0xff] %v4818_v42   ;;  %v2161_v55 = vmax.f32 %v1905_v38, 0.0  ;;  %v1648_v28 = vmul.f32 %v8784_v26, %v7490_v24  ;;  %v11253_v42 = vld [vmem:[#allocation124_spill] sm:$0xff] }
 0x472   :  { %v2162_v3 = vmax.f32 %v1906_v10, 0.0  ;;  %v1909_v0 = vadd.f32 %v8789_v31, %v1646_v7  ;;  %v4823_v29 = vpack.c.bf16 %v2160_v8, %v2159_v34  ;;  %v2163_v59 = vmax.f32 %v1907_v36, 0.0  ;;  %v11252_v34 = vld [vmem:[#allocation123_spill] sm:$0xff]  ;;  %v11254_v10 = vld [vmem:[#allocation125_spill] sm:$0xff] }
 0x473   :  { %v2164_v4 = vmax.f32 %v1908_v37, 0.0  ;;  %v1910_v39 = vadd.f32 %v8789_v31, %v1647_v52  ;;  %v1649_v60 = vmul.f32 %v8784_v26, %v11247_v33  ;;  %v1911_v18 = vadd.f32 %v8789_v31, %v1648_v28  ;;  %v11255_v37 = vld [vmem:[#allocation126_spill] sm:$0xff] }
 0x474   :  { %v4828_v35 = vpack.c.bf16 %v2162_v3, %v2161_v55  ;;  %v2165_v48 = vmax.f32 %v1909_v0, 0.0  ;;  %5458 = vst [vmem:[%s9951_s3 + $0x100] sm:$0xff] %v4823_v29   ;;  %v1650_v24 = vmul.f32 %v8784_v26, %v7504_v17  ;;  %v1651_v13 = vmul.f32 %v8784_v26, %v11248_v54  ;;  %v11256_v0 = vld [vmem:[#allocation127_spill] sm:$0xff] }
 0x475   :  { %v4833_v27 = vpack.c.bf16 %v2164_v4, %v2163_v59  ;;  %v2166_v15 = vmax.f32 %v1910_v39, 0.0  ;;  %v1912_v16 = vadd.f32 %v8789_v31, %v1649_v60  ;;  %v2167_v6 = vmax.f32 %v1911_v18, 0.0  ;;  %v11257_v39 = vld [vmem:[#allocation128_spill] sm:$0xff] }
 0x476   :  { %5459 = vst [vmem:[%s9951_s3 + $0x108] sm:$0xff] %v4828_v35   ;;  %v1652_v9 = vmul.f32 %v8784_v26, %v7518_v12  ;;  %v1653_v14 = vmul.f32 %v8784_v26, %v11249_v40  ;;  %v1913_v23 = vadd.f32 %v8789_v31, %v1650_v24  ;;  %v1914_v20 = vadd.f32 %v8789_v31, %v1651_v13  ;;  %v11258_v24 = vld [vmem:[#allocation129_spill] sm:$0xff] }
 0x477   :  { %5460 = vst [vmem:[%s9951_s3 + $0x110] sm:$0xff] %v4833_v27   ;;  %v4838_v17 = vpack.c.bf16 %v2166_v15, %v2165_v48  ;;  %v1654_v2 = vmul.f32 %v8784_v26, %v7532_v63  ;;  %v2168_v5 = vmax.f32 %v1912_v16, 0.0  ;;  %v1655_v44 = vmul.f32 %v8784_v26, %v11250_v1 }
 0x478   :  { %v1915_v57 = vadd.f32 %v8789_v31, %v1652_v9  ;;  %v1916_v12 = vadd.f32 %v8789_v31, %v1653_v14  ;;  %v2169_v22 = vmax.f32 %v1913_v23, 0.0  ;;  %v2170_v45 = vmax.f32 %v1914_v20, 0.0  ;;  %v11259_v9 = vld [vmem:[#allocation130_spill] sm:$0xff]  ;;  %v11260_v14 = vld [vmem:[#allocation131_spill] sm:$0xff] }
 0x479   :  { %5461 = vst [vmem:[%s9951_s3 + $0x118] sm:$0xff] %v4838_v17   ;;  %v1917_v25 = vadd.f32 %v8789_v31, %v1654_v2  ;;  %v1656_v51 = vmul.f32 %v8784_v26, %v7546_v61  ;;  %v4843_v63 = vpack.c.bf16 %v2168_v5, %v2167_v6  ;;  %v1918_v62 = vadd.f32 %v8789_v31, %v1655_v44  ;;  %v11261_v2 = vld [vmem:[#allocation132_spill] sm:$0xff] }
 0x47a   :  { %v2171_v41 = vmax.f32 %v1915_v57, 0.0  ;;  %v2172_v56 = vmax.f32 %v1916_v12, 0.0  ;;  %v4848_v43 = vpack.c.bf16 %v2170_v45, %v2169_v22  ;;  %v1657_v49 = vmul.f32 %v8784_v26, %v11251_v50  ;;  %v11262_v57 = vld [vmem:[#allocation133_spill] sm:$0xff]  ;;  %v11263_v45 = vld [vmem:[#allocation134_spill] sm:$0xff] }
 0x47b   :  { %v2173_v53 = vmax.f32 %v1917_v25, 0.0  ;;  %v1919_v11 = vadd.f32 %v8789_v31, %v1656_v51  ;;  %5462 = vst [vmem:[%s9951_s3 + $0x120] sm:$0xff] %v4843_v63   ;;  %v2174_v32 = vmax.f32 %v1918_v62, 0.0  ;;  %v1658_v61 = vmul.f32 %v8784_v26, %v7560_v58 }
 0x47c   :  { %v4853_v19 = vpack.c.bf16 %v2172_v56, %v2171_v41  ;;  %v1659_v21 = vmul.f32 %v8784_v26, %v11252_v34  ;;  %5463 = vst [vmem:[%s9951_s3 + $0x128] sm:$0xff] %v4848_v43   ;;  %v1920_v30 = vadd.f32 %v8789_v31, %v1657_v49  ;;  %v1660_v38 = vmul.f32 %v8784_v26, %v11253_v42  ;;  %v11264_v56 = vld [vmem:[#allocation135_spill] sm:$0xff]  ;;  %v11265_v49 = vld [vmem:[#allocation2_spill] sm:$0xff] }
 0x47d   :  { %v2175_v46 = vmax.f32 %v1919_v11, 0.0  ;;  %v1661_v7 = vmul.f32 %v8784_v26, %v11254_v10  ;;  %v4858_v58 = vpack.c.bf16 %v2174_v32, %v2173_v53  ;;  %v1921_v8 = vadd.f32 %v8789_v31, %v1658_v61 }
 0x47e   :  { %5464 = vst [vmem:[%s9951_s3 + $0x130] sm:$0xff] %v4853_v19   ;;  %v1922_v36 = vadd.f32 %v8789_v31, %v1659_v21  ;;  %v1662_v47 = vmul.f32 %v8784_v26, %v11255_v37  ;;  %v2176_v52 = vmax.f32 %v1920_v30, 0.0  ;;  %v1923_v55 = vadd.f32 %v8789_v31, %v1660_v38 }
 0x47f   :  { %v1924_v3 = vadd.f32 %v8789_v31, %v1661_v7  ;;  %v1663_v28 = vmul.f32 %v8784_v26, %v11256_v0  ;;  %5465 = vst [vmem:[%s9951_s3 + $0x138] sm:$0xff] %v4858_v58   ;;  %v2177_v29 = vmax.f32 %v1921_v8, 0.0  ;;  %v1664_v35 = vmul.f32 %v8784_v26, %v11257_v39  ;;  %v11267_v58 = vld [vmem:[#allocation3_spill] sm:$0xff]  ;;  %v11270_v0 = vld [vmem:[#allocation138_spill] sm:$0xff]  ;;  %v11271_v39 = vld [vmem:[#allocation5_spill] sm:$0xff] }
 0x480   :  { %v2178_v59 = vmax.f32 %v1922_v36, 0.0  ;;  %v1925_v4 = vadd.f32 %v8789_v31, %v1662_v47  ;;  %v4863_v48 = vpack.c.bf16 %v2176_v52, %v2175_v46  ;;  %v2179_v33 = vmax.f32 %v1923_v55, 0.0  ;;  %v11266_v46 = vld [vmem:[#allocation136_spill] sm:$0xff]  ;;  %v11268_v36 = vld [vmem:[#allocation137_spill] sm:$0xff] }
 0x481   :  { %v2180_v60 = vmax.f32 %v1924_v3, 0.0  ;;  %v1926_v18 = vadd.f32 %v8789_v31, %v1663_v28  ;;  %v1665_v54 = vmul.f32 %v8784_v26, %v11258_v24  ;;  %v1927_v13 = vadd.f32 %v8789_v31, %v1664_v35  ;;  %v11269_v55 = vld [vmem:[#allocation4_spill] sm:$0xff] }
 0x482   :  { %v4868_v27 = vpack.c.bf16 %v2178_v59, %v2177_v29  ;;  %v2181_v15 = vmax.f32 %v1925_v4, 0.0  ;;  %5466 = vst [vmem:[%s9951_s3 + $0x140] sm:$0xff] %v4863_v48   ;;  %v1666_v40 = vmul.f32 %v8784_v26, %v11259_v9  ;;  %v1667_v17 = vmul.f32 %v8784_v26, %v11260_v14 }
 0x483   :  { %v4873_v16 = vpack.c.bf16 %v2180_v60, %v2179_v33  ;;  %v2182_v6 = vmax.f32 %v1926_v18, 0.0  ;;  %v1928_v23 = vadd.f32 %v8789_v31, %v1665_v54  ;;  %v2183_v20 = vmax.f32 %v1927_v13, 0.0  ;;  %v11272_v18 = vld [vmem:[#allocation139_spill] sm:$0xff]  ;;  %v11273_v13 = vld [vmem:[#allocation6_spill] sm:$0xff] }
 0x484   :  { %5467 = vst [vmem:[%s9951_s3 + $0x148] sm:$0xff] %v4868_v27   ;;  %v1668_v5 = vmul.f32 %v8784_v26, %v11261_v2  ;;  %v1669_v12 = vmul.f32 %v8784_v26, %v11262_v57  ;;  %v1929_v44 = vadd.f32 %v8789_v31, %v1666_v40  ;;  %v1930_v22 = vadd.f32 %v8789_v31, %v1667_v17 }
 0x485   :  { %5468 = vst [vmem:[%s9951_s3 + $0x150] sm:$0xff] %v4873_v16   ;;  %v4878_v1 = vpack.c.bf16 %v2182_v6, %v2181_v15  ;;  %v1670_v25 = vmul.f32 %v8784_v26, %v11263_v45  ;;  %v2184_v51 = vmax.f32 %v1928_v23, 0.0  ;;  %v1671_v62 = vmul.f32 %v8784_v26, %v11264_v56  ;;  %v11278_v56 = vld [vmem:[#allocation142_spill] sm:$0xff] }
 0x486   :  { %v1931_v63 = vadd.f32 %v8789_v31, %v1668_v5  ;;  %v1932_v41 = vadd.f32 %v8789_v31, %v1669_v12  ;;  %v2185_v43 = vmax.f32 %v1929_v44, 0.0  ;;  %v2186_v53 = vmax.f32 %v1930_v22, 0.0  ;;  %v11276_v22 = vld [vmem:[#allocation141_spill] sm:$0xff] }
 0x487   :  { %5469 = vst [vmem:[%s9951_s3 + $0x158] sm:$0xff] %v4878_v1   ;;  %v1933_v50 = vadd.f32 %v8789_v31, %v1670_v25  ;;  %v1672_v11 = vmul.f32 %v8784_v26, %v11265_v49  ;;  %v4883_v19 = vpack.c.bf16 %v2184_v51, %v2183_v20  ;;  %v1934_v34 = vadd.f32 %v8789_v31, %v1671_v62  ;;  %v11274_v20 = vld [vmem:[#allocation140_spill] sm:$0xff]  ;;  %v11275_v1 = vld [vmem:[#allocation7_spill] sm:$0xff]  ;;  %v11279_v49 = vld [vmem:[#allocation9_spill] sm:$0xff] }
 0x488   :  { %v2187_v32 = vmax.f32 %v1931_v63, 0.0  ;;  %v2188_v61 = vmax.f32 %v1932_v41, 0.0  ;;  %v4888_v21 = vpack.c.bf16 %v2186_v53, %v2185_v43  ;;  %v1673_v42 = vmul.f32 %v8784_v26, %v11266_v46  ;;  %v11277_v63 = vld [vmem:[#allocation8_spill] sm:$0xff] }
 0x489   :  { %v2189_v30 = vmax.f32 %v1933_v50, 0.0  ;;  %v1935_v38 = vadd.f32 %v8789_v31, %v1672_v11  ;;  %5470 = vst [vmem:[%s9951_s3 + $0x160] sm:$0xff] %v4883_v19   ;;  %v2190_v7 = vmax.f32 %v1934_v34, 0.0  ;;  %v1674_v8 = vmul.f32 %v8784_v26, %v11267_v58  ;;  %v11280_v34 = vld [vmem:[#allocation143_spill] sm:$0xff] }
 0x48a   :  { %v4893_v10 = vpack.c.bf16 %v2188_v61, %v2187_v32  ;;  %v1675_v37 = vmul.f32 %v8784_v26, %v11268_v36  ;;  %5471 = vst [vmem:[%s9951_s3 + $0x168] sm:$0xff] %v4888_v21   ;;  %v1936_v47 = vadd.f32 %v8789_v31, %v1673_v42  ;;  %v1676_v3 = vmul.f32 %v8784_v26, %v11269_v55 }
 0x48b   :  { %v2191_v52 = vmax.f32 %v1935_v38, 0.0  ;;  %v1677_v28 = vmul.f32 %v8784_v26, %v11270_v0  ;;  %v4898_v29 = vpack.c.bf16 %v2190_v7, %v2189_v30  ;;  %v1937_v59 = vadd.f32 %v8789_v31, %v1674_v8  ;;  %v11281_v38 = vld [vmem:[#allocation10_spill] sm:$0xff] }
 0x48c   :  { %5472 = vst [vmem:[%s9951_s3 + $0x170] sm:$0xff] %v4893_v10   ;;  %v1938_v4 = vadd.f32 %v8789_v31, %v1675_v37  ;;  %v1678_v35 = vmul.f32 %v8784_v26, %v11271_v39  ;;  %v2192_v48 = vmax.f32 %v1936_v47, 0.0  ;;  %v1939_v33 = vadd.f32 %v8789_v31, %v1676_v3 }
 0x48d   :  { %v1940_v60 = vadd.f32 %v8789_v31, %v1677_v28  ;;  %v1679_v27 = vmul.f32 %v8784_v26, %v11272_v18  ;;  %5473 = vst [vmem:[%s9951_s3 + $0x178] sm:$0xff] %v4898_v29   ;;  %v2193_v15 = vmax.f32 %v1937_v59, 0.0  ;;  %v1680_v16 = vmul.f32 %v8784_v26, %v11273_v13  ;;  %v11283_v29 = vld [vmem:[#allocation11_spill] sm:$0xff]  ;;  %v11286_v18 = vld [vmem:[#allocation146_spill] sm:$0xff]  ;;  %v11287_v13 = vld [vmem:[#allocation13_spill] sm:$0xff] }
 0x48e   :  { %v2194_v24 = vmax.f32 %v1938_v4, 0.0  ;;  %v1941_v54 = vadd.f32 %v8789_v31, %v1678_v35  ;;  %v4903_v6 = vpack.c.bf16 %v2192_v48, %v2191_v52  ;;  %v2195_v9 = vmax.f32 %v1939_v33, 0.0  ;;  %v11282_v52 = vld [vmem:[#allocation144_spill] sm:$0xff]  ;;  %v11284_v4 = vld [vmem:[#allocation145_spill] sm:$0xff] }
 0x48f   :  { %v2196_v40 = vmax.f32 %v1940_v60, 0.0  ;;  %v1942_v14 = vadd.f32 %v8789_v31, %v1679_v27  ;;  %v1681_v2 = vmul.f32 %v8784_v26, %v11274_v20  ;;  %v1943_v5 = vadd.f32 %v8789_v31, %v1680_v16  ;;  %v11285_v33 = vld [vmem:[#allocation12_spill] sm:$0xff] }
 0x490   :  { %v4908_v17 = vpack.c.bf16 %v2194_v24, %v2193_v15  ;;  %v2197_v23 = vmax.f32 %v1941_v54, 0.0  ;;  %5474 = vst [vmem:[%s9951_s3 + $0x180] sm:$0xff] %v4903_v6   ;;  %v1682_v44 = vmul.f32 %v8784_v26, %v11275_v1  ;;  %v1683_v45 = vmul.f32 %v8784_v26, %v11276_v22 }
 0x491   :  { %v4913_v57 = vpack.c.bf16 %v2196_v40, %v2195_v9  ;;  %v2198_v12 = vmax.f32 %v1942_v14, 0.0  ;;  %v1944_v25 = vadd.f32 %v8789_v31, %v1681_v2  ;;  %v2199_v51 = vmax.f32 %v1943_v5, 0.0  ;;  %v11288_v14 = vld [vmem:[#allocation147_spill] sm:$0xff]  ;;  %v11289_v5 = vld [vmem:[#allocation14_spill] sm:$0xff] }
 0x492   :  { %5475 = vst [vmem:[%s9951_s3 + $0x188] sm:$0xff] %v4908_v17   ;;  %v1684_v41 = vmul.f32 %v8784_v26, %v11277_v63  ;;  %v1685_v62 = vmul.f32 %v8784_v26, %v11278_v56  ;;  %v1945_v53 = vadd.f32 %v8789_v31, %v1682_v44  ;;  %v1946_v50 = vadd.f32 %v8789_v31, %v1683_v45 }
 0x493   :  { %5476 = vst [vmem:[%s9951_s3 + $0x190] sm:$0xff] %v4913_v57   ;;  %v4918_v43 = vpack.c.bf16 %v2198_v12, %v2197_v23  ;;  %v1686_v11 = vmul.f32 %v8784_v26, %v11279_v49  ;;  %v2200_v19 = vmax.f32 %v1944_v25, 0.0  ;;  %v1687_v21 = vmul.f32 %v8784_v26, %v11280_v34  ;;  %v11294_v34 = vld [vmem:[#allocation150_spill] sm:$0xff] }
 0x494   :  { %v1947_v32 = vadd.f32 %v8789_v31, %v1684_v41  ;;  %v1948_v61 = vadd.f32 %v8789_v31, %v1685_v62  ;;  %v2201_v30 = vmax.f32 %v1945_v53, 0.0  ;;  %v2202_v46 = vmax.f32 %v1946_v50, 0.0  ;;  %v11292_v50 = vld [vmem:[#allocation149_spill] sm:$0xff] }
 0x495   :  { %5477 = vst [vmem:[%s9951_s3 + $0x198] sm:$0xff] %v4918_v43   ;;  %v1949_v42 = vadd.f32 %v8789_v31, %v1686_v11  ;;  %v1688_v10 = vmul.f32 %v8784_v26, %v11281_v38  ;;  %v4923_v7 = vpack.c.bf16 %v2200_v19, %v2199_v51  ;;  %v1950_v36 = vadd.f32 %v8789_v31, %v1687_v21  ;;  %v11290_v51 = vld [vmem:[#allocation148_spill] sm:$0xff]  ;;  %v11291_v43 = vld [vmem:[#allocation15_spill] sm:$0xff]  ;;  %v11295_v38 = vld [vmem:[#allocation17_spill] sm:$0xff] }
 0x496   :  { %v2203_v58 = vmax.f32 %v1947_v32, 0.0  ;;  %v2204_v8 = vmax.f32 %v1948_v61, 0.0  ;;  %v4928_v37 = vpack.c.bf16 %v2202_v46, %v2201_v30  ;;  %v1689_v55 = vmul.f32 %v8784_v26, %v11282_v52  ;;  %v11293_v32 = vld [vmem:[#allocation16_spill] sm:$0xff] }
 0x497   :  { %v2205_v47 = vmax.f32 %v1949_v42, 0.0  ;;  %v1951_v3 = vadd.f32 %v8789_v31, %v1688_v10  ;;  %5478 = vst [vmem:[%s9951_s3 + $0x1a0] sm:$0xff] %v4923_v7   ;;  %v2206_v28 = vmax.f32 %v1950_v36, 0.0  ;;  %v1690_v59 = vmul.f32 %v8784_v26, %v11283_v29  ;;  %v11296_v36 = vld [vmem:[#allocation151_spill] sm:$0xff] }
 0x498   :  { %v4933_v0 = vpack.c.bf16 %v2204_v8, %v2203_v58  ;;  %v1691_v39 = vmul.f32 %v8784_v26, %v11284_v4  ;;  %5479 = vst [vmem:[%s9951_s3 + $0x1a8] sm:$0xff] %v4928_v37   ;;  %v1952_v35 = vadd.f32 %v8789_v31, %v1689_v55  ;;  %v1692_v60 = vmul.f32 %v8784_v26, %v11285_v33 }
 0x499   :  { %v2207_v48 = vmax.f32 %v1951_v3, 0.0  ;;  %v1693_v27 = vmul.f32 %v8784_v26, %v11286_v18  ;;  %v4938_v15 = vpack.c.bf16 %v2206_v28, %v2205_v47  ;;  %v1953_v24 = vadd.f32 %v8789_v31, %v1690_v59  ;;  %v11297_v3 = vld [vmem:[#allocation18_spill] sm:$0xff] }
 0x49a   :  { %5480 = vst [vmem:[%s9951_s3 + $0x1b0] sm:$0xff] %v4933_v0   ;;  %v1954_v54 = vadd.f32 %v8789_v31, %v1691_v39  ;;  %v1694_v16 = vmul.f32 %v8784_v26, %v11287_v13  ;;  %v2208_v6 = vmax.f32 %v1952_v35, 0.0  ;;  %v1955_v9 = vadd.f32 %v8789_v31, %v1692_v60 }
 0x49b   :  { %v1956_v40 = vadd.f32 %v8789_v31, %v1693_v27  ;;  %v1695_v17 = vmul.f32 %v8784_v26, %v11288_v14  ;;  %5481 = vst [vmem:[%s9951_s3 + $0x1b8] sm:$0xff] %v4938_v15   ;;  %v2209_v23 = vmax.f32 %v1953_v24, 0.0  ;;  %v1696_v57 = vmul.f32 %v8784_v26, %v11289_v5  ;;  %v11299_v15 = vld [vmem:[#allocation19_spill] sm:$0xff]  ;;  %v11302_v14 = vld [vmem:[#allocation154_spill] sm:$0xff]  ;;  %v11303_v5 = vld [vmem:[#allocation21_spill] sm:$0xff] }
 0x49c   :  { %v2210_v20 = vmax.f32 %v1954_v54, 0.0  ;;  %v1957_v2 = vadd.f32 %v8789_v31, %v1694_v16  ;;  %v4943_v12 = vpack.c.bf16 %v2208_v6, %v2207_v48  ;;  %v2211_v1 = vmax.f32 %v1955_v9, 0.0  ;;  %v11298_v48 = vld [vmem:[#allocation152_spill] sm:$0xff]  ;;  %v11300_v54 = vld [vmem:[#allocation153_spill] sm:$0xff] }
 0x49d   :  { %v2212_v44 = vmax.f32 %v1956_v40, 0.0  ;;  %v1958_v22 = vadd.f32 %v8789_v31, %v1695_v17  ;;  %v1697_v63 = vmul.f32 %v8784_v26, %v11290_v51  ;;  %v1959_v41 = vadd.f32 %v8789_v31, %v1696_v57  ;;  %v11301_v9 = vld [vmem:[#allocation20_spill] sm:$0xff] }
 0x49e   :  { %v4948_v45 = vpack.c.bf16 %v2210_v20, %v2209_v23  ;;  %v2213_v25 = vmax.f32 %v1957_v2, 0.0  ;;  %5482 = vst [vmem:[%s9951_s3 + $0x1c0] sm:$0xff] %v4943_v12   ;;  %v1698_v53 = vmul.f32 %v8784_v26, %v11291_v43  ;;  %v1699_v49 = vmul.f32 %v8784_v26, %v11292_v50 }
 0x49f   :  { %v4953_v56 = vpack.c.bf16 %v2212_v44, %v2211_v1  ;;  %v2214_v62 = vmax.f32 %v1958_v22, 0.0  ;;  %v1960_v11 = vadd.f32 %v8789_v31, %v1697_v63  ;;  %v2215_v19 = vmax.f32 %v1959_v41, 0.0  ;;  %v11304_v22 = vld [vmem:[#allocation155_spill] sm:$0xff]  ;;  %v11305_v41 = vld [vmem:[#allocation22_spill] sm:$0xff] }
 0x4a0   :  { %5483 = vst [vmem:[%s9951_s3 + $0x1c8] sm:$0xff] %v4948_v45   ;;  %v1700_v61 = vmul.f32 %v8784_v26, %v11293_v32  ;;  %v1701_v21 = vmul.f32 %v8784_v26, %v11294_v34  ;;  %v1961_v46 = vadd.f32 %v8789_v31, %v1698_v53  ;;  %v1962_v42 = vadd.f32 %v8789_v31, %v1699_v49 }
 0x4a1   :  { %5484 = vst [vmem:[%s9951_s3 + $0x1d0] sm:$0xff] %v4953_v56   ;;  %v4958_v30 = vpack.c.bf16 %v2214_v62, %v2213_v25  ;;  %v1702_v10 = vmul.f32 %v8784_v26, %v11295_v38  ;;  %v2216_v7 = vmax.f32 %v1960_v11, 0.0  ;;  %v1703_v37 = vmul.f32 %v8784_v26, %v11296_v36  ;;  %v11310_v36 = vld [vmem:[#allocation158_spill] sm:$0xff] }
 0x4a2   :  { %v1963_v58 = vadd.f32 %v8789_v31, %v1700_v61  ;;  %v1964_v8 = vadd.f32 %v8789_v31, %v1701_v21  ;;  %v2217_v47 = vmax.f32 %v1961_v46, 0.0  ;;  %v2218_v52 = vmax.f32 %v1962_v42, 0.0  ;;  %v11308_v42 = vld [vmem:[#allocation157_spill] sm:$0xff] }
 0x4a3   :  { %5485 = vst [vmem:[%s9951_s3 + $0x1d8] sm:$0xff] %v4958_v30   ;;  %v1965_v55 = vadd.f32 %v8789_v31, %v1702_v10  ;;  %v1704_v0 = vmul.f32 %v8784_v26, %v11297_v3  ;;  %v4963_v28 = vpack.c.bf16 %v2216_v7, %v2215_v19  ;;  %v1966_v4 = vadd.f32 %v8789_v31, %v1703_v37  ;;  %v11306_v19 = vld [vmem:[#allocation156_spill] sm:$0xff]  ;;  %v11307_v30 = vld [vmem:[#allocation23_spill] sm:$0xff]  ;;  %v11311_v3 = vld [vmem:[#allocation25_spill] sm:$0xff] }
 0x4a4   :  { %v2219_v29 = vmax.f32 %v1963_v58, 0.0  ;;  %v2220_v59 = vmax.f32 %v1964_v8, 0.0  ;;  %v4968_v39 = vpack.c.bf16 %v2218_v52, %v2217_v47  ;;  %v1705_v33 = vmul.f32 %v8784_v26, %v11298_v48  ;;  %v11309_v58 = vld [vmem:[#allocation24_spill] sm:$0xff] }
 0x4a5   :  { %v2221_v35 = vmax.f32 %v1965_v55, 0.0  ;;  %v1967_v60 = vadd.f32 %v8789_v31, %v1704_v0  ;;  %5486 = vst [vmem:[%s9951_s3 + $0x1e0] sm:$0xff] %v4963_v28   ;;  %v2222_v27 = vmax.f32 %v1966_v4, 0.0  ;;  %v1706_v24 = vmul.f32 %v8784_v26, %v11299_v15  ;;  %v9373_v31 = vld [vmem:[%s9950_s2] ss:$0 sm:$0xff]  ;;  %v11312_v4 = vld [vmem:[#allocation159_spill] sm:$0xff] }
 0x4a6   :  { %v4973_v18 = vpack.c.bf16 %v2220_v59, %v2219_v29  ;;  %v1707_v13 = vmul.f32 %v8784_v26, %v11300_v54  ;;  %5487 = vst [vmem:[%s9951_s3 + $0x1e8] sm:$0xff] %v4968_v39   ;;  %v1968_v16 = vadd.f32 %v9373_v31, %v1705_v33  ;;  %v1708_v40 = vmul.f32 %v8784_v26, %v11301_v9 }
 0x4a7   :  { %v2223_v6 = vmax.f32 %v1967_v60, 0.0  ;;  %v1709_v17 = vmul.f32 %v8784_v26, %v11302_v14  ;;  %v4978_v23 = vpack.c.bf16 %v2222_v27, %v2221_v35  ;;  %v1969_v20 = vadd.f32 %v9373_v31, %v1706_v24  ;;  %v11313_v60 = vld [vmem:[#allocation26_spill] sm:$0xff] }
 0x4a8   :  { %5488 = vst [vmem:[%s9951_s3 + $0x1f0] sm:$0xff] %v4973_v18   ;;  %v1970_v2 = vadd.f32 %v9373_v31, %v1707_v13  ;;  %v1710_v57 = vmul.f32 %v8784_v26, %v11303_v5  ;;  %v2224_v12 = vmax.f32 %v1968_v16, 0.0  ;;  %v1971_v1 = vadd.f32 %v9373_v31, %v1708_v40 }
 0x4a9   :  { %v1972_v44 = vadd.f32 %v9373_v31, %v1709_v17  ;;  %v1711_v45 = vmul.f32 %v8784_v26, %v11304_v22  ;;  %5489 = vst [vmem:[%s9951_s3 + $0x1f8] sm:$0xff] %v4978_v23   ;;  %v2225_v25 = vmax.f32 %v1969_v20, 0.0  ;;  %v1712_v56 = vmul.f32 %v8784_v26, %v11305_v41  ;;  %v11315_v23 = vld [vmem:[#allocation27_spill] sm:$0xff]  ;;  %v11318_v22 = vld [vmem:[#allocation162_spill] sm:$0xff]  ;;  %v11319_v41 = vld [vmem:[#allocation29_spill] sm:$0xff] }
 0x4aa   :  { %v2226_v51 = vmax.f32 %v1970_v2, 0.0  ;;  %v1973_v63 = vadd.f32 %v9373_v31, %v1710_v57  ;;  %v4983_v62 = vpack.c.bf16 %v2224_v12, %v2223_v6  ;;  %v2227_v43 = vmax.f32 %v1971_v1, 0.0  ;;  %v11314_v6 = vld [vmem:[#allocation160_spill] sm:$0xff]  ;;  %v11316_v2 = vld [vmem:[#allocation161_spill] sm:$0xff] }
 0x4ab   :  { %v2228_v53 = vmax.f32 %v1972_v44, 0.0  ;;  %v1974_v50 = vadd.f32 %v9373_v31, %v1711_v45  ;;  %v1713_v32 = vmul.f32 %v8784_v26, %v11306_v19  ;;  %v1975_v61 = vadd.f32 %v9373_v31, %v1712_v56  ;;  %v11317_v1 = vld [vmem:[#allocation28_spill] sm:$0xff] }
 0x4ac   :  { %v4988_v49 = vpack.c.bf16 %v2226_v51, %v2225_v25  ;;  %v2229_v11 = vmax.f32 %v1973_v63, 0.0  ;;  %5490 = vst [vmem:[%s9951_s3 + $0x200] sm:$0xff] %v4983_v62   ;;  %v1714_v46 = vmul.f32 %v8784_v26, %v11307_v30  ;;  %v1715_v38 = vmul.f32 %v8784_v26, %v11308_v42 }
 0x4ad   :  { %v4993_v34 = vpack.c.bf16 %v2228_v53, %v2227_v43  ;;  %v2230_v21 = vmax.f32 %v1974_v50, 0.0  ;;  %v1976_v10 = vadd.f32 %v9373_v31, %v1713_v32  ;;  %v2231_v7 = vmax.f32 %v1975_v61, 0.0  ;;  %v11320_v50 = vld [vmem:[#allocation163_spill] sm:$0xff]  ;;  %v11321_v61 = vld [vmem:[#allocation30_spill] sm:$0xff] }
 0x4ae   :  { %5491 = vst [vmem:[%s9951_s3 + $0x208] sm:$0xff] %v4988_v49   ;;  %v1716_v8 = vmul.f32 %v8784_v26, %v11309_v58  ;;  %v1717_v37 = vmul.f32 %v8784_v26, %v11310_v36  ;;  %v1977_v52 = vadd.f32 %v9373_v31, %v1714_v46  ;;  %v1978_v55 = vadd.f32 %v9373_v31, %v1715_v38 }
 0x4af   :  { %5492 = vst [vmem:[%s9951_s3 + $0x210] sm:$0xff] %v4993_v34   ;;  %v4998_v47 = vpack.c.bf16 %v2230_v21, %v2229_v11  ;;  %v1718_v0 = vmul.f32 %v8784_v26, %v11311_v3  ;;  %v2232_v28 = vmax.f32 %v1976_v10, 0.0  ;;  %v1719_v39 = vmul.f32 %v8784_v26, %v11312_v4  ;;  %v11326_v4 = vld [vmem:[#allocation166_spill] sm:$0xff] }
 0x4b0   :  { %v1979_v29 = vadd.f32 %v9373_v31, %v1716_v8  ;;  %v1980_v59 = vadd.f32 %v9373_v31, %v1717_v37  ;;  %v2233_v35 = vmax.f32 %v1977_v52, 0.0  ;;  %v2234_v48 = vmax.f32 %v1978_v55, 0.0  ;;  %v11324_v55 = vld [vmem:[#allocation165_spill] sm:$0xff] }
 0x4b1   :  { %5493 = vst [vmem:[%s9951_s3 + $0x218] sm:$0xff] %v4998_v47   ;;  %v1981_v33 = vadd.f32 %v9373_v31, %v1718_v0  ;;  %v1720_v18 = vmul.f32 %v8784_v26, %v11313_v60  ;;  %v5003_v27 = vpack.c.bf16 %v2232_v28, %v2231_v7  ;;  %v1982_v54 = vadd.f32 %v9373_v31, %v1719_v39  ;;  %v11322_v7 = vld [vmem:[#allocation164_spill] sm:$0xff]  ;;  %v11323_v47 = vld [vmem:[#allocation31_spill] sm:$0xff]  ;;  %v11327_v60 = vld [vmem:[#allocation33_spill] sm:$0xff] }
 0x4b2   :  { %v2235_v15 = vmax.f32 %v1979_v29, 0.0  ;;  %v2236_v24 = vmax.f32 %v1980_v59, 0.0  ;;  %v5008_v13 = vpack.c.bf16 %v2234_v48, %v2233_v35  ;;  %v1721_v9 = vmul.f32 %v8784_v26, %v11314_v6  ;;  %v11325_v29 = vld [vmem:[#allocation32_spill] sm:$0xff] }
 0x4b3   :  { %v2237_v16 = vmax.f32 %v1981_v33, 0.0  ;;  %v1983_v40 = vadd.f32 %v9373_v31, %v1720_v18  ;;  %5494 = vst [vmem:[%s9951_s3 + $0x220] sm:$0xff] %v5003_v27   ;;  %v2238_v17 = vmax.f32 %v1982_v54, 0.0  ;;  %v1722_v20 = vmul.f32 %v8784_v26, %v11315_v23  ;;  %v11328_v54 = vld [vmem:[#allocation167_spill] sm:$0xff] }
 0x4b4   :  { %v5013_v14 = vpack.c.bf16 %v2236_v24, %v2235_v15  ;;  %v1723_v5 = vmul.f32 %v8784_v26, %v11316_v2  ;;  %5495 = vst [vmem:[%s9951_s3 + $0x228] sm:$0xff] %v5008_v13   ;;  %v1984_v57 = vadd.f32 %v9373_v31, %v1721_v9  ;;  %v1724_v44 = vmul.f32 %v8784_v26, %v11317_v1 }
 0x4b5   :  { %v2239_v12 = vmax.f32 %v1983_v40, 0.0  ;;  %v1725_v45 = vmul.f32 %v8784_v26, %v11318_v22  ;;  %v5018_v25 = vpack.c.bf16 %v2238_v17, %v2237_v16  ;;  %v1985_v51 = vadd.f32 %v9373_v31, %v1722_v20  ;;  %v11329_v40 = vld [vmem:[#allocation34_spill] sm:$0xff] }
 0x4b6   :  { %5496 = vst [vmem:[%s9951_s3 + $0x230] sm:$0xff] %v5013_v14   ;;  %v1986_v63 = vadd.f32 %v9373_v31, %v1723_v5  ;;  %v1726_v56 = vmul.f32 %v8784_v26, %v11319_v41  ;;  %v2240_v62 = vmax.f32 %v1984_v57, 0.0  ;;  %v1987_v43 = vadd.f32 %v9373_v31, %v1724_v44 }
 0x4b7   :  { %v1988_v53 = vadd.f32 %v9373_v31, %v1725_v45  ;;  %v1727_v49 = vmul.f32 %v8784_v26, %v11320_v50  ;;  %5497 = vst [vmem:[%s9951_s3 + $0x238] sm:$0xff] %v5018_v25   ;;  %v2241_v11 = vmax.f32 %v1985_v51, 0.0  ;;  %v1728_v34 = vmul.f32 %v8784_v26, %v11321_v61  ;;  %v11331_v25 = vld [vmem:[#allocation35_spill] sm:$0xff]  ;;  %v11334_v50 = vld [vmem:[#allocation170_spill] sm:$0xff]  ;;  %v11335_v61 = vld [vmem:[#allocation37_spill] sm:$0xff] }
 0x4b8   :  { %v2242_v19 = vmax.f32 %v1986_v63, 0.0  ;;  %v1989_v32 = vadd.f32 %v9373_v31, %v1726_v56  ;;  %v5023_v21 = vpack.c.bf16 %v2240_v62, %v2239_v12  ;;  %v2243_v30 = vmax.f32 %v1987_v43, 0.0  ;;  %v11330_v12 = vld [vmem:[#allocation168_spill] sm:$0xff]  ;;  %v11332_v63 = vld [vmem:[#allocation169_spill] sm:$0xff] }
 0x4b9   :  { %v2244_v46 = vmax.f32 %v1988_v53, 0.0  ;;  %v1990_v42 = vadd.f32 %v9373_v31, %v1727_v49  ;;  %v1729_v58 = vmul.f32 %v8784_v26, %v11322_v7  ;;  %v1991_v8 = vadd.f32 %v9373_v31, %v1728_v34  ;;  %v11333_v43 = vld [vmem:[#allocation36_spill] sm:$0xff] }
 0x4ba   :  { %v5028_v38 = vpack.c.bf16 %v2242_v19, %v2241_v11  ;;  %v2245_v10 = vmax.f32 %v1989_v32, 0.0  ;;  %5498 = vst [vmem:[%s9951_s3 + $0x240] sm:$0xff] %v5023_v21   ;;  %v1730_v52 = vmul.f32 %v8784_v26, %v11323_v47  ;;  %v1731_v3 = vmul.f32 %v8784_v26, %v11324_v55 }
 0x4bb   :  { %v5033_v36 = vpack.c.bf16 %v2244_v46, %v2243_v30  ;;  %v2246_v37 = vmax.f32 %v1990_v42, 0.0  ;;  %v1992_v0 = vadd.f32 %v9373_v31, %v1729_v58  ;;  %v2247_v28 = vmax.f32 %v1991_v8, 0.0  ;;  %v11336_v42 = vld [vmem:[#allocation171_spill] sm:$0xff]  ;;  %v11337_v8 = vld [vmem:[#allocation38_spill] sm:$0xff] }
 0x4bc   :  { %5499 = vst [vmem:[%s9951_s3 + $0x248] sm:$0xff] %v5028_v38   ;;  %v1732_v59 = vmul.f32 %v8784_v26, %v11325_v29  ;;  %v1733_v39 = vmul.f32 %v8784_v26, %v11326_v4  ;;  %v1993_v48 = vadd.f32 %v9373_v31, %v1730_v52  ;;  %v1994_v33 = vadd.f32 %v9373_v31, %v1731_v3 }
 0x4bd   :  { %5500 = vst [vmem:[%s9951_s3 + $0x250] sm:$0xff] %v5033_v36   ;;  %v5038_v35 = vpack.c.bf16 %v2246_v37, %v2245_v10  ;;  %v1734_v18 = vmul.f32 %v8784_v26, %v11327_v60  ;;  %v2248_v27 = vmax.f32 %v1992_v0, 0.0  ;;  %v1735_v13 = vmul.f32 %v8784_v26, %v11328_v54  ;;  %v11342_v54 = vld [vmem:[#allocation174_spill] sm:$0xff] }
 0x4be   :  { %v1995_v15 = vadd.f32 %v9373_v31, %v1732_v59  ;;  %v1996_v24 = vadd.f32 %v9373_v31, %v1733_v39  ;;  %v2249_v16 = vmax.f32 %v1993_v48, 0.0  ;;  %v2250_v6 = vmax.f32 %v1994_v33, 0.0  ;;  %v11340_v33 = vld [vmem:[#allocation173_spill] sm:$0xff] }
 0x4bf   :  { %5501 = vst [vmem:[%s9951_s3 + $0x258] sm:$0xff] %v5038_v35   ;;  %v1997_v9 = vadd.f32 %v9373_v31, %v1734_v18  ;;  %v1736_v14 = vmul.f32 %v8784_v26, %v11329_v40  ;;  %v5043_v17 = vpack.c.bf16 %v2248_v27, %v2247_v28  ;;  %v1998_v2 = vadd.f32 %v9373_v31, %v1735_v13  ;;  %v11338_v28 = vld [vmem:[#allocation172_spill] sm:$0xff]  ;;  %v11339_v35 = vld [vmem:[#allocation39_spill] sm:$0xff]  ;;  %v11343_v40 = vld [vmem:[#allocation41_spill] sm:$0xff] }
 0x4c0   :  { %v2251_v23 = vmax.f32 %v1995_v15, 0.0  ;;  %v2252_v20 = vmax.f32 %v1996_v24, 0.0  ;;  %v5048_v5 = vpack.c.bf16 %v2250_v6, %v2249_v16  ;;  %v1737_v1 = vmul.f32 %v8784_v26, %v11330_v12  ;;  %v11341_v15 = vld [vmem:[#allocation40_spill] sm:$0xff] }
 0x4c1   :  { %v2253_v57 = vmax.f32 %v1997_v9, 0.0  ;;  %v1999_v44 = vadd.f32 %v9373_v31, %v1736_v14  ;;  %5502 = vst [vmem:[%s9951_s3 + $0x260] sm:$0xff] %v5043_v17   ;;  %v2254_v45 = vmax.f32 %v1998_v2, 0.0  ;;  %v1738_v51 = vmul.f32 %v8784_v26, %v11331_v25  ;;  %v11344_v2 = vld [vmem:[#allocation175_spill] sm:$0xff] }
 0x4c2   :  { %v5053_v22 = vpack.c.bf16 %v2252_v20, %v2251_v23  ;;  %v1739_v41 = vmul.f32 %v8784_v26, %v11332_v63  ;;  %5503 = vst [vmem:[%s9951_s3 + $0x268] sm:$0xff] %v5048_v5   ;;  %v2000_v56 = vadd.f32 %v9373_v31, %v1737_v1  ;;  %v1740_v53 = vmul.f32 %v8784_v26, %v11333_v43 }
 0x4c3   :  { %v2255_v62 = vmax.f32 %v1999_v44, 0.0  ;;  %v1741_v49 = vmul.f32 %v8784_v26, %v11334_v50  ;;  %v5058_v11 = vpack.c.bf16 %v2254_v45, %v2253_v57  ;;  %v2001_v19 = vadd.f32 %v9373_v31, %v1738_v51  ;;  %v11345_v44 = vld [vmem:[#allocation42_spill] sm:$0xff] }
 0x4c4   :  { %5504 = vst [vmem:[%s9951_s3 + $0x270] sm:$0xff] %v5053_v22   ;;  %v2002_v32 = vadd.f32 %v9373_v31, %v1739_v41  ;;  %v1742_v34 = vmul.f32 %v8784_v26, %v11335_v61  ;;  %v2256_v21 = vmax.f32 %v2000_v56, 0.0  ;;  %v2003_v30 = vadd.f32 %v9373_v31, %v1740_v53 }
 0x4c5   :  { %v2004_v46 = vadd.f32 %v9373_v31, %v1741_v49  ;;  %v1743_v38 = vmul.f32 %v8784_v26, %v11336_v42  ;;  %5505 = vst [vmem:[%s9951_s3 + $0x278] sm:$0xff] %v5058_v11   ;;  %v2257_v10 = vmax.f32 %v2001_v19, 0.0  ;;  %v1744_v36 = vmul.f32 %v8784_v26, %v11337_v8  ;;  %v11347_v11 = vld [vmem:[#allocation43_spill] sm:$0xff]  ;;  %v11350_v42 = vld [vmem:[#allocation178_spill] sm:$0xff]  ;;  %v11351_v8 = vld [vmem:[#allocation45_spill] sm:$0xff] }
 0x4c6   :  { %v2258_v7 = vmax.f32 %v2002_v32, 0.0  ;;  %v2005_v58 = vadd.f32 %v9373_v31, %v1742_v34  ;;  %v5063_v37 = vpack.c.bf16 %v2256_v21, %v2255_v62  ;;  %v2259_v47 = vmax.f32 %v2003_v30, 0.0  ;;  %v11346_v62 = vld [vmem:[#allocation176_spill] sm:$0xff]  ;;  %v11348_v32 = vld [vmem:[#allocation177_spill] sm:$0xff] }
 0x4c7   :  { %v2260_v52 = vmax.f32 %v2004_v46, 0.0  ;;  %v2006_v55 = vadd.f32 %v9373_v31, %v1743_v38  ;;  %v1745_v29 = vmul.f32 %v8784_v26, %v11338_v28  ;;  %v2007_v59 = vadd.f32 %v9373_v31, %v1744_v36  ;;  %v11349_v30 = vld [vmem:[#allocation44_spill] sm:$0xff] }
 0x4c8   :  { %v5068_v3 = vpack.c.bf16 %v2258_v7, %v2257_v10  ;;  %v2261_v0 = vmax.f32 %v2005_v58, 0.0  ;;  %5506 = vst [vmem:[%s9951_s3 + $0x280] sm:$0xff] %v5063_v37   ;;  %v1746_v48 = vmul.f32 %v8784_v26, %v11339_v35  ;;  %v1747_v60 = vmul.f32 %v8784_v26, %v11340_v33 }
 0x4c9   :  { %v5073_v4 = vpack.c.bf16 %v2260_v52, %v2259_v47  ;;  %v2262_v39 = vmax.f32 %v2006_v55, 0.0  ;;  %v2008_v18 = vadd.f32 %v9373_v31, %v1745_v29  ;;  %v2263_v27 = vmax.f32 %v2007_v59, 0.0  ;;  %v11352_v55 = vld [vmem:[#allocation179_spill] sm:$0xff]  ;;  %v11353_v59 = vld [vmem:[#allocation46_spill] sm:$0xff] }
 0x4ca   :  { %5507 = vst [vmem:[%s9951_s3 + $0x288] sm:$0xff] %v5068_v3   ;;  %v1748_v24 = vmul.f32 %v8784_v26, %v11341_v15  ;;  %v1749_v13 = vmul.f32 %v8784_v26, %v11342_v54  ;;  %v2009_v6 = vadd.f32 %v9373_v31, %v1746_v48  ;;  %v2010_v9 = vadd.f32 %v9373_v31, %v1747_v60 }
 0x4cb   :  { %5508 = vst [vmem:[%s9951_s3 + $0x290] sm:$0xff] %v5073_v4   ;;  %v5078_v16 = vpack.c.bf16 %v2262_v39, %v2261_v0  ;;  %v1750_v14 = vmul.f32 %v8784_v26, %v11343_v40  ;;  %v2264_v17 = vmax.f32 %v2008_v18, 0.0  ;;  %v1751_v5 = vmul.f32 %v8784_v26, %v11344_v2  ;;  %v11358_v2 = vld [vmem:[#allocation182_spill] sm:$0xff] }
 0x4cc   :  { %v2011_v23 = vadd.f32 %v9373_v31, %v1748_v24  ;;  %v2012_v20 = vadd.f32 %v9373_v31, %v1749_v13  ;;  %v2265_v57 = vmax.f32 %v2009_v6, 0.0  ;;  %v2266_v12 = vmax.f32 %v2010_v9, 0.0  ;;  %v11356_v9 = vld [vmem:[#allocation181_spill] sm:$0xff] }
 0x4cd   :  { %5509 = vst [vmem:[%s9951_s3 + $0x298] sm:$0xff] %v5078_v16   ;;  %v2013_v1 = vadd.f32 %v9373_v31, %v1750_v14  ;;  %v1752_v22 = vmul.f32 %v8784_v26, %v11345_v44  ;;  %v5083_v45 = vpack.c.bf16 %v2264_v17, %v2263_v27  ;;  %v2014_v63 = vadd.f32 %v9373_v31, %v1751_v5  ;;  %v11354_v27 = vld [vmem:[#allocation180_spill] sm:$0xff]  ;;  %v11355_v16 = vld [vmem:[#allocation47_spill] sm:$0xff]  ;;  %v11359_v44 = vld [vmem:[#allocation49_spill] sm:$0xff] }
 0x4ce   :  { %v2267_v25 = vmax.f32 %v2011_v23, 0.0  ;;  %v2268_v51 = vmax.f32 %v2012_v20, 0.0  ;;  %v5088_v41 = vpack.c.bf16 %v2266_v12, %v2265_v57  ;;  %v1753_v43 = vmul.f32 %v8784_v26, %v11346_v62  ;;  %v11357_v23 = vld [vmem:[#allocation48_spill] sm:$0xff] }
 0x4cf   :  { %v2269_v56 = vmax.f32 %v2013_v1, 0.0  ;;  %v2015_v53 = vadd.f32 %v9373_v31, %v1752_v22  ;;  %5510 = vst [vmem:[%s9951_s3 + $0x2a0] sm:$0xff] %v5083_v45   ;;  %v2270_v49 = vmax.f32 %v2014_v63, 0.0  ;;  %v1754_v19 = vmul.f32 %v8784_v26, %v11347_v11  ;;  %v11360_v63 = vld [vmem:[#allocation183_spill] sm:$0xff] }
 0x4d0   :  { %v5093_v50 = vpack.c.bf16 %v2268_v51, %v2267_v25  ;;  %v1755_v61 = vmul.f32 %v8784_v26, %v11348_v32  ;;  %5511 = vst [vmem:[%s9951_s3 + $0x2a8] sm:$0xff] %v5088_v41   ;;  %v2016_v34 = vadd.f32 %v9373_v31, %v1753_v43  ;;  %v1756_v46 = vmul.f32 %v8784_v26, %v11349_v30 }
 0x4d1   :  { %v2271_v21 = vmax.f32 %v2015_v53, 0.0  ;;  %v1757_v38 = vmul.f32 %v8784_v26, %v11350_v42  ;;  %v5098_v10 = vpack.c.bf16 %v2270_v49, %v2269_v56  ;;  %v2017_v7 = vadd.f32 %v9373_v31, %v1754_v19  ;;  %v11361_v53 = vld [vmem:[#allocation50_spill] sm:$0xff] }
 0x4d2   :  { %5512 = vst [vmem:[%s9951_s3 + $0x2b0] sm:$0xff] %v5093_v50   ;;  %v2018_v58 = vadd.f32 %v9373_v31, %v1755_v61  ;;  %v1758_v36 = vmul.f32 %v8784_v26, %v11351_v8  ;;  %v2272_v37 = vmax.f32 %v2016_v34, 0.0  ;;  %v2019_v47 = vadd.f32 %v9373_v31, %v1756_v46 }
 0x4d3   :  { %v2020_v52 = vadd.f32 %v9373_v31, %v1757_v38  ;;  %v1759_v3 = vmul.f32 %v8784_v26, %v11352_v55  ;;  %5513 = vst [vmem:[%s9951_s3 + $0x2b8] sm:$0xff] %v5098_v10   ;;  %v2273_v0 = vmax.f32 %v2017_v7, 0.0  ;;  %v1760_v4 = vmul.f32 %v8784_v26, %v11353_v59  ;;  %v11363_v10 = vld [vmem:[#allocation51_spill] sm:$0xff]  ;;  %v11366_v55 = vld [vmem:[#allocation186_spill] sm:$0xff]  ;;  %v11367_v59 = vld [vmem:[#allocation53_spill] sm:$0xff] }
 0x4d4   :  { %v2274_v28 = vmax.f32 %v2018_v58, 0.0  ;;  %v2021_v29 = vadd.f32 %v9373_v31, %v1758_v36  ;;  %v5103_v39 = vpack.c.bf16 %v2272_v37, %v2271_v21  ;;  %v2275_v35 = vmax.f32 %v2019_v47, 0.0  ;;  %v11362_v21 = vld [vmem:[#allocation184_spill] sm:$0xff]  ;;  %v11364_v58 = vld [vmem:[#allocation185_spill] sm:$0xff] }
 0x4d5   :  { %v2276_v48 = vmax.f32 %v2020_v52, 0.0  ;;  %v2022_v33 = vadd.f32 %v9373_v31, %v1759_v3  ;;  %v1761_v15 = vmul.f32 %v8784_v26, %v11354_v27  ;;  %v2023_v24 = vadd.f32 %v9373_v31, %v1760_v4  ;;  %v11365_v47 = vld [vmem:[#allocation52_spill] sm:$0xff] }
 0x4d6   :  { %v5108_v60 = vpack.c.bf16 %v2274_v28, %v2273_v0  ;;  %v2277_v18 = vmax.f32 %v2021_v29, 0.0  ;;  %5514 = vst [vmem:[%s9951_s3 + $0x2c0] sm:$0xff] %v5103_v39   ;;  %v1762_v6 = vmul.f32 %v8784_v26, %v11355_v16  ;;  %v1763_v40 = vmul.f32 %v8784_v26, %v11356_v9 }
 0x4d7   :  { %v5113_v54 = vpack.c.bf16 %v2276_v48, %v2275_v35  ;;  %v2278_v13 = vmax.f32 %v2022_v33, 0.0  ;;  %v2024_v14 = vadd.f32 %v9373_v31, %v1761_v15  ;;  %v2279_v17 = vmax.f32 %v2023_v24, 0.0  ;;  %v11368_v33 = vld [vmem:[#allocation187_spill] sm:$0xff]  ;;  %v11369_v24 = vld [vmem:[#allocation54_spill] sm:$0xff] }
 0x4d8   :  { %5515 = vst [vmem:[%s9951_s3 + $0x2c8] sm:$0xff] %v5108_v60   ;;  %v1764_v20 = vmul.f32 %v8784_v26, %v11357_v23  ;;  %v1765_v5 = vmul.f32 %v8784_v26, %v11358_v2  ;;  %v2025_v12 = vadd.f32 %v9373_v31, %v1762_v6  ;;  %v2026_v1 = vadd.f32 %v9373_v31, %v1763_v40 }
 0x4d9   :  { %5516 = vst [vmem:[%s9951_s3 + $0x2d0] sm:$0xff] %v5113_v54   ;;  %v5118_v57 = vpack.c.bf16 %v2278_v13, %v2277_v18  ;;  %v1766_v22 = vmul.f32 %v8784_v26, %v11359_v44  ;;  %v2280_v45 = vmax.f32 %v2024_v14, 0.0  ;;  %v1767_v41 = vmul.f32 %v8784_v26, %v11360_v63  ;;  %v11374_v63 = vld [vmem:[#allocation190_spill] sm:$0xff] }
 0x4da   :  { %v2027_v25 = vadd.f32 %v9373_v31, %v1764_v20  ;;  %v2028_v51 = vadd.f32 %v9373_v31, %v1765_v5  ;;  %v2281_v56 = vmax.f32 %v2025_v12, 0.0  ;;  %v2282_v62 = vmax.f32 %v2026_v1, 0.0  ;;  %v11372_v1 = vld [vmem:[#allocation189_spill] sm:$0xff] }
 0x4db   :  { %5517 = vst [vmem:[%s9951_s3 + $0x2d8] sm:$0xff] %v5118_v57   ;;  %v2029_v43 = vadd.f32 %v9373_v31, %v1766_v22  ;;  %v1768_v50 = vmul.f32 %v8784_v26, %v11361_v53  ;;  %v5123_v49 = vpack.c.bf16 %v2280_v45, %v2279_v17  ;;  %v2030_v32 = vadd.f32 %v9373_v31, %v1767_v41  ;;  %v11370_v17 = vld [vmem:[#allocation188_spill] sm:$0xff]  ;;  %v11371_v57 = vld [vmem:[#allocation55_spill] sm:$0xff]  ;;  %v11375_v53 = vld [vmem:[#allocation57_spill] sm:$0xff] }
 0x4dc   :  { %v2283_v11 = vmax.f32 %v2027_v25, 0.0  ;;  %v2284_v19 = vmax.f32 %v2028_v51, 0.0  ;;  %v5128_v61 = vpack.c.bf16 %v2282_v62, %v2281_v56  ;;  %v1769_v30 = vmul.f32 %v8784_v26, %v11362_v21  ;;  %v11373_v25 = vld [vmem:[#allocation56_spill] sm:$0xff] }
 0x4dd   :  { %v2285_v34 = vmax.f32 %v2029_v43, 0.0  ;;  %v2031_v46 = vadd.f32 %v9373_v31, %v1768_v50  ;;  %5518 = vst [vmem:[%s9951_s3 + $0x2e0] sm:$0xff] %v5123_v49   ;;  %v2286_v38 = vmax.f32 %v2030_v32, 0.0  ;;  %v1770_v7 = vmul.f32 %v8784_v26, %v11363_v10  ;;  %v11376_v32 = vld [vmem:[#allocation191_spill] sm:$0xff] }
 0x4de   :  { %v5133_v42 = vpack.c.bf16 %v2284_v19, %v2283_v11  ;;  %v1771_v8 = vmul.f32 %v8784_v26, %v11364_v58  ;;  %5519 = vst [vmem:[%s9951_s3 + $0x2e8] sm:$0xff] %v5128_v61   ;;  %v2032_v36 = vadd.f32 %v9373_v31, %v1769_v30  ;;  %v1772_v52 = vmul.f32 %v8784_v26, %v11365_v47 }
 0x4df   :  { %v2287_v37 = vmax.f32 %v2031_v46, 0.0  ;;  %v1773_v3 = vmul.f32 %v8784_v26, %v11366_v55  ;;  %v5138_v0 = vpack.c.bf16 %v2286_v38, %v2285_v34  ;;  %v2033_v28 = vadd.f32 %v9373_v31, %v1770_v7  ;;  %v11377_v46 = vld [vmem:[#allocation58_spill] sm:$0xff] }
 0x4e0   :  { %5520 = vst [vmem:[%s9951_s3 + $0x2f0] sm:$0xff] %v5133_v42   ;;  %v2034_v29 = vadd.f32 %v9373_v31, %v1771_v8  ;;  %v1774_v4 = vmul.f32 %v8784_v26, %v11367_v59  ;;  %v2288_v39 = vmax.f32 %v2032_v36, 0.0  ;;  %v2035_v35 = vadd.f32 %v9373_v31, %v1772_v52 }
 0x4e1   :  { %v2036_v48 = vadd.f32 %v9373_v31, %v1773_v3  ;;  %v1775_v60 = vmul.f32 %v8784_v26, %v11368_v33  ;;  %5521 = vst [vmem:[%s9951_s3 + $0x2f8] sm:$0xff] %v5138_v0   ;;  %v2289_v18 = vmax.f32 %v2033_v28, 0.0  ;;  %v1776_v54 = vmul.f32 %v8784_v26, %v11369_v24  ;;  %v11379_v0 = vld [vmem:[#allocation59_spill] sm:$0xff]  ;;  %v11382_v33 = vld [vmem:[#allocation194_spill] sm:$0xff]  ;;  %v11383_v24 = vld [vmem:[#allocation61_spill] sm:$0xff] }
 0x4e2   :  { %v2290_v27 = vmax.f32 %v2034_v29, 0.0  ;;  %v2037_v15 = vadd.f32 %v9373_v31, %v1774_v4  ;;  %v5143_v13 = vpack.c.bf16 %v2288_v39, %v2287_v37  ;;  %v2291_v16 = vmax.f32 %v2035_v35, 0.0  ;;  %v11378_v37 = vld [vmem:[#allocation192_spill] sm:$0xff]  ;;  %v11380_v29 = vld [vmem:[#allocation193_spill] sm:$0xff] }
 0x4e3   :  { %v2292_v6 = vmax.f32 %v2036_v48, 0.0  ;;  %v2038_v9 = vadd.f32 %v9373_v31, %v1775_v60  ;;  %v1777_v23 = vmul.f32 %v8784_v26, %v11370_v17  ;;  %v2039_v20 = vadd.f32 %v9373_v31, %v1776_v54  ;;  %v11381_v35 = vld [vmem:[#allocation60_spill] sm:$0xff] }
 0x4e4   :  { %v5148_v40 = vpack.c.bf16 %v2290_v27, %v2289_v18  ;;  %v2293_v14 = vmax.f32 %v2037_v15, 0.0  ;;  %5522 = vst [vmem:[%s9951_s3 + $0x300] sm:$0xff] %v5143_v13   ;;  %v1778_v12 = vmul.f32 %v8784_v26, %v11371_v57  ;;  %v1779_v44 = vmul.f32 %v8784_v26, %v11372_v1 }
 0x4e5   :  { %v5153_v2 = vpack.c.bf16 %v2292_v6, %v2291_v16  ;;  %v2294_v5 = vmax.f32 %v2038_v9, 0.0  ;;  %v2040_v22 = vadd.f32 %v9373_v31, %v1777_v23  ;;  %v2295_v45 = vmax.f32 %v2039_v20, 0.0  ;;  %v11384_v9 = vld [vmem:[#allocation195_spill] sm:$0xff]  ;;  %v11385_v20 = vld [vmem:[#allocation62_spill] sm:$0xff] }
 0x4e6   :  { %5523 = vst [vmem:[%s9951_s3 + $0x308] sm:$0xff] %v5148_v40   ;;  %v1780_v51 = vmul.f32 %v8784_v26, %v11373_v25  ;;  %v1781_v41 = vmul.f32 %v8784_v26, %v11374_v63  ;;  %v2041_v62 = vadd.f32 %v9373_v31, %v1778_v12  ;;  %v2042_v43 = vadd.f32 %v9373_v31, %v1779_v44 }
 0x4e7   :  { %5524 = vst [vmem:[%s9951_s3 + $0x310] sm:$0xff] %v5153_v2   ;;  %v5158_v56 = vpack.c.bf16 %v2294_v5, %v2293_v14  ;;  %v1782_v50 = vmul.f32 %v8784_v26, %v11375_v53  ;;  %v2296_v49 = vmax.f32 %v2040_v22, 0.0  ;;  %v1783_v61 = vmul.f32 %v8784_v26, %v11376_v32  ;;  %v11390_v32 = vld [vmem:[#allocation198_spill] sm:$0xff] }
 0x4e8   :  { %v2043_v11 = vadd.f32 %v9373_v31, %v1780_v51  ;;  %v2044_v19 = vadd.f32 %v9373_v31, %v1781_v41  ;;  %v2297_v34 = vmax.f32 %v2041_v62, 0.0  ;;  %v2298_v21 = vmax.f32 %v2042_v43, 0.0  ;;  %v11388_v43 = vld [vmem:[#allocation197_spill] sm:$0xff] }
 0x4e9   :  { %5525 = vst [vmem:[%s9951_s3 + $0x318] sm:$0xff] %v5158_v56   ;;  %v2045_v30 = vadd.f32 %v9373_v31, %v1782_v50  ;;  %v1784_v42 = vmul.f32 %v8784_v26, %v11377_v46  ;;  %v5163_v38 = vpack.c.bf16 %v2296_v49, %v2295_v45  ;;  %v2046_v58 = vadd.f32 %v9373_v31, %v1783_v61  ;;  %v11386_v45 = vld [vmem:[#allocation196_spill] sm:$0xff]  ;;  %v11387_v56 = vld [vmem:[#allocation63_spill] sm:$0xff]  ;;  %v11391_v46 = vld [vmem:[#allocation65_spill] sm:$0xff] }
 0x4ea   :  { %v2299_v10 = vmax.f32 %v2043_v11, 0.0  ;;  %v2300_v7 = vmax.f32 %v2044_v19, 0.0  ;;  %v5168_v8 = vpack.c.bf16 %v2298_v21, %v2297_v34  ;;  %v1785_v47 = vmul.f32 %v8784_v26, %v11378_v37  ;;  %v11389_v11 = vld [vmem:[#allocation64_spill] sm:$0xff] }
 0x4eb   :  { %v2301_v36 = vmax.f32 %v2045_v30, 0.0  ;;  %v2047_v52 = vadd.f32 %v9373_v31, %v1784_v42  ;;  %5526 = vst [vmem:[%s9951_s3 + $0x320] sm:$0xff] %v5163_v38   ;;  %v2302_v3 = vmax.f32 %v2046_v58, 0.0  ;;  %v1786_v28 = vmul.f32 %v8784_v26, %v11379_v0  ;;  %v11392_v58 = vld [vmem:[#allocation199_spill] sm:$0xff] }
 0x4ec   :  { %v5173_v55 = vpack.c.bf16 %v2300_v7, %v2299_v10  ;;  %v1787_v59 = vmul.f32 %v8784_v26, %v11380_v29  ;;  %5527 = vst [vmem:[%s9951_s3 + $0x328] sm:$0xff] %v5168_v8   ;;  %v2048_v4 = vadd.f32 %v9373_v31, %v1785_v47  ;;  %v1788_v48 = vmul.f32 %v8784_v26, %v11381_v35 }
 0x4ed   :  { %v2303_v39 = vmax.f32 %v2047_v52, 0.0  ;;  %v1789_v60 = vmul.f32 %v8784_v26, %v11382_v33  ;;  %v5178_v18 = vpack.c.bf16 %v2302_v3, %v2301_v36  ;;  %v2049_v27 = vadd.f32 %v9373_v31, %v1786_v28  ;;  %v11393_v52 = vld [vmem:[#allocation66_spill] sm:$0xff] }
 0x4ee   :  { %5528 = vst [vmem:[%s9951_s3 + $0x330] sm:$0xff] %v5173_v55   ;;  %v2050_v15 = vadd.f32 %v9373_v31, %v1787_v59  ;;  %v1790_v54 = vmul.f32 %v8784_v26, %v11383_v24  ;;  %v2304_v13 = vmax.f32 %v2048_v4, 0.0  ;;  %v2051_v16 = vadd.f32 %v9373_v31, %v1788_v48 }
 0x4ef   :  { %v2052_v6 = vadd.f32 %v9373_v31, %v1789_v60  ;;  %v1791_v40 = vmul.f32 %v8784_v26, %v11384_v9  ;;  %5529 = vst [vmem:[%s9951_s3 + $0x338] sm:$0xff] %v5178_v18   ;;  %v2305_v14 = vmax.f32 %v2049_v27, 0.0  ;;  %v1792_v2 = vmul.f32 %v8784_v26, %v11385_v20  ;;  %v11395_v18 = vld [vmem:[#allocation67_spill] sm:$0xff]  ;;  %v11398_v9 = vld [vmem:[#allocation202_spill] sm:$0xff]  ;;  %v11399_v20 = vld [vmem:[#allocation69_spill] sm:$0xff] }
 0x4f0   :  { %v2306_v17 = vmax.f32 %v2050_v15, 0.0  ;;  %v2053_v23 = vadd.f32 %v9373_v31, %v1790_v54  ;;  %v5183_v5 = vpack.c.bf16 %v2304_v13, %v2303_v39  ;;  %v2307_v57 = vmax.f32 %v2051_v16, 0.0  ;;  %v11394_v39 = vld [vmem:[#allocation200_spill] sm:$0xff]  ;;  %v11396_v15 = vld [vmem:[#allocation201_spill] sm:$0xff] }
 0x4f1   :  { %v2308_v12 = vmax.f32 %v2052_v6, 0.0  ;;  %v2054_v1 = vadd.f32 %v9373_v31, %v1791_v40  ;;  %v1793_v25 = vmul.f32 %v8784_v26, %v11386_v45  ;;  %v2055_v51 = vadd.f32 %v9373_v31, %v1792_v2  ;;  %v11397_v16 = vld [vmem:[#allocation68_spill] sm:$0xff] }
 0x4f2   :  { %v5188_v44 = vpack.c.bf16 %v2306_v17, %v2305_v14  ;;  %v2309_v22 = vmax.f32 %v2053_v23, 0.0  ;;  %5530 = vst [vmem:[%s9951_s3 + $0x340] sm:$0xff] %v5183_v5   ;;  %v1794_v62 = vmul.f32 %v8784_v26, %v11387_v56  ;;  %v1795_v53 = vmul.f32 %v8784_v26, %v11388_v43 }
 0x4f3   :  { %v5193_v63 = vpack.c.bf16 %v2308_v12, %v2307_v57  ;;  %v2310_v41 = vmax.f32 %v2054_v1, 0.0  ;;  %v2056_v50 = vadd.f32 %v9373_v31, %v1793_v25  ;;  %v2311_v49 = vmax.f32 %v2055_v51, 0.0  ;;  %v11400_v1 = vld [vmem:[#allocation203_spill] sm:$0xff]  ;;  %v11401_v51 = vld [vmem:[#allocation70_spill] sm:$0xff] }
 0x4f4   :  { %5531 = vst [vmem:[%s9951_s3 + $0x348] sm:$0xff] %v5188_v44   ;;  %v1796_v19 = vmul.f32 %v8784_v26, %v11389_v11  ;;  %v1797_v61 = vmul.f32 %v8784_v26, %v11390_v32  ;;  %v2057_v21 = vadd.f32 %v9373_v31, %v1794_v62  ;;  %v2058_v30 = vadd.f32 %v9373_v31, %v1795_v53 }
 0x4f5   :  { %5532 = vst [vmem:[%s9951_s3 + $0x350] sm:$0xff] %v5193_v63   ;;  %v5198_v34 = vpack.c.bf16 %v2310_v41, %v2309_v22  ;;  %v1798_v42 = vmul.f32 %v8784_v26, %v11391_v46  ;;  %v2312_v38 = vmax.f32 %v2056_v50, 0.0  ;;  %v1799_v8 = vmul.f32 %v8784_v26, %v11392_v58  ;;  %v11406_v58 = vld [vmem:[#allocation206_spill] sm:$0xff] }
 0x4f6   :  { %v2059_v10 = vadd.f32 %v9373_v31, %v1796_v19  ;;  %v2060_v7 = vadd.f32 %v9373_v31, %v1797_v61  ;;  %v2313_v36 = vmax.f32 %v2057_v21, 0.0  ;;  %v2314_v37 = vmax.f32 %v2058_v30, 0.0  ;;  %v11404_v30 = vld [vmem:[#allocation205_spill] sm:$0xff] }
 0x4f7   :  { %5533 = vst [vmem:[%s9951_s3 + $0x358] sm:$0xff] %v5198_v34   ;;  %v2061_v47 = vadd.f32 %v9373_v31, %v1798_v42  ;;  %v1800_v55 = vmul.f32 %v8784_v26, %v11393_v52  ;;  %v5203_v3 = vpack.c.bf16 %v2312_v38, %v2311_v49  ;;  %v2062_v29 = vadd.f32 %v9373_v31, %v1799_v8  ;;  %v11402_v49 = vld [vmem:[#allocation204_spill] sm:$0xff]  ;;  %v11403_v34 = vld [vmem:[#allocation71_spill] sm:$0xff]  ;;  %v11407_v52 = vld [vmem:[#allocation73_spill] sm:$0xff] }
 0x4f8   :  { %v2315_v0 = vmax.f32 %v2059_v10, 0.0  ;;  %v2316_v28 = vmax.f32 %v2060_v7, 0.0  ;;  %v5208_v59 = vpack.c.bf16 %v2314_v37, %v2313_v36  ;;  %v1801_v35 = vmul.f32 %v8784_v26, %v11394_v39  ;;  %v11405_v10 = vld [vmem:[#allocation72_spill] sm:$0xff] }
 0x4f9   :  { %v2317_v4 = vmax.f32 %v2061_v47, 0.0  ;;  %v2063_v48 = vadd.f32 %v9373_v31, %v1800_v55  ;;  %5534 = vst [vmem:[%s9951_s3 + $0x360] sm:$0xff] %v5203_v3   ;;  %v2318_v60 = vmax.f32 %v2062_v29, 0.0  ;;  %v1802_v27 = vmul.f32 %v8784_v26, %v11395_v18  ;;  %v11408_v29 = vld [vmem:[#allocation207_spill] sm:$0xff] }
 0x4fa   :  { %v5213_v33 = vpack.c.bf16 %v2316_v28, %v2315_v0  ;;  %v1803_v24 = vmul.f32 %v8784_v26, %v11396_v15  ;;  %5535 = vst [vmem:[%s9951_s3 + $0x368] sm:$0xff] %v5208_v59   ;;  %v2064_v54 = vadd.f32 %v9373_v31, %v1801_v35  ;;  %v1804_v6 = vmul.f32 %v8784_v26, %v11397_v16 }
 0x4fb   :  { %v2319_v13 = vmax.f32 %v2063_v48, 0.0  ;;  %v1805_v40 = vmul.f32 %v8784_v26, %v11398_v9  ;;  %v5218_v14 = vpack.c.bf16 %v2318_v60, %v2317_v4  ;;  %v2065_v17 = vadd.f32 %v9373_v31, %v1802_v27  ;;  %v11409_v48 = vld [vmem:[#allocation74_spill] sm:$0xff] }
 0x4fc   :  { %5536 = vst [vmem:[%s9951_s3 + $0x370] sm:$0xff] %v5213_v33   ;;  %v2066_v23 = vadd.f32 %v9373_v31, %v1803_v24  ;;  %v1806_v2 = vmul.f32 %v8784_v26, %v11399_v20  ;;  %v2320_v5 = vmax.f32 %v2064_v54, 0.0  ;;  %v2067_v57 = vadd.f32 %v9373_v31, %v1804_v6 }
 0x4fd   :  { %v2068_v12 = vadd.f32 %v9373_v31, %v1805_v40  ;;  %v1807_v44 = vmul.f32 %v8784_v26, %v11400_v1  ;;  %5537 = vst [vmem:[%s9951_s3 + $0x378] sm:$0xff] %v5218_v14   ;;  %v2321_v22 = vmax.f32 %v2065_v17, 0.0  ;;  %v1808_v63 = vmul.f32 %v8784_v26, %v11401_v51  ;;  %v11411_v14 = vld [vmem:[#allocation75_spill] sm:$0xff]  ;;  %v11414_v1 = vld [vmem:[#allocation210_spill] sm:$0xff]  ;;  %v11415_v51 = vld [vmem:[#allocation77_spill] sm:$0xff] }
 0x4fe   :  { %v2322_v45 = vmax.f32 %v2066_v23, 0.0  ;;  %v2069_v25 = vadd.f32 %v9373_v31, %v1806_v2  ;;  %v5223_v41 = vpack.c.bf16 %v2320_v5, %v2319_v13  ;;  %v2323_v56 = vmax.f32 %v2067_v57, 0.0  ;;  %v11410_v13 = vld [vmem:[#allocation208_spill] sm:$0xff]  ;;  %v11412_v23 = vld [vmem:[#allocation209_spill] sm:$0xff] }
 0x4ff   :  { %v2324_v62 = vmax.f32 %v2068_v12, 0.0  ;;  %v2070_v43 = vadd.f32 %v9373_v31, %v1807_v44  ;;  %v1809_v11 = vmul.f32 %v8784_v26, %v11402_v49  ;;  %v2071_v19 = vadd.f32 %v9373_v31, %v1808_v63  ;;  %v11413_v57 = vld [vmem:[#allocation76_spill] sm:$0xff] }
 0x500   :  { %v5228_v53 = vpack.c.bf16 %v2322_v45, %v2321_v22  ;;  %v2325_v50 = vmax.f32 %v2069_v25, 0.0  ;;  %5538 = vst [vmem:[%s9951_s3 + $0x380] sm:$0xff] %v5223_v41   ;;  %v1810_v21 = vmul.f32 %v8784_v26, %v11403_v34  ;;  %v1811_v46 = vmul.f32 %v8784_v26, %v11404_v30 }
 0x501   :  { %v5233_v32 = vpack.c.bf16 %v2324_v62, %v2323_v56  ;;  %v2326_v61 = vmax.f32 %v2070_v43, 0.0  ;;  %v2072_v42 = vadd.f32 %v9373_v31, %v1809_v11  ;;  %v2327_v38 = vmax.f32 %v2071_v19, 0.0  ;;  %v11416_v43 = vld [vmem:[#allocation211_spill] sm:$0xff]  ;;  %v11417_v19 = vld [vmem:[#allocation78_spill] sm:$0xff] }
 0x502   :  { %5539 = vst [vmem:[%s9951_s3 + $0x388] sm:$0xff] %v5228_v53   ;;  %v1812_v7 = vmul.f32 %v8784_v26, %v11405_v10  ;;  %v1813_v8 = vmul.f32 %v8784_v26, %v11406_v58  ;;  %v2073_v37 = vadd.f32 %v9373_v31, %v1810_v21  ;;  %v2074_v47 = vadd.f32 %v9373_v31, %v1811_v46 }
 0x503   :  { %5540 = vst [vmem:[%s9951_s3 + $0x390] sm:$0xff] %v5233_v32   ;;  %v5238_v36 = vpack.c.bf16 %v2326_v61, %v2325_v50  ;;  %v1814_v55 = vmul.f32 %v8784_v26, %v11407_v52  ;;  %v2328_v3 = vmax.f32 %v2072_v42, 0.0  ;;  %v1815_v59 = vmul.f32 %v8784_v26, %v11408_v29  ;;  %v11422_v29 = vld [vmem:[#allocation214_spill] sm:$0xff] }
 0x504   :  { %v2075_v0 = vadd.f32 %v9373_v31, %v1812_v7  ;;  %v2076_v28 = vadd.f32 %v9373_v31, %v1813_v8  ;;  %v2329_v4 = vmax.f32 %v2073_v37, 0.0  ;;  %v2330_v39 = vmax.f32 %v2074_v47, 0.0  ;;  %v11420_v47 = vld [vmem:[#allocation213_spill] sm:$0xff] }
 0x505   :  { %5541 = vst [vmem:[%s9951_s3 + $0x398] sm:$0xff] %v5238_v36   ;;  %v2077_v35 = vadd.f32 %v9373_v31, %v1814_v55  ;;  %v1816_v33 = vmul.f32 %v8784_v26, %v11409_v48  ;;  %v5243_v60 = vpack.c.bf16 %v2328_v3, %v2327_v38  ;;  %v2078_v15 = vadd.f32 %v9373_v31, %v1815_v59  ;;  %v11418_v38 = vld [vmem:[#allocation212_spill] sm:$0xff]  ;;  %v11419_v36 = vld [vmem:[#allocation79_spill] sm:$0xff] }
 0x506   :  { %v2331_v18 = vmax.f32 %v2075_v0, 0.0  ;;  %v2332_v27 = vmax.f32 %v2076_v28, 0.0  ;;  %v5248_v24 = vpack.c.bf16 %v2330_v39, %v2329_v4  ;;  %v1817_v16 = vmul.f32 %v8784_v26, %v11410_v13  ;;  %v11421_v0 = vld [vmem:[#allocation80_spill] sm:$0xff]  ;;  %v11423_v48 = vld [vmem:[#allocation215_spill] sm:$0xff] }
 0x507   :  { %v2333_v54 = vmax.f32 %v2077_v35, 0.0  ;;  %v2079_v6 = vadd.f32 %v9373_v31, %v1816_v33  ;;  %5542 = vst [vmem:[%s9951_s3 + $0x3a0] sm:$0xff] %v5243_v60   ;;  %v2334_v40 = vmax.f32 %v2078_v15, 0.0  ;;  %v1818_v17 = vmul.f32 %v8784_v26, %v11411_v14  ;;  %v11424_v15 = vld [vmem:[#allocation216_spill] sm:$0xff] }
 0x508   :  { %v5253_v9 = vpack.c.bf16 %v2332_v27, %v2331_v18  ;;  %v1819_v20 = vmul.f32 %v8784_v26, %v11412_v23  ;;  %5543 = vst [vmem:[%s9951_s3 + $0x3a8] sm:$0xff] %v5248_v24   ;;  %v2080_v2 = vadd.f32 %v9373_v31, %v1817_v16  ;;  %v1820_v12 = vmul.f32 %v8784_v26, %v11413_v57 }
 0x509   :  { %v2335_v5 = vmax.f32 %v2079_v6, 0.0  ;;  %v1821_v44 = vmul.f32 %v8784_v26, %v11414_v1  ;;  %v5258_v22 = vpack.c.bf16 %v2334_v40, %v2333_v54  ;;  %v2081_v45 = vadd.f32 %v9373_v31, %v1818_v17 }
 0x50a   :  { %5544 = vst [vmem:[%s9951_s3 + $0x3b0] sm:$0xff] %v5253_v9   ;;  %v2082_v25 = vadd.f32 %v9373_v31, %v1819_v20  ;;  %v1822_v63 = vmul.f32 %v8784_v26, %v11415_v51  ;;  %v2336_v41 = vmax.f32 %v2080_v2, 0.0  ;;  %v2083_v56 = vadd.f32 %v9373_v31, %v1820_v12 }
 0x50b   :  { %v2084_v62 = vadd.f32 %v9373_v31, %v1821_v44  ;;  %v1823_v53 = vmul.f32 %v8784_v26, %v11416_v43  ;;  %5545 = vst [vmem:[%s9951_s3 + $0x3b8] sm:$0xff] %v5258_v22   ;;  %v2337_v50 = vmax.f32 %v2081_v45, 0.0  ;;  %v1824_v32 = vmul.f32 %v8784_v26, %v11417_v19 }
 0x50c   :  { %v2338_v49 = vmax.f32 %v2082_v25, 0.0  ;;  %v2085_v11 = vadd.f32 %v9373_v31, %v1822_v63  ;;  %v5263_v61 = vpack.c.bf16 %v2336_v41, %v2335_v5  ;;  %v2339_v34 = vmax.f32 %v2083_v56, 0.0 }
 0x50d   :  { %v2340_v21 = vmax.f32 %v2084_v62, 0.0  ;;  %v2086_v30 = vadd.f32 %v9373_v31, %v1823_v53  ;;  %v1825_v10 = vmul.f32 %v8784_v26, %v11418_v38  ;;  %v2087_v7 = vadd.f32 %v9373_v31, %v1824_v32 }
 0x50e   :  { %v5268_v46 = vpack.c.bf16 %v2338_v49, %v2337_v50  ;;  %v2341_v42 = vmax.f32 %v2085_v11, 0.0  ;;  %5546 = vst [vmem:[%s9951_s3 + $0x3c0] sm:$0xff] %v5263_v61   ;;  %v1826_v37 = vmul.f32 %v8784_v26, %v11419_v36  ;;  %v1827_v52 = vmul.f32 %v8784_v26, %v11420_v47 }
 0x50f   :  { %v5273_v58 = vpack.c.bf16 %v2340_v21, %v2339_v34  ;;  %v2342_v8 = vmax.f32 %v2086_v30, 0.0  ;;  %v2088_v55 = vadd.f32 %v9373_v31, %v1825_v10  ;;  %v2343_v3 = vmax.f32 %v2087_v7, 0.0 }
 0x510   :  { %5547 = vst [vmem:[%s9951_s3 + $0x3c8] sm:$0xff] %v5268_v46   ;;  %v1828_v28 = vmul.f32 %v8784_v26, %v11421_v0  ;;  %v1829_v59 = vmul.f32 %v8784_v26, %v11422_v29  ;;  %v2089_v39 = vadd.f32 %v9373_v31, %v1826_v37  ;;  %v2090_v35 = vadd.f32 %v9373_v31, %v1827_v52 }
 0x511   :  { %5548 = vst [vmem:[%s9951_s3 + $0x3d0] sm:$0xff] %v5273_v58   ;;  %v5278_v4 = vpack.c.bf16 %v2342_v8, %v2341_v42  ;;  %v1830_v33 = vmul.f32 %v8784_v26, %v11423_v48  ;;  %v2344_v60 = vmax.f32 %v2088_v55, 0.0  ;;  %v1831_v24 = vmul.f32 %v8784_v26, %v11424_v15 }
 0x512   :  { %v2091_v18 = vadd.f32 %v9373_v31, %v1828_v28  ;;  %v2092_v27 = vadd.f32 %v9373_v31, %v1829_v59  ;;  %v2345_v54 = vmax.f32 %v2089_v39, 0.0  ;;  %v2346_v13 = vmax.f32 %v2090_v35, 0.0 }
 0x513   :  { %5549 = vst [vmem:[%s9951_s3 + $0x3d8] sm:$0xff] %v5278_v4   ;;  %v2093_v16 = vadd.f32 %v9373_v31, %v1830_v33  ;;  %v5283_v6 = vpack.c.bf16 %v2344_v60, %v2343_v3  ;;  %v2094_v14 = vadd.f32 %v9373_v31, %v1831_v24 }
 0x514   :  { %v2347_v9 = vmax.f32 %v2091_v18, 0.0  ;;  %v2348_v40 = vmax.f32 %v2092_v27, 0.0  ;;  %v5288_v17 = vpack.c.bf16 %v2346_v13, %v2345_v54 }
 0x515   :  { %v2349_v23 = vmax.f32 %v2093_v16, 0.0  ;;  %5550 = vst [vmem:[%s9951_s3 + $0x3e0] sm:$0xff] %v5283_v6   ;;  %v2350_v20 = vmax.f32 %v2094_v14, 0.0 }
 0x516   :  { %v5293_v26 = vpack.c.bf16 %v2348_v40, %v2347_v9  ;;  %5551 = vst [vmem:[%s9951_s3 + $0x3e8] sm:$0xff] %v5288_v17  }
 0x517   :  { %v5298_v2 = vpack.c.bf16 %v2350_v20, %v2349_v23 }
 0x518   :  { %5552 = vst [vmem:[%s9951_s3 + $0x3f0] sm:$0xff] %v5293_v26  }
 0x519   :  { %5553 = vst [vmem:[%s9951_s3 + $0x3f8] sm:$0xff] %v5298_v2  }

// kernel: generator_forward.17
= control target key start
LH: loop header
LB: loop body
LE: loop exit
PB: predicated region body
PF: predicated region fallthrough
CT: control target
= control target key end

     0   :  { %s863_s9 = smov 0   ;;  %s960_s0 = inlined_call_operand.vmem [shape: bf16[2304,128], index: 0, kind: input, shape index: {}]   ;;  %s961_s1 = inlined_call_operand.vmem [shape: bf16[128,128], index: 1, kind: input, shape index: {}]   ;;  %s962_s2 = inlined_call_operand.vmem [shape: f32[2304,128], index: 2, kind: output, shape index: {}]  }
   0x1 LB: > { %s621_s10 = sadd.s32 4294967295, %s846_s9   ;;  %p625_p0 = scmp.ge.s32.totalorder %s846_s9, 1  ;;  %s846_s9 = sphi %s863_s9, %s12_s9  }
   0x2   : > { %p113_p1 = scmp.lt.s32.totalorder %s846_s9, 10 }
   0x4   : > { %p114_p2 = pnand %p625_p0, %p113_p1 }
   0x5   : > { %v752_v0 = vld [vmem:[%s961_s1] sm:$0xff] (!%p114_p2)   ;;  %s626_s13 = sshll.u32 (!%p114_p2), %s621_s10, 5  ;;  %v753_v1 = vld [vmem:[%s961_s1 + $0x8] sm:$0xff] (!%p114_p2)   ;;  %v754_v2 = vld [vmem:[%s961_s1 + $0x10] sm:$0xff] (!%p114_p2)  }
   0x6   : > { %117 = sbr.rel (%p114_p2) target bundleno = 296 (0x128), region = 28  ;;  %p136_p3 = scmp.lt.s32.totalorder (!%p114_p2), %s626_s13, 287  ;;  %680 = vmatprep.subr.bf16.mxu0 (!%p114_p2), %v752_v0  ;;  %728 = vmatprep.subr.bf16.mxu1 (!%p114_p2), %v752_v0  ;;  %v755_v3 = vld [vmem:[%s961_s1 + $0x18] sm:$0xff] (!%p114_p2)   ;;  %v756_v6 = vld [vmem:[%s961_s1 + $0x20] sm:$0xff] (!%p114_p2)   ;;  %v757_v7 = vld [vmem:[%s961_s1 + $0x28] sm:$0xff] (!%p114_p2)  }
   0x7   : > { %681 = vmatpush3.bf16.msra.mxu0 (!%p114_p2), %v752_v0  ;;  %736 = vmatpush3.bf16.msra.mxu1 (!%p114_p2), %v752_v0  ;;  %v758_v8 = vld [vmem:[%s961_s1 + $0x30] sm:$0xff] (!%p114_p2)   ;;  %v759_v9 = vld [vmem:[%s961_s1 + $0x38] sm:$0xff] (!%p114_p2)  }
   0x8   : > { %682 = vmatprep.subr.bf16.mxu0 (!%p114_p2), %v753_v1  ;;  %729 = vmatprep.subr.bf16.mxu1 (!%p114_p2), %v753_v1 }
   0xb   : > { %683 = vmatpush3.bf16.msra.mxu0 (!%p114_p2), %v753_v1  ;;  %737 = vmatpush3.bf16.msra.mxu1 (!%p114_p2), %v753_v1 }
   0xc   : > { %684 = vmatprep.subr.bf16.mxu0 (!%p114_p2), %v754_v2  ;;  %730 = vmatprep.subr.bf16.mxu1 (!%p114_p2), %v754_v2 }
   0xd   : > { %s964_s13 = smov (!%p136_p3, %s626_s13), 287 }
   0xe   : > { %s627_s18 = sshll.u32 %s964_s13, 2  ;;  %s629_s4 = sshll.u32 %s964_s13, 3 }
   0xf   : > { %s886_s21 = scalar_lea.vmem %s960_s0, %s627_s18  ;;  %685 = vmatpush3.bf16.msra.mxu0 %v754_v2  ;;  %738 = vmatpush3.bf16.msra.mxu1 %v754_v2  ;;  %s923_s7 = scalar_lea.vmem %s962_s2, %s629_s4 }
  0x10   : > { %v760_v4 = vld [vmem:[%s886_s21] sm:$0xff]   ;;  %686 = vmatprep.subr.bf16.mxu0 %v755_v3  ;;  %731 = vmatprep.subr.bf16.mxu1 %v755_v3  ;;  %v762_v10 = vld [vmem:[%s886_s21 + $0x8] sm:$0xff]   ;;  %v764_v12 = vld [vmem:[%s886_s21 + $0x10] sm:$0xff]  }
  0x11   : > { %v761_v5 = vld [vmem:[%s886_s21 + $0x40] sm:$0xff]   ;;  %696 = vmatprep.mubr.bf16.mxu0 %v760_v4  ;;  %v763_v11 = vld [vmem:[%s886_s21 + $0x48] sm:$0xff]   ;;  %v765_v13 = vld [vmem:[%s886_s21 + $0x50] sm:$0xff]  }
  0x12   : > { %712 = vmatprep.mubr.bf16.mxu1 %v761_v5  ;;  %v766_v14 = vld [vmem:[%s886_s21 + $0x18] sm:$0xff]   ;;  %v768_v16 = vld [vmem:[%s886_s21 + $0x20] sm:$0xff]   ;;  %v770_v18 = vld [vmem:[%s886_s21 + $0x28] sm:$0xff]  }
  0x13   : > { %687 = vmatpush3.bf16.msra.mxu0 %v755_v3  ;;  %739 = vmatpush3.bf16.msra.mxu1 %v755_v3  ;;  %v767_v15 = vld [vmem:[%s886_s21 + $0x58] sm:$0xff]   ;;  %v769_v17 = vld [vmem:[%s886_s21 + $0x60] sm:$0xff]   ;;  %v771_v19 = vld [vmem:[%s886_s21 + $0x68] sm:$0xff]  }
  0x14   : > { %688 = vmatprep.subr.bf16.mxu0 %v756_v6  ;;  %732 = vmatprep.subr.bf16.mxu1 %v756_v6  ;;  %v772_v20 = vld [vmem:[%s886_s21 + $0x30] sm:$0xff]   ;;  %v774_v22 = vld [vmem:[%s886_s21 + $0x38] sm:$0xff]  }
  0x15   : > { %v773_v21 = vld [vmem:[%s886_s21 + $0x70] sm:$0xff]   ;;  %v775_v23 = vld [vmem:[%s886_s21 + $0x78] sm:$0xff]  }
  0x17   : > { %689 = vmatpush3.bf16.msra.mxu0 %v756_v6  ;;  %740 = vmatpush3.bf16.msra.mxu1 %v756_v6 }
  0x18   : > { %690 = vmatprep.subr.bf16.mxu0 %v757_v7  ;;  %733 = vmatprep.subr.bf16.mxu1 %v757_v7 }
  0x1b   : > { %691 = vmatpush3.bf16.msra.mxu0 %v757_v7  ;;  %741 = vmatpush3.bf16.msra.mxu1 %v757_v7 }
  0x1c   : > { %692 = vmatprep.subr.bf16.mxu0 %v758_v8  ;;  %734 = vmatprep.subr.bf16.mxu1 %v758_v8 }
  0x1f   : > { %693 = vmatpush3.bf16.msra.mxu0 %v758_v8  ;;  %742 = vmatpush3.bf16.msra.mxu1 %v758_v8 }
  0x20   : > { %694 = vmatprep.subr.bf16.mxu0 %v759_v9  ;;  %735 = vmatprep.subr.bf16.mxu1 %v759_v9 }
  0x23   : > { %695 = vmatpush3.bf16.msra.mxu0 %v759_v9  ;;  %743 = vmatpush3.bf16.msra.mxu1 %v759_v9 }
  0x26   : > { %697 = vmatmul.mubr.bf16.vlgmr.msra.gmra.mrb[0].mxu0 %v762_v10  ;;  %713 = vmatmul.mubr.bf16.vlgmr.msra.gmra.mrb[0].mxu1 %v763_v11 }
  0x27   : > { %700 = vmatprep.mubr.bf16.mxu0 %v764_v12  ;;  %716 = vmatprep.mubr.bf16.mxu1 %v765_v13 }
  0x2e   : > { %701 = vmatmul.mubr.bf16.gmra.mrb[4].mxu0 %v766_v14  ;;  %717 = vmatmul.mubr.bf16.gmra.mrb[4].mxu1 %v767_v15 }
  0x2f   : > { %704 = vmatprep.mubr.bf16.mxu0 %v768_v16  ;;  %720 = vmatprep.mubr.bf16.mxu1 %v769_v17 }
  0x36   : > { %705 = vmatmul.mubr.bf16.gmra.mrb[8].mxu0 %v770_v18  ;;  %721 = vmatmul.mubr.bf16.gmra.mrb[8].mxu1 %v771_v19 }
  0x37   : > { %708 = vmatprep.mubr.bf16.mxu0 %v772_v20  ;;  %724 = vmatprep.mubr.bf16.mxu1 %v773_v21 }
  0x3e   : > { %709 = vmatmul.mubr.bf16.gmra.mrb[12].mxu0 %v774_v22  ;;  %725 = vmatmul.mubr.bf16.gmra.mrb[12].mxu1 %v775_v23 }
  0xf9   : > { %v698_v24 = vpop.f32.mrb[0].mxu0  ;;  %v714_v25 = vpop.f32.mrb[0].mxu1 }
  0xfa   : > { %776 = vtanh.f32 %v698_v24  ;;  %v374_v26 = vpop.f32.mrb[1].mxu0  ;;  %v438_v27 = vpop.f32.mrb[1].mxu1 }
  0xfb   : > { %778 = vtanh.f32 %v714_v25  ;;  %v699_v28 = vpop.f32.mrb[2].mxu0  ;;  %v715_v29 = vpop.f32.mrb[2].mxu1 }
  0xfc   : > { %780 = vtanh.f32 %v374_v26  ;;  %v377_v30 = vpop.f32.mrb[3].mxu0  ;;  %v441_v31 = vpop.f32.mrb[3].mxu1 }
  0xfd   : > { %782 = vtanh.f32 %v438_v27 }
  0xfe   : > { %784 = vtanh.f32 %v699_v28 }
  0xff   : > { %786 = vtanh.f32 %v715_v29 }
 0x100   : > { %788 = vtanh.f32 %v377_v30 }
 0x101   : > { %790 = vtanh.f32 %v441_v31  ;;  %v702_v32 = vpop.f32.mrb[4].mxu0  ;;  %v718_v33 = vpop.f32.mrb[4].mxu1 }
 0x102   : > { %792 = vtanh.f32 %v702_v32  ;;  %v390_v34 = vpop.f32.mrb[5].mxu0  ;;  %v454_v35 = vpop.f32.mrb[5].mxu1 }
 0x103   : > { %794 = vtanh.f32 %v718_v33  ;;  %v703_v36 = vpop.f32.mrb[6].mxu0  ;;  %v719_v37 = vpop.f32.mrb[6].mxu1 }
 0x104   : > { %v777_v38 = vpop.eup %776  ;;  %796 = vtanh.f32 %v390_v34  ;;  %v393_v39 = vpop.f32.mrb[7].mxu0 }
 0x105   : > { %v457_v40 = vpop.f32.mrb[7].mxu1  ;;  %v779_v41 = vpop.eup %778  ;;  %535 = vst [vmem:[%s923_s7 + $0x10] sm:$0xff] %v777_v38  ;;  %798 = vtanh.f32 %v454_v35 }
 0x106   : > { %v781_v42 = vpop.eup %780  ;;  %551 = vst [vmem:[%s923_s7 + $0x90] sm:$0xff] %v779_v41  ;;  %800 = vtanh.f32 %v703_v36 }
 0x107   : > { %v783_v43 = vpop.eup %782  ;;  %533 = vst [vmem:[%s923_s7] sm:$0xff] %v781_v42  ;;  %802 = vtanh.f32 %v719_v37 }
 0x108   : > { %v785_v44 = vpop.eup %784  ;;  %549 = vst [vmem:[%s923_s7 + $0x80] sm:$0xff] %v783_v43  ;;  %804 = vtanh.f32 %v393_v39 }
 0x109   : > { %v787_v45 = vpop.eup %786  ;;  %536 = vst [vmem:[%s923_s7 + $0x18] sm:$0xff] %v785_v44  ;;  %806 = vtanh.f32 %v457_v40  ;;  %v706_v46 = vpop.f32.mrb[8].mxu0 }
 0x10a   : > { %v722_v47 = vpop.f32.mrb[8].mxu1  ;;  %v789_v48 = vpop.eup %788  ;;  %552 = vst [vmem:[%s923_s7 + $0x98] sm:$0xff] %v787_v45  ;;  %808 = vtanh.f32 %v706_v46 }
 0x10b   : > { %v406_v49 = vpop.f32.mrb[9].mxu0  ;;  %v470_v50 = vpop.f32.mrb[9].mxu1  ;;  %534 = vst [vmem:[%s923_s7 + $0x8] sm:$0xff] %v789_v48  ;;  %810 = vtanh.f32 %v722_v47 }
 0x10c   : > { %v791_v51 = vpop.eup %790  ;;  %v707_v52 = vpop.f32.mrb[10].mxu0  ;;  %812 = vtanh.f32 %v406_v49 }
 0x10d   : > { %v723_v53 = vpop.f32.mrb[10].mxu1  ;;  %v793_v54 = vpop.eup %792  ;;  %550 = vst [vmem:[%s923_s7 + $0x88] sm:$0xff] %v791_v51  ;;  %814 = vtanh.f32 %v470_v50 }
 0x10e   : > { %v409_v55 = vpop.f32.mrb[11].mxu0  ;;  %v473_v56 = vpop.f32.mrb[11].mxu1  ;;  %539 = vst [vmem:[%s923_s7 + $0x30] sm:$0xff] %v793_v54  ;;  %816 = vtanh.f32 %v707_v52 }
 0x10f   : > { %v795_v57 = vpop.eup %794  ;;  %818 = vtanh.f32 %v723_v53 }
 0x110   : > { %v797_v58 = vpop.eup %796  ;;  %555 = vst [vmem:[%s923_s7 + $0xb0] sm:$0xff] %v795_v57  ;;  %820 = vtanh.f32 %v409_v55 }
 0x111   : > { %v799_v59 = vpop.eup %798  ;;  %537 = vst [vmem:[%s923_s7 + $0x20] sm:$0xff] %v797_v58  ;;  %822 = vtanh.f32 %v473_v56  ;;  %v710_v62 = vpop.f32.mrb[12].mxu0 }
 0x112   : > { %v801_v60 = vpop.eup %800  ;;  %553 = vst [vmem:[%s923_s7 + $0xa0] sm:$0xff] %v799_v59  ;;  %v726_v63 = vpop.f32.mrb[12].mxu1  ;;  %824 = vtanh.f32 %v710_v62 }
 0x113   : > { %v803_v61 = vpop.eup %802  ;;  %540 = vst [vmem:[%s923_s7 + $0x38] sm:$0xff] %v801_v60  ;;  %v422_v1 = vpop.f32.mrb[13].mxu0  ;;  %826 = vtanh.f32 %v726_v63 }
 0x114   : > { %v805_v0 = vpop.eup %804  ;;  %556 = vst [vmem:[%s923_s7 + $0xb8] sm:$0xff] %v803_v61  ;;  %v486_v2 = vpop.f32.mrb[13].mxu1  ;;  %828 = vtanh.f32 %v422_v1 }
 0x115   : > { %v807_v3 = vpop.eup %806  ;;  %538 = vst [vmem:[%s923_s7 + $0x28] sm:$0xff] %v805_v0  ;;  %v711_v4 = vpop.f32.mrb[14].mxu0  ;;  %830 = vtanh.f32 %v486_v2 }
 0x116   : > { %v727_v5 = vpop.f32.mrb[14].mxu1  ;;  %v809_v6 = vpop.eup %808  ;;  %554 = vst [vmem:[%s923_s7 + $0xa8] sm:$0xff] %v807_v3  ;;  %832 = vtanh.f32 %v711_v4 }
 0x117   : > { %v425_v7 = vpop.f32.mrb[15].mxu0  ;;  %v489_v8 = vpop.f32.mrb[15].mxu1  ;;  %543 = vst [vmem:[%s923_s7 + $0x50] sm:$0xff] %v809_v6  ;;  %834 = vtanh.f32 %v727_v5 }
 0x118   : > { %v811_v9 = vpop.eup %810  ;;  %836 = vtanh.f32 %v425_v7 }
 0x119   : > { %v813_v10 = vpop.eup %812  ;;  %559 = vst [vmem:[%s923_s7 + $0xd0] sm:$0xff] %v811_v9  ;;  %838 = vtanh.f32 %v489_v8 }
 0x11a   : > { %v815_v11 = vpop.eup %814  ;;  %541 = vst [vmem:[%s923_s7 + $0x40] sm:$0xff] %v813_v10 }
 0x11b   : > { %v817_v12 = vpop.eup %816  ;;  %557 = vst [vmem:[%s923_s7 + $0xc0] sm:$0xff] %v815_v11 }
 0x11c   : > { %v819_v13 = vpop.eup %818  ;;  %544 = vst [vmem:[%s923_s7 + $0x58] sm:$0xff] %v817_v12 }
 0x11d   : > { %v821_v14 = vpop.eup %820  ;;  %560 = vst [vmem:[%s923_s7 + $0xd8] sm:$0xff] %v819_v13 }
 0x11e   : > { %v823_v15 = vpop.eup %822  ;;  %542 = vst [vmem:[%s923_s7 + $0x48] sm:$0xff] %v821_v14 }
 0x11f   : > { %v825_v16 = vpop.eup %824  ;;  %558 = vst [vmem:[%s923_s7 + $0xc8] sm:$0xff] %v823_v15 }
 0x120   : > { %v827_v17 = vpop.eup %826  ;;  %547 = vst [vmem:[%s923_s7 + $0x70] sm:$0xff] %v825_v16 }
 0x121   : > { %v829_v18 = vpop.eup %828  ;;  %563 = vst [vmem:[%s923_s7 + $0xf0] sm:$0xff] %v827_v17 }
 0x122   : > { %v831_v19 = vpop.eup %830  ;;  %545 = vst [vmem:[%s923_s7 + $0x60] sm:$0xff] %v829_v18 }
 0x123   : > { %v833_v20 = vpop.eup %832  ;;  %561 = vst [vmem:[%s923_s7 + $0xe0] sm:$0xff] %v831_v19 }
 0x124   : > { %v835_v21 = vpop.eup %834  ;;  %548 = vst [vmem:[%s923_s7 + $0x78] sm:$0xff] %v833_v20 }
 0x125   : > { %v837_v22 = vpop.eup %836  ;;  %564 = vst [vmem:[%s923_s7 + $0xf8] sm:$0xff] %v835_v21 }
 0x126   : > { %v839_v23 = vpop.eup %838  ;;  %546 = vst [vmem:[%s923_s7 + $0x68] sm:$0xff] %v837_v22 }
 0x127   : > { %562 = vst [vmem:[%s923_s7 + $0xe8] sm:$0xff] %v839_v23 }
 0x128 PF: > { %s12_s9 = sadd.s32 1, %s846_s9  }
 0x129   : > { %p9_p4 = scmp.ge.s32.totalorder %s12_s9, 11  }
 0x12b   :  { %11 = sbr.rel (!%p9_p4) target bundleno = 1 (0x1), region = 58 }

</bundles_post_ra>
